<compile_context>
chip_gen: v7x
topology: tpu7x:2x2x1
jax: 0.10.0
libtpu: 0.0.40
codegen_flags: <defaults>
</compile_context>

<pallas_src>
import math

import jax
import jax.numpy as jnp
from jax.experimental import pallas as pl
from jax.experimental.pallas import tpu as pltpu


def cd_kernel(x_ref, a_ref, y_ref):
    """One (column-tile j, row-tile k) step of y = x @ (Ar + i*Ai), all real bf16 matmuls.

    x_ref : (4, tk)     bf16, rows = [Re_hi, Im_hi, Re_lo, Im_lo] of the input signal
    a_ref : (2, tk, tn) bf16, [Re(A), Im(A)] row/column tile of the circulant operator
    y_ref : (2, tn)     f32,  rows = [Re(y), Im(y)], accumulated in place across the k axis
    """
    x = x_ref[...]                                                   # (4, tk) bf16
    ar = a_ref[0]                                                    # (tk, tn) bf16
    ai = a_ref[1]                                                    # (tk, tn) bf16
    # Single-pass bf16 MXU matmuls with f32 accumulation.
    pr = jnp.dot(x, ar, preferred_element_type=jnp.float32)         # (4, tn)
    pi = jnp.dot(x, ai, preferred_element_type=jnp.float32)         # (4, tn)
    # Recombine hi+lo rows: x_re ~ row0+row2, x_im ~ row1+row3.
    # y_re = xr@Ar - xi@Ai ; y_im = xr@Ai + xi@Ar
    yr = (pr[0:1] + pr[2:3]) - (pi[1:2] + pi[3:4])
    yi = (pi[0:1] + pi[2:3]) + (pr[1:2] + pr[3:4])

    k = pl.program_id(1)

    @pl.when(k == 0)
    def _():
        y_ref[0:1, :] = yr
        y_ref[1:2, :] = yi

    @pl.when(k != 0)
    def _():
        y_ref[0:1, :] = y_ref[0:1, :] + yr
        y_ref[1:2, :] = y_ref[1:2, :] + yi


def _round_up(x, m):
    return ((x + m - 1) // m) * m


def _vmem_limit_bytes():
    """Generation-aware scoped-VMEM limit (v7x has only 64 MiB physical VMEM)."""
    try:
        cap = int(pltpu.get_tpu_info().vmem_capacity_bytes)
    except Exception:
        cap = 64 << 20  # conservative default (v7x physical VMEM)
    return max(32 << 20, min(cap, 128 << 20) - (16 << 20))


def _tile_bytes(tk, tn):
    """Approx resident VMEM for one grid step: double-buffered bf16 [Ar|Ai] tile,
    double-buffered bf16 x tile, resident f32 output tile (x2 for safety)."""
    return 2 * (2 * tk * tn * 2) + 2 * (4 * tk * 2) + 2 * (2 * tn * 4)


def _choose_tiling(N, budget_bytes):
    """Return (N_pad, Nk_pad, tn, tk): lane-dense column padding, row padding,
    column tile, row (reduction) tile."""
    N_pad = max(128, _round_up(N, 128))
    # Prefer full reduction (tk = N) with the biggest lane-dense column tile that fits.
    for tn in (2048, 1024, 512, 256, 128):
        if N_pad % tn == 0 and _tile_bytes(N, tn) <= budget_bytes:
            return N_pad, N, tn, N
    # Even tn=128 with full K overflows VMEM (very large N, e.g. v7x): block the row axis.
    tn = 128
    nk = 2
    while True:
        tk = _round_up(pl.cdiv(N, nk), 128)
        if _tile_bytes(tk, tn) <= budget_bytes or tk == 128:
            return N_pad, nk * tk, tn, tk
        nk *= 2


def _dimension_semantics():
    """v7x has 2 TensorCores/chip: shard the column-tile axis across them with CORE_PARALLEL.
    Plain "parallel" does not change codegen on single-TC chips (v5e/v6e)."""
    try:
        kind = jax.devices()[0].device_kind.lower()
    except Exception:
        kind = ""
    if "v7" in kind or "7x" in kind:
        return (pltpu.CORE_PARALLEL, pltpu.ARBITRARY)
    return ("parallel", "arbitrary")


def _build_cd_fn(N, N_pad, Nk_pad, tn, tk, semantics, vmem_limit):
    nj = N_pad // tn
    nk = Nk_pad // tk
    call = pl.pallas_call(
        cd_kernel,
        grid=(nj, nk),
        in_specs=[
            pl.BlockSpec((4, tk), lambda j, k: (0, k)),          # hi/lo Re/Im input rows
            pl.BlockSpec((2, tk, tn), lambda j, k: (0, k, j)),   # fused [Re(A), Im(A)] tile
        ],
        out_specs=pl.BlockSpec((2, tn), lambda j, k: (0, j)),    # resident f32 accumulator
        out_shape=jax.ShapeDtypeStruct((2, N_pad), jnp.float32),
        compiler_params=pltpu.CompilerParams(
            dimension_semantics=semantics,
            vmem_limit_bytes=vmem_limit,
        ),
    )

    @jax.jit
    def fn(xr, xi, a):
        # Error-compensated bf16 split of the (tiny) input operand: removes x-quantization
        # error while keeping single-pass bf16 weights (A) for the bandwidth-bound side.
        xr_hi = xr.astype(jnp.bfloat16)
        xi_hi = xi.astype(jnp.bfloat16)
        xr_lo = (xr - xr_hi.astype(jnp.float32)).astype(jnp.bfloat16)
        xi_lo = (xi - xi_hi.astype(jnp.float32)).astype(jnp.bfloat16)
        x4 = jnp.stack([xr_hi, xi_hi, xr_lo, xi_lo], axis=0)     # (4, N) bf16
        if Nk_pad > N:
            x4 = jnp.pad(x4, ((0, 0), (0, Nk_pad - N)))
        y2 = call(x4, a)                                          # (2, N_pad) f32
        y = (y2[0, :N] + 1j * y2[1, :N]).astype(jnp.complex64)
        return y[None, :]                                         # (1, N) complex64

    return fn


class ChromaticDispersionPallas:
    """JAX/Pallas port of the PyTorch ChromaticDispersion module."""

    def __init__(self, D, L, Lambda, fs, name="CD impairement"):
        # NOTE: the torch module stores D as float16; we keep float32 here (negligible diff,
        # and the in-script reference uses the same float32 constant).
        self.D = float(D)
        self.L = float(L)
        self.Lambda = float(Lambda)
        self.fs = float(fs)
        self.name = name
        self.c = 300000000.0
        self._cache = {}  # N -> [A (device, bf16), fn, build params, validated flag]

    def _transfer_fn(self, N):
        """H = exp(-1j*K*w^2) with w = 2*pi*fftshift(linspace(-fs/2, fs/2, N))/fs."""
        f = jnp.fft.fftshift(
            jnp.linspace(-self.fs / 2.0, self.fs / 2.0, N, dtype=jnp.float32))
        w = (2.0 * jnp.pi / jnp.float32(self.fs)) * f
        K = jnp.float32(self.D * self.L * self.Lambda ** 2
                        / (4.0 * math.pi * self.c * (1.0 / self.fs) ** 2))
        return jnp.exp(-1j * (K * w * w))                        # complex64, |H| = 1

    def _fused_operator(self, N, Nk_pad, N_pad):
        """Circulant operator A with A[n, m] = ifft(H)[(m - n) mod N], so y = x @ A equals
        ifft(H * fft(x)) (1/N folded in).  Stored as a fused bf16 [Re, Im] stack, zero-padded
        to (2, Nk_pad, N_pad)."""
        Hf = self._transfer_fn(N)
        h = jnp.fft.ifft(Hf)                                     # impulse response, complex64
        n = jnp.arange(N, dtype=jnp.int32)
        idx = jnp.mod(n[None, :] - n[:, None], N)                # (row n, col m) -> (m-n) mod N
        A = jnp.take(h, idx, axis=0)                             # (N, N) complex64 circulant
        A2 = jnp.stack([jnp.real(A), jnp.imag(A)], axis=0)       # (2, N, N) f32
        A2 = jnp.pad(A2, ((0, 0), (0, Nk_pad - N), (0, N_pad - N)))
        return A2.astype(jnp.bfloat16)

    def _get(self, N):
        if N not in self._cache:
            limit = _vmem_limit_bytes()
            budget = max(16 << 20, limit - (8 << 20))
            N_pad, Nk_pad, tn, tk = _choose_tiling(N, budget)
            A2 = jax.device_put(self._fused_operator(N, Nk_pad, N_pad))
            params = (N, N_pad, Nk_pad, tn, tk)
            fn = _build_cd_fn(*params, _dimension_semantics(), limit)
            self._cache[N] = [A2, fn, params, False]
        return self._cache[N]

    def __call__(self, input_data):
        x_flat = jnp.ravel(input_data)
        N = int(x_flat.shape[0])
        entry = self._get(N)
        A2, fn, params, validated = entry
        xr = jnp.real(x_flat).astype(jnp.float32)
        xi = jnp.imag(x_flat).astype(jnp.float32)
        if not validated:
            try:
                out = jax.block_until_ready(fn(xr, xi, A2))
            except Exception:
                # e.g. CORE_PARALLEL not supported by this chip/runtime: rebuild conservatively.
                fn = _build_cd_fn(*params, ("arbitrary", "arbitrary"), _vmem_limit_bytes())
                entry[1] = fn
                out = jax.block_until_ready(fn(xr, xi, A2))
            entry[3] = True
            return out
        return fn(xr, xi, A2)


if __name__ == "__main__":
    key = jax.random.PRNGKey(0)
    k1, k2 = jax.random.split(key)
    B, Cc, Hh, Ww = 2, 4, 8, 16  # N = 1024 after flatten
    x_re = jax.random.normal(k1, (B, Cc, Hh, Ww), dtype=jnp.float32)
    x_im = jax.random.normal(k2, (B, Cc, Hh, Ww), dtype=jnp.float32)
    x = (x_re + 1j * x_im).astype(jnp.complex64)

    # Deterministic fiber parameters (typical SMF): D=17 ps/nm/km, L=80 km, 1550 nm, 32 GS/s
    cd = ChromaticDispersionPallas(D=17e-6, L=80e3, Lambda=1550e-9, fs=32e9)

    out = cd(x)
    out = jax.block_until_ready(out)

    # Pure-JAX FFT reference for sanity check
    x_flat = jnp.ravel(x)
    N = x_flat.shape[0]
    fs = jnp.float32(32e9)
    f = jnp.fft.fftshift(jnp.linspace(-fs / 2, fs / 2, N, dtype=jnp.float32))
    w = 2.0 * jnp.pi * f / fs
    K = (jnp.float32(17e-6) * jnp.float32(80e3) * jnp.float32(1550e-9) ** 2
         / (4.0 * jnp.pi * jnp.float32(3e8) * (1.0 / fs) ** 2))
    Hf = jnp.exp(-1j * K * w * w)
    ref = jnp.fft.ifft(Hf * jnp.fft.fft(x_flat))[None, :]

    assert out.shape == (1, N) and out.dtype == jnp.complex64
    max_err = float(jnp.max(jnp.abs(out - ref)))
    assert max_err < 1e-2, f"max abs error {max_err}"
    print("KERNEL_OK")
</pallas_src>

<mosaic_0001>
module attributes {stable_mosaic.version = 11 : i64} {
  func.func @cd_kernel(%arg0: i32, %arg1: i32, %arg2: memref<4x1024xbf16, #tpu.memory_space<vmem>>, %arg3: memref<2x1024x1024xbf16, #tpu.memory_space<vmem>>, %arg4: memref<2x1024xf32, #tpu.memory_space<vmem>>) attributes {dimension_semantics = [#tpu.dimension_semantics<parallel>, #tpu.dimension_semantics<arbitrary>], iteration_bounds = array<i64: 1, 1>, scalar_prefetch = 0 : i64, scratch_operands = 0 : i64, tpu.core_type = #tpu.core_type<tc>, window_params = [{transform_indices = @transform_0, window_bounds = array<i64: 4, 1024>}, {transform_indices = @transform_1, window_bounds = array<i64: 2, 1024, 1024>}, {transform_indices = @transform_2, window_bounds = array<i64: 2, 1024>}]} {
    %c0 = arith.constant 0 : index
    %c0_0 = arith.constant 0 : index
    %0 = vector.load %arg2[%c0, %c0_0] : memref<4x1024xbf16, #tpu.memory_space<vmem>>, vector<4x1024xbf16>
    %c0_1 = arith.constant 0 : index
    %c0_2 = arith.constant 0 : index
    %c0_3 = arith.constant 0 : index
    %1 = vector.load %arg3[%c0_1, %c0_2, %c0_3] : memref<2x1024x1024xbf16, #tpu.memory_space<vmem>>, vector<1x1024x1024xbf16>
    %2 = vector.shape_cast %1 : vector<1x1024x1024xbf16> to vector<1024x1024xbf16>
    %c1 = arith.constant 1 : index
    %c0_4 = arith.constant 0 : index
    %c0_5 = arith.constant 0 : index
    %3 = vector.load %arg3[%c1, %c0_4, %c0_5] : memref<2x1024x1024xbf16, #tpu.memory_space<vmem>>, vector<1x1024x1024xbf16>
    %4 = vector.shape_cast %3 : vector<1x1024x1024xbf16> to vector<1024x1024xbf16>
    %cst = arith.constant dense<0.000000e+00> : vector<4x1024xf32>
    %5 = tpu.matmul %0, %2, %cst {dimension_numbers = #tpu.dot_dimension_numbers<[1], [0], [0], [1], [0, 0, 1, 1], [], []>} : vector<4x1024xbf16>, vector<1024x1024xbf16>, vector<4x1024xf32> -> vector<4x1024xf32>
    %cst_6 = arith.constant dense<0.000000e+00> : vector<4x1024xf32>
    %6 = tpu.matmul %0, %4, %cst_6 {dimension_numbers = #tpu.dot_dimension_numbers<[1], [0], [0], [1], [0, 0, 1, 1], [], []>} : vector<4x1024xbf16>, vector<1024x1024xbf16>, vector<4x1024xf32> -> vector<4x1024xf32>
    %7 = vector.extract_strided_slice %5 {offsets = [0, 0], sizes = [1, 1024], strides = [1, 1]} : vector<4x1024xf32> to vector<1x1024xf32>
    %8 = vector.extract_strided_slice %5 {offsets = [2, 0], sizes = [1, 1024], strides = [1, 1]} : vector<4x1024xf32> to vector<1x1024xf32>
    %9 = arith.addf %7, %8 : vector<1x1024xf32>
    %10 = vector.extract_strided_slice %6 {offsets = [1, 0], sizes = [1, 1024], strides = [1, 1]} : vector<4x1024xf32> to vector<1x1024xf32>
    %11 = vector.extract_strided_slice %6 {offsets = [3, 0], sizes = [1, 1024], strides = [1, 1]} : vector<4x1024xf32> to vector<1x1024xf32>
    %12 = arith.addf %10, %11 : vector<1x1024xf32>
    %13 = arith.subf %9, %12 : vector<1x1024xf32>
    %14 = vector.extract_strided_slice %6 {offsets = [0, 0], sizes = [1, 1024], strides = [1, 1]} : vector<4x1024xf32> to vector<1x1024xf32>
    %15 = vector.extract_strided_slice %6 {offsets = [2, 0], sizes = [1, 1024], strides = [1, 1]} : vector<4x1024xf32> to vector<1x1024xf32>
    %16 = arith.addf %14, %15 : vector<1x1024xf32>
    %17 = vector.extract_strided_slice %5 {offsets = [1, 0], sizes = [1, 1024], strides = [1, 1]} : vector<4x1024xf32> to vector<1x1024xf32>
    %18 = vector.extract_strided_slice %5 {offsets = [3, 0], sizes = [1, 1024], strides = [1, 1]} : vector<4x1024xf32> to vector<1x1024xf32>
    %19 = arith.addf %17, %18 : vector<1x1024xf32>
    %20 = arith.addf %16, %19 : vector<1x1024xf32>
    %c0_i32 = arith.constant 0 : i32
    %21 = arith.cmpi eq, %arg1, %c0_i32 : i32
    %22 = arith.extui %21 : i1 to i32
    %c0_i32_7 = arith.constant 0 : i32
    %23 = arith.cmpi ne, %22, %c0_i32_7 : i32
    scf.if %23 {
      %c0_10 = arith.constant 0 : index
      %c0_11 = arith.constant 0 : index
      %27 = vector.load %arg4[%c0_10, %c0_11] : memref<2x1024xf32, #tpu.memory_space<vmem>>, vector<1x1024xf32>
      tpu.vector_store %arg4[%c0_10, %c0_11], %13 {strides = array<i32>} : memref<2x1024xf32, #tpu.memory_space<vmem>>, vector<1x1024xf32>,
      %c1_12 = arith.constant 1 : index
      %c0_13 = arith.constant 0 : index
      %28 = vector.load %arg4[%c1_12, %c0_13] : memref<2x1024xf32, #tpu.memory_space<vmem>>, vector<1x1024xf32>
      tpu.vector_store %arg4[%c1_12, %c0_13], %20 {strides = array<i32>} : memref<2x1024xf32, #tpu.memory_space<vmem>>, vector<1x1024xf32>,
    } else {
    }
    %c0_i32_8 = arith.constant 0 : i32
    %24 = arith.cmpi ne, %arg1, %c0_i32_8 : i32
    %25 = arith.extui %24 : i1 to i32
    %c0_i32_9 = arith.constant 0 : i32
    %26 = arith.cmpi ne, %25, %c0_i32_9 : i32
    scf.if %26 {
      %c0_10 = arith.constant 0 : index
      %c0_11 = arith.constant 0 : index
      %27 = vector.load %arg4[%c0_10, %c0_11] : memref<2x1024xf32, #tpu.memory_space<vmem>>, vector<1x1024xf32>
      %28 = arith.addf %27, %13 : vector<1x1024xf32>
      %c0_12 = arith.constant 0 : index
      %c0_13 = arith.constant 0 : index
      %29 = vector.load %arg4[%c0_12, %c0_13] : memref<2x1024xf32, #tpu.memory_space<vmem>>, vector<1x1024xf32>
      tpu.vector_store %arg4[%c0_12, %c0_13], %28 {strides = array<i32>} : memref<2x1024xf32, #tpu.memory_space<vmem>>, vector<1x1024xf32>,
      %c1_14 = arith.constant 1 : index
      %c0_15 = arith.constant 0 : index
      %30 = vector.load %arg4[%c1_14, %c0_15] : memref<2x1024xf32, #tpu.memory_space<vmem>>, vector<1x1024xf32>
      %31 = arith.addf %30, %20 : vector<1x1024xf32>
      %c1_16 = arith.constant 1 : index
      %c0_17 = arith.constant 0 : index
      %32 = vector.load %arg4[%c1_16, %c0_17] : memref<2x1024xf32, #tpu.memory_space<vmem>>, vector<1x1024xf32>
      tpu.vector_store %arg4[%c1_16, %c0_17], %31 {strides = array<i32>} : memref<2x1024xf32, #tpu.memory_space<vmem>>, vector<1x1024xf32>,
    } else {
    }
    return
  }
  func.func @transform_0(%arg0: i32, %arg1: i32) -> (i32, i32) {
    %c0_i32 = arith.constant 0 : i32
    %c0_i32_0 = arith.constant 0 : i32
    return %c0_i32, %arg1 : i32, i32
  }
  func.func @transform_1(%arg0: i32, %arg1: i32) -> (i32, i32, i32) {
    %c0_i32 = arith.constant 0 : i32
    %c0_i32_0 = arith.constant 0 : i32
    return %c0_i32, %arg1, %arg0 : i32, i32, i32
  }
  func.func @transform_2(%arg0: i32, %arg1: i32) -> (i32, i32) {
    %c0_i32 = arith.constant 0 : i32
    %c0_i32_0 = arith.constant 0 : i32
    return %c0_i32, %arg0 : i32, i32
  }
}

module attributes {stable_mosaic.version = 11 : i64} {
  func.func @cd_kernel(%arg0: i32, %arg1: i32, %arg2: memref<4x1024xbf16, #tpu.memory_space<vmem>>, %arg3: memref<2x1024x1024xbf16, #tpu.memory_space<vmem>>, %arg4: memref<2x1024xf32, #tpu.memory_space<vmem>>) attributes {dimension_semantics = [#tpu.dimension_semantics<arbitrary>, #tpu.dimension_semantics<arbitrary>], iteration_bounds = array<i64: 1, 1>, scalar_prefetch = 0 : i64, scratch_operands = 0 : i64, tpu.core_type = #tpu.core_type<tc>, window_params = [{transform_indices = @transform_0, window_bounds = array<i64: 4, 1024>}, {transform_indices = @transform_1, window_bounds = array<i64: 2, 1024, 1024>}, {transform_indices = @transform_2, window_bounds = array<i64: 2, 1024>}]} {
    %c0 = arith.constant 0 : index
    %c0_0 = arith.constant 0 : index
    %0 = vector.load %arg2[%c0, %c0_0] : memref<4x1024xbf16, #tpu.memory_space<vmem>>, vector<4x1024xbf16>
    %c0_1 = arith.constant 0 : index
    %c0_2 = arith.constant 0 : index
    %c0_3 = arith.constant 0 : index
    %1 = vector.load %arg3[%c0_1, %c0_2, %c0_3] : memref<2x1024x1024xbf16, #tpu.memory_space<vmem>>, vector<1x1024x1024xbf16>
    %2 = vector.shape_cast %1 : vector<1x1024x1024xbf16> to vector<1024x1024xbf16>
    %c1 = arith.constant 1 : index
    %c0_4 = arith.constant 0 : index
    %c0_5 = arith.constant 0 : index
    %3 = vector.load %arg3[%c1, %c0_4, %c0_5] : memref<2x1024x1024xbf16, #tpu.memory_space<vmem>>, vector<1x1024x1024xbf16>
    %4 = vector.shape_cast %3 : vector<1x1024x1024xbf16> to vector<1024x1024xbf16>
    %cst = arith.constant dense<0.000000e+00> : vector<4x1024xf32>
    %5 = tpu.matmul %0, %2, %cst {dimension_numbers = #tpu.dot_dimension_numbers<[1], [0], [0], [1], [0, 0, 1, 1], [], []>} : vector<4x1024xbf16>, vector<1024x1024xbf16>, vector<4x1024xf32> -> vector<4x1024xf32>
    %cst_6 = arith.constant dense<0.000000e+00> : vector<4x1024xf32>
    %6 = tpu.matmul %0, %4, %cst_6 {dimension_numbers = #tpu.dot_dimension_numbers<[1], [0], [0], [1], [0, 0, 1, 1], [], []>} : vector<4x1024xbf16>, vector<1024x1024xbf16>, vector<4x1024xf32> -> vector<4x1024xf32>
    %7 = vector.extract_strided_slice %5 {offsets = [0, 0], sizes = [1, 1024], strides = [1, 1]} : vector<4x1024xf32> to vector<1x1024xf32>
    %8 = vector.extract_strided_slice %5 {offsets = [2, 0], sizes = [1, 1024], strides = [1, 1]} : vector<4x1024xf32> to vector<1x1024xf32>
    %9 = arith.addf %7, %8 : vector<1x1024xf32>
    %10 = vector.extract_strided_slice %6 {offsets = [1, 0], sizes = [1, 1024], strides = [1, 1]} : vector<4x1024xf32> to vector<1x1024xf32>
    %11 = vector.extract_strided_slice %6 {offsets = [3, 0], sizes = [1, 1024], strides = [1, 1]} : vector<4x1024xf32> to vector<1x1024xf32>
    %12 = arith.addf %10, %11 : vector<1x1024xf32>
    %13 = arith.subf %9, %12 : vector<1x1024xf32>
    %14 = vector.extract_strided_slice %6 {offsets = [0, 0], sizes = [1, 1024], strides = [1, 1]} : vector<4x1024xf32> to vector<1x1024xf32>
    %15 = vector.extract_strided_slice %6 {offsets = [2, 0], sizes = [1, 1024], strides = [1, 1]} : vector<4x1024xf32> to vector<1x1024xf32>
    %16 = arith.addf %14, %15 : vector<1x1024xf32>
    %17 = vector.extract_strided_slice %5 {offsets = [1, 0], sizes = [1, 1024], strides = [1, 1]} : vector<4x1024xf32> to vector<1x1024xf32>
    %18 = vector.extract_strided_slice %5 {offsets = [3, 0], sizes = [1, 1024], strides = [1, 1]} : vector<4x1024xf32> to vector<1x1024xf32>
    %19 = arith.addf %17, %18 : vector<1x1024xf32>
    %20 = arith.addf %16, %19 : vector<1x1024xf32>
    %c0_i32 = arith.constant 0 : i32
    %21 = arith.cmpi eq, %arg1, %c0_i32 : i32
    %22 = arith.extui %21 : i1 to i32
    %c0_i32_7 = arith.constant 0 : i32
    %23 = arith.cmpi ne, %22, %c0_i32_7 : i32
    scf.if %23 {
      %c0_10 = arith.constant 0 : index
      %c0_11 = arith.constant 0 : index
      %27 = vector.load %arg4[%c0_10, %c0_11] : memref<2x1024xf32, #tpu.memory_space<vmem>>, vector<1x1024xf32>
      tpu.vector_store %arg4[%c0_10, %c0_11], %13 {strides = array<i32>} : memref<2x1024xf32, #tpu.memory_space<vmem>>, vector<1x1024xf32>,
      %c1_12 = arith.constant 1 : index
      %c0_13 = arith.constant 0 : index
      %28 = vector.load %arg4[%c1_12, %c0_13] : memref<2x1024xf32, #tpu.memory_space<vmem>>, vector<1x1024xf32>
      tpu.vector_store %arg4[%c1_12, %c0_13], %20 {strides = array<i32>} : memref<2x1024xf32, #tpu.memory_space<vmem>>, vector<1x1024xf32>,
    } else {
    }
    %c0_i32_8 = arith.constant 0 : i32
    %24 = arith.cmpi ne, %arg1, %c0_i32_8 : i32
    %25 = arith.extui %24 : i1 to i32
    %c0_i32_9 = arith.constant 0 : i32
    %26 = arith.cmpi ne, %25, %c0_i32_9 : i32
    scf.if %26 {
      %c0_10 = arith.constant 0 : index
      %c0_11 = arith.constant 0 : index
      %27 = vector.load %arg4[%c0_10, %c0_11] : memref<2x1024xf32, #tpu.memory_space<vmem>>, vector<1x1024xf32>
      %28 = arith.addf %27, %13 : vector<1x1024xf32>
      %c0_12 = arith.constant 0 : index
      %c0_13 = arith.constant 0 : index
      %29 = vector.load %arg4[%c0_12, %c0_13] : memref<2x1024xf32, #tpu.memory_space<vmem>>, vector<1x1024xf32>
      tpu.vector_store %arg4[%c0_12, %c0_13], %28 {strides = array<i32>} : memref<2x1024xf32, #tpu.memory_space<vmem>>, vector<1x1024xf32>,
      %c1_14 = arith.constant 1 : index
      %c0_15 = arith.constant 0 : index
      %30 = vector.load %arg4[%c1_14, %c0_15] : memref<2x1024xf32, #tpu.memory_space<vmem>>, vector<1x1024xf32>
      %31 = arith.addf %30, %20 : vector<1x1024xf32>
      %c1_16 = arith.constant 1 : index
      %c0_17 = arith.constant 0 : index
      %32 = vector.load %arg4[%c1_16, %c0_17] : memref<2x1024xf32, #tpu.memory_space<vmem>>, vector<1x1024xf32>
      tpu.vector_store %arg4[%c1_16, %c0_17], %31 {strides = array<i32>} : memref<2x1024xf32, #tpu.memory_space<vmem>>, vector<1x1024xf32>,
    } else {
    }
    return
  }
  func.func @transform_0(%arg0: i32, %arg1: i32) -> (i32, i32) {
    %c0_i32 = arith.constant 0 : i32
    %c0_i32_0 = arith.constant 0 : i32
    return %c0_i32, %arg1 : i32, i32
  }
  func.func @transform_1(%arg0: i32, %arg1: i32) -> (i32, i32, i32) {
    %c0_i32 = arith.constant 0 : i32
    %c0_i32_0 = arith.constant 0 : i32
    return %c0_i32, %arg1, %arg0 : i32, i32, i32
  }
  func.func @transform_2(%arg0: i32, %arg1: i32) -> (i32, i32) {
    %c0_i32 = arith.constant 0 : i32
    %c0_i32_0 = arith.constant 0 : i32
    return %c0_i32, %arg0 : i32, i32
  }
}

</mosaic_0001>

<bundles_post_ra>
// kernel: custom-call
= control target key start
LH: loop header
LB: loop body
LE: loop exit
PB: predicated region body
PF: predicated region fallthrough
CT: control target
= control target key end

     0   :  { %s126_s0 = inlined_call_operand.vmem [shape: f32[1,1024], index: 0, kind: input, shape index: {}]   ;;  %s127_s1 = inlined_call_operand.vmem [shape: f32[1,1024], index: 1, kind: input, shape index: {}]   ;;  %s128_s2 = inlined_call_operand.hbm [shape: c64[1,1024], index: 2, kind: output, shape index: {}]  }
   0x1   :  { %s87_s11 = scalar_lea.hbm %s128_s2, 128 }
   0x2   :  { %4 = vsyncpa [#allocation0], 0  ;;  %s5_s14 = sshll.u32 %s126_s0, 4  ;;  %s6_s14 = int_to_ptr.vmem [resolvable:$true] %s5_s14 }
   0x3   :  { %s18_s15 = scalar_lea.vmem %s6_s14, 128  ;;  %p23_p1 = scmp.lt.s32.totalorder %s6_s14, %s6_s14 }
   0x4   :  { %p19_p0 = scmp.ne.s32.totalorder %s6_s14, %s18_s15  ;;  %p24_p2 = scmp.lt.s32.totalorder %s18_s15, %s18_s15 }
   0x6   :  { %p25_p3 = por %p24_p2, %p23_p1 }
   0x8   :  { %p26_p4 = pnand %p25_p3, %p19_p0 }
   0xa   :  { %29 = shalt.err (!%p26_p4)  }
   0xb   :  { %p31_p5 = scmp.ne.s32.totalorder %s128_s2, %s87_s11  ;;  %s32_s0 = scalar_lea.hbm %s128_s2, 256 }
   0xc   :  { %p33_p6 = scmp.lt.u32.totalorder %s32_s0, %s87_s11  ;;  %p34_p7 = scmp.lt.u32.totalorder %s87_s11, %s128_s2 }
   0xe   :  { %p35_p8 = por %p34_p7, %p33_p6 }
  0x10   :  { %p36_p9 = pnand %p35_p8, %p31_p5 }
  0x12   :  { %39 = shalt.err (!%p36_p9)  }
  0x13   :  { %8 = dma.vmem_to_hbm [thread:$0]  %s6_s14, 128, %s128_s2, [#allocation0] }
  0x14   :  { %65 = dma.done.wait [#allocation0], 128  }
  0x15   :  { %66 = vsyncadd [#allocation0], 4294967168 }
  0x16   :  { %10 = vsyncpa [#allocation0], 1 }
  0x17   :  { %11 = vsyncpa [#allocation1], 0  ;;  %s12_s28 = sshll.u32 %s127_s1, 4  ;;  %s13_s28 = int_to_ptr.vmem [resolvable:$true] %s12_s28 }
  0x18   :  { %s40_s29 = scalar_lea.vmem %s13_s28, 128  ;;  %p45_p11 = scmp.lt.s32.totalorder %s13_s28, %s13_s28 }
  0x19   :  { %p41_p10 = scmp.ne.s32.totalorder %s13_s28, %s40_s29  ;;  %p46_p12 = scmp.lt.s32.totalorder %s40_s29, %s40_s29 }
  0x1b   :  { %p47_p13 = por %p46_p12, %p45_p11 }
  0x1d   :  { %p48_p0 = pnand %p47_p13, %p41_p10 }
  0x1f   :  { %51 = shalt.err (!%p48_p0)  }
  0x20   :  { %p53_p1 = scmp.ne.s32.totalorder %s87_s11, %s32_s0  ;;  %p56_p2 = scmp.lt.u32.totalorder %s32_s0, %s32_s0 }
  0x22   :  { %p57_p3 = por %p56_p2, %p34_p7 }
  0x24   :  { %p59_p4 = por %p57_p3, %p33_p6 }
  0x26   :  { %p60_p5 = pnand %p59_p4, %p53_p1 }
  0x28   :  { %63 = shalt.err (!%p60_p5)  }
  0x29   :  { %15 = dma.vmem_to_hbm [thread:$0]  %s13_s28, 128, %s87_s11, [#allocation1] }
  0x2a   :  { %67 = dma.done.wait [#allocation1], 128  }
  0x2b   :  { %68 = vsyncadd [#allocation1], 4294967168 }
  0x2c   :  { %17 = vsyncpa [#allocation1], 1 }

// kernel: fn.1
= control target key start
LH: loop header
LB: loop body
LE: loop exit
PB: predicated region body
PF: predicated region fallthrough
CT: control target
= control target key end

     0   :  { %7 = vsyncpa [#allocation3], 0  ;;  %s9065_s9 = smov [#allocation2]   ;;  %s9297_s0 = inlined_call_operand.vmem [shape: bf16[4,1024], index: 0, kind: input, shape index: {}]   ;;  %s9298_s1 = inlined_call_operand.hbm [shape: bf16[2,1024,1024], index: 1, kind: input, shape index: {}]   ;;  %s9299_s2 = inlined_call_operand.vmem [shape: f32[2,1024], index: 2, kind: output, shape index: {}]  }
   0x1   :  { %s15_s10 = sshll.u32 %s9065_s9, 4  ;;  %s9041_s13 = scalar_lea.hbm %s9298_s1, 131072  ;;  %s16_s10 = int_to_ptr.vmem [resolvable:$true] %s15_s10 }
   0x2   :  { %p9042_p0 = scmp.ne.s32.totalorder %s9298_s1, %s9041_s13  ;;  %p9045_p1 = scmp.lt.u32.totalorder %s9041_s13, %s9298_s1 }
   0x4   :  { %p9047_p2 = pnand %p9045_p1, %p9042_p0 }
   0x6   :  { %9050 = shalt.err (!%p9047_p2)
}
   0x7   :  { %s9051_s18 = scalar_lea.vmem %s16_s10, 131072  ;;  %p9056_p4 = scmp.lt.s32.totalorder %s16_s10, %s16_s10 }
   0x8   :  { %p9052_p3 = scmp.ne.s32.totalorder %s16_s10, %s9051_s18  ;;  %p9057_p5 = scmp.lt.s32.totalorder %s9051_s18, %s9051_s18 }
   0xa   :  { %p9058_p6 = por %p9057_p5, %p9056_p4 }
   0xc   :  { %p9059_p7 = pnand %p9058_p6, %p9052_p3 }
   0xe   :  { %9062 = shalt.err (!%p9059_p7)
}
   0xf   :  { %s9066_s19 = smov 512   ;;  %s9067_s20 = smov 32  }
  0x10   :  { %21 = dma.hbm_to_vmem [thread:$0]  %s9298_s1, 131072, %s16_s10, [#allocation3], %s9066_s19, %s9066_s19, %s9067_s20  }
  0x11   :  { %9063 = dma.done.wait [#allocation3], 131072  }
  0x12   :  { %9064 = vsyncadd [#allocation3], 4294836224  ;;  %v27_v0 = vld [vmem:[#allocation2] sm:$0xff]  ;;  %v28_v2 = vld [vmem:[#allocation2 + $0x8] sm:$0xff]  ;;  %v9068_v32 = vmov 1983009808   ;;  %v1058_v34 = vlaneseq }
  0x13   :  { %v31_v1 = vld [vmem:[#allocation2 + $0x20] sm:$0xff]  ;;  %v32_v4 = vld [vmem:[#allocation2 + $0x28] sm:$0xff]  ;;  %v1056_v33 = vunpack.c.l.s4 %v9068_v32  ;;  %v9105_v59 = vld [vmem:[%s9297_s0] sm:$0xff] }
  0x14   :  { %v7912_v3 = vcombine.high %v27_v0, %v31_v1  ;;  %v7911_v5 = vcombine.low %v27_v0, %v31_v1  ;;  %v35_v6 = vld [vmem:[#allocation2 + $0x40] sm:$0xff]  ;;  %v7914_v8 = vcombine.high %v28_v2, %v32_v4  ;;  %v7913_v9 = vcombine.low %v28_v2, %v32_v4  ;;  %v36_v11 = vld [vmem:[#allocation2 + $0x48] sm:$0xff] }
  0x15   :  { %v39_v7 = vld [vmem:[#allocation2 + $0x60] sm:$0xff]  ;;  %v40_v12 = vld [vmem:[#allocation2 + $0x68] sm:$0xff]  ;;  %v1057_v43 = vunpack.c.0.s8 %v1056_v33  ;;  %v9097_v44 = vshrl.u32 %v1058_v34, 7 }
  0x16   :  { %v7920_v10 = vcombine.high %v35_v6, %v39_v7  ;;  %v43_v13 = vld [vmem:[#allocation2 + $0x80] sm:$0xff]  ;;  %3656 = vmatprep.subr.bf16.mxu0 %v7912_v3  ;;  %v7922_v14 = vcombine.high %v36_v11, %v40_v12  ;;  %v44_v16 = vld [vmem:[#allocation2 + $0x88] sm:$0xff]  ;;  %3820 = vmatprep.subr.bf16.mxu1 %v7914_v8  ;;  %v7919_v18 = vcombine.low %v35_v6, %v39_v7 }
  0x17   :  { %v47_v15 = vld [vmem:[#allocation2 + $0xa0] sm:$0xff]  ;;  %v48_v17 = vld [vmem:[#allocation2 + $0xa8] sm:$0xff]  ;;  %3657 = vmatpush1.bf16.msra.mxu0 %v7911_v5  ;;  %3821 = vmatpush1.bf16.msra.mxu1 %v7913_v9  ;;  %v7921_v19 = vcombine.low %v36_v11, %v40_v12  ;;  %v9100_v53 = vsub.s32 %v1057_v43, %v9097_v44 }
  0x18   :  { %3658 = vmatprep.subr.bf16.mxu0 %v7920_v10  ;;  %v7928_v20 = vcombine.high %v43_v13, %v47_v15  ;;  %3822 = vmatprep.subr.bf16.mxu1 %v7922_v14  ;;  %v7930_v21 = vcombine.high %v44_v16, %v48_v17  ;;  %v51_v22 = vld [vmem:[#allocation2 + $0xc0] sm:$0xff]  ;;  %v52_v24 = vld [vmem:[#allocation2 + $0xc8] sm:$0xff]  ;;  %v7927_v26 = vcombine.low %v43_v13, %v47_v15 }
  0x19   :  { %v55_v23 = vld [vmem:[#allocation2 + $0xe0] sm:$0xff]  ;;  %v56_v25 = vld [vmem:[#allocation2 + $0xe8] sm:$0xff]  ;;  %v7929_v27 = vcombine.low %v44_v16, %v48_v17  ;;  %v9109_v63 = vrot.slane %v9105_v59, %v9100_v53 }
  0x1a   :  { %v7936_v28 = vcombine.high %v51_v22, %v55_v23  ;;  %v7938_v29 = vcombine.high %v52_v24, %v56_v25  ;;  %v59_v30 = vld [vmem:[#allocation2 + $0x100] sm:$0xff]  ;;  %v60_v35 = vld [vmem:[#allocation2 + $0x108] sm:$0xff]  ;;  %v7935_v37 = vcombine.low %v51_v22, %v55_v23  ;;  %v7937_v38 = vcombine.low %v52_v24, %v56_v25 }
  0x1b   :  { %3659 = vmatpush1.bf16.msra.mxu0 %v7919_v18  ;;  %3823 = vmatpush1.bf16.msra.mxu1 %v7921_v19  ;;  %v63_v31 = vld [vmem:[#allocation2 + $0x120] sm:$0xff]  ;;  %v64_v36 = vld [vmem:[#allocation2 + $0x128] sm:$0xff]  ;;  %v9113_v3 = vcombine.high %v9109_v63, %v9109_v63 }
  0x1c   :  { %3660 = vmatprep.subr.bf16.mxu0 %v7928_v20  ;;  %3824 = vmatprep.subr.bf16.mxu1 %v7930_v21  ;;  %v7944_v39 = vcombine.high %v59_v30, %v63_v31  ;;  %v7946_v40 = vcombine.high %v60_v35, %v64_v36  ;;  %v67_v41 = vld [vmem:[#allocation2 + $0x140] sm:$0xff]  ;;  %v68_v45 = vld [vmem:[#allocation2 + $0x148] sm:$0xff]  ;;  %v7943_v47 = vcombine.low %v59_v30, %v63_v31 }
  0x1d   :  { %v71_v42 = vld [vmem:[#allocation2 + $0x160] sm:$0xff]  ;;  %v72_v46 = vld [vmem:[#allocation2 + $0x168] sm:$0xff]  ;;  %v7945_v48 = vcombine.low %v60_v35, %v64_v36  ;;  %3688 = vmatprep.mubr.bf16.mxu0 %v9113_v3  ;;  %3852 = vmatprep.mubr.bf16.mxu1 %v9113_v3 }
  0x1e   :  { %v7952_v49 = vcombine.high %v67_v41, %v71_v42  ;;  %v7954_v50 = vcombine.high %v68_v45, %v72_v46  ;;  %v75_v51 = vld [vmem:[#allocation2 + $0x180] sm:$0xff]  ;;  %v76_v54 = vld [vmem:[#allocation2 + $0x188] sm:$0xff]  ;;  %v7951_v56 = vcombine.low %v67_v41, %v71_v42  ;;  %v7953_v57 = vcombine.low %v68_v45, %v72_v46 }
  0x1f   :  { %3661 = vmatpush1.bf16.msra.mxu0 %v7927_v26  ;;  %3825 = vmatpush1.bf16.msra.mxu1 %v7929_v27  ;;  %v79_v52 = vld [vmem:[#allocation2 + $0x1a0] sm:$0xff]  ;;  %v80_v55 = vld [vmem:[#allocation2 + $0x1a8] sm:$0xff] }
  0x20   :  { %3662 = vmatprep.subr.bf16.mxu0 %v7936_v28  ;;  %3826 = vmatprep.subr.bf16.mxu1 %v7938_v29  ;;  %v7960_v58 = vcombine.high %v75_v51, %v79_v52  ;;  %v7962_v60 = vcombine.high %v76_v54, %v80_v55  ;;  %v83_v61 = vld [vmem:[#allocation2 + $0x1c0] sm:$0xff]  ;;  %v84_v0 = vld [vmem:[#allocation2 + $0x1c8] sm:$0xff]  ;;  %v7959_v2 = vcombine.low %v75_v51, %v79_v52 }
  0x21   :  { %v87_v62 = vld [vmem:[#allocation2 + $0x1e0] sm:$0xff]  ;;  %v88_v1 = vld [vmem:[#allocation2 + $0x1e8] sm:$0xff]  ;;  %v7961_v4 = vcombine.low %v76_v54, %v80_v55 }
  0x22   :  { %v7968_v5 = vcombine.high %v83_v61, %v87_v62  ;;  %v7970_v6 = vcombine.high %v84_v0, %v88_v1  ;;  %v91_v7 = vld [vmem:[#allocation2 + $0x200] sm:$0xff]  ;;  %v92_v9 = vld [vmem:[#allocation2 + $0x208] sm:$0xff]  ;;  %v7967_v11 = vcombine.low %v83_v61, %v87_v62  ;;  %v7969_v12 = vcombine.low %v84_v0, %v88_v1 }
  0x23   :  { %3663 = vmatpush1.bf16.msra.mxu0 %v7935_v37  ;;  %3827 = vmatpush1.bf16.msra.mxu1 %v7937_v38  ;;  %v95_v8 = vld [vmem:[#allocation2 + $0x220] sm:$0xff]  ;;  %v96_v10 = vld [vmem:[#allocation2 + $0x228] sm:$0xff] }
  0x24   :  { %3664 = vmatprep.subr.bf16.mxu0 %v7944_v39  ;;  %3828 = vmatprep.subr.bf16.mxu1 %v7946_v40  ;;  %v7976_v13 = vcombine.high %v91_v7, %v95_v8  ;;  %v7978_v14 = vcombine.high %v92_v9, %v96_v10  ;;  %v99_v15 = vld [vmem:[#allocation2 + $0x240] sm:$0xff]  ;;  %v100_v17 = vld [vmem:[#allocation2 + $0x248] sm:$0xff]  ;;  %v7975_v19 = vcombine.low %v91_v7, %v95_v8 }
  0x25   :  { %v103_v16 = vld [vmem:[#allocation2 + $0x260] sm:$0xff]  ;;  %v104_v18 = vld [vmem:[#allocation2 + $0x268] sm:$0xff]  ;;  %v7977_v20 = vcombine.low %v92_v9, %v96_v10 }
  0x26   :  { %v7984_v21 = vcombine.high %v99_v15, %v103_v16  ;;  %v7986_v22 = vcombine.high %v100_v17, %v104_v18  ;;  %v107_v23 = vld [vmem:[#allocation2 + $0x280] sm:$0xff]  ;;  %v108_v25 = vld [vmem:[#allocation2 + $0x288] sm:$0xff]  ;;  %v7983_v27 = vcombine.low %v99_v15, %v103_v16  ;;  %v7985_v28 = vcombine.low %v100_v17, %v104_v18 }
  0x27   :  { %3665 = vmatpush1.bf16.msra.mxu0 %v7943_v47  ;;  %3829 = vmatpush1.bf16.msra.mxu1 %v7945_v48  ;;  %v111_v24 = vld [vmem:[#allocation2 + $0x2a0] sm:$0xff]  ;;  %v112_v26 = vld [vmem:[#allocation2 + $0x2a8] sm:$0xff] }
  0x28   :  { %3666 = vmatprep.subr.bf16.mxu0 %v7952_v49  ;;  %3830 = vmatprep.subr.bf16.mxu1 %v7954_v50  ;;  %v7992_v29 = vcombine.high %v107_v23, %v111_v24  ;;  %v7994_v30 = vcombine.high %v108_v25, %v112_v26  ;;  %v115_v31 = vld [vmem:[#allocation2 + $0x2c0] sm:$0xff]  ;;  %v116_v33 = vld [vmem:[#allocation2 + $0x2c8] sm:$0xff]  ;;  %v7991_v35 = vcombine.low %v107_v23, %v111_v24 }
  0x29   :  { %v119_v32 = vld [vmem:[#allocation2 + $0x2e0] sm:$0xff]  ;;  %v120_v34 = vld [vmem:[#allocation2 + $0x2e8] sm:$0xff]  ;;  %v7993_v36 = vcombine.low %v108_v25, %v112_v26 }
  0x2a   :  { %v8000_v37 = vcombine.high %v115_v31, %v119_v32  ;;  %v8002_v38 = vcombine.high %v116_v33, %v120_v34  ;;  %v123_v39 = vld [vmem:[#allocation2 + $0x300] sm:$0xff]  ;;  %v124_v41 = vld [vmem:[#allocation2 + $0x308] sm:$0xff]  ;;  %v7999_v43 = vcombine.low %v115_v31, %v119_v32  ;;  %v8001_v45 = vcombine.low %v116_v33, %v120_v34 }
  0x2b   :  { %3667 = vmatpush1.bf16.msra.mxu0 %v7951_v56  ;;  %3831 = vmatpush1.bf16.msra.mxu1 %v7953_v57  ;;  %v127_v40 = vld [vmem:[#allocation2 + $0x320] sm:$0xff]  ;;  %v128_v42 = vld [vmem:[#allocation2 + $0x328] sm:$0xff] }
  0x2c   :  { %3668 = vmatprep.subr.bf16.mxu0 %v7960_v58  ;;  %3832 = vmatprep.subr.bf16.mxu1 %v7962_v60  ;;  %v8008_v46 = vcombine.high %v123_v39, %v127_v40  ;;  %v8010_v47 = vcombine.high %v124_v41, %v128_v42  ;;  %v131_v48 = vld [vmem:[#allocation2 + $0x340] sm:$0xff]  ;;  %v132_v50 = vld [vmem:[#allocation2 + $0x348] sm:$0xff]  ;;  %v8007_v52 = vcombine.low %v123_v39, %v127_v40 }
  0x2d   :  { %v135_v49 = vld [vmem:[#allocation2 + $0x360] sm:$0xff]  ;;  %v136_v51 = vld [vmem:[#allocation2 + $0x368] sm:$0xff]  ;;  %v8009_v54 = vcombine.low %v124_v41, %v128_v42 }
  0x2e   :  { %v8016_v55 = vcombine.high %v131_v48, %v135_v49  ;;  %v8018_v56 = vcombine.high %v132_v50, %v136_v51  ;;  %v139_v57 = vld [vmem:[#allocation2 + $0x380] sm:$0xff]  ;;  %v140_v60 = vld [vmem:[#allocation2 + $0x388] sm:$0xff]  ;;  %v8015_v62 = vcombine.low %v131_v48, %v135_v49  ;;  %v8017_v0 = vcombine.low %v132_v50, %v136_v51 }
  0x2f   :  { %3669 = vmatpush1.bf16.msra.mxu0 %v7959_v2  ;;  %3833 = vmatpush1.bf16.msra.mxu1 %v7961_v4  ;;  %v143_v58 = vld [vmem:[#allocation2 + $0x3a0] sm:$0xff]  ;;  %v144_v61 = vld [vmem:[#allocation2 + $0x3a8] sm:$0xff] }
  0x30   :  { %3670 = vmatprep.subr.bf16.mxu0 %v7968_v5  ;;  %3834 = vmatprep.subr.bf16.mxu1 %v7970_v6  ;;  %v8024_v1 = vcombine.high %v139_v57, %v143_v58  ;;  %v8026_v2 = vcombine.high %v140_v60, %v144_v61  ;;  %v147_v4 = vld [vmem:[#allocation2 + $0x3c0] sm:$0xff]  ;;  %v148_v6 = vld [vmem:[#allocation2 + $0x3c8] sm:$0xff]  ;;  %v8023_v8 = vcombine.low %v139_v57, %v143_v58 }
  0x31   :  { %v151_v5 = vld [vmem:[#allocation2 + $0x3e0] sm:$0xff]  ;;  %v152_v7 = vld [vmem:[#allocation2 + $0x3e8] sm:$0xff]  ;;  %v8025_v9 = vcombine.low %v140_v60, %v144_v61 }
  0x32   :  { %v8032_v10 = vcombine.high %v147_v4, %v151_v5  ;;  %v156_v15 = vld [vmem:[#allocation2 + $0x408] sm:$0xff]  ;;  %v8031_v17 = vcombine.low %v147_v4, %v151_v5  ;;  %v8033_v18 = vcombine.low %v148_v6, %v152_v7  ;;  %v183_v39 = vld [vmem:[#allocation2 + $0x4e0] sm:$0xff] }
  0x33   :  { %3671 = vmatpush1.bf16.msra.mxu0 %v7967_v11  ;;  %3835 = vmatpush1.bf16.msra.mxu1 %v7969_v12  ;;  %v8034_v11 = vcombine.high %v148_v6, %v152_v7  ;;  %v155_v12 = vld [vmem:[#allocation2 + $0x400] sm:$0xff]  ;;  %v160_v16 = vld [vmem:[#allocation2 + $0x428] sm:$0xff] }
  0x34   :  { %3672 = vmatprep.subr.bf16.mxu0 %v7976_v13  ;;  %3836 = vmatprep.subr.bf16.mxu1 %v7978_v14  ;;  %v159_v13 = vld [vmem:[#allocation2 + $0x420] sm:$0xff]  ;;  %v1054_v14 = vcombine.high %v9105_v59, %v9105_v59  ;;  %v164_v24 = vld [vmem:[#allocation2 + $0x448] sm:$0xff]  ;;  %v8041_v59 = vcombine.low %v156_v15, %v160_v16 }
  0x35   :  { %v168_v25 = vld [vmem:[#allocation2 + $0x468] sm:$0xff]  ;;  %v8039_v26 = vcombine.low %v155_v12, %v159_v13  ;;  %v191_v48 = vld [vmem:[#allocation2 + $0x520] sm:$0xff] }
  0x36   :  { %v9120_v23 = vrot.slane %v1054_v14, %v9100_v53  ;;  %v172_v32 = vld [vmem:[#allocation2 + $0x488] sm:$0xff]  ;;  %v199_v57 = vld [vmem:[#allocation2 + $0x560] sm:$0xff] }
  0x37   :  { %3673 = vmatpush1.bf16.msra.mxu0 %v7975_v19  ;;  %3837 = vmatpush1.bf16.msra.mxu1 %v7977_v20  ;;  %v8040_v19 = vcombine.high %v155_v12, %v159_v13  ;;  %v8042_v20 = vcombine.high %v156_v15, %v160_v16  ;;  %v176_v33 = vld [vmem:[#allocation2 + $0x4a8] sm:$0xff]  ;;  %v207_v4 = vld [vmem:[#allocation2 + $0x5a0] sm:$0xff] }
  0x38   :  { %3674 = vmatprep.subr.bf16.mxu0 %v7984_v21  ;;  %3838 = vmatprep.subr.bf16.mxu1 %v7986_v22  ;;  %v163_v21 = vld [vmem:[#allocation2 + $0x440] sm:$0xff]  ;;  %v9124_v31 = vcombine.high %v9120_v23, %v9120_v23  ;;  %v180_v40 = vld [vmem:[#allocation2 + $0x4c8] sm:$0xff] }
  0x39   :  { %v167_v22 = vld [vmem:[#allocation2 + $0x460] sm:$0xff]  ;;  %v184_v41 = vld [vmem:[#allocation2 + $0x4e8] sm:$0xff] }
  0x3a   :  { %v8047_v34 = vcombine.low %v163_v21, %v167_v22  ;;  %v188_v49 = vld [vmem:[#allocation2 + $0x508] sm:$0xff]  ;;  %v215_v12 = vld [vmem:[#allocation2 + $0x5e0] sm:$0xff] }
  0x3b   :  { %3675 = vmatpush1.bf16.msra.mxu0 %v7983_v27  ;;  %3839 = vmatpush1.bf16.msra.mxu1 %v7985_v28  ;;  %v8048_v27 = vcombine.high %v163_v21, %v167_v22  ;;  %v8050_v28 = vcombine.high %v164_v24, %v168_v25  ;;  %v192_v50 = vld [vmem:[#allocation2 + $0x528] sm:$0xff] }
  0x3c   :  { %3676 = vmatprep.subr.bf16.mxu0 %v7992_v29  ;;  %3840 = vmatprep.subr.bf16.mxu1 %v7994_v30  ;;  %v171_v29 = vld [vmem:[#allocation2 + $0x480] sm:$0xff]  ;;  %v196_v58 = vld [vmem:[#allocation2 + $0x548] sm:$0xff] }
  0x3d   :  { %v175_v30 = vld [vmem:[#allocation2 + $0x4a0] sm:$0xff]  ;;  %v200_v60 = vld [vmem:[#allocation2 + $0x568] sm:$0xff] }
  0x3e   :  { %v8055_v42 = vcombine.low %v171_v29, %v175_v30  ;;  %v204_v5 = vld [vmem:[#allocation2 + $0x588] sm:$0xff] }
  0x3f   :  { %3677 = vmatpush1.bf16.msra.mxu0 %v7991_v35  ;;  %3841 = vmatpush1.bf16.msra.mxu1 %v7993_v36  ;;  %v8049_v35 = vcombine.low %v164_v24, %v168_v25  ;;  %v8056_v36 = vcombine.high %v171_v29, %v175_v30  ;;  %v208_v6 = vld [vmem:[#allocation2 + $0x5a8] sm:$0xff] }
  0x40   :  { %3678 = vmatprep.subr.bf16.mxu0 %v8000_v37  ;;  %3842 = vmatprep.subr.bf16.mxu1 %v8002_v38  ;;  %v8058_v37 = vcombine.high %v172_v32, %v176_v33  ;;  %v179_v38 = vld [vmem:[#allocation2 + $0x4c0] sm:$0xff]  ;;  %v212_v13 = vld [vmem:[#allocation2 + $0x5c8] sm:$0xff]  ;;  %v8089_v16 = vcombine.low %v204_v5, %v208_v6 }
  0x41   :  { %v8063_v51 = vcombine.low %v179_v38, %v183_v39  ;;  %v216_v14 = vld [vmem:[#allocation2 + $0x5e8] sm:$0xff] }
  0x42   :  { %v220_v21 = vld [vmem:[#allocation2 + $0x608] sm:$0xff]  ;;  %v8097_v25 = vcombine.low %v212_v13, %v216_v14 }
  0x43   :  { %3679 = vmatpush1.bf16.msra.mxu0 %v7999_v43  ;;  %3843 = vmatpush1.bf16.msra.mxu1 %v8001_v45  ;;  %v8057_v43 = vcombine.low %v172_v32, %v176_v33  ;;  %v8064_v45 = vcombine.high %v179_v38, %v183_v39  ;;  %v224_v22 = vld [vmem:[#allocation2 + $0x628] sm:$0xff] }
  0x44   :  { %3680 = vmatprep.subr.bf16.mxu0 %v8008_v46  ;;  %3844 = vmatprep.subr.bf16.mxu1 %v8010_v47  ;;  %v8066_v46 = vcombine.high %v180_v40, %v184_v41  ;;  %v187_v47 = vld [vmem:[#allocation2 + $0x500] sm:$0xff]  ;;  %v228_v29 = vld [vmem:[#allocation2 + $0x648] sm:$0xff]  ;;  %v8105_v33 = vcombine.low %v220_v21, %v224_v22 }
  0x45   :  { %v8071_v61 = vcombine.low %v187_v47, %v191_v48  ;;  %v232_v30 = vld [vmem:[#allocation2 + $0x668] sm:$0xff] }
  0x46   :  { %v236_v38 = vld [vmem:[#allocation2 + $0x688] sm:$0xff] }
  0x47   :  { %3681 = vmatpush1.bf16.msra.mxu0 %v8007_v52  ;;  %3845 = vmatpush1.bf16.msra.mxu1 %v8009_v54  ;;  %v8065_v52 = vcombine.low %v180_v40, %v184_v41  ;;  %v8072_v54 = vcombine.high %v187_v47, %v191_v48  ;;  %v240_v39 = vld [vmem:[#allocation2 + $0x6a8] sm:$0xff]  ;;  %v8113_v41 = vcombine.low %v228_v29, %v232_v30 }
  0x48   :  { %3682 = vmatprep.subr.bf16.mxu0 %v8016_v55  ;;  %3846 = vmatprep.subr.bf16.mxu1 %v8018_v56  ;;  %v8074_v55 = vcombine.high %v188_v49, %v192_v50  ;;  %v195_v56 = vld [vmem:[#allocation2 + $0x540] sm:$0xff]  ;;  %v244_v47 = vld [vmem:[#allocation2 + $0x6c8] sm:$0xff] }
  0x49   :  { %v8079_v7 = vcombine.low %v195_v56, %v199_v57  ;;  %v248_v48 = vld [vmem:[#allocation2 + $0x6e8] sm:$0xff] }
  0x4b   :  { %3683 = vmatpush1.bf16.msra.mxu0 %v8015_v62  ;;  %3847 = vmatpush1.bf16.msra.mxu1 %v8017_v0  ;;  %v8073_v62 = vcombine.low %v188_v49, %v192_v50  ;;  %v8080_v0 = vcombine.high %v195_v56, %v199_v57  ;;  %v8121_v50 = vcombine.low %v236_v38, %v240_v39  ;;  %v252_v56 = vld [vmem:[#allocation2 + $0x708] sm:$0xff] }
  0x4c   :  { %3684 = vmatprep.subr.bf16.mxu0 %v8024_v1  ;;  %3848 = vmatprep.subr.bf16.mxu1 %v8026_v2  ;;  %v8082_v1 = vcombine.high %v196_v58, %v200_v60  ;;  %v203_v2 = vld [vmem:[#allocation2 + $0x580] sm:$0xff]  ;;  %v256_v57 = vld [vmem:[#allocation2 + $0x728] sm:$0xff] }
  0x4d   :  { %v8087_v15 = vcombine.low %v203_v2, %v207_v4 }
  0x4f   :  { %3685 = vmatpush1.bf16.msra.mxu0 %v8023_v8  ;;  %3849 = vmatpush1.bf16.msra.mxu1 %v8025_v9  ;;  %v8081_v8 = vcombine.low %v196_v58, %v200_v60  ;;  %v8088_v9 = vcombine.high %v203_v2, %v207_v4  ;;  %v8129_v60 = vcombine.low %v244_v47, %v248_v48  ;;  %v260_v2 = vld [vmem:[#allocation2 + $0x748] sm:$0xff] }
  0x50   :  { %3686 = vmatprep.subr.bf16.mxu0 %v8032_v10  ;;  %3850 = vmatprep.subr.bf16.mxu1 %v8034_v11  ;;  %v8090_v10 = vcombine.high %v204_v5, %v208_v6  ;;  %v211_v11 = vld [vmem:[#allocation2 + $0x5c0] sm:$0xff]  ;;  %v264_v4 = vld [vmem:[#allocation2 + $0x768] sm:$0xff]  ;;  %v8137_v6 = vcombine.low %v252_v56, %v256_v57 }
  0x51   :  { %v8095_v24 = vcombine.low %v211_v11, %v215_v12 }
  0x53   :  { %3687 = vmatpush1.bf16.msra.mxu0 %v8031_v17  ;;  %3851 = vmatpush1.bf16.msra.mxu1 %v8033_v18  ;;  %v8096_v17 = vcombine.high %v211_v11, %v215_v12  ;;  %v8098_v18 = vcombine.high %v212_v13, %v216_v14  ;;  %v268_v11 = vld [vmem:[#allocation2 + $0x788] sm:$0xff]  ;;  %v8145_v14 = vcombine.low %v260_v2, %v264_v4 }
  0x54   :  { %3697 = vmatprep.subr.bf16.mxu0 %v8040_v19  ;;  %3861 = vmatprep.subr.bf16.mxu1 %v8042_v20  ;;  %v219_v19 = vld [vmem:[#allocation2 + $0x600] sm:$0xff]  ;;  %v272_v12 = vld [vmem:[#allocation2 + $0x7a8] sm:$0xff] }
  0x55   :  { %v223_v20 = vld [vmem:[#allocation2 + $0x620] sm:$0xff] }
  0x56   :  { %3689 = vmatmul.mubr.bf16.vlgmr.msra.gmra.mrb[0].mxu0 %v9109_v63  ;;  %3853 = vmatmul.mubr.bf16.vlgmr.msra.gmra.mrb[0].mxu1 %v9109_v63  ;;  %v8103_v32 = vcombine.low %v219_v19, %v223_v20 }
  0x57   :  { %3698 = vmatpush1.bf16.msra.mxu0 %v8039_v26  ;;  %3862 = vmatpush1.bf16.msra.mxu1 %v8041_v59  ;;  %v8104_v26 = vcombine.high %v219_v19, %v223_v20  ;;  %v8106_v59 = vcombine.high %v220_v21, %v224_v22  ;;  %v276_v19 = vld [vmem:[#allocation2 + $0x7c8] sm:$0xff]  ;;  %v8153_v22 = vcombine.low %v268_v11, %v272_v12 }
  0x58   :  { %3699 = vmatprep.subr.bf16.mxu0 %v8048_v27  ;;  %3863 = vmatprep.subr.bf16.mxu1 %v8050_v28  ;;  %v227_v27 = vld [vmem:[#allocation2 + $0x640] sm:$0xff]  ;;  %v280_v20 = vld [vmem:[#allocation2 + $0x7e8] sm:$0xff] }
  0x59   :  { %3729 = vmatprep.mubr.bf16.mxu0 %v9124_v31  ;;  %3893 = vmatprep.mubr.bf16.mxu1 %v9124_v31  ;;  %v231_v28 = vld [vmem:[#allocation2 + $0x660] sm:$0xff] }
  0x5a   :  { %v8111_v40 = vcombine.low %v227_v27, %v231_v28 }
  0x5b   :  { %3700 = vmatpush1.bf16.msra.mxu0 %v8047_v34  ;;  %3864 = vmatpush1.bf16.msra.mxu1 %v8049_v35  ;;  %v8112_v34 = vcombine.high %v227_v27, %v231_v28  ;;  %v8114_v35 = vcombine.high %v228_v29, %v232_v30  ;;  %v284_v27 = vld [vmem:[#allocation2 + $0x808] sm:$0xff]  ;;  %v9133_v29 = vld [vmem:[%s9297_s0 + $0x8] sm:$0xff] }
  0x5c   :  { %3701 = vmatprep.subr.bf16.mxu0 %v8056_v36  ;;  %3865 = vmatprep.subr.bf16.mxu1 %v8058_v37  ;;  %v235_v36 = vld [vmem:[#allocation2 + $0x680] sm:$0xff]  ;;  %v288_v28 = vld [vmem:[#allocation2 + $0x828] sm:$0xff] }
  0x5d   :  { %v239_v37 = vld [vmem:[#allocation2 + $0x6a0] sm:$0xff] }
  0x5e   :  { %v8119_v49 = vcombine.low %v235_v36, %v239_v37 }
  0x5f   :  { %3702 = vmatpush1.bf16.msra.mxu0 %v8055_v42  ;;  %3866 = vmatpush1.bf16.msra.mxu1 %v8057_v43  ;;  %v8120_v42 = vcombine.high %v235_v36, %v239_v37  ;;  %v8122_v43 = vcombine.high %v236_v38, %v240_v39  ;;  %v295_v36 = vld [vmem:[#allocation2 + $0x860] sm:$0xff]  ;;  %v9137_v37 = vrot.slane %v9133_v29, %v9100_v53  ;;  %v292_v38 = vld [vmem:[#allocation2 + $0x848] sm:$0xff] }
  0x60   :  { %3703 = vmatprep.subr.bf16.mxu0 %v8064_v45  ;;  %3867 = vmatprep.subr.bf16.mxu1 %v8066_v46  ;;  %v243_v45 = vld [vmem:[#allocation2 + $0x6c0] sm:$0xff]  ;;  %v296_v39 = vld [vmem:[#allocation2 + $0x868] sm:$0xff] }
  0x61   :  { %v247_v46 = vld [vmem:[#allocation2 + $0x6e0] sm:$0xff] }
  0x62   :  { %v8127_v58 = vcombine.low %v243_v45, %v247_v46 }
  0x63   :  { %3704 = vmatpush1.bf16.msra.mxu0 %v8063_v51  ;;  %3868 = vmatpush1.bf16.msra.mxu1 %v8065_v52  ;;  %v8128_v51 = vcombine.high %v243_v45, %v247_v46  ;;  %v8130_v52 = vcombine.high %v244_v47, %v248_v48  ;;  %v299_v45 = vld [vmem:[#allocation2 + $0x880] sm:$0xff]  ;;  %v9141_v47 = vcombine.high %v9137_v37, %v9137_v37  ;;  %v300_v48 = vld [vmem:[#allocation2 + $0x888] sm:$0xff] }
  0x64   :  { %3705 = vmatprep.subr.bf16.mxu0 %v8072_v54  ;;  %3869 = vmatprep.subr.bf16.mxu1 %v8074_v55  ;;  %v251_v54 = vld [vmem:[#allocation2 + $0x700] sm:$0xff] }
  0x65   :  { %v255_v55 = vld [vmem:[#allocation2 + $0x720] sm:$0xff] }
  0x66   :  { %v8135_v5 = vcombine.low %v251_v54, %v255_v55  ;;  %v303_v46 = vld [vmem:[#allocation2 + $0x8a0] sm:$0xff] }
  0x67   :  { %3706 = vmatpush1.bf16.msra.mxu0 %v8071_v61  ;;  %3870 = vmatpush1.bf16.msra.mxu1 %v8073_v62  ;;  %v8136_v61 = vcombine.high %v251_v54, %v255_v55  ;;  %v8138_v62 = vcombine.high %v252_v56, %v256_v57  ;;  %v307_v55 = vld [vmem:[#allocation2 + $0x8c0] sm:$0xff]  ;;  %v308_v57 = vld [vmem:[#allocation2 + $0x8c8] sm:$0xff] }
  0x68   :  { %3707 = vmatprep.subr.bf16.mxu0 %v8080_v0  ;;  %3871 = vmatprep.subr.bf16.mxu1 %v8082_v1  ;;  %v259_v0 = vld [vmem:[#allocation2 + $0x740] sm:$0xff] }
  0x69   :  { %v263_v1 = vld [vmem:[#allocation2 + $0x760] sm:$0xff] }
  0x6a   :  { %v8143_v13 = vcombine.low %v259_v0, %v263_v1  ;;  %v311_v56 = vld [vmem:[#allocation2 + $0x8e0] sm:$0xff] }
  0x6b   :  { %3708 = vmatpush1.bf16.msra.mxu0 %v8079_v7  ;;  %3872 = vmatpush1.bf16.msra.mxu1 %v8081_v8  ;;  %v8144_v7 = vcombine.high %v259_v0, %v263_v1  ;;  %v8146_v8 = vcombine.high %v260_v2, %v264_v4  ;;  %v315_v1 = vld [vmem:[#allocation2 + $0x900] sm:$0xff]  ;;  %v316_v4 = vld [vmem:[#allocation2 + $0x908] sm:$0xff] }
  0x6c   :  { %3709 = vmatprep.subr.bf16.mxu0 %v8088_v9  ;;  %3873 = vmatprep.subr.bf16.mxu1 %v8090_v10  ;;  %v267_v9 = vld [vmem:[#allocation2 + $0x780] sm:$0xff] }
  0x6d   :  { %v271_v10 = vld [vmem:[#allocation2 + $0x7a0] sm:$0xff] }
  0x6e   :  { %v8151_v21 = vcombine.low %v267_v9, %v271_v10  ;;  %v319_v2 = vld [vmem:[#allocation2 + $0x920] sm:$0xff] }
  0x6f   :  { %3710 = vmatpush1.bf16.msra.mxu0 %v8087_v15  ;;  %3874 = vmatpush1.bf16.msra.mxu1 %v8089_v16  ;;  %v8152_v15 = vcombine.high %v267_v9, %v271_v10  ;;  %v8154_v16 = vcombine.high %v268_v11, %v272_v12  ;;  %v323_v10 = vld [vmem:[#allocation2 + $0x940] sm:$0xff]  ;;  %v324_v12 = vld [vmem:[#allocation2 + $0x948] sm:$0xff] }
  0x70   :  { %3711 = vmatprep.subr.bf16.mxu0 %v8096_v17  ;;  %3875 = vmatprep.subr.bf16.mxu1 %v8098_v18  ;;  %v275_v17 = vld [vmem:[#allocation2 + $0x7c0] sm:$0xff] }
  0x71   :  { %v279_v18 = vld [vmem:[#allocation2 + $0x7e0] sm:$0xff] }
  0x72   :  { %v8159_v30 = vcombine.low %v275_v17, %v279_v18  ;;  %v327_v11 = vld [vmem:[#allocation2 + $0x960] sm:$0xff] }
  0x73   :  { %3712 = vmatpush1.bf16.msra.mxu0 %v8095_v24  ;;  %3876 = vmatpush1.bf16.msra.mxu1 %v8097_v25  ;;  %v8160_v24 = vcombine.high %v275_v17, %v279_v18  ;;  %v8162_v25 = vcombine.high %v276_v19, %v280_v20  ;;  %v331_v18 = vld [vmem:[#allocation2 + $0x980] sm:$0xff] }
  0x74   :  { %3713 = vmatprep.subr.bf16.mxu0 %v8104_v26  ;;  %3877 = vmatprep.subr.bf16.mxu1 %v8106_v59  ;;  %v283_v26 = vld [vmem:[#allocation2 + $0x800] sm:$0xff] }
  0x75   :  { %v287_v59 = vld [vmem:[#allocation2 + $0x820] sm:$0xff] }
  0x77   :  { %3714 = vmatpush1.bf16.msra.mxu0 %v8103_v32  ;;  %3878 = vmatpush1.bf16.msra.mxu1 %v8105_v33  ;;  %v8161_v32 = vcombine.low %v276_v19, %v280_v20  ;;  %v8168_v33 = vcombine.high %v283_v26, %v287_v59  ;;  %v335_v19 = vld [vmem:[#allocation2 + $0x9a0] sm:$0xff]  ;;  %v332_v20 = vld [vmem:[#allocation2 + $0x988] sm:$0xff] }
  0x78   :  { %3715 = vmatprep.subr.bf16.mxu0 %v8112_v34  ;;  %3879 = vmatprep.subr.bf16.mxu1 %v8114_v35  ;;  %v8170_v34 = vcombine.high %v284_v27, %v288_v28  ;;  %v291_v35 = vld [vmem:[#allocation2 + $0x840] sm:$0xff] }
  0x7b   :  { %3716 = vmatpush1.bf16.msra.mxu0 %v8111_v40  ;;  %3880 = vmatpush1.bf16.msra.mxu1 %v8113_v41  ;;  %v8167_v40 = vcombine.low %v283_v26, %v287_v59  ;;  %v8169_v41 = vcombine.low %v284_v27, %v288_v28  ;;  %v339_v59 = vld [vmem:[#allocation2 + $0x9c0] sm:$0xff]  ;;  %v340_v28 = vld [vmem:[#allocation2 + $0x9c8] sm:$0xff] }
  0x7c   :  { %3717 = vmatprep.subr.bf16.mxu0 %v8120_v42  ;;  %3881 = vmatprep.subr.bf16.mxu1 %v8122_v43  ;;  %v8176_v42 = vcombine.high %v291_v35, %v295_v36  ;;  %v8178_v43 = vcombine.high %v292_v38, %v296_v39  ;;  %v343_v27 = vld [vmem:[#allocation2 + $0x9e0] sm:$0xff] }
  0x7f   :  { %3718 = vmatpush1.bf16.msra.mxu0 %v8119_v49  ;;  %3882 = vmatpush1.bf16.msra.mxu1 %v8121_v50  ;;  %v304_v49 = vld [vmem:[#allocation2 + $0x8a8] sm:$0xff]  ;;  %v8175_v50 = vcombine.low %v291_v35, %v295_v36  ;;  %v347_v36 = vld [vmem:[#allocation2 + $0xa00] sm:$0xff] }
  0x80   :  { %3719 = vmatprep.subr.bf16.mxu0 %v8128_v51  ;;  %3883 = vmatprep.subr.bf16.mxu1 %v8130_v52  ;;  %v8177_v51 = vcombine.low %v292_v38, %v296_v39  ;;  %v8184_v52 = vcombine.high %v299_v45, %v303_v46  ;;  %v8186_v54 = vcombine.high %v300_v48, %v304_v49  ;;  %v351_v38 = vld [vmem:[#allocation2 + $0xa20] sm:$0xff]  ;;  %v348_v39 = vld [vmem:[#allocation2 + $0xa08] sm:$0xff] }
  0x83   :  { %3720 = vmatpush1.bf16.msra.mxu0 %v8127_v58  ;;  %3884 = vmatpush1.bf16.msra.mxu1 %v8129_v60  ;;  %v312_v58 = vld [vmem:[#allocation2 + $0x8e8] sm:$0xff]  ;;  %v8183_v60 = vcombine.low %v299_v45, %v303_v46  ;;  %v355_v46 = vld [vmem:[#allocation2 + $0xa40] sm:$0xff] }
  0x84   :  { %3721 = vmatprep.subr.bf16.mxu0 %v8136_v61  ;;  %3885 = vmatprep.subr.bf16.mxu1 %v8138_v62  ;;  %v8185_v61 = vcombine.low %v300_v48, %v304_v49  ;;  %v8192_v62 = vcombine.high %v307_v55, %v311_v56  ;;  %v8194_v0 = vcombine.high %v308_v57, %v312_v58  ;;  %v359_v48 = vld [vmem:[#allocation2 + $0xa60] sm:$0xff]  ;;  %v356_v49 = vld [vmem:[#allocation2 + $0xa48] sm:$0xff] }
  0x87   :  { %3722 = vmatpush1.bf16.msra.mxu0 %v8135_v5  ;;  %3886 = vmatpush1.bf16.msra.mxu1 %v8137_v6  ;;  %v320_v5 = vld [vmem:[#allocation2 + $0x928] sm:$0xff]  ;;  %v8191_v6 = vcombine.low %v307_v55, %v311_v56  ;;  %v363_v56 = vld [vmem:[#allocation2 + $0xa80] sm:$0xff] }
  0x88   :  { %3723 = vmatprep.subr.bf16.mxu0 %v8144_v7  ;;  %3887 = vmatprep.subr.bf16.mxu1 %v8146_v8  ;;  %v8193_v7 = vcombine.low %v308_v57, %v312_v58  ;;  %v8200_v8 = vcombine.high %v315_v1, %v319_v2  ;;  %v8202_v9 = vcombine.high %v316_v4, %v320_v5  ;;  %v367_v57 = vld [vmem:[#allocation2 + $0xaa0] sm:$0xff]  ;;  %v364_v58 = vld [vmem:[#allocation2 + $0xa88] sm:$0xff] }
  0x8b   :  { %3724 = vmatpush1.bf16.msra.mxu0 %v8143_v13  ;;  %3888 = vmatpush1.bf16.msra.mxu1 %v8145_v14  ;;  %v328_v13 = vld [vmem:[#allocation2 + $0x968] sm:$0xff]  ;;  %v8199_v14 = vcombine.low %v315_v1, %v319_v2  ;;  %v371_v2 = vld [vmem:[#allocation2 + $0xac0] sm:$0xff] }
  0x8c   :  { %3725 = vmatprep.subr.bf16.mxu0 %v8152_v15  ;;  %3889 = vmatprep.subr.bf16.mxu1 %v8154_v16  ;;  %v8201_v15 = vcombine.low %v316_v4, %v320_v5  ;;  %v8208_v16 = vcombine.high %v323_v10, %v327_v11  ;;  %v8210_v17 = vcombine.high %v324_v12, %v328_v13  ;;  %v375_v4 = vld [vmem:[#allocation2 + $0xae0] sm:$0xff]  ;;  %v372_v5 = vld [vmem:[#allocation2 + $0xac8] sm:$0xff] }
  0x8f   :  { %3726 = vmatpush1.bf16.msra.mxu0 %v8151_v21  ;;  %3890 = vmatpush1.bf16.msra.mxu1 %v8153_v22  ;;  %v336_v21 = vld [vmem:[#allocation2 + $0x9a8] sm:$0xff]  ;;  %v8207_v22 = vcombine.low %v323_v10, %v327_v11  ;;  %v379_v11 = vld [vmem:[#allocation2 + $0xb00] sm:$0xff] }
  0x90   :  { %3727 = vmatprep.subr.bf16.mxu0 %v8160_v24  ;;  %3891 = vmatprep.subr.bf16.mxu1 %v8162_v25  ;;  %v8209_v24 = vcombine.low %v324_v12, %v328_v13  ;;  %v8216_v25 = vcombine.high %v331_v18, %v335_v19  ;;  %v8218_v26 = vcombine.high %v332_v20, %v336_v21  ;;  %v383_v12 = vld [vmem:[#allocation2 + $0xb20] sm:$0xff]  ;;  %v380_v13 = vld [vmem:[#allocation2 + $0xb08] sm:$0xff] }
  0x93   :  { %3728 = vmatpush1.bf16.msra.mxu0 %v8159_v30  ;;  %3892 = vmatpush1.bf16.msra.mxu1 %v8161_v32  ;;  %v344_v30 = vld [vmem:[#allocation2 + $0x9e8] sm:$0xff]  ;;  %v8215_v32 = vcombine.low %v331_v18, %v335_v19  ;;  %v387_v19 = vld [vmem:[#allocation2 + $0xb40] sm:$0xff] }
  0x94   :  { %3738 = vmatprep.subr.bf16.mxu0 %v8168_v33  ;;  %3902 = vmatprep.subr.bf16.mxu1 %v8170_v34  ;;  %v8217_v33 = vcombine.low %v332_v20, %v336_v21  ;;  %v8224_v34 = vcombine.high %v339_v59, %v343_v27  ;;  %v8226_v35 = vcombine.high %v340_v28, %v344_v30  ;;  %v391_v20 = vld [vmem:[#allocation2 + $0xb60] sm:$0xff]  ;;  %v388_v21 = vld [vmem:[#allocation2 + $0xb48] sm:$0xff] }
  0x96   :  { %3730 = vmatmul.mubr.bf16.vlgmr.msra.gmra.mrb[0].mxu0 %v9120_v23  ;;  %3894 = vmatmul.mubr.bf16.vlgmr.msra.gmra.mrb[0].mxu1 %v9120_v23 }
  0x97   :  { %3739 = vmatpush1.bf16.msra.mxu0 %v8167_v40  ;;  %3903 = vmatpush1.bf16.msra.mxu1 %v8169_v41  ;;  %v352_v40 = vld [vmem:[#allocation2 + $0xa28] sm:$0xff]  ;;  %v8223_v41 = vcombine.low %v339_v59, %v343_v27  ;;  %v395_v27 = vld [vmem:[#allocation2 + $0xb80] sm:$0xff] }
  0x98   :  { %3740 = vmatprep.subr.bf16.mxu0 %v8176_v42  ;;  %3904 = vmatprep.subr.bf16.mxu1 %v8178_v43  ;;  %v8225_v42 = vcombine.low %v340_v28, %v344_v30  ;;  %v8232_v43 = vcombine.high %v347_v36, %v351_v38  ;;  %v8234_v45 = vcombine.high %v348_v39, %v352_v40  ;;  %v399_v28 = vld [vmem:[#allocation2 + $0xba0] sm:$0xff]  ;;  %v396_v30 = vld [vmem:[#allocation2 + $0xb88] sm:$0xff] }
  0x99   :  { %3770 = vmatprep.mubr.bf16.mxu0 %v9141_v47  ;;  %3934 = vmatprep.mubr.bf16.mxu1 %v9141_v47 }
  0x9b   :  { %3741 = vmatpush1.bf16.msra.mxu0 %v8175_v50  ;;  %3905 = vmatpush1.bf16.msra.mxu1 %v8177_v51  ;;  %v360_v50 = vld [vmem:[#allocation2 + $0xa68] sm:$0xff]  ;;  %v8231_v51 = vcombine.low %v347_v36, %v351_v38  ;;  %v403_v38 = vld [vmem:[#allocation2 + $0xbc0] sm:$0xff] }
  0x9c   :  { %3742 = vmatprep.subr.bf16.mxu0 %v8184_v52  ;;  %3906 = vmatprep.subr.bf16.mxu1 %v8186_v54  ;;  %v8233_v52 = vcombine.low %v348_v39, %v352_v40  ;;  %v8240_v54 = vcombine.high %v355_v46, %v359_v48  ;;  %v8242_v55 = vcombine.high %v356_v49, %v360_v50  ;;  %v407_v39 = vld [vmem:[#allocation2 + $0xbe0] sm:$0xff]  ;;  %v404_v40 = vld [vmem:[#allocation2 + $0xbc8] sm:$0xff] }
  0x9f   :  { %3743 = vmatpush1.bf16.msra.mxu0 %v8183_v60  ;;  %3907 = vmatpush1.bf16.msra.mxu1 %v8185_v61  ;;  %v368_v60 = vld [vmem:[#allocation2 + $0xaa8] sm:$0xff]  ;;  %v8239_v61 = vcombine.low %v355_v46, %v359_v48  ;;  %v411_v48 = vld [vmem:[#allocation2 + $0xc00] sm:$0xff] }
  0xa0   :  { %3744 = vmatprep.subr.bf16.mxu0 %v8192_v62  ;;  %3908 = vmatprep.subr.bf16.mxu1 %v8194_v0  ;;  %v8241_v62 = vcombine.low %v356_v49, %v360_v50  ;;  %v8248_v0 = vcombine.high %v363_v56, %v367_v57  ;;  %v8250_v1 = vcombine.high %v364_v58, %v368_v60  ;;  %v415_v49 = vld [vmem:[#allocation2 + $0xc20] sm:$0xff] }
  0xa1   :  { %v1071_v50 = vcombine.high %v9133_v29, %v9133_v29 }
  0xa3   :  { %3745 = vmatpush1.bf16.msra.mxu0 %v8191_v6  ;;  %3909 = vmatpush1.bf16.msra.mxu1 %v8193_v7  ;;  %v376_v6 = vld [vmem:[#allocation2 + $0xae8] sm:$0xff]  ;;  %v8247_v7 = vcombine.low %v363_v56, %v367_v57  ;;  %v8296_v56 = vcombine.high %v411_v48, %v415_v49 }
  0xa4   :  { %3746 = vmatprep.subr.bf16.mxu0 %v8200_v8  ;;  %3910 = vmatprep.subr.bf16.mxu1 %v8202_v9  ;;  %v8249_v8 = vcombine.low %v364_v58, %v368_v60  ;;  %v8256_v9 = vcombine.high %v371_v2, %v375_v4  ;;  %v8258_v10 = vcombine.high %v372_v5, %v376_v6  ;;  %v419_v58 = vld [vmem:[#allocation2 + $0xc40] sm:$0xff] }
  0xa5   :  { %v423_v60 = vld [vmem:[#allocation2 + $0xc60] sm:$0xff] }
  0xa7   :  { %3747 = vmatpush1.bf16.msra.mxu0 %v8199_v14  ;;  %3911 = vmatpush1.bf16.msra.mxu1 %v8201_v15  ;;  %v384_v14 = vld [vmem:[#allocation2 + $0xb28] sm:$0xff]  ;;  %v8255_v15 = vcombine.low %v371_v2, %v375_v4  ;;  %v8304_v2 = vcombine.high %v419_v58, %v423_v60 }
  0xa8   :  { %3748 = vmatprep.subr.bf16.mxu0 %v8208_v16  ;;  %3912 = vmatprep.subr.bf16.mxu1 %v8210_v17  ;;  %v8257_v16 = vcombine.low %v372_v5, %v376_v6  ;;  %v8264_v17 = vcombine.high %v379_v11, %v383_v12  ;;  %v8266_v18 = vcombine.high %v380_v13, %v384_v14  ;;  %v427_v5 = vld [vmem:[#allocation2 + $0xc80] sm:$0xff] }
  0xa9   :  { %v431_v6 = vld [vmem:[#allocation2 + $0xca0] sm:$0xff] }
  0xab   :  { %3749 = vmatpush1.bf16.msra.mxu0 %v8207_v22  ;;  %3913 = vmatpush1.bf16.msra.mxu1 %v8209_v24  ;;  %v392_v22 = vld [vmem:[#allocation2 + $0xb68] sm:$0xff]  ;;  %v8263_v24 = vcombine.low %v379_v11, %v383_v12  ;;  %v8312_v11 = vcombine.high %v427_v5, %v431_v6 }
  0xac   :  { %3750 = vmatprep.subr.bf16.mxu0 %v8216_v25  ;;  %3914 = vmatprep.subr.bf16.mxu1 %v8218_v26  ;;  %v8265_v25 = vcombine.low %v380_v13, %v384_v14  ;;  %v8272_v26 = vcombine.high %v387_v19, %v391_v20  ;;  %v8274_v59 = vcombine.high %v388_v21, %v392_v22  ;;  %v435_v13 = vld [vmem:[#allocation2 + $0xcc0] sm:$0xff] }
  0xad   :  { %v439_v14 = vld [vmem:[#allocation2 + $0xce0] sm:$0xff] }
  0xaf   :  { %3751 = vmatpush1.bf16.msra.mxu0 %v8215_v32  ;;  %3915 = vmatpush1.bf16.msra.mxu1 %v8217_v33  ;;  %v400_v32 = vld [vmem:[#allocation2 + $0xba8] sm:$0xff]  ;;  %v8271_v33 = vcombine.low %v387_v19, %v391_v20  ;;  %v8320_v19 = vcombine.high %v435_v13, %v439_v14 }
  0xb0   :  { %3752 = vmatprep.subr.bf16.mxu0 %v8224_v34  ;;  %3916 = vmatprep.subr.bf16.mxu1 %v8226_v35  ;;  %v8273_v34 = vcombine.low %v388_v21, %v392_v22  ;;  %v8280_v35 = vcombine.high %v395_v27, %v399_v28  ;;  %v8282_v36 = vcombine.high %v396_v30, %v400_v32  ;;  %v443_v21 = vld [vmem:[#allocation2 + $0xd00] sm:$0xff] }
  0xb1   :  { %v447_v22 = vld [vmem:[#allocation2 + $0xd20] sm:$0xff] }
  0xb3   :  { %3753 = vmatpush1.bf16.msra.mxu0 %v8223_v41  ;;  %3917 = vmatpush1.bf16.msra.mxu1 %v8225_v42  ;;  %v408_v41 = vld [vmem:[#allocation2 + $0xbe8] sm:$0xff]  ;;  %v8279_v42 = vcombine.low %v395_v27, %v399_v28  ;;  %v8328_v27 = vcombine.high %v443_v21, %v447_v22 }
  0xb4   :  { %3754 = vmatprep.subr.bf16.mxu0 %v8232_v43  ;;  %3918 = vmatprep.subr.bf16.mxu1 %v8234_v45  ;;  %v8281_v43 = vcombine.low %v396_v30, %v400_v32  ;;  %v8288_v45 = vcombine.high %v403_v38, %v407_v39  ;;  %v8290_v46 = vcombine.high %v404_v40, %v408_v41  ;;  %v451_v30 = vld [vmem:[#allocation2 + $0xd40] sm:$0xff] }
  0xb5   :  { %v455_v32 = vld [vmem:[#allocation2 + $0xd60] sm:$0xff] }
  0xb7   :  { %3755 = vmatpush1.bf16.msra.mxu0 %v8231_v51  ;;  %3919 = vmatpush1.bf16.msra.mxu1 %v8233_v52  ;;  %v412_v51 = vld [vmem:[#allocation2 + $0xc08] sm:$0xff] }
  0xb8   :  { %3756 = vmatprep.subr.bf16.mxu0 %v8240_v54  ;;  %3920 = vmatprep.subr.bf16.mxu1 %v8242_v55  ;;  %v416_v52 = vld [vmem:[#allocation2 + $0xc28] sm:$0xff]  ;;  %v8287_v54 = vcombine.low %v403_v38, %v407_v39  ;;  %v8289_v55 = vcombine.low %v404_v40, %v408_v41  ;;  %v8336_v38 = vcombine.high %v451_v30, %v455_v32  ;;  %v459_v40 = vld [vmem:[#allocation2 + $0xd80] sm:$0xff] }
  0xb9   :  { %v8298_v57 = vcombine.high %v412_v51, %v416_v52  ;;  %v8297_v29 = vcombine.low %v412_v51, %v416_v52  ;;  %v463_v41 = vld [vmem:[#allocation2 + $0xda0] sm:$0xff]  ;;  %v468_v52 = vld [vmem:[#allocation2 + $0xdc8] sm:$0xff] }
  0xba   :  { %v471_v51 = vld [vmem:[#allocation2 + $0xde0] sm:$0xff] }
  0xbb   :  { %3757 = vmatpush1.bf16.msra.mxu0 %v8239_v61  ;;  %3921 = vmatpush1.bf16.msra.mxu1 %v8241_v62  ;;  %v9150_v61 = vrot.slane %v1071_v50, %v9100_v53  ;;  %v420_v62 = vld [vmem:[#allocation2 + $0xc48] sm:$0xff]  ;;  %v467_v50 = vld [vmem:[#allocation2 + $0xdc0] sm:$0xff] }
  0xbc   :  { %3758 = vmatprep.subr.bf16.mxu0 %v8248_v0  ;;  %3922 = vmatprep.subr.bf16.mxu1 %v8250_v1  ;;  %v424_v0 = vld [vmem:[#allocation2 + $0xc68] sm:$0xff]  ;;  %v8295_v1 = vcombine.low %v411_v48, %v415_v49  ;;  %v8344_v48 = vcombine.high %v459_v40, %v463_v41 }
  0xbd   :  { %v8306_v4 = vcombine.high %v420_v62, %v424_v0  ;;  %v428_v53 = vld [vmem:[#allocation2 + $0xc88] sm:$0xff] }
  0xbf   :  { %3759 = vmatpush1.bf16.msra.mxu0 %v8247_v7  ;;  %3923 = vmatpush1.bf16.msra.mxu1 %v8249_v8  ;;  %v9154_v7 = vcombine.high %v9150_v61, %v9150_v61  ;;  %v432_v8 = vld [vmem:[#allocation2 + $0xca8] sm:$0xff] }
  0xc0   :  { %3760 = vmatprep.subr.bf16.mxu0 %v8256_v9  ;;  %3924 = vmatprep.subr.bf16.mxu1 %v8258_v10  ;;  %v8303_v9 = vcombine.low %v419_v58, %v423_v60  ;;  %v8305_v10 = vcombine.low %v420_v62, %v424_v0  ;;  %v8314_v12 = vcombine.high %v428_v53, %v432_v8  ;;  %v475_v60 = vld [vmem:[#allocation2 + $0xe00] sm:$0xff]  ;;  %v476_v0 = vld [vmem:[#allocation2 + $0xe08] sm:$0xff] }
  0xc1   :  { %v479_v62 = vld [vmem:[#allocation2 + $0xe20] sm:$0xff] }
  0xc3   :  { %3761 = vmatpush1.bf16.msra.mxu0 %v8255_v15  ;;  %3925 = vmatpush1.bf16.msra.mxu1 %v8257_v16  ;;  %v436_v15 = vld [vmem:[#allocation2 + $0xcc8] sm:$0xff] }
  0xc4   :  { %3762 = vmatprep.subr.bf16.mxu0 %v8264_v17  ;;  %3926 = vmatprep.subr.bf16.mxu1 %v8266_v18  ;;  %v440_v16 = vld [vmem:[#allocation2 + $0xce8] sm:$0xff]  ;;  %v8311_v17 = vcombine.low %v427_v5, %v431_v6  ;;  %v8313_v18 = vcombine.low %v428_v53, %v432_v8  ;;  %v483_v6 = vld [vmem:[#allocation2 + $0xe40] sm:$0xff] }
  0xc5   :  { %v8322_v20 = vcombine.high %v436_v15, %v440_v16  ;;  %v487_v53 = vld [vmem:[#allocation2 + $0xe60] sm:$0xff]  ;;  %v484_v8 = vld [vmem:[#allocation2 + $0xe48] sm:$0xff] }
  0xc7   :  { %3763 = vmatpush1.bf16.msra.mxu0 %v8263_v24  ;;  %3927 = vmatpush1.bf16.msra.mxu1 %v8265_v25  ;;  %v444_v24 = vld [vmem:[#allocation2 + $0xd08] sm:$0xff] }
  0xc8   :  { %3764 = vmatprep.subr.bf16.mxu0 %v8272_v26  ;;  %3928 = vmatprep.subr.bf16.mxu1 %v8274_v59  ;;  %v448_v25 = vld [vmem:[#allocation2 + $0xd28] sm:$0xff]  ;;  %v8319_v26 = vcombine.low %v435_v13, %v439_v14  ;;  %v8321_v59 = vcombine.low %v436_v15, %v440_v16  ;;  %v491_v14 = vld [vmem:[#allocation2 + $0xe80] sm:$0xff] }
  0xc9   :  { %v8330_v28 = vcombine.high %v444_v24, %v448_v25  ;;  %v495_v15 = vld [vmem:[#allocation2 + $0xea0] sm:$0xff]  ;;  %v492_v16 = vld [vmem:[#allocation2 + $0xe88] sm:$0xff] }
  0xcb   :  { %3765 = vmatpush1.bf16.msra.mxu0 %v8271_v33  ;;  %3929 = vmatpush1.bf16.msra.mxu1 %v8273_v34  ;;  %v452_v33 = vld [vmem:[#allocation2 + $0xd48] sm:$0xff] }
  0xcc   :  { %3766 = vmatprep.subr.bf16.mxu0 %v8280_v35  ;;  %3930 = vmatprep.subr.bf16.mxu1 %v8282_v36  ;;  %v456_v34 = vld [vmem:[#allocation2 + $0xd68] sm:$0xff]  ;;  %v8327_v35 = vcombine.low %v443_v21, %v447_v22  ;;  %v8329_v36 = vcombine.low %v444_v24, %v448_v25  ;;  %v499_v22 = vld [vmem:[#allocation2 + $0xec0] sm:$0xff] }
  0xcd   :  { %v8338_v39 = vcombine.high %v452_v33, %v456_v34  ;;  %v503_v24 = vld [vmem:[#allocation2 + $0xee0] sm:$0xff]  ;;  %v500_v25 = vld [vmem:[#allocation2 + $0xec8] sm:$0xff] }
  0xcf   :  { %3767 = vmatpush1.bf16.msra.mxu0 %v8279_v42  ;;  %3931 = vmatpush1.bf16.msra.mxu1 %v8281_v43  ;;  %v460_v42 = vld [vmem:[#allocation2 + $0xd88] sm:$0xff] }
  0xd0   :  { %3768 = vmatprep.subr.bf16.mxu0 %v8288_v45  ;;  %3932 = vmatprep.subr.bf16.mxu1 %v8290_v46  ;;  %v464_v43 = vld [vmem:[#allocation2 + $0xda8] sm:$0xff]  ;;  %v8335_v45 = vcombine.low %v451_v30, %v455_v32  ;;  %v8337_v46 = vcombine.low %v452_v33, %v456_v34  ;;  %v507_v32 = vld [vmem:[#allocation2 + $0xf00] sm:$0xff] }
  0xd1   :  { %v8346_v49 = vcombine.high %v460_v42, %v464_v43  ;;  %v511_v33 = vld [vmem:[#allocation2 + $0xf20] sm:$0xff]  ;;  %v508_v34 = vld [vmem:[#allocation2 + $0xf08] sm:$0xff] }
  0xd3   :  { %3769 = vmatpush1.bf16.msra.mxu0 %v8287_v54  ;;  %3933 = vmatpush1.bf16.msra.mxu1 %v8289_v55  ;;  %v472_v54 = vld [vmem:[#allocation2 + $0xde8] sm:$0xff]  ;;  %v8343_v55 = vcombine.low %v459_v40, %v463_v41  ;;  %v515_v41 = vld [vmem:[#allocation2 + $0xf40] sm:$0xff] }
  0xd4   :  { %3779 = vmatprep.subr.bf16.mxu0 %v8296_v56  ;;  %3943 = vmatprep.subr.bf16.mxu1 %v8298_v57  ;;  %v8345_v56 = vcombine.low %v460_v42, %v464_v43  ;;  %v8352_v57 = vcombine.high %v467_v50, %v471_v51  ;;  %v8354_v58 = vcombine.high %v468_v52, %v472_v54  ;;  %v519_v42 = vld [vmem:[#allocation2 + $0xf60] sm:$0xff]  ;;  %v516_v43 = vld [vmem:[#allocation2 + $0xf48] sm:$0xff] }
  0xd6   :  { %3771 = vmatmul.mubr.bf16.vlgmr.msra.gmra.mrb[0].mxu0 %v9137_v37  ;;  %3935 = vmatmul.mubr.bf16.vlgmr.msra.gmra.mrb[0].mxu1 %v9137_v37 }
  0xd7   :  { %3780 = vmatpush1.bf16.msra.mxu0 %v8295_v1  ;;  %3944 = vmatpush1.bf16.msra.mxu1 %v8297_v29  ;;  %v480_v1 = vld [vmem:[#allocation2 + $0xe28] sm:$0xff]  ;;  %v8351_v29 = vcombine.low %v467_v50, %v471_v51  ;;  %v523_v51 = vld [vmem:[#allocation2 + $0xf80] sm:$0xff] }
  0xd8   :  { %3781 = vmatprep.subr.bf16.mxu0 %v8304_v2  ;;  %3945 = vmatprep.subr.bf16.mxu1 %v8306_v4  ;;  %v8353_v2 = vcombine.low %v468_v52, %v472_v54  ;;  %v8360_v4 = vcombine.high %v475_v60, %v479_v62  ;;  %v8362_v5 = vcombine.high %v476_v0, %v480_v1  ;;  %v527_v52 = vld [vmem:[#allocation2 + $0xfa0] sm:$0xff]  ;;  %v524_v54 = vld [vmem:[#allocation2 + $0xf88] sm:$0xff] }
  0xd9   :  { %3811 = vmatprep.mubr.bf16.mxu0 %v9154_v7  ;;  %3975 = vmatprep.mubr.bf16.mxu1 %v9154_v7 }
  0xdb   :  { %3782 = vmatpush1.bf16.msra.mxu0 %v8303_v9  ;;  %3946 = vmatpush1.bf16.msra.mxu1 %v8305_v10  ;;  %v488_v9 = vld [vmem:[#allocation2 + $0xe68] sm:$0xff]  ;;  %v8359_v10 = vcombine.low %v475_v60, %v479_v62  ;;  %v531_v62 = vld [vmem:[#allocation2 + $0xfc0] sm:$0xff] }
  0xdc   :  { %3783 = vmatprep.subr.bf16.mxu0 %v8312_v11  ;;  %3947 = vmatprep.subr.bf16.mxu1 %v8314_v12  ;;  %v8361_v11 = vcombine.low %v476_v0, %v480_v1  ;;  %v8368_v12 = vcombine.high %v483_v6, %v487_v53  ;;  %v8370_v13 = vcombine.high %v484_v8, %v488_v9  ;;  %v535_v0 = vld [vmem:[#allocation2 + $0xfe0] sm:$0xff]  ;;  %v532_v1 = vld [vmem:[#allocation2 + $0xfc8] sm:$0xff] }
  0xdf   :  { %3784 = vmatpush1.bf16.msra.mxu0 %v8311_v17  ;;  %3948 = vmatpush1.bf16.msra.mxu1 %v8313_v18  ;;  %v496_v17 = vld [vmem:[#allocation2 + $0xea8] sm:$0xff]  ;;  %v8367_v18 = vcombine.low %v483_v6, %v487_v53  ;;  %v29_v53 = vld [vmem:[#allocation2 + $0x10] sm:$0xff] }
  0xe0   :  { %3785 = vmatprep.subr.bf16.mxu0 %v8320_v19  ;;  %3949 = vmatprep.subr.bf16.mxu1 %v8322_v20  ;;  %v8369_v19 = vcombine.low %v484_v8, %v488_v9  ;;  %v8376_v20 = vcombine.high %v491_v14, %v495_v15  ;;  %v8378_v21 = vcombine.high %v492_v16, %v496_v17  ;;  %v33_v8 = vld [vmem:[#allocation2 + $0x30] sm:$0xff]  ;;  %v30_v9 = vld [vmem:[#allocation2 + $0x18] sm:$0xff] }
  0xe3   :  { %3786 = vmatpush1.bf16.msra.mxu0 %v8319_v26  ;;  %3950 = vmatpush1.bf16.msra.mxu1 %v8321_v59  ;;  %v504_v26 = vld [vmem:[#allocation2 + $0xee8] sm:$0xff]  ;;  %v8375_v59 = vcombine.low %v491_v14, %v495_v15  ;;  %v37_v15 = vld [vmem:[#allocation2 + $0x50] sm:$0xff] }
  0xe4   :  { %3787 = vmatprep.subr.bf16.mxu0 %v8328_v27  ;;  %3951 = vmatprep.subr.bf16.mxu1 %v8330_v28  ;;  %v8377_v27 = vcombine.low %v492_v16, %v496_v17  ;;  %v8384_v28 = vcombine.high %v499_v22, %v503_v24  ;;  %v8386_v30 = vcombine.high %v500_v25, %v504_v26  ;;  %v41_v16 = vld [vmem:[#allocation2 + $0x70] sm:$0xff]  ;;  %v38_v17 = vld [vmem:[#allocation2 + $0x58] sm:$0xff] }
  0xe7   :  { %3788 = vmatpush1.bf16.msra.mxu0 %v8327_v35  ;;  %3952 = vmatpush1.bf16.msra.mxu1 %v8329_v36  ;;  %v512_v35 = vld [vmem:[#allocation2 + $0xf28] sm:$0xff]  ;;  %v8383_v36 = vcombine.low %v499_v22, %v503_v24  ;;  %v45_v24 = vld [vmem:[#allocation2 + $0x90] sm:$0xff] }
  0xe8   :  { %3789 = vmatprep.subr.bf16.mxu0 %v8336_v38  ;;  %3953 = vmatprep.subr.bf16.mxu1 %v8338_v39  ;;  %v8385_v38 = vcombine.low %v500_v25, %v504_v26  ;;  %v8392_v39 = vcombine.high %v507_v32, %v511_v33  ;;  %v8394_v40 = vcombine.high %v508_v34, %v512_v35  ;;  %v49_v25 = vld [vmem:[#allocation2 + $0xb0] sm:$0xff]  ;;  %v46_v26 = vld [vmem:[#allocation2 + $0x98] sm:$0xff] }
  0xeb   :  { %3790 = vmatpush1.bf16.msra.mxu0 %v8335_v45  ;;  %3954 = vmatpush1.bf16.msra.mxu1 %v8337_v46  ;;  %v520_v45 = vld [vmem:[#allocation2 + $0xf68] sm:$0xff]  ;;  %v8391_v46 = vcombine.low %v507_v32, %v511_v33  ;;  %v53_v33 = vld [vmem:[#allocation2 + $0xd0] sm:$0xff] }
  0xec   :  { %3791 = vmatprep.subr.bf16.mxu0 %v8344_v48  ;;  %3955 = vmatprep.subr.bf16.mxu1 %v8346_v49  ;;  %v8393_v48 = vcombine.low %v508_v34, %v512_v35  ;;  %v8400_v49 = vcombine.high %v515_v41, %v519_v42  ;;  %v8402_v50 = vcombine.high %v516_v43, %v520_v45  ;;  %v57_v34 = vld [vmem:[#allocation2 + $0xf0] sm:$0xff]  ;;  %v54_v35 = vld [vmem:[#allocation2 + $0xd8] sm:$0xff] }
  0xef   :  { %3792 = vmatpush1.bf16.msra.mxu0 %v8343_v55  ;;  %3956 = vmatpush1.bf16.msra.mxu1 %v8345_v56  ;;  %v528_v55 = vld [vmem:[#allocation2 + $0xfa8] sm:$0xff]  ;;  %v8399_v56 = vcombine.low %v515_v41, %v519_v42  ;;  %v61_v42 = vld [vmem:[#allocation2 + $0x110] sm:$0xff] }
  0xf0   :  { %3793 = vmatprep.subr.bf16.mxu0 %v8352_v57  ;;  %3957 = vmatprep.subr.bf16.mxu1 %v8354_v58  ;;  %v8401_v57 = vcombine.low %v516_v43, %v520_v45  ;;  %v8408_v58 = vcombine.high %v523_v51, %v527_v52  ;;  %v8410_v60 = vcombine.high %v524_v54, %v528_v55  ;;  %v65_v43 = vld [vmem:[#allocation2 + $0x130] sm:$0xff]  ;;  %v62_v45 = vld [vmem:[#allocation2 + $0x118] sm:$0xff] }
  0xf3   :  { %3794 = vmatpush1.bf16.msra.mxu0 %v8351_v29  ;;  %3958 = vmatpush1.bf16.msra.mxu1 %v8353_v2  ;;  %v536_v29 = vld [vmem:[#allocation2 + $0xfe8] sm:$0xff]  ;;  %v8407_v2 = vcombine.low %v523_v51, %v527_v52  ;;  %v69_v52 = vld [vmem:[#allocation2 + $0x150] sm:$0xff] }
  0xf4   :  { %3795 = vmatprep.subr.bf16.mxu0 %v8360_v4  ;;  %3959 = vmatprep.subr.bf16.mxu1 %v8362_v5  ;;  %v8409_v4 = vcombine.low %v524_v54, %v528_v55  ;;  %v8416_v5 = vcombine.high %v531_v62, %v535_v0  ;;  %v8418_v6 = vcombine.high %v532_v1, %v536_v29  ;;  %v73_v54 = vld [vmem:[#allocation2 + $0x170] sm:$0xff]  ;;  %v70_v55 = vld [vmem:[#allocation2 + $0x158] sm:$0xff] }
  0xf7   :  { %3796 = vmatpush1.bf16.msra.mxu0 %v8359_v10  ;;  %3960 = vmatpush1.bf16.msra.mxu1 %v8361_v11  ;;  %v34_v10 = vld [vmem:[#allocation2 + $0x38] sm:$0xff]  ;;  %v8415_v11 = vcombine.low %v531_v62, %v535_v0  ;;  %v77_v0 = vld [vmem:[#allocation2 + $0x190] sm:$0xff] }
  0xf8   :  { %3797 = vmatprep.subr.bf16.mxu0 %v8368_v12  ;;  %3961 = vmatprep.subr.bf16.mxu1 %v8370_v13  ;;  %v8417_v12 = vcombine.low %v532_v1, %v536_v29  ;;  %v7916_v13 = vcombine.high %v29_v53, %v33_v8  ;;  %v7918_v14 = vcombine.high %v30_v9, %v34_v10  ;;  %v81_v1 = vld [vmem:[#allocation2 + $0x1b0] sm:$0xff]  ;;  %v78_v29 = vld [vmem:[#allocation2 + $0x198] sm:$0xff] }
  0xfb   :  { %3798 = vmatpush1.bf16.msra.mxu0 %v8367_v18  ;;  %3962 = vmatpush1.bf16.msra.mxu1 %v8369_v19  ;;  %v42_v18 = vld [vmem:[#allocation2 + $0x78] sm:$0xff]  ;;  %v7915_v19 = vcombine.low %v29_v53, %v33_v8  ;;  %v85_v8 = vld [vmem:[#allocation2 + $0x1d0] sm:$0xff] }
  0xfc   :  { %3799 = vmatprep.subr.bf16.mxu0 %v8376_v20  ;;  %3963 = vmatprep.subr.bf16.mxu1 %v8378_v21  ;;  %v7917_v20 = vcombine.low %v30_v9, %v34_v10  ;;  %v7924_v21 = vcombine.high %v37_v15, %v41_v16  ;;  %v7926_v22 = vcombine.high %v38_v17, %v42_v18  ;;  %v89_v9 = vld [vmem:[#allocation2 + $0x1f0] sm:$0xff]  ;;  %v86_v10 = vld [vmem:[#allocation2 + $0x1d8] sm:$0xff] }
  0xff   :  { %3800 = vmatpush1.bf16.msra.mxu0 %v8375_v59  ;;  %3964 = vmatpush1.bf16.msra.mxu1 %v8377_v27  ;;  %v50_v59 = vld [vmem:[#allocation2 + $0xb8] sm:$0xff]  ;;  %v7923_v27 = vcombine.low %v37_v15, %v41_v16  ;;  %v93_v16 = vld [vmem:[#allocation2 + $0x210] sm:$0xff] }
 0x100   :  { %3801 = vmatprep.subr.bf16.mxu0 %v8384_v28  ;;  %3965 = vmatprep.subr.bf16.mxu1 %v8386_v30  ;;  %v7925_v28 = vcombine.low %v38_v17, %v42_v18  ;;  %v7932_v30 = vcombine.high %v45_v24, %v49_v25  ;;  %v7934_v32 = vcombine.high %v46_v26, %v50_v59  ;;  %v97_v17 = vld [vmem:[#allocation2 + $0x230] sm:$0xff]  ;;  %v94_v18 = vld [vmem:[#allocation2 + $0x218] sm:$0xff] }
 0x103   :  { %3802 = vmatpush1.bf16.msra.mxu0 %v8383_v36  ;;  %3966 = vmatpush1.bf16.msra.mxu1 %v8385_v38  ;;  %v58_v36 = vld [vmem:[#allocation2 + $0xf8] sm:$0xff]  ;;  %v7931_v38 = vcombine.low %v45_v24, %v49_v25  ;;  %v101_v25 = vld [vmem:[#allocation2 + $0x250] sm:$0xff] }
 0x104   :  { %3803 = vmatprep.subr.bf16.mxu0 %v8392_v39  ;;  %3967 = vmatprep.subr.bf16.mxu1 %v8394_v40  ;;  %v7933_v39 = vcombine.low %v46_v26, %v50_v59  ;;  %v7940_v40 = vcombine.high %v53_v33, %v57_v34  ;;  %v7942_v41 = vcombine.high %v54_v35, %v58_v36  ;;  %v105_v26 = vld [vmem:[#allocation2 + $0x270] sm:$0xff]  ;;  %v102_v59 = vld [vmem:[#allocation2 + $0x258] sm:$0xff] }
 0x107   :  { %3804 = vmatpush1.bf16.msra.mxu0 %v8391_v46  ;;  %3968 = vmatpush1.bf16.msra.mxu1 %v8393_v48  ;;  %v66_v46 = vld [vmem:[#allocation2 + $0x138] sm:$0xff]  ;;  %v7939_v48 = vcombine.low %v53_v33, %v57_v34  ;;  %v109_v34 = vld [vmem:[#allocation2 + $0x290] sm:$0xff] }
 0x108   :  { %3805 = vmatprep.subr.bf16.mxu0 %v8400_v49  ;;  %3969 = vmatprep.subr.bf16.mxu1 %v8402_v50  ;;  %v7941_v49 = vcombine.low %v54_v35, %v58_v36  ;;  %v7948_v50 = vcombine.high %v61_v42, %v65_v43  ;;  %v7950_v51 = vcombine.high %v62_v45, %v66_v46  ;;  %v113_v35 = vld [vmem:[#allocation2 + $0x2b0] sm:$0xff]  ;;  %v110_v36 = vld [vmem:[#allocation2 + $0x298] sm:$0xff] }
 0x10b   :  { %3806 = vmatpush1.bf16.msra.mxu0 %v8399_v56  ;;  %3970 = vmatpush1.bf16.msra.mxu1 %v8401_v57  ;;  %v74_v56 = vld [vmem:[#allocation2 + $0x178] sm:$0xff]  ;;  %v7947_v57 = vcombine.low %v61_v42, %v65_v43  ;;  %v117_v43 = vld [vmem:[#allocation2 + $0x2d0] sm:$0xff] }
 0x10c   :  { %3807 = vmatprep.subr.bf16.mxu0 %v8408_v58  ;;  %3971 = vmatprep.subr.bf16.mxu1 %v8410_v60  ;;  %v7949_v58 = vcombine.low %v62_v45, %v66_v46  ;;  %v7956_v60 = vcombine.high %v69_v52, %v73_v54  ;;  %v7958_v62 = vcombine.high %v70_v55, %v74_v56  ;;  %v121_v45 = vld [vmem:[#allocation2 + $0x2f0] sm:$0xff]  ;;  %v118_v46 = vld [vmem:[#allocation2 + $0x2d8] sm:$0xff] }
 0x10f   :  { %3808 = vmatpush1.bf16.msra.mxu0 %v8407_v2  ;;  %3972 = vmatpush1.bf16.msra.mxu1 %v8409_v4  ;;  %v82_v2 = vld [vmem:[#allocation2 + $0x1b8] sm:$0xff]  ;;  %v7955_v4 = vcombine.low %v69_v52, %v73_v54  ;;  %v125_v54 = vld [vmem:[#allocation2 + $0x310] sm:$0xff] }
 0x110   :  { %3809 = vmatprep.subr.bf16.mxu0 %v8416_v5  ;;  %3973 = vmatprep.subr.bf16.mxu1 %v8418_v6  ;;  %v7957_v5 = vcombine.low %v70_v55, %v74_v56  ;;  %v7964_v6 = vcombine.high %v77_v0, %v81_v1  ;;  %v7966_v53 = vcombine.high %v78_v29, %v82_v2  ;;  %v129_v55 = vld [vmem:[#allocation2 + $0x330] sm:$0xff]  ;;  %v126_v56 = vld [vmem:[#allocation2 + $0x318] sm:$0xff] }
 0x113   :  { %3810 = vmatpush1.bf16.msra.mxu0 %v8415_v11  ;;  %3974 = vmatpush1.bf16.msra.mxu1 %v8417_v12  ;;  %v90_v11 = vld [vmem:[#allocation2 + $0x1f8] sm:$0xff]  ;;  %v7963_v12 = vcombine.low %v77_v0, %v81_v1  ;;  %v133_v1 = vld [vmem:[#allocation2 + $0x350] sm:$0xff] }
 0x114   :  { %3984 = vmatprep.subr.bf16.mxu0 %v7916_v13  ;;  %4148 = vmatprep.subr.bf16.mxu1 %v7918_v14  ;;  %v7965_v13 = vcombine.low %v78_v29, %v82_v2  ;;  %v7972_v14 = vcombine.high %v85_v8, %v89_v9  ;;  %v7974_v15 = vcombine.high %v86_v10, %v90_v11  ;;  %v137_v29 = vld [vmem:[#allocation2 + $0x370] sm:$0xff]  ;;  %v134_v2 = vld [vmem:[#allocation2 + $0x358] sm:$0xff] }
 0x116   :  { %3812 = vmatmul.mubr.bf16.vlgmr.msra.gmra.mrb[0].mxu0 %v9150_v61  ;;  %3976 = vmatmul.mubr.bf16.vlgmr.msra.gmra.mrb[0].mxu1 %v9150_v61 }
 0x117   :  { %3985 = vmatpush1.bf16.msra.mxu0 %v7915_v19  ;;  %4149 = vmatpush1.bf16.msra.mxu1 %v7917_v20  ;;  %v98_v19 = vld [vmem:[#allocation2 + $0x238] sm:$0xff]  ;;  %v7971_v20 = vcombine.low %v85_v8, %v89_v9  ;;  %v141_v9 = vld [vmem:[#allocation2 + $0x390] sm:$0xff] }
 0x118   :  { %3986 = vmatprep.subr.bf16.mxu0 %v7924_v21  ;;  %4150 = vmatprep.subr.bf16.mxu1 %v7926_v22  ;;  %v7973_v21 = vcombine.low %v86_v10, %v90_v11  ;;  %v7980_v22 = vcombine.high %v93_v16, %v97_v17  ;;  %v7982_v24 = vcombine.high %v94_v18, %v98_v19  ;;  %v145_v10 = vld [vmem:[#allocation2 + $0x3b0] sm:$0xff]  ;;  %v142_v11 = vld [vmem:[#allocation2 + $0x398] sm:$0xff] }
 0x119   :  { %4016 = vmatprep.mubr.bf16.mxu0 %v9113_v3  ;;  %4180 = vmatprep.mubr.bf16.mxu1 %v9113_v3 }
 0x11b   :  { %3987 = vmatpush1.bf16.msra.mxu0 %v7923_v27  ;;  %4151 = vmatpush1.bf16.msra.mxu1 %v7925_v28  ;;  %v106_v27 = vld [vmem:[#allocation2 + $0x278] sm:$0xff]  ;;  %v7979_v28 = vcombine.low %v93_v16, %v97_v17  ;;  %v149_v17 = vld [vmem:[#allocation2 + $0x3d0] sm:$0xff] }
 0x11c   :  { %3988 = vmatprep.subr.bf16.mxu0 %v7932_v30  ;;  %4152 = vmatprep.subr.bf16.mxu1 %v7934_v32  ;;  %v7981_v30 = vcombine.low %v94_v18, %v98_v19  ;;  %v7988_v32 = vcombine.high %v101_v25, %v105_v26  ;;  %v7990_v33 = vcombine.high %v102_v59, %v106_v27  ;;  %v153_v18 = vld [vmem:[#allocation2 + $0x3f0] sm:$0xff]  ;;  %v150_v19 = vld [vmem:[#allocation2 + $0x3d8] sm:$0xff] }
 0x11f   :  { %3989 = vmatpush1.bf16.msra.mxu0 %v7931_v38  ;;  %4153 = vmatpush1.bf16.msra.mxu1 %v7933_v39  ;;  %v114_v38 = vld [vmem:[#allocation2 + $0x2b8] sm:$0xff]  ;;  %v7987_v39 = vcombine.low %v101_v25, %v105_v26  ;;  %v157_v26 = vld [vmem:[#allocation2 + $0x410] sm:$0xff] }
 0x120   :  { %3990 = vmatprep.subr.bf16.mxu0 %v7940_v40  ;;  %4154 = vmatprep.subr.bf16.mxu1 %v7942_v41  ;;  %v7989_v40 = vcombine.low %v102_v59, %v106_v27  ;;  %v7996_v41 = vcombine.high %v109_v34, %v113_v35  ;;  %v7998_v42 = vcombine.high %v110_v36, %v114_v38  ;;  %v161_v59 = vld [vmem:[#allocation2 + $0x430] sm:$0xff]  ;;  %v158_v27 = vld [vmem:[#allocation2 + $0x418] sm:$0xff] }
 0x123   :  { %3991 = vmatpush1.bf16.msra.mxu0 %v7939_v48  ;;  %4155 = vmatpush1.bf16.msra.mxu1 %v7941_v49  ;;  %v122_v48 = vld [vmem:[#allocation2 + $0x2f8] sm:$0xff]  ;;  %v7995_v49 = vcombine.low %v109_v34, %v113_v35  ;;  %v165_v35 = vld [vmem:[#allocation2 + $0x450] sm:$0xff] }
 0x124   :  { %3992 = vmatprep.subr.bf16.mxu0 %v7948_v50  ;;  %4156 = vmatprep.subr.bf16.mxu1 %v7950_v51  ;;  %v7997_v50 = vcombine.low %v110_v36, %v114_v38  ;;  %v8004_v51 = vcombine.high %v117_v43, %v121_v45  ;;  %v8006_v52 = vcombine.high %v118_v46, %v122_v48  ;;  %v169_v36 = vld [vmem:[#allocation2 + $0x470] sm:$0xff]  ;;  %v166_v38 = vld [vmem:[#allocation2 + $0x458] sm:$0xff] }
 0x127   :  { %3993 = vmatpush1.bf16.msra.mxu0 %v7947_v57  ;;  %4157 = vmatpush1.bf16.msra.mxu1 %v7949_v58  ;;  %v130_v57 = vld [vmem:[#allocation2 + $0x338] sm:$0xff]  ;;  %v8003_v58 = vcombine.low %v117_v43, %v121_v45  ;;  %v173_v45 = vld [vmem:[#allocation2 + $0x490] sm:$0xff] }
 0x128   :  { %3994 = vmatprep.subr.bf16.mxu0 %v7956_v60  ;;  %4158 = vmatprep.subr.bf16.mxu1 %v7958_v62  ;;  %v8005_v60 = vcombine.low %v118_v46, %v122_v48  ;;  %v8012_v62 = vcombine.high %v125_v54, %v129_v55  ;;  %v8014_v0 = vcombine.high %v126_v56, %v130_v57  ;;  %v177_v46 = vld [vmem:[#allocation2 + $0x4b0] sm:$0xff]  ;;  %v174_v48 = vld [vmem:[#allocation2 + $0x498] sm:$0xff] }
 0x12b   :  { %3995 = vmatpush1.bf16.msra.mxu0 %v7955_v4  ;;  %4159 = vmatpush1.bf16.msra.mxu1 %v7957_v5  ;;  %v138_v4 = vld [vmem:[#allocation2 + $0x378] sm:$0xff]  ;;  %v8011_v5 = vcombine.low %v125_v54, %v129_v55  ;;  %v181_v55 = vld [vmem:[#allocation2 + $0x4d0] sm:$0xff] }
 0x12c   :  { %3996 = vmatprep.subr.bf16.mxu0 %v7964_v6  ;;  %4160 = vmatprep.subr.bf16.mxu1 %v7966_v53  ;;  %v8013_v6 = vcombine.low %v126_v56, %v130_v57  ;;  %v8020_v53 = vcombine.high %v133_v1, %v137_v29  ;;  %v8022_v8 = vcombine.high %v134_v2, %v138_v4  ;;  %v185_v56 = vld [vmem:[#allocation2 + $0x4f0] sm:$0xff]  ;;  %v182_v57 = vld [vmem:[#allocation2 + $0x4d8] sm:$0xff] }
 0x12f   :  { %3997 = vmatpush1.bf16.msra.mxu0 %v7963_v12  ;;  %4161 = vmatpush1.bf16.msra.mxu1 %v7965_v13  ;;  %v146_v12 = vld [vmem:[#allocation2 + $0x3b8] sm:$0xff]  ;;  %v8019_v13 = vcombine.low %v133_v1, %v137_v29  ;;  %v189_v29 = vld [vmem:[#allocation2 + $0x510] sm:$0xff] }
 0x130   :  { %3998 = vmatprep.subr.bf16.mxu0 %v7972_v14  ;;  %4162 = vmatprep.subr.bf16.mxu1 %v7974_v15  ;;  %v8021_v14 = vcombine.low %v134_v2, %v138_v4  ;;  %v8028_v15 = vcombine.high %v141_v9, %v145_v10  ;;  %v8030_v16 = vcombine.high %v142_v11, %v146_v12  ;;  %v193_v2 = vld [vmem:[#allocation2 + $0x530] sm:$0xff]  ;;  %v190_v4 = vld [vmem:[#allocation2 + $0x518] sm:$0xff] }
 0x133   :  { %3999 = vmatpush1.bf16.msra.mxu0 %v7971_v20  ;;  %4163 = vmatpush1.bf16.msra.mxu1 %v7973_v21  ;;  %v154_v20 = vld [vmem:[#allocation2 + $0x3f8] sm:$0xff]  ;;  %v8027_v21 = vcombine.low %v141_v9, %v145_v10  ;;  %v197_v10 = vld [vmem:[#allocation2 + $0x550] sm:$0xff] }
 0x134   :  { %4000 = vmatprep.subr.bf16.mxu0 %v7980_v22  ;;  %4164 = vmatprep.subr.bf16.mxu1 %v7982_v24  ;;  %v8029_v22 = vcombine.low %v142_v11, %v146_v12  ;;  %v8036_v24 = vcombine.high %v149_v17, %v153_v18  ;;  %v8038_v25 = vcombine.high %v150_v19, %v154_v20  ;;  %v201_v11 = vld [vmem:[#allocation2 + $0x570] sm:$0xff]  ;;  %v198_v12 = vld [vmem:[#allocation2 + $0x558] sm:$0xff] }
 0x137   :  { %4001 = vmatpush1.bf16.msra.mxu0 %v7979_v28  ;;  %4165 = vmatpush1.bf16.msra.mxu1 %v7981_v30  ;;  %v162_v28 = vld [vmem:[#allocation2 + $0x438] sm:$0xff]  ;;  %v8035_v30 = vcombine.low %v149_v17, %v153_v18  ;;  %v205_v18 = vld [vmem:[#allocation2 + $0x590] sm:$0xff] }
 0x138   :  { %4002 = vmatprep.subr.bf16.mxu0 %v7988_v32  ;;  %4166 = vmatprep.subr.bf16.mxu1 %v7990_v33  ;;  %v8037_v32 = vcombine.low %v150_v19, %v154_v20  ;;  %v8044_v33 = vcombine.high %v157_v26, %v161_v59  ;;  %v8046_v34 = vcombine.high %v158_v27, %v162_v28  ;;  %v209_v19 = vld [vmem:[#allocation2 + $0x5b0] sm:$0xff]  ;;  %v206_v20 = vld [vmem:[#allocation2 + $0x598] sm:$0xff] }
 0x13b   :  { %4003 = vmatpush1.bf16.msra.mxu0 %v7987_v39  ;;  %4167 = vmatpush1.bf16.msra.mxu1 %v7989_v40  ;;  %v170_v39 = vld [vmem:[#allocation2 + $0x478] sm:$0xff]  ;;  %v8043_v40 = vcombine.low %v157_v26, %v161_v59  ;;  %v213_v59 = vld [vmem:[#allocation2 + $0x5d0] sm:$0xff] }
 0x13c   :  { %4004 = vmatprep.subr.bf16.mxu0 %v7996_v41  ;;  %4168 = vmatprep.subr.bf16.mxu1 %v7998_v42  ;;  %v8045_v41 = vcombine.low %v158_v27, %v162_v28  ;;  %v8052_v42 = vcombine.high %v165_v35, %v169_v36  ;;  %v8054_v43 = vcombine.high %v166_v38, %v170_v39  ;;  %v217_v27 = vld [vmem:[#allocation2 + $0x5f0] sm:$0xff]  ;;  %v214_v28 = vld [vmem:[#allocation2 + $0x5d8] sm:$0xff] }
 0x13f   :  { %4005 = vmatpush1.bf16.msra.mxu0 %v7995_v49  ;;  %4169 = vmatpush1.bf16.msra.mxu1 %v7997_v50  ;;  %v178_v49 = vld [vmem:[#allocation2 + $0x4b8] sm:$0xff]  ;;  %v8051_v50 = vcombine.low %v165_v35, %v169_v36  ;;  %v221_v36 = vld [vmem:[#allocation2 + $0x610] sm:$0xff] }
 0x140   :  { %4006 = vmatprep.subr.bf16.mxu0 %v8004_v51  ;;  %4170 = vmatprep.subr.bf16.mxu1 %v8006_v52  ;;  %v8053_v51 = vcombine.low %v166_v38, %v170_v39  ;;  %v8060_v52 = vcombine.high %v173_v45, %v177_v46  ;;  %v8062_v54 = vcombine.high %v174_v48, %v178_v49  ;;  %v225_v38 = vld [vmem:[#allocation2 + $0x630] sm:$0xff]  ;;  %v222_v39 = vld [vmem:[#allocation2 + $0x618] sm:$0xff] }
 0x143   :  { %4007 = vmatpush1.bf16.msra.mxu0 %v8003_v58  ;;  %4171 = vmatpush1.bf16.msra.mxu1 %v8005_v60  ;;  %v186_v58 = vld [vmem:[#allocation2 + $0x4f8] sm:$0xff]  ;;  %v8059_v60 = vcombine.low %v173_v45, %v177_v46  ;;  %v229_v46 = vld [vmem:[#allocation2 + $0x650] sm:$0xff] }
 0x144   :  { %4008 = vmatprep.subr.bf16.mxu0 %v8012_v62  ;;  %4172 = vmatprep.subr.bf16.mxu1 %v8014_v0  ;;  %v8061_v62 = vcombine.low %v174_v48, %v178_v49  ;;  %v8068_v0 = vcombine.high %v181_v55, %v185_v56  ;;  %v8070_v1 = vcombine.high %v182_v57, %v186_v58  ;;  %v233_v48 = vld [vmem:[#allocation2 + $0x670] sm:$0xff]  ;;  %v230_v49 = vld [vmem:[#allocation2 + $0x658] sm:$0xff] }
 0x147   :  { %4009 = vmatpush1.bf16.msra.mxu0 %v8011_v5  ;;  %4173 = vmatpush1.bf16.msra.mxu1 %v8013_v6  ;;  %v194_v5 = vld [vmem:[#allocation2 + $0x538] sm:$0xff]  ;;  %v8067_v6 = vcombine.low %v181_v55, %v185_v56  ;;  %v237_v56 = vld [vmem:[#allocation2 + $0x690] sm:$0xff] }
 0x148   :  { %4010 = vmatprep.subr.bf16.mxu0 %v8020_v53  ;;  %4174 = vmatprep.subr.bf16.mxu1 %v8022_v8  ;;  %v8069_v53 = vcombine.low %v182_v57, %v186_v58  ;;  %v8076_v8 = vcombine.high %v189_v29, %v193_v2  ;;  %v8078_v9 = vcombine.high %v190_v4, %v194_v5  ;;  %v241_v57 = vld [vmem:[#allocation2 + $0x6b0] sm:$0xff]  ;;  %v238_v58 = vld [vmem:[#allocation2 + $0x698] sm:$0xff] }
 0x14b   :  { %4011 = vmatpush1.bf16.msra.mxu0 %v8019_v13  ;;  %4175 = vmatpush1.bf16.msra.mxu1 %v8021_v14  ;;  %v202_v13 = vld [vmem:[#allocation2 + $0x578] sm:$0xff]  ;;  %v8075_v14 = vcombine.low %v189_v29, %v193_v2  ;;  %v245_v2 = vld [vmem:[#allocation2 + $0x6d0] sm:$0xff] }
 0x14c   :  { %4012 = vmatprep.subr.bf16.mxu0 %v8028_v15  ;;  %4176 = vmatprep.subr.bf16.mxu1 %v8030_v16  ;;  %v8077_v15 = vcombine.low %v190_v4, %v194_v5  ;;  %v8084_v16 = vcombine.high %v197_v10, %v201_v11  ;;  %v8086_v17 = vcombine.high %v198_v12, %v202_v13  ;;  %v249_v4 = vld [vmem:[#allocation2 + $0x6f0] sm:$0xff]  ;;  %v246_v5 = vld [vmem:[#allocation2 + $0x6d8] sm:$0xff] }
 0x14f   :  { %4013 = vmatpush1.bf16.msra.mxu0 %v8027_v21  ;;  %4177 = vmatpush1.bf16.msra.mxu1 %v8029_v22  ;;  %v210_v21 = vld [vmem:[#allocation2 + $0x5b8] sm:$0xff]  ;;  %v8083_v22 = vcombine.low %v197_v10, %v201_v11  ;;  %v253_v11 = vld [vmem:[#allocation2 + $0x710] sm:$0xff] }
 0x150   :  { %4014 = vmatprep.subr.bf16.mxu0 %v8036_v24  ;;  %4178 = vmatprep.subr.bf16.mxu1 %v8038_v25  ;;  %v8085_v24 = vcombine.low %v198_v12, %v202_v13  ;;  %v8092_v25 = vcombine.high %v205_v18, %v209_v19  ;;  %v8094_v26 = vcombine.high %v206_v20, %v210_v21  ;;  %v257_v12 = vld [vmem:[#allocation2 + $0x730] sm:$0xff]  ;;  %v254_v13 = vld [vmem:[#allocation2 + $0x718] sm:$0xff] }
 0x153   :  { %4015 = vmatpush1.bf16.msra.mxu0 %v8035_v30  ;;  %4179 = vmatpush1.bf16.msra.mxu1 %v8037_v32  ;;  %v218_v30 = vld [vmem:[#allocation2 + $0x5f8] sm:$0xff]  ;;  %v8091_v32 = vcombine.low %v205_v18, %v209_v19  ;;  %v261_v19 = vld [vmem:[#allocation2 + $0x750] sm:$0xff] }
 0x154   :  { %4025 = vmatprep.subr.bf16.mxu0 %v8044_v33  ;;  %4189 = vmatprep.subr.bf16.mxu1 %v8046_v34  ;;  %v8093_v33 = vcombine.low %v206_v20, %v210_v21  ;;  %v8100_v34 = vcombine.high %v213_v59, %v217_v27  ;;  %v8102_v35 = vcombine.high %v214_v28, %v218_v30  ;;  %v265_v20 = vld [vmem:[#allocation2 + $0x770] sm:$0xff]  ;;  %v262_v21 = vld [vmem:[#allocation2 + $0x758] sm:$0xff] }
 0x156   :  { %4017 = vmatmul.mubr.bf16.vlgmr.msra.gmra.mrb[4].mxu0 %v9109_v63  ;;  %4181 = vmatmul.mubr.bf16.vlgmr.msra.gmra.mrb[4].mxu1 %v9109_v63 }
 0x157   :  { %4026 = vmatpush1.bf16.msra.mxu0 %v8043_v40  ;;  %4190 = vmatpush1.bf16.msra.mxu1 %v8045_v41  ;;  %v226_v40 = vld [vmem:[#allocation2 + $0x638] sm:$0xff]  ;;  %v8099_v41 = vcombine.low %v213_v59, %v217_v27  ;;  %v269_v27 = vld [vmem:[#allocation2 + $0x790] sm:$0xff] }
 0x158   :  { %4027 = vmatprep.subr.bf16.mxu0 %v8052_v42  ;;  %4191 = vmatprep.subr.bf16.mxu1 %v8054_v43  ;;  %v8101_v42 = vcombine.low %v214_v28, %v218_v30  ;;  %v8108_v43 = vcombine.high %v221_v36, %v225_v38  ;;  %v8110_v45 = vcombine.high %v222_v39, %v226_v40  ;;  %v273_v28 = vld [vmem:[#allocation2 + $0x7b0] sm:$0xff]  ;;  %v270_v30 = vld [vmem:[#allocation2 + $0x798] sm:$0xff] }
 0x159   :  { %4057 = vmatprep.mubr.bf16.mxu0 %v9124_v31  ;;  %4221 = vmatprep.mubr.bf16.mxu1 %v9124_v31 }
 0x15b   :  { %4028 = vmatpush1.bf16.msra.mxu0 %v8051_v50  ;;  %4192 = vmatpush1.bf16.msra.mxu1 %v8053_v51  ;;  %v234_v50 = vld [vmem:[#allocation2 + $0x678] sm:$0xff]  ;;  %v8107_v51 = vcombine.low %v221_v36, %v225_v38  ;;  %v277_v38 = vld [vmem:[#allocation2 + $0x7d0] sm:$0xff] }
 0x15c   :  { %4029 = vmatprep.subr.bf16.mxu0 %v8060_v52  ;;  %4193 = vmatprep.subr.bf16.mxu1 %v8062_v54  ;;  %v8109_v52 = vcombine.low %v222_v39, %v226_v40  ;;  %v8116_v54 = vcombine.high %v229_v46, %v233_v48  ;;  %v8118_v55 = vcombine.high %v230_v49, %v234_v50  ;;  %v281_v39 = vld [vmem:[#allocation2 + $0x7f0] sm:$0xff]  ;;  %v278_v40 = vld [vmem:[#allocation2 + $0x7d8] sm:$0xff] }
 0x15f   :  { %4030 = vmatpush1.bf16.msra.mxu0 %v8059_v60  ;;  %4194 = vmatpush1.bf16.msra.mxu1 %v8061_v62  ;;  %v242_v60 = vld [vmem:[#allocation2 + $0x6b8] sm:$0xff]  ;;  %v8115_v62 = vcombine.low %v229_v46, %v233_v48  ;;  %v285_v48 = vld [vmem:[#allocation2 + $0x810] sm:$0xff] }
 0x160   :  { %4031 = vmatprep.subr.bf16.mxu0 %v8068_v0  ;;  %4195 = vmatprep.subr.bf16.mxu1 %v8070_v1  ;;  %v8117_v0 = vcombine.low %v230_v49, %v234_v50  ;;  %v8124_v1 = vcombine.high %v237_v56, %v241_v57  ;;  %v8126_v29 = vcombine.high %v238_v58, %v242_v60  ;;  %v289_v49 = vld [vmem:[#allocation2 + $0x830] sm:$0xff]  ;;  %v286_v50 = vld [vmem:[#allocation2 + $0x818] sm:$0xff] }
 0x163   :  { %4032 = vmatpush1.bf16.msra.mxu0 %v8067_v6  ;;  %4196 = vmatpush1.bf16.msra.mxu1 %v8069_v53  ;;  %v250_v6 = vld [vmem:[#allocation2 + $0x6f8] sm:$0xff]  ;;  %v8123_v53 = vcombine.low %v237_v56, %v241_v57  ;;  %v293_v57 = vld [vmem:[#allocation2 + $0x850] sm:$0xff] }
 0x164   :  { %4033 = vmatprep.subr.bf16.mxu0 %v8076_v8  ;;  %4197 = vmatprep.subr.bf16.mxu1 %v8078_v9  ;;  %v8125_v8 = vcombine.low %v238_v58, %v242_v60  ;;  %v8132_v9 = vcombine.high %v245_v2, %v249_v4  ;;  %v8134_v10 = vcombine.high %v246_v5, %v250_v6  ;;  %v297_v58 = vld [vmem:[#allocation2 + $0x870] sm:$0xff]  ;;  %v294_v60 = vld [vmem:[#allocation2 + $0x858] sm:$0xff] }
 0x167   :  { %4034 = vmatpush1.bf16.msra.mxu0 %v8075_v14  ;;  %4198 = vmatpush1.bf16.msra.mxu1 %v8077_v15  ;;  %v258_v14 = vld [vmem:[#allocation2 + $0x738] sm:$0xff]  ;;  %v8131_v15 = vcombine.low %v245_v2, %v249_v4  ;;  %v301_v4 = vld [vmem:[#allocation2 + $0x890] sm:$0xff] }
 0x168   :  { %4035 = vmatprep.subr.bf16.mxu0 %v8084_v16  ;;  %4199 = vmatprep.subr.bf16.mxu1 %v8086_v17  ;;  %v8133_v16 = vcombine.low %v246_v5, %v250_v6  ;;  %v8140_v17 = vcombine.high %v253_v11, %v257_v12  ;;  %v8142_v18 = vcombine.high %v254_v13, %v258_v14  ;;  %v305_v5 = vld [vmem:[#allocation2 + $0x8b0] sm:$0xff]  ;;  %v302_v6 = vld [vmem:[#allocation2 + $0x898] sm:$0xff] }
 0x16b   :  { %4036 = vmatpush1.bf16.msra.mxu0 %v8083_v22  ;;  %4200 = vmatpush1.bf16.msra.mxu1 %v8085_v24  ;;  %v266_v22 = vld [vmem:[#allocation2 + $0x778] sm:$0xff]  ;;  %v8139_v24 = vcombine.low %v253_v11, %v257_v12  ;;  %v309_v12 = vld [vmem:[#allocation2 + $0x8d0] sm:$0xff] }
 0x16c   :  { %4037 = vmatprep.subr.bf16.mxu0 %v8092_v25  ;;  %4201 = vmatprep.subr.bf16.mxu1 %v8094_v26  ;;  %v8141_v25 = vcombine.low %v254_v13, %v258_v14  ;;  %v8148_v26 = vcombine.high %v261_v19, %v265_v20  ;;  %v8150_v59 = vcombine.high %v262_v21, %v266_v22  ;;  %v313_v13 = vld [vmem:[#allocation2 + $0x8f0] sm:$0xff]  ;;  %v310_v14 = vld [vmem:[#allocation2 + $0x8d8] sm:$0xff] }
 0x16f   :  { %4038 = vmatpush1.bf16.msra.mxu0 %v8091_v32  ;;  %4202 = vmatpush1.bf16.msra.mxu1 %v8093_v33  ;;  %v274_v32 = vld [vmem:[#allocation2 + $0x7b8] sm:$0xff]  ;;  %v8147_v33 = vcombine.low %v261_v19, %v265_v20  ;;  %v317_v20 = vld [vmem:[#allocation2 + $0x910] sm:$0xff] }
 0x170   :  { %4039 = vmatprep.subr.bf16.mxu0 %v8100_v34  ;;  %4203 = vmatprep.subr.bf16.mxu1 %v8102_v35  ;;  %v8149_v34 = vcombine.low %v262_v21, %v266_v22  ;;  %v8156_v35 = vcombine.high %v269_v27, %v273_v28  ;;  %v8158_v36 = vcombine.high %v270_v30, %v274_v32  ;;  %v321_v21 = vld [vmem:[#allocation2 + $0x930] sm:$0xff]  ;;  %v318_v22 = vld [vmem:[#allocation2 + $0x918] sm:$0xff] }
 0x173   :  { %4040 = vmatpush1.bf16.msra.mxu0 %v8099_v41  ;;  %4204 = vmatpush1.bf16.msra.mxu1 %v8101_v42  ;;  %v282_v41 = vld [vmem:[#allocation2 + $0x7f8] sm:$0xff]  ;;  %v8155_v42 = vcombine.low %v269_v27, %v273_v28  ;;  %v325_v28 = vld [vmem:[#allocation2 + $0x950] sm:$0xff] }
 0x174   :  { %4041 = vmatprep.subr.bf16.mxu0 %v8108_v43  ;;  %4205 = vmatprep.subr.bf16.mxu1 %v8110_v45  ;;  %v8157_v43 = vcombine.low %v270_v30, %v274_v32  ;;  %v8164_v45 = vcombine.high %v277_v38, %v281_v39  ;;  %v8166_v46 = vcombine.high %v278_v40, %v282_v41  ;;  %v329_v30 = vld [vmem:[#allocation2 + $0x970] sm:$0xff]  ;;  %v326_v32 = vld [vmem:[#allocation2 + $0x958] sm:$0xff] }
 0x177   :  { %4042 = vmatpush1.bf16.msra.mxu0 %v8107_v51  ;;  %4206 = vmatpush1.bf16.msra.mxu1 %v8109_v52  ;;  %v290_v51 = vld [vmem:[#allocation2 + $0x838] sm:$0xff]  ;;  %v8163_v52 = vcombine.low %v277_v38, %v281_v39  ;;  %v333_v39 = vld [vmem:[#allocation2 + $0x990] sm:$0xff] }
 0x178   :  { %4043 = vmatprep.subr.bf16.mxu0 %v8116_v54  ;;  %4207 = vmatprep.subr.bf16.mxu1 %v8118_v55  ;;  %v8165_v54 = vcombine.low %v278_v40, %v282_v41  ;;  %v8172_v55 = vcombine.high %v285_v48, %v289_v49  ;;  %v8174_v56 = vcombine.high %v286_v50, %v290_v51  ;;  %v337_v40 = vld [vmem:[#allocation2 + $0x9b0] sm:$0xff]  ;;  %v334_v41 = vld [vmem:[#allocation2 + $0x998] sm:$0xff] }
 0x17b   :  { %4044 = vmatpush1.bf16.msra.mxu0 %v8115_v62  ;;  %4208 = vmatpush1.bf16.msra.mxu1 %v8117_v0  ;;  %v298_v62 = vld [vmem:[#allocation2 + $0x878] sm:$0xff]  ;;  %v8171_v0 = vcombine.low %v285_v48, %v289_v49  ;;  %v341_v49 = vld [vmem:[#allocation2 + $0x9d0] sm:$0xff] }
 0x17c   :  { %4045 = vmatprep.subr.bf16.mxu0 %v8124_v1  ;;  %4209 = vmatprep.subr.bf16.mxu1 %v8126_v29  ;;  %v8173_v1 = vcombine.low %v286_v50, %v290_v51  ;;  %v8180_v29 = vcombine.high %v293_v57, %v297_v58  ;;  %v8182_v2 = vcombine.high %v294_v60, %v298_v62  ;;  %v345_v50 = vld [vmem:[#allocation2 + $0x9f0] sm:$0xff]  ;;  %v342_v51 = vld [vmem:[#allocation2 + $0x9d8] sm:$0xff] }
 0x17f   :  { %4046 = vmatpush1.bf16.msra.mxu0 %v8123_v53  ;;  %4210 = vmatpush1.bf16.msra.mxu1 %v8125_v8  ;;  %v306_v53 = vld [vmem:[#allocation2 + $0x8b8] sm:$0xff]  ;;  %v8179_v8 = vcombine.low %v293_v57, %v297_v58  ;;  %v349_v58 = vld [vmem:[#allocation2 + $0xa10] sm:$0xff] }
 0x180   :  { %4047 = vmatprep.subr.bf16.mxu0 %v8132_v9  ;;  %4211 = vmatprep.subr.bf16.mxu1 %v8134_v10  ;;  %v8181_v9 = vcombine.low %v294_v60, %v298_v62  ;;  %v8188_v10 = vcombine.high %v301_v4, %v305_v5  ;;  %v8190_v11 = vcombine.high %v302_v6, %v306_v53  ;;  %v353_v60 = vld [vmem:[#allocation2 + $0xa30] sm:$0xff]  ;;  %v350_v62 = vld [vmem:[#allocation2 + $0xa18] sm:$0xff] }
 0x183   :  { %4048 = vmatpush1.bf16.msra.mxu0 %v8131_v15  ;;  %4212 = vmatpush1.bf16.msra.mxu1 %v8133_v16  ;;  %v314_v15 = vld [vmem:[#allocation2 + $0x8f8] sm:$0xff]  ;;  %v8187_v16 = vcombine.low %v301_v4, %v305_v5  ;;  %v357_v5 = vld [vmem:[#allocation2 + $0xa50] sm:$0xff] }
 0x184   :  { %4049 = vmatprep.subr.bf16.mxu0 %v8140_v17  ;;  %4213 = vmatprep.subr.bf16.mxu1 %v8142_v18  ;;  %v8189_v17 = vcombine.low %v302_v6, %v306_v53  ;;  %v8196_v18 = vcombine.high %v309_v12, %v313_v13  ;;  %v8198_v19 = vcombine.high %v310_v14, %v314_v15  ;;  %v361_v6 = vld [vmem:[#allocation2 + $0xa70] sm:$0xff]  ;;  %v358_v53 = vld [vmem:[#allocation2 + $0xa58] sm:$0xff] }
 0x187   :  { %4050 = vmatpush1.bf16.msra.mxu0 %v8139_v24  ;;  %4214 = vmatpush1.bf16.msra.mxu1 %v8141_v25  ;;  %v322_v24 = vld [vmem:[#allocation2 + $0x938] sm:$0xff]  ;;  %v8195_v25 = vcombine.low %v309_v12, %v313_v13  ;;  %v365_v13 = vld [vmem:[#allocation2 + $0xa90] sm:$0xff] }
 0x188   :  { %4051 = vmatprep.subr.bf16.mxu0 %v8148_v26  ;;  %4215 = vmatprep.subr.bf16.mxu1 %v8150_v59  ;;  %v8197_v26 = vcombine.low %v310_v14, %v314_v15  ;;  %v8204_v59 = vcombine.high %v317_v20, %v321_v21  ;;  %v8206_v27 = vcombine.high %v318_v22, %v322_v24  ;;  %v369_v14 = vld [vmem:[#allocation2 + $0xab0] sm:$0xff]  ;;  %v366_v15 = vld [vmem:[#allocation2 + $0xa98] sm:$0xff] }
 0x18b   :  { %4052 = vmatpush1.bf16.msra.mxu0 %v8147_v33  ;;  %4216 = vmatpush1.bf16.msra.mxu1 %v8149_v34  ;;  %v330_v33 = vld [vmem:[#allocation2 + $0x978] sm:$0xff]  ;;  %v8203_v34 = vcombine.low %v317_v20, %v321_v21  ;;  %v373_v21 = vld [vmem:[#allocation2 + $0xad0] sm:$0xff] }
 0x18c   :  { %4053 = vmatprep.subr.bf16.mxu0 %v8156_v35  ;;  %4217 = vmatprep.subr.bf16.mxu1 %v8158_v36  ;;  %v8205_v35 = vcombine.low %v318_v22, %v322_v24  ;;  %v8212_v36 = vcombine.high %v325_v28, %v329_v30  ;;  %v8214_v38 = vcombine.high %v326_v32, %v330_v33  ;;  %v377_v22 = vld [vmem:[#allocation2 + $0xaf0] sm:$0xff]  ;;  %v374_v24 = vld [vmem:[#allocation2 + $0xad8] sm:$0xff] }
 0x18f   :  { %4054 = vmatpush1.bf16.msra.mxu0 %v8155_v42  ;;  %4218 = vmatpush1.bf16.msra.mxu1 %v8157_v43  ;;  %v338_v42 = vld [vmem:[#allocation2 + $0x9b8] sm:$0xff]  ;;  %v8211_v43 = vcombine.low %v325_v28, %v329_v30  ;;  %v381_v30 = vld [vmem:[#allocation2 + $0xb10] sm:$0xff] }
 0x190   :  { %4055 = vmatprep.subr.bf16.mxu0 %v8164_v45  ;;  %4219 = vmatprep.subr.bf16.mxu1 %v8166_v46  ;;  %v8213_v45 = vcombine.low %v326_v32, %v330_v33  ;;  %v8220_v46 = vcombine.high %v333_v39, %v337_v40  ;;  %v8222_v48 = vcombine.high %v334_v41, %v338_v42  ;;  %v385_v32 = vld [vmem:[#allocation2 + $0xb30] sm:$0xff]  ;;  %v382_v33 = vld [vmem:[#allocation2 + $0xb18] sm:$0xff] }
 0x193   :  { %4056 = vmatpush1.bf16.msra.mxu0 %v8163_v52  ;;  %4220 = vmatpush1.bf16.msra.mxu1 %v8165_v54  ;;  %v346_v52 = vld [vmem:[#allocation2 + $0x9f8] sm:$0xff]  ;;  %v8219_v54 = vcombine.low %v333_v39, %v337_v40  ;;  %v389_v40 = vld [vmem:[#allocation2 + $0xb50] sm:$0xff] }
 0x194   :  { %4066 = vmatprep.subr.bf16.mxu0 %v8172_v55  ;;  %4230 = vmatprep.subr.bf16.mxu1 %v8174_v56  ;;  %v8221_v55 = vcombine.low %v334_v41, %v338_v42  ;;  %v8228_v56 = vcombine.high %v341_v49, %v345_v50  ;;  %v8230_v57 = vcombine.high %v342_v51, %v346_v52  ;;  %v393_v41 = vld [vmem:[#allocation2 + $0xb70] sm:$0xff]  ;;  %v390_v42 = vld [vmem:[#allocation2 + $0xb58] sm:$0xff] }
 0x196   :  { %4058 = vmatmul.mubr.bf16.vlgmr.msra.gmra.mrb[4].mxu0 %v9120_v23  ;;  %4222 = vmatmul.mubr.bf16.vlgmr.msra.gmra.mrb[4].mxu1 %v9120_v23 }
 0x197   :  { %4067 = vmatpush1.bf16.msra.mxu0 %v8171_v0  ;;  %4231 = vmatpush1.bf16.msra.mxu1 %v8173_v1  ;;  %v354_v0 = vld [vmem:[#allocation2 + $0xa38] sm:$0xff]  ;;  %v8227_v1 = vcombine.low %v341_v49, %v345_v50  ;;  %v397_v50 = vld [vmem:[#allocation2 + $0xb90] sm:$0xff] }
 0x198   :  { %4068 = vmatprep.subr.bf16.mxu0 %v8180_v29  ;;  %4232 = vmatprep.subr.bf16.mxu1 %v8182_v2  ;;  %v8229_v29 = vcombine.low %v342_v51, %v346_v52  ;;  %v8236_v2 = vcombine.high %v349_v58, %v353_v60  ;;  %v8238_v4 = vcombine.high %v350_v62, %v354_v0  ;;  %v401_v51 = vld [vmem:[#allocation2 + $0xbb0] sm:$0xff]  ;;  %v398_v52 = vld [vmem:[#allocation2 + $0xb98] sm:$0xff] }
 0x199   :  { %4098 = vmatprep.mubr.bf16.mxu0 %v9141_v47  ;;  %4262 = vmatprep.mubr.bf16.mxu1 %v9141_v47 }
 0x19b   :  { %4069 = vmatpush1.bf16.msra.mxu0 %v8179_v8  ;;  %4233 = vmatpush1.bf16.msra.mxu1 %v8181_v9  ;;  %v362_v8 = vld [vmem:[#allocation2 + $0xa78] sm:$0xff]  ;;  %v8235_v9 = vcombine.low %v349_v58, %v353_v60  ;;  %v405_v60 = vld [vmem:[#allocation2 + $0xbd0] sm:$0xff] }
 0x19c   :  { %4070 = vmatprep.subr.bf16.mxu0 %v8188_v10  ;;  %4234 = vmatprep.subr.bf16.mxu1 %v8190_v11  ;;  %v8237_v10 = vcombine.low %v350_v62, %v354_v0  ;;  %v8244_v11 = vcombine.high %v357_v5, %v361_v6  ;;  %v8246_v12 = vcombine.high %v358_v53, %v362_v8  ;;  %v409_v62 = vld [vmem:[#allocation2 + $0xbf0] sm:$0xff]  ;;  %v406_v0 = vld [vmem:[#allocation2 + $0xbd8] sm:$0xff] }
 0x19f   :  { %4071 = vmatpush1.bf16.msra.mxu0 %v8187_v16  ;;  %4235 = vmatpush1.bf16.msra.mxu1 %v8189_v17  ;;  %v370_v16 = vld [vmem:[#allocation2 + $0xab8] sm:$0xff]  ;;  %v8243_v17 = vcombine.low %v357_v5, %v361_v6  ;;  %v413_v6 = vld [vmem:[#allocation2 + $0xc10] sm:$0xff] }
 0x1a0   :  { %4072 = vmatprep.subr.bf16.mxu0 %v8196_v18  ;;  %4236 = vmatprep.subr.bf16.mxu1 %v8198_v19  ;;  %v8245_v18 = vcombine.low %v358_v53, %v362_v8  ;;  %v8252_v19 = vcombine.high %v365_v13, %v369_v14  ;;  %v8254_v20 = vcombine.high %v366_v15, %v370_v16  ;;  %v417_v53 = vld [vmem:[#allocation2 + $0xc30] sm:$0xff]  ;;  %v414_v8 = vld [vmem:[#allocation2 + $0xc18] sm:$0xff] }
 0x1a3   :  { %4073 = vmatpush1.bf16.msra.mxu0 %v8195_v25  ;;  %4237 = vmatpush1.bf16.msra.mxu1 %v8197_v26  ;;  %v378_v25 = vld [vmem:[#allocation2 + $0xaf8] sm:$0xff]  ;;  %v8251_v26 = vcombine.low %v365_v13, %v369_v14  ;;  %v421_v14 = vld [vmem:[#allocation2 + $0xc50] sm:$0xff] }
 0x1a4   :  { %4074 = vmatprep.subr.bf16.mxu0 %v8204_v59  ;;  %4238 = vmatprep.subr.bf16.mxu1 %v8206_v27  ;;  %v8253_v59 = vcombine.low %v366_v15, %v370_v16  ;;  %v8260_v27 = vcombine.high %v373_v21, %v377_v22  ;;  %v8262_v28 = vcombine.high %v374_v24, %v378_v25  ;;  %v425_v15 = vld [vmem:[#allocation2 + $0xc70] sm:$0xff]  ;;  %v422_v16 = vld [vmem:[#allocation2 + $0xc58] sm:$0xff] }
 0x1a7   :  { %4075 = vmatpush1.bf16.msra.mxu0 %v8203_v34  ;;  %4239 = vmatpush1.bf16.msra.mxu1 %v8205_v35  ;;  %v386_v34 = vld [vmem:[#allocation2 + $0xb38] sm:$0xff]  ;;  %v8259_v35 = vcombine.low %v373_v21, %v377_v22  ;;  %v429_v22 = vld [vmem:[#allocation2 + $0xc90] sm:$0xff] }
 0x1a8   :  { %4076 = vmatprep.subr.bf16.mxu0 %v8212_v36  ;;  %4240 = vmatprep.subr.bf16.mxu1 %v8214_v38  ;;  %v8261_v36 = vcombine.low %v374_v24, %v378_v25  ;;  %v8268_v38 = vcombine.high %v381_v30, %v385_v32  ;;  %v8270_v39 = vcombine.high %v382_v33, %v386_v34  ;;  %v433_v24 = vld [vmem:[#allocation2 + $0xcb0] sm:$0xff]  ;;  %v430_v25 = vld [vmem:[#allocation2 + $0xc98] sm:$0xff] }
 0x1ab   :  { %4077 = vmatpush1.bf16.msra.mxu0 %v8211_v43  ;;  %4241 = vmatpush1.bf16.msra.mxu1 %v8213_v45  ;;  %v394_v43 = vld [vmem:[#allocation2 + $0xb78] sm:$0xff]  ;;  %v8267_v45 = vcombine.low %v381_v30, %v385_v32  ;;  %v437_v32 = vld [vmem:[#allocation2 + $0xcd0] sm:$0xff] }
 0x1ac   :  { %4078 = vmatprep.subr.bf16.mxu0 %v8220_v46  ;;  %4242 = vmatprep.subr.bf16.mxu1 %v8222_v48  ;;  %v8269_v46 = vcombine.low %v382_v33, %v386_v34  ;;  %v8276_v48 = vcombine.high %v389_v40, %v393_v41  ;;  %v8278_v49 = vcombine.high %v390_v42, %v394_v43  ;;  %v441_v33 = vld [vmem:[#allocation2 + $0xcf0] sm:$0xff]  ;;  %v438_v34 = vld [vmem:[#allocation2 + $0xcd8] sm:$0xff] }
 0x1af   :  { %4079 = vmatpush1.bf16.msra.mxu0 %v8219_v54  ;;  %4243 = vmatpush1.bf16.msra.mxu1 %v8221_v55  ;;  %v402_v54 = vld [vmem:[#allocation2 + $0xbb8] sm:$0xff]  ;;  %v8275_v55 = vcombine.low %v389_v40, %v393_v41  ;;  %v445_v41 = vld [vmem:[#allocation2 + $0xd10] sm:$0xff] }
 0x1b0   :  { %4080 = vmatprep.subr.bf16.mxu0 %v8228_v56  ;;  %4244 = vmatprep.subr.bf16.mxu1 %v8230_v57  ;;  %v8277_v56 = vcombine.low %v390_v42, %v394_v43  ;;  %v8284_v57 = vcombine.high %v397_v50, %v401_v51  ;;  %v8286_v58 = vcombine.high %v398_v52, %v402_v54  ;;  %v449_v42 = vld [vmem:[#allocation2 + $0xd30] sm:$0xff]  ;;  %v446_v43 = vld [vmem:[#allocation2 + $0xd18] sm:$0xff] }
 0x1b3   :  { %4081 = vmatpush1.bf16.msra.mxu0 %v8227_v1  ;;  %4245 = vmatpush1.bf16.msra.mxu1 %v8229_v29  ;;  %v410_v1 = vld [vmem:[#allocation2 + $0xbf8] sm:$0xff]  ;;  %v8283_v29 = vcombine.low %v397_v50, %v401_v51  ;;  %v453_v51 = vld [vmem:[#allocation2 + $0xd50] sm:$0xff] }
 0x1b4   :  { %4082 = vmatprep.subr.bf16.mxu0 %v8236_v2  ;;  %4246 = vmatprep.subr.bf16.mxu1 %v8238_v4  ;;  %v8285_v2 = vcombine.low %v398_v52, %v402_v54  ;;  %v8292_v4 = vcombine.high %v405_v60, %v409_v62  ;;  %v8294_v5 = vcombine.high %v406_v0, %v410_v1  ;;  %v457_v52 = vld [vmem:[#allocation2 + $0xd70] sm:$0xff]  ;;  %v454_v54 = vld [vmem:[#allocation2 + $0xd58] sm:$0xff] }
 0x1b7   :  { %4083 = vmatpush1.bf16.msra.mxu0 %v8235_v9  ;;  %4247 = vmatpush1.bf16.msra.mxu1 %v8237_v10  ;;  %v418_v9 = vld [vmem:[#allocation2 + $0xc38] sm:$0xff]  ;;  %v8291_v10 = vcombine.low %v405_v60, %v409_v62  ;;  %v461_v62 = vld [vmem:[#allocation2 + $0xd90] sm:$0xff] }
 0x1b8   :  { %4084 = vmatprep.subr.bf16.mxu0 %v8244_v11  ;;  %4248 = vmatprep.subr.bf16.mxu1 %v8246_v12  ;;  %v8293_v11 = vcombine.low %v406_v0, %v410_v1  ;;  %v8300_v12 = vcombine.high %v413_v6, %v417_v53  ;;  %v8302_v13 = vcombine.high %v414_v8, %v418_v9  ;;  %v465_v0 = vld [vmem:[#allocation2 + $0xdb0] sm:$0xff]  ;;  %v462_v1 = vld [vmem:[#allocation2 + $0xd98] sm:$0xff] }
 0x1bb   :  { %4085 = vmatpush1.bf16.msra.mxu0 %v8243_v17  ;;  %4249 = vmatpush1.bf16.msra.mxu1 %v8245_v18  ;;  %v426_v17 = vld [vmem:[#allocation2 + $0xc78] sm:$0xff]  ;;  %v8299_v18 = vcombine.low %v413_v6, %v417_v53 }
 0x1bc   :  { %4086 = vmatprep.subr.bf16.mxu0 %v8252_v19  ;;  %4250 = vmatprep.subr.bf16.mxu1 %v8254_v20  ;;  %v8301_v19 = vcombine.low %v414_v8, %v418_v9  ;;  %v8308_v20 = vcombine.high %v421_v14, %v425_v15  ;;  %v8310_v21 = vcombine.high %v422_v16, %v426_v17  ;;  %v469_v8 = vld [vmem:[#allocation2 + $0xdd0] sm:$0xff] }
 0x1bd   :  { %v473_v9 = vld [vmem:[#allocation2 + $0xdf0] sm:$0xff] }
 0x1bf   :  { %4087 = vmatpush1.bf16.msra.mxu0 %v8251_v26  ;;  %4251 = vmatpush1.bf16.msra.mxu1 %v8253_v59  ;;  %v434_v26 = vld [vmem:[#allocation2 + $0xcb8] sm:$0xff]  ;;  %v8307_v59 = vcombine.low %v421_v14, %v425_v15 }
 0x1c0   :  { %4088 = vmatprep.subr.bf16.mxu0 %v8260_v27  ;;  %4252 = vmatprep.subr.bf16.mxu1 %v8262_v28  ;;  %v8309_v27 = vcombine.low %v422_v16, %v426_v17  ;;  %v8316_v28 = vcombine.high %v429_v22, %v433_v24  ;;  %v8318_v30 = vcombine.high %v430_v25, %v434_v26 }
 0x1c1   :  { %v8347_v16 = vcombine.low %v461_v62, %v465_v0 }
 0x1c3   :  { %4089 = vmatpush1.bf16.msra.mxu0 %v8259_v35  ;;  %4253 = vmatpush1.bf16.msra.mxu1 %v8261_v36  ;;  %v442_v35 = vld [vmem:[#allocation2 + $0xcf8] sm:$0xff]  ;;  %v8315_v36 = vcombine.low %v429_v22, %v433_v24  ;;  %v477_v24 = vld [vmem:[#allocation2 + $0xe10] sm:$0xff] }
 0x1c4   :  { %4090 = vmatprep.subr.bf16.mxu0 %v8268_v38  ;;  %4254 = vmatprep.subr.bf16.mxu1 %v8270_v39  ;;  %v8317_v38 = vcombine.low %v430_v25, %v434_v26  ;;  %v8324_v39 = vcombine.high %v437_v32, %v441_v33  ;;  %v8326_v40 = vcombine.high %v438_v34, %v442_v35  ;;  %v481_v25 = vld [vmem:[#allocation2 + $0xe30] sm:$0xff]  ;;  %v478_v26 = vld [vmem:[#allocation2 + $0xe18] sm:$0xff] }
 0x1c7   :  { %4091 = vmatpush1.bf16.msra.mxu0 %v8267_v45  ;;  %4255 = vmatpush1.bf16.msra.mxu1 %v8269_v46  ;;  %v450_v45 = vld [vmem:[#allocation2 + $0xd38] sm:$0xff]  ;;  %v8323_v46 = vcombine.low %v437_v32, %v441_v33  ;;  %v485_v33 = vld [vmem:[#allocation2 + $0xe50] sm:$0xff] }
 0x1c8   :  { %4092 = vmatprep.subr.bf16.mxu0 %v8276_v48  ;;  %4256 = vmatprep.subr.bf16.mxu1 %v8278_v49  ;;  %v8325_v48 = vcombine.low %v438_v34, %v442_v35  ;;  %v8332_v49 = vcombine.high %v445_v41, %v449_v42  ;;  %v8334_v50 = vcombine.high %v446_v43, %v450_v45  ;;  %v489_v34 = vld [vmem:[#allocation2 + $0xe70] sm:$0xff]  ;;  %v486_v35 = vld [vmem:[#allocation2 + $0xe58] sm:$0xff] }
 0x1cb   :  { %4093 = vmatpush1.bf16.msra.mxu0 %v8275_v55  ;;  %4257 = vmatpush1.bf16.msra.mxu1 %v8277_v56  ;;  %v458_v55 = vld [vmem:[#allocation2 + $0xd78] sm:$0xff]  ;;  %v8331_v56 = vcombine.low %v445_v41, %v449_v42  ;;  %v493_v42 = vld [vmem:[#allocation2 + $0xe90] sm:$0xff] }
 0x1cc   :  { %4094 = vmatprep.subr.bf16.mxu0 %v8284_v57  ;;  %4258 = vmatprep.subr.bf16.mxu1 %v8286_v58  ;;  %v8333_v57 = vcombine.low %v446_v43, %v450_v45  ;;  %v8340_v58 = vcombine.high %v453_v51, %v457_v52  ;;  %v8342_v60 = vcombine.high %v454_v54, %v458_v55  ;;  %v497_v43 = vld [vmem:[#allocation2 + $0xeb0] sm:$0xff]  ;;  %v494_v45 = vld [vmem:[#allocation2 + $0xe98] sm:$0xff] }
 0x1cf   :  { %4095 = vmatpush1.bf16.msra.mxu0 %v8283_v29  ;;  %4259 = vmatpush1.bf16.msra.mxu1 %v8285_v2  ;;  %v466_v29 = vld [vmem:[#allocation2 + $0xdb8] sm:$0xff]  ;;  %v8339_v2 = vcombine.low %v453_v51, %v457_v52  ;;  %v501_v52 = vld [vmem:[#allocation2 + $0xed0] sm:$0xff] }
 0x1d0   :  { %4096 = vmatprep.subr.bf16.mxu0 %v8292_v4  ;;  %4260 = vmatprep.subr.bf16.mxu1 %v8294_v5  ;;  %v8341_v4 = vcombine.low %v454_v54, %v458_v55  ;;  %v8348_v5 = vcombine.high %v461_v62, %v465_v0  ;;  %v8350_v53 = vcombine.high %v462_v1, %v466_v29  ;;  %v505_v54 = vld [vmem:[#allocation2 + $0xef0] sm:$0xff]  ;;  %v502_v55 = vld [vmem:[#allocation2 + $0xed8] sm:$0xff] }
 0x1d1   :  { %v509_v0 = vld [vmem:[#allocation2 + $0xf10] sm:$0xff] }
 0x1d3   :  { %4097 = vmatpush1.bf16.msra.mxu0 %v8291_v10  ;;  %4261 = vmatpush1.bf16.msra.mxu1 %v8293_v11 }
 0x1d4   :  { %4107 = vmatprep.subr.bf16.mxu0 %v8300_v12  ;;  %4271 = vmatprep.subr.bf16.mxu1 %v8302_v13  ;;  %v470_v12 = vld [vmem:[#allocation2 + $0xdd8] sm:$0xff] }
 0x1d5   :  { %v474_v13 = vld [vmem:[#allocation2 + $0xdf8] sm:$0xff] }
 0x1d6   :  { %4099 = vmatmul.mubr.bf16.vlgmr.msra.gmra.mrb[4].mxu0 %v9137_v37  ;;  %4263 = vmatmul.mubr.bf16.vlgmr.msra.gmra.mrb[4].mxu1 %v9137_v37  ;;  %v8358_v22 = vcombine.high %v470_v12, %v474_v13 }
 0x1d7   :  { %4108 = vmatpush1.bf16.msra.mxu0 %v8299_v18  ;;  %4272 = vmatpush1.bf16.msra.mxu1 %v8301_v19  ;;  %v8349_v19 = vcombine.low %v462_v1, %v466_v29  ;;  %v513_v1 = vld [vmem:[#allocation2 + $0xf30] sm:$0xff]  ;;  %v510_v29 = vld [vmem:[#allocation2 + $0xf18] sm:$0xff] }
 0x1d8   :  { %4109 = vmatprep.subr.bf16.mxu0 %v8308_v20  ;;  %4273 = vmatprep.subr.bf16.mxu1 %v8310_v21  ;;  %v8356_v20 = vcombine.high %v469_v8, %v473_v9 }
 0x1d9   :  { %4139 = vmatprep.mubr.bf16.mxu0 %v9154_v7  ;;  %4303 = vmatprep.mubr.bf16.mxu1 %v9154_v7 }
 0x1db   :  { %4110 = vmatpush1.bf16.msra.mxu0 %v8307_v59  ;;  %4274 = vmatpush1.bf16.msra.mxu1 %v8309_v27  ;;  %v482_v59 = vld [vmem:[#allocation2 + $0xe38] sm:$0xff]  ;;  %v8355_v27 = vcombine.low %v469_v8, %v473_v9  ;;  %v517_v9 = vld [vmem:[#allocation2 + $0xf50] sm:$0xff] }
 0x1dc   :  { %4111 = vmatprep.subr.bf16.mxu0 %v8316_v28  ;;  %4275 = vmatprep.subr.bf16.mxu1 %v8318_v30  ;;  %v8357_v28 = vcombine.low %v470_v12, %v474_v13  ;;  %v8364_v30 = vcombine.high %v477_v24, %v481_v25  ;;  %v8366_v32 = vcombine.high %v478_v26, %v482_v59  ;;  %v521_v12 = vld [vmem:[#allocation2 + $0xf70] sm:$0xff]  ;;  %v518_v13 = vld [vmem:[#allocation2 + $0xf58] sm:$0xff] }
 0x1df   :  { %4112 = vmatpush1.bf16.msra.mxu0 %v8315_v36  ;;  %4276 = vmatpush1.bf16.msra.mxu1 %v8317_v38  ;;  %v490_v36 = vld [vmem:[#allocation2 + $0xe78] sm:$0xff]  ;;  %v8363_v38 = vcombine.low %v477_v24, %v481_v25  ;;  %v8403_v25 = vcombine.low %v517_v9, %v521_v12 }
 0x1e0   :  { %4113 = vmatprep.subr.bf16.mxu0 %v8324_v39  ;;  %4277 = vmatprep.subr.bf16.mxu1 %v8326_v40  ;;  %v8365_v39 = vcombine.low %v478_v26, %v482_v59  ;;  %v8372_v40 = vcombine.high %v485_v33, %v489_v34  ;;  %v8374_v41 = vcombine.high %v486_v35, %v490_v36  ;;  %v530_v24 = vld [vmem:[#allocation2 + $0xfb8] sm:$0xff] }
 0x1e3   :  { %4114 = vmatpush1.bf16.msra.mxu0 %v8323_v46  ;;  %4278 = vmatpush1.bf16.msra.mxu1 %v8325_v48  ;;  %v498_v46 = vld [vmem:[#allocation2 + $0xeb8] sm:$0xff]  ;;  %v8371_v48 = vcombine.low %v485_v33, %v489_v34 }
 0x1e4   :  { %4115 = vmatprep.subr.bf16.mxu0 %v8332_v49  ;;  %4279 = vmatprep.subr.bf16.mxu1 %v8334_v50  ;;  %v8373_v49 = vcombine.low %v486_v35, %v490_v36  ;;  %v8380_v50 = vcombine.high %v493_v42, %v497_v43  ;;  %v8382_v51 = vcombine.high %v494_v45, %v498_v46  ;;  %v538_v33 = vld [vmem:[#allocation2 + $0xff8] sm:$0xff] }
 0x1e7   :  { %4116 = vmatpush1.bf16.msra.mxu0 %v8331_v56  ;;  %4280 = vmatpush1.bf16.msra.mxu1 %v8333_v57  ;;  %v506_v56 = vld [vmem:[#allocation2 + $0xef8] sm:$0xff]  ;;  %v8379_v57 = vcombine.low %v493_v42, %v497_v43  ;;  %v545_v42 = vld [vmem:[#allocation2 + $0x1028] sm:$0xff] }
 0x1e8   :  { %4117 = vmatprep.subr.bf16.mxu0 %v8340_v58  ;;  %4281 = vmatprep.subr.bf16.mxu1 %v8342_v60  ;;  %v8381_v58 = vcombine.low %v494_v45, %v498_v46  ;;  %v8388_v60 = vcombine.high %v501_v52, %v505_v54  ;;  %v8390_v62 = vcombine.high %v502_v55, %v506_v56 }
 0x1e9   :  { %v9176_v6 = vpop.f32.mrb[0].mxu0  ;;  %v9178_v10 = vpop.f32.mrb[0].mxu1 }
 0x1ea   :  { %v9180_v11 = vpop.f32.mrb[1].mxu0  ;;  %v9182_v14 = vpop.f32.mrb[1].mxu1 }
 0x1eb   :  { %v3817_v15 = vpop.f32.mrb[2].mxu0  ;;  %4118 = vmatpush1.bf16.msra.mxu0 %v8339_v2  ;;  %v3981_v17 = vpop.f32.mrb[2].mxu1  ;;  %4282 = vmatpush1.bf16.msra.mxu1 %v8341_v4  ;;  %v514_v2 = vld [vmem:[#allocation2 + $0xf38] sm:$0xff]  ;;  %v8387_v4 = vcombine.low %v501_v52, %v505_v54  ;;  %v553_v52 = vld [vmem:[#allocation2 + $0x1068] sm:$0xff] }
 0x1ec   :  { %v3818_v18 = vpop.f32.mrb[3].mxu0  ;;  %4119 = vmatprep.subr.bf16.mxu0 %v8348_v5  ;;  %v3982_v21 = vpop.f32.mrb[3].mxu1  ;;  %4283 = vmatprep.subr.bf16.mxu1 %v8350_v53  ;;  %v8389_v5 = vcombine.low %v502_v55, %v506_v56  ;;  %v8396_v53 = vcombine.high %v509_v0, %v513_v1  ;;  %v8398_v8 = vcombine.high %v510_v29, %v514_v2  ;;  %v522_v15 = vld [vmem:[#allocation2 + $0xf78] sm:$0xff] }
 0x1ed   :  { %v8397_v17 = vcombine.low %v510_v29, %v514_v2  ;;  %v8404_v18 = vcombine.high %v517_v9, %v521_v12  ;;  %v529_v21 = vld [vmem:[#allocation2 + $0xfb0] sm:$0xff]  ;;  %v8405_v26 = vcombine.low %v518_v13, %v522_v15  ;;  %v569_v9 = vld [vmem:[#allocation2 + $0x10e8] sm:$0xff] }
 0x1ef   :  { %4120 = vmatpush1.bf16.msra.mxu0 %v8347_v16  ;;  %4284 = vmatpush1.bf16.msra.mxu1 %v8349_v19  ;;  %v8395_v16 = vcombine.low %v509_v0, %v513_v1  ;;  %v8406_v19 = vcombine.high %v518_v13, %v522_v15  ;;  %v561_v0 = vld [vmem:[#allocation2 + $0x10a8] sm:$0xff] }
 0x1f0   :  { %4121 = vmatprep.subr.bf16.mxu0 %v8356_v20  ;;  %4285 = vmatprep.subr.bf16.mxu1 %v8358_v22  ;;  %v525_v20 = vld [vmem:[#allocation2 + $0xf90] sm:$0xff]  ;;  %v526_v22 = vld [vmem:[#allocation2 + $0xf98] sm:$0xff] }
 0x1f1   :  { %v8412_v59 = vcombine.high %v525_v20, %v529_v21  ;;  %v8411_v34 = vcombine.low %v525_v20, %v529_v21  ;;  %v8413_v35 = vcombine.low %v526_v22, %v530_v24  ;;  %v577_v20 = vld [vmem:[#allocation2 + $0x1128] sm:$0xff] }
 0x1f3   :  { %4122 = vmatpush1.bf16.msra.mxu0 %v8355_v27  ;;  %4286 = vmatpush1.bf16.msra.mxu1 %v8357_v28  ;;  %v8414_v27 = vcombine.high %v526_v22, %v530_v24  ;;  %v533_v28 = vld [vmem:[#allocation2 + $0xfd0] sm:$0xff] }
 0x1f4   :  { %4123 = vmatprep.subr.bf16.mxu0 %v8364_v30  ;;  %4287 = vmatprep.subr.bf16.mxu1 %v8366_v32  ;;  %v537_v30 = vld [vmem:[#allocation2 + $0xff0] sm:$0xff]  ;;  %v534_v32 = vld [vmem:[#allocation2 + $0xfd8] sm:$0xff] }
 0x1f5   :  { %v8420_v36 = vcombine.high %v533_v28, %v537_v30  ;;  %v8419_v43 = vcombine.low %v533_v28, %v537_v30  ;;  %v8421_v45 = vcombine.low %v534_v32, %v538_v33  ;;  %v585_v28 = vld [vmem:[#allocation2 + $0x1168] sm:$0xff] }
 0x1f7   :  { %4124 = vmatpush1.bf16.msra.mxu0 %v8363_v38  ;;  %4288 = vmatpush1.bf16.msra.mxu1 %v8365_v39  ;;  %v8422_v38 = vcombine.high %v534_v32, %v538_v33  ;;  %v540_v39 = vld [vmem:[#allocation2 + $0x1000] sm:$0xff] }
 0x1f8   :  { %4125 = vmatprep.subr.bf16.mxu0 %v8372_v40  ;;  %4289 = vmatprep.subr.bf16.mxu1 %v8374_v41  ;;  %v544_v40 = vld [vmem:[#allocation2 + $0x1020] sm:$0xff]  ;;  %v541_v41 = vld [vmem:[#allocation2 + $0x1008] sm:$0xff] }
 0x1f9   :  { %v8424_v46 = vcombine.high %v540_v39, %v544_v40  ;;  %v8423_v54 = vcombine.low %v540_v39, %v544_v40  ;;  %v8425_v55 = vcombine.low %v541_v41, %v545_v42  ;;  %v593_v39 = vld [vmem:[#allocation2 + $0x11a8] sm:$0xff] }
 0x1fb   :  { %4126 = vmatpush1.bf16.msra.mxu0 %v8371_v48  ;;  %4290 = vmatpush1.bf16.msra.mxu1 %v8373_v49  ;;  %v8426_v48 = vcombine.high %v541_v41, %v545_v42  ;;  %v548_v49 = vld [vmem:[#allocation2 + $0x1040] sm:$0xff] }
 0x1fc   :  { %4127 = vmatprep.subr.bf16.mxu0 %v8380_v50  ;;  %4291 = vmatprep.subr.bf16.mxu1 %v8382_v51  ;;  %v552_v50 = vld [vmem:[#allocation2 + $0x1060] sm:$0xff]  ;;  %v549_v51 = vld [vmem:[#allocation2 + $0x1048] sm:$0xff] }
 0x1fd   :  { %v8432_v56 = vcombine.high %v548_v49, %v552_v50  ;;  %v8431_v1 = vcombine.low %v548_v49, %v552_v50  ;;  %v8433_v29 = vcombine.low %v549_v51, %v553_v52  ;;  %v601_v49 = vld [vmem:[#allocation2 + $0x11e8] sm:$0xff] }
 0x1ff   :  { %4128 = vmatpush1.bf16.msra.mxu0 %v8379_v57  ;;  %4292 = vmatpush1.bf16.msra.mxu1 %v8381_v58  ;;  %v8434_v57 = vcombine.high %v549_v51, %v553_v52  ;;  %v556_v58 = vld [vmem:[#allocation2 + $0x1080] sm:$0xff] }
 0x200   :  { %4129 = vmatprep.subr.bf16.mxu0 %v8388_v60  ;;  %4293 = vmatprep.subr.bf16.mxu1 %v8390_v62  ;;  %v560_v60 = vld [vmem:[#allocation2 + $0x10a0] sm:$0xff]  ;;  %v557_v62 = vld [vmem:[#allocation2 + $0x1088] sm:$0xff] }
 0x201   :  { %v8440_v2 = vcombine.high %v556_v58, %v560_v60  ;;  %v8439_v12 = vcombine.low %v556_v58, %v560_v60  ;;  %v8441_v13 = vcombine.low %v557_v62, %v561_v0  ;;  %v609_v58 = vld [vmem:[#allocation2 + $0x1228] sm:$0xff] }
 0x203   :  { %4130 = vmatpush1.bf16.msra.mxu0 %v8387_v4  ;;  %4294 = vmatpush1.bf16.msra.mxu1 %v8389_v5  ;;  %v8442_v4 = vcombine.high %v557_v62, %v561_v0  ;;  %v564_v5 = vld [vmem:[#allocation2 + $0x10c0] sm:$0xff] }
 0x204   :  { %4131 = vmatprep.subr.bf16.mxu0 %v8396_v53  ;;  %4295 = vmatprep.subr.bf16.mxu1 %v8398_v8  ;;  %v568_v53 = vld [vmem:[#allocation2 + $0x10e0] sm:$0xff]  ;;  %v565_v8 = vld [vmem:[#allocation2 + $0x10c8] sm:$0xff] }
 0x205   :  { %v8448_v15 = vcombine.high %v564_v5, %v568_v53  ;;  %v8447_v21 = vcombine.low %v564_v5, %v568_v53  ;;  %v8449_v22 = vcombine.low %v565_v8, %v569_v9  ;;  %v617_v5 = vld [vmem:[#allocation2 + $0x1268] sm:$0xff] }
 0x207   :  { %4132 = vmatpush1.bf16.msra.mxu0 %v8395_v16  ;;  %4296 = vmatpush1.bf16.msra.mxu1 %v8397_v17  ;;  %v8450_v16 = vcombine.high %v565_v8, %v569_v9  ;;  %v572_v17 = vld [vmem:[#allocation2 + $0x1100] sm:$0xff] }
 0x208   :  { %4133 = vmatprep.subr.bf16.mxu0 %v8404_v18  ;;  %4297 = vmatprep.subr.bf16.mxu1 %v8406_v19  ;;  %v576_v18 = vld [vmem:[#allocation2 + $0x1120] sm:$0xff]  ;;  %v573_v19 = vld [vmem:[#allocation2 + $0x1108] sm:$0xff] }
 0x209   :  { %v8456_v24 = vcombine.high %v572_v17, %v576_v18  ;;  %v8455_v30 = vcombine.low %v572_v17, %v576_v18  ;;  %v8457_v32 = vcombine.low %v573_v19, %v577_v20  ;;  %v625_v17 = vld [vmem:[#allocation2 + $0x12a8] sm:$0xff] }
 0x20b   :  { %4134 = vmatpush1.bf16.msra.mxu0 %v8403_v25  ;;  %4298 = vmatpush1.bf16.msra.mxu1 %v8405_v26  ;;  %v8458_v25 = vcombine.high %v573_v19, %v577_v20  ;;  %v580_v26 = vld [vmem:[#allocation2 + $0x1140] sm:$0xff] }
 0x20c   :  { %4135 = vmatprep.subr.bf16.mxu0 %v8412_v59  ;;  %4299 = vmatprep.subr.bf16.mxu1 %v8414_v27  ;;  %v584_v59 = vld [vmem:[#allocation2 + $0x1160] sm:$0xff]  ;;  %v581_v27 = vld [vmem:[#allocation2 + $0x1148] sm:$0xff] }
 0x20d   :  { %v8464_v33 = vcombine.high %v580_v26, %v584_v59  ;;  %v8463_v40 = vcombine.low %v580_v26, %v584_v59  ;;  %v8465_v41 = vcombine.low %v581_v27, %v585_v28  ;;  %v633_v26 = vld [vmem:[#allocation2 + $0x12e8] sm:$0xff] }
 0x20f   :  { %4136 = vmatpush1.bf16.msra.mxu0 %v8411_v34  ;;  %4300 = vmatpush1.bf16.msra.mxu1 %v8413_v35  ;;  %v8466_v34 = vcombine.high %v581_v27, %v585_v28  ;;  %v588_v35 = vld [vmem:[#allocation2 + $0x1180] sm:$0xff] }
 0x210   :  { %4137 = vmatprep.subr.bf16.mxu0 %v8420_v36  ;;  %4301 = vmatprep.subr.bf16.mxu1 %v8422_v38  ;;  %v592_v36 = vld [vmem:[#allocation2 + $0x11a0] sm:$0xff]  ;;  %v589_v38 = vld [vmem:[#allocation2 + $0x1188] sm:$0xff] }
 0x211   :  { %v8472_v42 = vcombine.high %v588_v35, %v592_v36  ;;  %v8471_v50 = vcombine.low %v588_v35, %v592_v36  ;;  %v8473_v51 = vcombine.low %v589_v38, %v593_v39  ;;  %v641_v35 = vld [vmem:[#allocation2 + $0x1328] sm:$0xff] }
 0x213   :  { %4138 = vmatpush1.bf16.msra.mxu0 %v8419_v43  ;;  %4302 = vmatpush1.bf16.msra.mxu1 %v8421_v45  ;;  %v8474_v43 = vcombine.high %v589_v38, %v593_v39  ;;  %v596_v45 = vld [vmem:[#allocation2 + $0x11c0] sm:$0xff] }
 0x214   :  { %6872 = vmatprep.subr.bf16.mxu0 %v8424_v46  ;;  %7036 = vmatprep.subr.bf16.mxu1 %v8426_v48  ;;  %v600_v46 = vld [vmem:[#allocation2 + $0x11e0] sm:$0xff]  ;;  %v597_v48 = vld [vmem:[#allocation2 + $0x11c8] sm:$0xff] }
 0x215   :  { %v8480_v52 = vcombine.high %v596_v45, %v600_v46  ;;  %v8479_v60 = vcombine.low %v596_v45, %v600_v46  ;;  %v8481_v62 = vcombine.low %v597_v48, %v601_v49  ;;  %v649_v45 = vld [vmem:[#allocation2 + $0x1368] sm:$0xff] }
 0x216   :  { %4140 = vmatmul.mubr.bf16.vlgmr.msra.gmra.mrb[4].mxu0 %v9150_v61  ;;  %4304 = vmatmul.mubr.bf16.vlgmr.msra.gmra.mrb[4].mxu1 %v9150_v61 }
 0x217   :  { %6873 = vmatpush1.bf16.msra.mxu0 %v8423_v54  ;;  %7037 = vmatpush1.bf16.msra.mxu1 %v8425_v55  ;;  %v8482_v54 = vcombine.high %v597_v48, %v601_v49  ;;  %v604_v55 = vld [vmem:[#allocation2 + $0x1200] sm:$0xff] }
 0x218   :  { %6874 = vmatprep.subr.bf16.mxu0 %v8432_v56  ;;  %7038 = vmatprep.subr.bf16.mxu1 %v8434_v57  ;;  %v608_v56 = vld [vmem:[#allocation2 + $0x1220] sm:$0xff]  ;;  %v605_v57 = vld [vmem:[#allocation2 + $0x1208] sm:$0xff] }
 0x219   :  { %6904 = vmatprep.mubr.bf16.mxu0 %v9113_v3  ;;  %7068 = vmatprep.mubr.bf16.mxu1 %v9113_v3  ;;  %v8488_v0 = vcombine.high %v604_v55, %v608_v56  ;;  %v8487_v53 = vcombine.low %v604_v55, %v608_v56  ;;  %v8489_v8 = vcombine.low %v605_v57, %v609_v58  ;;  %v657_v55 = vld [vmem:[#allocation2 + $0x13a8] sm:$0xff] }
 0x21b   :  { %6875 = vmatpush1.bf16.msra.mxu0 %v8431_v1  ;;  %7039 = vmatpush1.bf16.msra.mxu1 %v8433_v29  ;;  %v8490_v1 = vcombine.high %v605_v57, %v609_v58  ;;  %v612_v29 = vld [vmem:[#allocation2 + $0x1240] sm:$0xff] }
 0x21c   :  { %6876 = vmatprep.subr.bf16.mxu0 %v8440_v2  ;;  %7040 = vmatprep.subr.bf16.mxu1 %v8442_v4  ;;  %v616_v2 = vld [vmem:[#allocation2 + $0x1260] sm:$0xff]  ;;  %v613_v4 = vld [vmem:[#allocation2 + $0x1248] sm:$0xff] }
 0x21d   :  { %v8496_v9 = vcombine.high %v612_v29, %v616_v2  ;;  %v8495_v18 = vcombine.low %v612_v29, %v616_v2  ;;  %v8497_v19 = vcombine.low %v613_v4, %v617_v5  ;;  %v665_v29 = vld [vmem:[#allocation2 + $0x13e8] sm:$0xff] }
 0x21f   :  { %6877 = vmatpush1.bf16.msra.mxu0 %v8439_v12  ;;  %7041 = vmatpush1.bf16.msra.mxu1 %v8441_v13  ;;  %v8498_v12 = vcombine.high %v613_v4, %v617_v5  ;;  %v620_v13 = vld [vmem:[#allocation2 + $0x1280] sm:$0xff] }
 0x220   :  { %6878 = vmatprep.subr.bf16.mxu0 %v8448_v15  ;;  %7042 = vmatprep.subr.bf16.mxu1 %v8450_v16  ;;  %v624_v15 = vld [vmem:[#allocation2 + $0x12a0] sm:$0xff]  ;;  %v621_v16 = vld [vmem:[#allocation2 + $0x1288] sm:$0xff] }
 0x221   :  { %v8504_v20 = vcombine.high %v620_v13, %v624_v15  ;;  %v8503_v59 = vcombine.low %v620_v13, %v624_v15  ;;  %v8505_v27 = vcombine.low %v621_v16, %v625_v17  ;;  %v673_v13 = vld [vmem:[#allocation2 + $0x1428] sm:$0xff] }
 0x223   :  { %6879 = vmatpush1.bf16.msra.mxu0 %v8447_v21  ;;  %7043 = vmatpush1.bf16.msra.mxu1 %v8449_v22  ;;  %v8506_v21 = vcombine.high %v621_v16, %v625_v17  ;;  %v628_v22 = vld [vmem:[#allocation2 + $0x12c0] sm:$0xff] }
 0x224   :  { %6880 = vmatprep.subr.bf16.mxu0 %v8456_v24  ;;  %7044 = vmatprep.subr.bf16.mxu1 %v8458_v25  ;;  %v632_v24 = vld [vmem:[#allocation2 + $0x12e0] sm:$0xff]  ;;  %v629_v25 = vld [vmem:[#allocation2 + $0x12c8] sm:$0xff] }
 0x225   :  { %v8512_v28 = vcombine.high %v628_v22, %v632_v24  ;;  %v8511_v36 = vcombine.low %v628_v22, %v632_v24  ;;  %v8513_v38 = vcombine.low %v629_v25, %v633_v26  ;;  %v681_v22 = vld [vmem:[#allocation2 + $0x1468] sm:$0xff] }
 0x227   :  { %6881 = vmatpush1.bf16.msra.mxu0 %v8455_v30  ;;  %7045 = vmatpush1.bf16.msra.mxu1 %v8457_v32  ;;  %v8514_v30 = vcombine.high %v629_v25, %v633_v26  ;;  %v636_v32 = vld [vmem:[#allocation2 + $0x1300] sm:$0xff] }
 0x228   :  { %6882 = vmatprep.subr.bf16.mxu0 %v8464_v33  ;;  %7046 = vmatprep.subr.bf16.mxu1 %v8466_v34  ;;  %v640_v33 = vld [vmem:[#allocation2 + $0x1320] sm:$0xff]  ;;  %v637_v34 = vld [vmem:[#allocation2 + $0x1308] sm:$0xff] }
 0x229   :  { %v8520_v39 = vcombine.high %v636_v32, %v640_v33  ;;  %v8519_v46 = vcombine.low %v636_v32, %v640_v33  ;;  %v8521_v48 = vcombine.low %v637_v34, %v641_v35  ;;  %v689_v32 = vld [vmem:[#allocation2 + $0x14a8] sm:$0xff] }
 0x22b   :  { %6883 = vmatpush1.bf16.msra.mxu0 %v8463_v40  ;;  %7047 = vmatpush1.bf16.msra.mxu1 %v8465_v41  ;;  %v8522_v40 = vcombine.high %v637_v34, %v641_v35  ;;  %v644_v41 = vld [vmem:[#allocation2 + $0x1340] sm:$0xff] }
 0x22c   :  { %6884 = vmatprep.subr.bf16.mxu0 %v8472_v42  ;;  %7048 = vmatprep.subr.bf16.mxu1 %v8474_v43  ;;  %v648_v42 = vld [vmem:[#allocation2 + $0x1360] sm:$0xff]  ;;  %v645_v43 = vld [vmem:[#allocation2 + $0x1348] sm:$0xff] }
 0x22d   :  { %v8528_v49 = vcombine.high %v644_v41, %v648_v42  ;;  %v8527_v56 = vcombine.low %v644_v41, %v648_v42  ;;  %v8529_v57 = vcombine.low %v645_v43, %v649_v45  ;;  %v697_v41 = vld [vmem:[#allocation2 + $0x14e8] sm:$0xff] }
 0x22f   :  { %6885 = vmatpush1.bf16.msra.mxu0 %v8471_v50  ;;  %7049 = vmatpush1.bf16.msra.mxu1 %v8473_v51  ;;  %v8530_v50 = vcombine.high %v645_v43, %v649_v45  ;;  %v652_v51 = vld [vmem:[#allocation2 + $0x1380] sm:$0xff] }
 0x230   :  { %6886 = vmatprep.subr.bf16.mxu0 %v8480_v52  ;;  %7050 = vmatprep.subr.bf16.mxu1 %v8482_v54  ;;  %v656_v52 = vld [vmem:[#allocation2 + $0x13a0] sm:$0xff]  ;;  %v653_v54 = vld [vmem:[#allocation2 + $0x1388] sm:$0xff] }
 0x231   :  { %v8536_v58 = vcombine.high %v652_v51, %v656_v52  ;;  %v8535_v2 = vcombine.low %v652_v51, %v656_v52  ;;  %v8537_v4 = vcombine.low %v653_v54, %v657_v55  ;;  %v705_v51 = vld [vmem:[#allocation2 + $0x1528] sm:$0xff] }
 0x233   :  { %6887 = vmatpush1.bf16.msra.mxu0 %v8479_v60  ;;  %7051 = vmatpush1.bf16.msra.mxu1 %v8481_v62  ;;  %v8538_v60 = vcombine.high %v653_v54, %v657_v55  ;;  %v660_v62 = vld [vmem:[#allocation2 + $0x13c0] sm:$0xff] }
 0x234   :  { %6888 = vmatprep.subr.bf16.mxu0 %v8488_v0  ;;  %7052 = vmatprep.subr.bf16.mxu1 %v8490_v1  ;;  %v664_v0 = vld [vmem:[#allocation2 + $0x13e0] sm:$0xff]  ;;  %v661_v1 = vld [vmem:[#allocation2 + $0x13c8] sm:$0xff] }
 0x235   :  { %v8544_v5 = vcombine.high %v660_v62, %v664_v0  ;;  %v8543_v15 = vcombine.low %v660_v62, %v664_v0  ;;  %v8545_v16 = vcombine.low %v661_v1, %v665_v29  ;;  %v713_v62 = vld [vmem:[#allocation2 + $0x1568] sm:$0xff] }
 0x237   :  { %6889 = vmatpush1.bf16.msra.mxu0 %v8487_v53  ;;  %7053 = vmatpush1.bf16.msra.mxu1 %v8489_v8  ;;  %v8546_v53 = vcombine.high %v661_v1, %v665_v29  ;;  %v668_v8 = vld [vmem:[#allocation2 + $0x1400] sm:$0xff] }
 0x238   :  { %6890 = vmatprep.subr.bf16.mxu0 %v8496_v9  ;;  %7054 = vmatprep.subr.bf16.mxu1 %v8498_v12  ;;  %v672_v9 = vld [vmem:[#allocation2 + $0x1420] sm:$0xff]  ;;  %v669_v12 = vld [vmem:[#allocation2 + $0x1408] sm:$0xff] }
 0x239   :  { %v8552_v17 = vcombine.high %v668_v8, %v672_v9  ;;  %v8551_v24 = vcombine.low %v668_v8, %v672_v9  ;;  %v8553_v25 = vcombine.low %v669_v12, %v673_v13  ;;  %v721_v8 = vld [vmem:[#allocation2 + $0x15a8] sm:$0xff] }
 0x23b   :  { %6891 = vmatpush1.bf16.msra.mxu0 %v8495_v18  ;;  %7055 = vmatpush1.bf16.msra.mxu1 %v8497_v19  ;;  %v8554_v18 = vcombine.high %v669_v12, %v673_v13  ;;  %v676_v19 = vld [vmem:[#allocation2 + $0x1440] sm:$0xff] }
 0x23c   :  { %6892 = vmatprep.subr.bf16.mxu0 %v8504_v20  ;;  %7056 = vmatprep.subr.bf16.mxu1 %v8506_v21  ;;  %v680_v20 = vld [vmem:[#allocation2 + $0x1460] sm:$0xff]  ;;  %v677_v21 = vld [vmem:[#allocation2 + $0x1448] sm:$0xff] }
 0x23d   :  { %v8560_v26 = vcombine.high %v676_v19, %v680_v20  ;;  %v8559_v33 = vcombine.low %v676_v19, %v680_v20  ;;  %v8561_v34 = vcombine.low %v677_v21, %v681_v22  ;;  %v729_v19 = vld [vmem:[#allocation2 + $0x15e8] sm:$0xff] }
 0x23f   :  { %6893 = vmatpush1.bf16.msra.mxu0 %v8503_v59  ;;  %7057 = vmatpush1.bf16.msra.mxu1 %v8505_v27  ;;  %v8562_v59 = vcombine.high %v677_v21, %v681_v22  ;;  %v684_v27 = vld [vmem:[#allocation2 + $0x1480] sm:$0xff] }
 0x240   :  { %6894 = vmatprep.subr.bf16.mxu0 %v8512_v28  ;;  %7058 = vmatprep.subr.bf16.mxu1 %v8514_v30  ;;  %v688_v28 = vld [vmem:[#allocation2 + $0x14a0] sm:$0xff]  ;;  %v685_v30 = vld [vmem:[#allocation2 + $0x1488] sm:$0xff] }
 0x241   :  { %v8568_v35 = vcombine.high %v684_v27, %v688_v28  ;;  %v8567_v42 = vcombine.low %v684_v27, %v688_v28  ;;  %v8569_v43 = vcombine.low %v685_v30, %v689_v32  ;;  %v737_v27 = vld [vmem:[#allocation2 + $0x1628] sm:$0xff] }
 0x243   :  { %6895 = vmatpush1.bf16.msra.mxu0 %v8511_v36  ;;  %7059 = vmatpush1.bf16.msra.mxu1 %v8513_v38  ;;  %v8570_v36 = vcombine.high %v685_v30, %v689_v32  ;;  %v692_v38 = vld [vmem:[#allocation2 + $0x14c0] sm:$0xff] }
 0x244   :  { %6896 = vmatprep.subr.bf16.mxu0 %v8520_v39  ;;  %7060 = vmatprep.subr.bf16.mxu1 %v8522_v40  ;;  %v696_v39 = vld [vmem:[#allocation2 + $0x14e0] sm:$0xff]  ;;  %v693_v40 = vld [vmem:[#allocation2 + $0x14c8] sm:$0xff] }
 0x245   :  { %v8576_v45 = vcombine.high %v692_v38, %v696_v39  ;;  %v8575_v52 = vcombine.low %v692_v38, %v696_v39  ;;  %v8577_v54 = vcombine.low %v693_v40, %v697_v41  ;;  %v745_v38 = vld [vmem:[#allocation2 + $0x1668] sm:$0xff] }
 0x247   :  { %6897 = vmatpush1.bf16.msra.mxu0 %v8519_v46  ;;  %7061 = vmatpush1.bf16.msra.mxu1 %v8521_v48  ;;  %v8578_v46 = vcombine.high %v693_v40, %v697_v41  ;;  %v700_v48 = vld [vmem:[#allocation2 + $0x1500] sm:$0xff] }
 0x248   :  { %6898 = vmatprep.subr.bf16.mxu0 %v8528_v49  ;;  %7062 = vmatprep.subr.bf16.mxu1 %v8530_v50  ;;  %v704_v49 = vld [vmem:[#allocation2 + $0x1520] sm:$0xff]  ;;  %v701_v50 = vld [vmem:[#allocation2 + $0x1508] sm:$0xff] }
 0x249   :  { %v8584_v55 = vcombine.high %v700_v48, %v704_v49  ;;  %v8583_v0 = vcombine.low %v700_v48, %v704_v49  ;;  %v8585_v1 = vcombine.low %v701_v50, %v705_v51  ;;  %v753_v48 = vld [vmem:[#allocation2 + $0x16a8] sm:$0xff] }
 0x24b   :  { %6899 = vmatpush1.bf16.msra.mxu0 %v8527_v56  ;;  %7063 = vmatpush1.bf16.msra.mxu1 %v8529_v57  ;;  %v8586_v56 = vcombine.high %v701_v50, %v705_v51  ;;  %v708_v57 = vld [vmem:[#allocation2 + $0x1540] sm:$0xff] }
 0x24c   :  { %6900 = vmatprep.subr.bf16.mxu0 %v8536_v58  ;;  %7064 = vmatprep.subr.bf16.mxu1 %v8538_v60  ;;  %v712_v58 = vld [vmem:[#allocation2 + $0x1560] sm:$0xff]  ;;  %v709_v60 = vld [vmem:[#allocation2 + $0x1548] sm:$0xff] }
 0x24d   :  { %v8592_v29 = vcombine.high %v708_v57, %v712_v58  ;;  %v8591_v9 = vcombine.low %v708_v57, %v712_v58  ;;  %v8593_v12 = vcombine.low %v709_v60, %v713_v62  ;;  %v761_v57 = vld [vmem:[#allocation2 + $0x16e8] sm:$0xff] }
 0x24f   :  { %6901 = vmatpush1.bf16.msra.mxu0 %v8535_v2  ;;  %7065 = vmatpush1.bf16.msra.mxu1 %v8537_v4  ;;  %v8594_v2 = vcombine.high %v709_v60, %v713_v62  ;;  %v716_v4 = vld [vmem:[#allocation2 + $0x1580] sm:$0xff] }
 0x250   :  { %6902 = vmatprep.subr.bf16.mxu0 %v8544_v5  ;;  %7066 = vmatprep.subr.bf16.mxu1 %v8546_v53  ;;  %v720_v5 = vld [vmem:[#allocation2 + $0x15a0] sm:$0xff]  ;;  %v717_v53 = vld [vmem:[#allocation2 + $0x1588] sm:$0xff] }
 0x251   :  { %v8600_v13 = vcombine.high %v716_v4, %v720_v5  ;;  %v8599_v20 = vcombine.low %v716_v4, %v720_v5  ;;  %v8601_v21 = vcombine.low %v717_v53, %v721_v8  ;;  %v769_v4 = vld [vmem:[#allocation2 + $0x1728] sm:$0xff] }
 0x253   :  { %6903 = vmatpush1.bf16.msra.mxu0 %v8543_v15  ;;  %7067 = vmatpush1.bf16.msra.mxu1 %v8545_v16  ;;  %v8602_v15 = vcombine.high %v717_v53, %v721_v8  ;;  %v724_v16 = vld [vmem:[#allocation2 + $0x15c0] sm:$0xff] }
 0x254   :  { %6913 = vmatprep.subr.bf16.mxu0 %v8552_v17  ;;  %7077 = vmatprep.subr.bf16.mxu1 %v8554_v18  ;;  %v728_v17 = vld [vmem:[#allocation2 + $0x15e0] sm:$0xff]  ;;  %v725_v18 = vld [vmem:[#allocation2 + $0x15c8] sm:$0xff] }
 0x255   :  { %v8608_v22 = vcombine.high %v724_v16, %v728_v17  ;;  %v8607_v28 = vcombine.low %v724_v16, %v728_v17  ;;  %v8609_v30 = vcombine.low %v725_v18, %v729_v19  ;;  %v777_v16 = vld [vmem:[#allocation2 + $0x1768] sm:$0xff] }
 0x256   :  { %6905 = vmatmul.mubr.bf16.vlgmr.msra.gmra.mrb[8].mxu0 %v9109_v63  ;;  %7069 = vmatmul.mubr.bf16.vlgmr.msra.gmra.mrb[8].mxu1 %v9109_v63 }
 0x257   :  { %6914 = vmatpush1.bf16.msra.mxu0 %v8551_v24  ;;  %7078 = vmatpush1.bf16.msra.mxu1 %v8553_v25  ;;  %v8610_v24 = vcombine.high %v725_v18, %v729_v19  ;;  %v732_v25 = vld [vmem:[#allocation2 + $0x1600] sm:$0xff] }
 0x258   :  { %6915 = vmatprep.subr.bf16.mxu0 %v8560_v26  ;;  %7079 = vmatprep.subr.bf16.mxu1 %v8562_v59  ;;  %v736_v26 = vld [vmem:[#allocation2 + $0x1620] sm:$0xff]  ;;  %v733_v59 = vld [vmem:[#allocation2 + $0x1608] sm:$0xff] }
 0x259   :  { %6945 = vmatprep.mubr.bf16.mxu0 %v9124_v31  ;;  %7109 = vmatprep.mubr.bf16.mxu1 %v9124_v31  ;;  %v8616_v32 = vcombine.high %v732_v25, %v736_v26  ;;  %v8615_v39 = vcombine.low %v732_v25, %v736_v26  ;;  %v8617_v40 = vcombine.low %v733_v59, %v737_v27  ;;  %v785_v25 = vld [vmem:[#allocation2 + $0x17a8] sm:$0xff] }
 0x25b   :  { %6916 = vmatpush1.bf16.msra.mxu0 %v8559_v33  ;;  %7080 = vmatpush1.bf16.msra.mxu1 %v8561_v34  ;;  %v8618_v33 = vcombine.high %v733_v59, %v737_v27  ;;  %v740_v34 = vld [vmem:[#allocation2 + $0x1640] sm:$0xff] }
 0x25c   :  { %6917 = vmatprep.subr.bf16.mxu0 %v8568_v35  ;;  %7081 = vmatprep.subr.bf16.mxu1 %v8570_v36  ;;  %v744_v35 = vld [vmem:[#allocation2 + $0x1660] sm:$0xff]  ;;  %v741_v36 = vld [vmem:[#allocation2 + $0x1648] sm:$0xff] }
 0x25d   :  { %v8624_v41 = vcombine.high %v740_v34, %v744_v35  ;;  %v8623_v49 = vcombine.low %v740_v34, %v744_v35  ;;  %v8625_v50 = vcombine.low %v741_v36, %v745_v38  ;;  %v793_v34 = vld [vmem:[#allocation2 + $0x17e8] sm:$0xff] }
 0x25f   :  { %6918 = vmatpush1.bf16.msra.mxu0 %v8567_v42  ;;  %7082 = vmatpush1.bf16.msra.mxu1 %v8569_v43  ;;  %v8626_v42 = vcombine.high %v741_v36, %v745_v38  ;;  %v748_v43 = vld [vmem:[#allocation2 + $0x1680] sm:$0xff] }
 0x260   :  { %6919 = vmatprep.subr.bf16.mxu0 %v8576_v45  ;;  %7083 = vmatprep.subr.bf16.mxu1 %v8578_v46  ;;  %v752_v45 = vld [vmem:[#allocation2 + $0x16a0] sm:$0xff]  ;;  %v749_v46 = vld [vmem:[#allocation2 + $0x1688] sm:$0xff] }
 0x261   :  { %v8632_v51 = vcombine.high %v748_v43, %v752_v45  ;;  %v8631_v58 = vcombine.low %v748_v43, %v752_v45  ;;  %v8633_v60 = vcombine.low %v749_v46, %v753_v48  ;;  %v801_v43 = vld [vmem:[#allocation2 + $0x1828] sm:$0xff] }
 0x263   :  { %6920 = vmatpush1.bf16.msra.mxu0 %v8575_v52  ;;  %7084 = vmatpush1.bf16.msra.mxu1 %v8577_v54  ;;  %v8634_v52 = vcombine.high %v749_v46, %v753_v48  ;;  %v756_v54 = vld [vmem:[#allocation2 + $0x16c0] sm:$0xff] }
 0x264   :  { %6921 = vmatprep.subr.bf16.mxu0 %v8584_v55  ;;  %7085 = vmatprep.subr.bf16.mxu1 %v8586_v56  ;;  %v760_v55 = vld [vmem:[#allocation2 + $0x16e0] sm:$0xff]  ;;  %v757_v56 = vld [vmem:[#allocation2 + $0x16c8] sm:$0xff] }
 0x265   :  { %v8640_v62 = vcombine.high %v756_v54, %v760_v55  ;;  %v8639_v5 = vcombine.low %v756_v54, %v760_v55  ;;  %v8641_v53 = vcombine.low %v757_v56, %v761_v57  ;;  %v809_v54 = vld [vmem:[#allocation2 + $0x1868] sm:$0xff] }
 0x267   :  { %6922 = vmatpush1.bf16.msra.mxu0 %v8583_v0  ;;  %7086 = vmatpush1.bf16.msra.mxu1 %v8585_v1  ;;  %v8642_v0 = vcombine.high %v757_v56, %v761_v57  ;;  %v764_v1 = vld [vmem:[#allocation2 + $0x1700] sm:$0xff] }
 0x268   :  { %6923 = vmatprep.subr.bf16.mxu0 %v8592_v29  ;;  %7087 = vmatprep.subr.bf16.mxu1 %v8594_v2  ;;  %v768_v29 = vld [vmem:[#allocation2 + $0x1720] sm:$0xff]  ;;  %v765_v2 = vld [vmem:[#allocation2 + $0x1708] sm:$0xff] }
 0x269   :  { %v8648_v8 = vcombine.high %v764_v1, %v768_v29  ;;  %v8647_v17 = vcombine.low %v764_v1, %v768_v29  ;;  %v8649_v18 = vcombine.low %v765_v2, %v769_v4  ;;  %v817_v1 = vld [vmem:[#allocation2 + $0x18a8] sm:$0xff] }
 0x26b   :  { %6924 = vmatpush1.bf16.msra.mxu0 %v8591_v9  ;;  %7088 = vmatpush1.bf16.msra.mxu1 %v8593_v12  ;;  %v8650_v9 = vcombine.high %v765_v2, %v769_v4  ;;  %v772_v12 = vld [vmem:[#allocation2 + $0x1740] sm:$0xff] }
 0x26c   :  { %6925 = vmatprep.subr.bf16.mxu0 %v8600_v13  ;;  %7089 = vmatprep.subr.bf16.mxu1 %v8602_v15  ;;  %v776_v13 = vld [vmem:[#allocation2 + $0x1760] sm:$0xff]  ;;  %v773_v15 = vld [vmem:[#allocation2 + $0x1748] sm:$0xff] }
 0x26d   :  { %v8656_v19 = vcombine.high %v772_v12, %v776_v13  ;;  %v8655_v26 = vcombine.low %v772_v12, %v776_v13  ;;  %v8657_v59 = vcombine.low %v773_v15, %v777_v16  ;;  %v825_v12 = vld [vmem:[#allocation2 + $0x18e8] sm:$0xff] }
 0x26f   :  { %6926 = vmatpush1.bf16.msra.mxu0 %v8599_v20  ;;  %7090 = vmatpush1.bf16.msra.mxu1 %v8601_v21  ;;  %v8658_v20 = vcombine.high %v773_v15, %v777_v16  ;;  %v780_v21 = vld [vmem:[#allocation2 + $0x1780] sm:$0xff] }
 0x270   :  { %6927 = vmatprep.subr.bf16.mxu0 %v8608_v22  ;;  %7091 = vmatprep.subr.bf16.mxu1 %v8610_v24  ;;  %v784_v22 = vld [vmem:[#allocation2 + $0x17a0] sm:$0xff]  ;;  %v781_v24 = vld [vmem:[#allocation2 + $0x1788] sm:$0xff] }
 0x271   :  { %v8664_v27 = vcombine.high %v780_v21, %v784_v22  ;;  %v8663_v35 = vcombine.low %v780_v21, %v784_v22  ;;  %v8665_v36 = vcombine.low %v781_v24, %v785_v25  ;;  %v833_v21 = vld [vmem:[#allocation2 + $0x1928] sm:$0xff] }
 0x273   :  { %6928 = vmatpush1.bf16.msra.mxu0 %v8607_v28  ;;  %7092 = vmatpush1.bf16.msra.mxu1 %v8609_v30  ;;  %v8666_v28 = vcombine.high %v781_v24, %v785_v25  ;;  %v788_v30 = vld [vmem:[#allocation2 + $0x17c0] sm:$0xff] }
 0x274   :  { %6929 = vmatprep.subr.bf16.mxu0 %v8616_v32  ;;  %7093 = vmatprep.subr.bf16.mxu1 %v8618_v33  ;;  %v792_v32 = vld [vmem:[#allocation2 + $0x17e0] sm:$0xff]  ;;  %v789_v33 = vld [vmem:[#allocation2 + $0x17c8] sm:$0xff] }
 0x275   :  { %v8672_v38 = vcombine.high %v788_v30, %v792_v32  ;;  %v8671_v45 = vcombine.low %v788_v30, %v792_v32  ;;  %v8673_v46 = vcombine.low %v789_v33, %v793_v34  ;;  %v841_v30 = vld [vmem:[#allocation2 + $0x1968] sm:$0xff] }
 0x277   :  { %6930 = vmatpush1.bf16.msra.mxu0 %v8615_v39  ;;  %7094 = vmatpush1.bf16.msra.mxu1 %v8617_v40  ;;  %v8674_v39 = vcombine.high %v789_v33, %v793_v34  ;;  %v796_v40 = vld [vmem:[#allocation2 + $0x1800] sm:$0xff] }
 0x278   :  { %6931 = vmatprep.subr.bf16.mxu0 %v8624_v41  ;;  %7095 = vmatprep.subr.bf16.mxu1 %v8626_v42  ;;  %v800_v41 = vld [vmem:[#allocation2 + $0x1820] sm:$0xff]  ;;  %v797_v42 = vld [vmem:[#allocation2 + $0x1808] sm:$0xff] }
 0x279   :  { %v8680_v48 = vcombine.high %v796_v40, %v800_v41  ;;  %v8679_v55 = vcombine.low %v796_v40, %v800_v41  ;;  %v8681_v56 = vcombine.low %v797_v42, %v801_v43  ;;  %v849_v40 = vld [vmem:[#allocation2 + $0x19a8] sm:$0xff] }
 0x27b   :  { %6932 = vmatpush1.bf16.msra.mxu0 %v8623_v49  ;;  %7096 = vmatpush1.bf16.msra.mxu1 %v8625_v50  ;;  %v8682_v49 = vcombine.high %v797_v42, %v801_v43  ;;  %v804_v50 = vld [vmem:[#allocation2 + $0x1840] sm:$0xff] }
 0x27c   :  { %6933 = vmatprep.subr.bf16.mxu0 %v8632_v51  ;;  %7097 = vmatprep.subr.bf16.mxu1 %v8634_v52  ;;  %v808_v51 = vld [vmem:[#allocation2 + $0x1860] sm:$0xff]  ;;  %v805_v52 = vld [vmem:[#allocation2 + $0x1848] sm:$0xff] }
 0x27d   :  { %v8688_v57 = vcombine.high %v804_v50, %v808_v51  ;;  %v8687_v29 = vcombine.low %v804_v50, %v808_v51  ;;  %v8689_v2 = vcombine.low %v805_v52, %v809_v54  ;;  %v857_v50 = vld [vmem:[#allocation2 + $0x19e8] sm:$0xff] }
 0x27f   :  { %6934 = vmatpush1.bf16.msra.mxu0 %v8631_v58  ;;  %7098 = vmatpush1.bf16.msra.mxu1 %v8633_v60  ;;  %v8690_v58 = vcombine.high %v805_v52, %v809_v54  ;;  %v812_v60 = vld [vmem:[#allocation2 + $0x1880] sm:$0xff] }
 0x280   :  { %6935 = vmatprep.subr.bf16.mxu0 %v8640_v62  ;;  %7099 = vmatprep.subr.bf16.mxu1 %v8642_v0  ;;  %v816_v62 = vld [vmem:[#allocation2 + $0x18a0] sm:$0xff]  ;;  %v813_v0 = vld [vmem:[#allocation2 + $0x1888] sm:$0xff] }
 0x281   :  { %v8696_v4 = vcombine.high %v812_v60, %v816_v62  ;;  %v8695_v13 = vcombine.low %v812_v60, %v816_v62  ;;  %v8697_v15 = vcombine.low %v813_v0, %v817_v1  ;;  %v865_v60 = vld [vmem:[#allocation2 + $0x1a28] sm:$0xff] }
 0x283   :  { %6936 = vmatpush1.bf16.msra.mxu0 %v8639_v5  ;;  %7100 = vmatpush1.bf16.msra.mxu1 %v8641_v53  ;;  %v8698_v5 = vcombine.high %v813_v0, %v817_v1  ;;  %v820_v53 = vld [vmem:[#allocation2 + $0x18c0] sm:$0xff] }
 0x284   :  { %6937 = vmatprep.subr.bf16.mxu0 %v8648_v8  ;;  %7101 = vmatprep.subr.bf16.mxu1 %v8650_v9  ;;  %v824_v8 = vld [vmem:[#allocation2 + $0x18e0] sm:$0xff]  ;;  %v821_v9 = vld [vmem:[#allocation2 + $0x18c8] sm:$0xff] }
 0x285   :  { %v8704_v16 = vcombine.high %v820_v53, %v824_v8  ;;  %v8703_v22 = vcombine.low %v820_v53, %v824_v8  ;;  %v8705_v24 = vcombine.low %v821_v9, %v825_v12  ;;  %v873_v53 = vld [vmem:[#allocation2 + $0x1a68] sm:$0xff] }
 0x287   :  { %6938 = vmatpush1.bf16.msra.mxu0 %v8647_v17  ;;  %7102 = vmatpush1.bf16.msra.mxu1 %v8649_v18  ;;  %v8706_v17 = vcombine.high %v821_v9, %v825_v12  ;;  %v828_v18 = vld [vmem:[#allocation2 + $0x1900] sm:$0xff] }
 0x288   :  { %6939 = vmatprep.subr.bf16.mxu0 %v8656_v19  ;;  %7103 = vmatprep.subr.bf16.mxu1 %v8658_v20  ;;  %v832_v19 = vld [vmem:[#allocation2 + $0x1920] sm:$0xff]  ;;  %v829_v20 = vld [vmem:[#allocation2 + $0x1908] sm:$0xff] }
 0x289   :  { %v8712_v25 = vcombine.high %v828_v18, %v832_v19  ;;  %v8711_v32 = vcombine.low %v828_v18, %v832_v19  ;;  %v8713_v33 = vcombine.low %v829_v20, %v833_v21  ;;  %v881_v18 = vld [vmem:[#allocation2 + $0x1aa8] sm:$0xff] }
 0x28b   :  { %6940 = vmatpush1.bf16.msra.mxu0 %v8655_v26  ;;  %7104 = vmatpush1.bf16.msra.mxu1 %v8657_v59  ;;  %v8714_v26 = vcombine.high %v829_v20, %v833_v21  ;;  %v836_v59 = vld [vmem:[#allocation2 + $0x1940] sm:$0xff] }
 0x28c   :  { %6941 = vmatprep.subr.bf16.mxu0 %v8664_v27  ;;  %7105 = vmatprep.subr.bf16.mxu1 %v8666_v28  ;;  %v840_v27 = vld [vmem:[#allocation2 + $0x1960] sm:$0xff]  ;;  %v837_v28 = vld [vmem:[#allocation2 + $0x1948] sm:$0xff] }
 0x28d   :  { %v8720_v34 = vcombine.high %v836_v59, %v840_v27  ;;  %v8719_v41 = vcombine.low %v836_v59, %v840_v27  ;;  %v8721_v42 = vcombine.low %v837_v28, %v841_v30  ;;  %v889_v59 = vld [vmem:[#allocation2 + $0x1ae8] sm:$0xff] }
 0x28f   :  { %6942 = vmatpush1.bf16.msra.mxu0 %v8663_v35  ;;  %7106 = vmatpush1.bf16.msra.mxu1 %v8665_v36  ;;  %v8722_v35 = vcombine.high %v837_v28, %v841_v30  ;;  %v844_v36 = vld [vmem:[#allocation2 + $0x1980] sm:$0xff] }
 0x290   :  { %6943 = vmatprep.subr.bf16.mxu0 %v8672_v38  ;;  %7107 = vmatprep.subr.bf16.mxu1 %v8674_v39  ;;  %v848_v38 = vld [vmem:[#allocation2 + $0x19a0] sm:$0xff]  ;;  %v845_v39 = vld [vmem:[#allocation2 + $0x1988] sm:$0xff] }
 0x291   :  { %v8728_v43 = vcombine.high %v844_v36, %v848_v38  ;;  %v8727_v51 = vcombine.low %v844_v36, %v848_v38  ;;  %v8729_v52 = vcombine.low %v845_v39, %v849_v40  ;;  %v897_v36 = vld [vmem:[#allocation2 + $0x1b28] sm:$0xff] }
 0x293   :  { %6944 = vmatpush1.bf16.msra.mxu0 %v8671_v45  ;;  %7108 = vmatpush1.bf16.msra.mxu1 %v8673_v46  ;;  %v8730_v45 = vcombine.high %v845_v39, %v849_v40  ;;  %v852_v46 = vld [vmem:[#allocation2 + $0x19c0] sm:$0xff] }
 0x294   :  { %6954 = vmatprep.subr.bf16.mxu0 %v8680_v48  ;;  %7118 = vmatprep.subr.bf16.mxu1 %v8682_v49  ;;  %v856_v48 = vld [vmem:[#allocation2 + $0x19e0] sm:$0xff]  ;;  %v853_v49 = vld [vmem:[#allocation2 + $0x19c8] sm:$0xff] }
 0x295   :  { %v8736_v54 = vcombine.high %v852_v46, %v856_v48  ;;  %v8735_v62 = vcombine.low %v852_v46, %v856_v48  ;;  %v8737_v0 = vcombine.low %v853_v49, %v857_v50  ;;  %v905_v46 = vld [vmem:[#allocation2 + $0x1b68] sm:$0xff] }
 0x296   :  { %6946 = vmatmul.mubr.bf16.vlgmr.msra.gmra.mrb[8].mxu0 %v9120_v23  ;;  %7110 = vmatmul.mubr.bf16.vlgmr.msra.gmra.mrb[8].mxu1 %v9120_v23 }
 0x297   :  { %6955 = vmatpush1.bf16.msra.mxu0 %v8679_v55  ;;  %7119 = vmatpush1.bf16.msra.mxu1 %v8681_v56  ;;  %v8738_v55 = vcombine.high %v853_v49, %v857_v50  ;;  %v860_v56 = vld [vmem:[#allocation2 + $0x1a00] sm:$0xff] }
 0x298   :  { %6956 = vmatprep.subr.bf16.mxu0 %v8688_v57  ;;  %7120 = vmatprep.subr.bf16.mxu1 %v8690_v58  ;;  %v864_v57 = vld [vmem:[#allocation2 + $0x1a20] sm:$0xff]  ;;  %v861_v58 = vld [vmem:[#allocation2 + $0x1a08] sm:$0xff] }
 0x299   :  { %6986 = vmatprep.mubr.bf16.mxu0 %v9141_v47  ;;  %7150 = vmatprep.mubr.bf16.mxu1 %v9141_v47  ;;  %v8744_v1 = vcombine.high %v860_v56, %v864_v57  ;;  %v8743_v8 = vcombine.low %v860_v56, %v864_v57  ;;  %v8745_v9 = vcombine.low %v861_v58, %v865_v60  ;;  %v913_v56 = vld [vmem:[#allocation2 + $0x1ba8] sm:$0xff] }
 0x29b   :  { %6957 = vmatpush1.bf16.msra.mxu0 %v8687_v29  ;;  %7121 = vmatpush1.bf16.msra.mxu1 %v8689_v2  ;;  %v8746_v29 = vcombine.high %v861_v58, %v865_v60  ;;  %v868_v2 = vld [vmem:[#allocation2 + $0x1a40] sm:$0xff] }
 0x29c   :  { %6958 = vmatprep.subr.bf16.mxu0 %v8696_v4  ;;  %7122 = vmatprep.subr.bf16.mxu1 %v8698_v5  ;;  %v872_v4 = vld [vmem:[#allocation2 + $0x1a60] sm:$0xff]  ;;  %v869_v5 = vld [vmem:[#allocation2 + $0x1a48] sm:$0xff] }
 0x29d   :  { %v8752_v12 = vcombine.high %v868_v2, %v872_v4  ;;  %v8751_v19 = vcombine.low %v868_v2, %v872_v4  ;;  %v8753_v20 = vcombine.low %v869_v5, %v873_v53  ;;  %v921_v2 = vld [vmem:[#allocation2 + $0x1be8] sm:$0xff] }
 0x29f   :  { %6959 = vmatpush1.bf16.msra.mxu0 %v8695_v13  ;;  %7123 = vmatpush1.bf16.msra.mxu1 %v8697_v15  ;;  %v8754_v13 = vcombine.high %v869_v5, %v873_v53  ;;  %v876_v15 = vld [vmem:[#allocation2 + $0x1a80] sm:$0xff] }
 0x2a0   :  { %6960 = vmatprep.subr.bf16.mxu0 %v8704_v16  ;;  %7124 = vmatprep.subr.bf16.mxu1 %v8706_v17  ;;  %v880_v16 = vld [vmem:[#allocation2 + $0x1aa0] sm:$0xff]  ;;  %v877_v17 = vld [vmem:[#allocation2 + $0x1a88] sm:$0xff] }
 0x2a1   :  { %v8760_v21 = vcombine.high %v876_v15, %v880_v16  ;;  %v8759_v27 = vcombine.low %v876_v15, %v880_v16  ;;  %v8761_v28 = vcombine.low %v877_v17, %v881_v18  ;;  %v929_v15 = vld [vmem:[#allocation2 + $0x1c28] sm:$0xff] }
 0x2a3   :  { %6961 = vmatpush1.bf16.msra.mxu0 %v8703_v22  ;;  %7125 = vmatpush1.bf16.msra.mxu1 %v8705_v24  ;;  %v8762_v22 = vcombine.high %v877_v17, %v881_v18  ;;  %v884_v24 = vld [vmem:[#allocation2 + $0x1ac0] sm:$0xff] }
 0x2a4   :  { %6962 = vmatprep.subr.bf16.mxu0 %v8712_v25  ;;  %7126 = vmatprep.subr.bf16.mxu1 %v8714_v26  ;;  %v888_v25 = vld [vmem:[#allocation2 + $0x1ae0] sm:$0xff]  ;;  %v885_v26 = vld [vmem:[#allocation2 + $0x1ac8] sm:$0xff] }
 0x2a5   :  { %v8768_v30 = vcombine.high %v884_v24, %v888_v25  ;;  %v8767_v38 = vcombine.low %v884_v24, %v888_v25  ;;  %v8769_v39 = vcombine.low %v885_v26, %v889_v59  ;;  %v937_v24 = vld [vmem:[#allocation2 + $0x1c68] sm:$0xff] }
 0x2a7   :  { %6963 = vmatpush1.bf16.msra.mxu0 %v8711_v32  ;;  %7127 = vmatpush1.bf16.msra.mxu1 %v8713_v33  ;;  %v8770_v32 = vcombine.high %v885_v26, %v889_v59  ;;  %v892_v33 = vld [vmem:[#allocation2 + $0x1b00] sm:$0xff] }
 0x2a8   :  { %6964 = vmatprep.subr.bf16.mxu0 %v8720_v34  ;;  %7128 = vmatprep.subr.bf16.mxu1 %v8722_v35  ;;  %v896_v34 = vld [vmem:[#allocation2 + $0x1b20] sm:$0xff]  ;;  %v893_v35 = vld [vmem:[#allocation2 + $0x1b08] sm:$0xff] }
 0x2a9   :  { %v8776_v40 = vcombine.high %v892_v33, %v896_v34  ;;  %v8775_v48 = vcombine.low %v892_v33, %v896_v34  ;;  %v8777_v49 = vcombine.low %v893_v35, %v897_v36  ;;  %v945_v33 = vld [vmem:[#allocation2 + $0x1ca8] sm:$0xff] }
 0x2ab   :  { %6965 = vmatpush1.bf16.msra.mxu0 %v8719_v41  ;;  %7129 = vmatpush1.bf16.msra.mxu1 %v8721_v42  ;;  %v8778_v41 = vcombine.high %v893_v35, %v897_v36  ;;  %v900_v42 = vld [vmem:[#allocation2 + $0x1b40] sm:$0xff] }
 0x2ac   :  { %6966 = vmatprep.subr.bf16.mxu0 %v8728_v43  ;;  %7130 = vmatprep.subr.bf16.mxu1 %v8730_v45  ;;  %v904_v43 = vld [vmem:[#allocation2 + $0x1b60] sm:$0xff]  ;;  %v901_v45 = vld [vmem:[#allocation2 + $0x1b48] sm:$0xff] }
 0x2ad   :  { %v8784_v50 = vcombine.high %v900_v42, %v904_v43  ;;  %v8783_v57 = vcombine.low %v900_v42, %v904_v43  ;;  %v8785_v58 = vcombine.low %v901_v45, %v905_v46  ;;  %v953_v42 = vld [vmem:[#allocation2 + $0x1ce8] sm:$0xff] }
 0x2af   :  { %6967 = vmatpush1.bf16.msra.mxu0 %v8727_v51  ;;  %7131 = vmatpush1.bf16.msra.mxu1 %v8729_v52  ;;  %v8786_v51 = vcombine.high %v901_v45, %v905_v46  ;;  %v908_v52 = vld [vmem:[#allocation2 + $0x1b80] sm:$0xff] }
 0x2b0   :  { %6968 = vmatprep.subr.bf16.mxu0 %v8736_v54  ;;  %7132 = vmatprep.subr.bf16.mxu1 %v8738_v55  ;;  %v912_v54 = vld [vmem:[#allocation2 + $0x1ba0] sm:$0xff]  ;;  %v909_v55 = vld [vmem:[#allocation2 + $0x1b88] sm:$0xff] }
 0x2b1   :  { %v8792_v60 = vcombine.high %v908_v52, %v912_v54  ;;  %v8791_v4 = vcombine.low %v908_v52, %v912_v54  ;;  %v8793_v5 = vcombine.low %v909_v55, %v913_v56  ;;  %v961_v52 = vld [vmem:[#allocation2 + $0x1d28] sm:$0xff] }
 0x2b3   :  { %6969 = vmatpush1.bf16.msra.mxu0 %v8735_v62  ;;  %7133 = vmatpush1.bf16.msra.mxu1 %v8737_v0  ;;  %v8794_v62 = vcombine.high %v909_v55, %v913_v56  ;;  %v916_v0 = vld [vmem:[#allocation2 + $0x1bc0] sm:$0xff] }
 0x2b4   :  { %6970 = vmatprep.subr.bf16.mxu0 %v8744_v1  ;;  %7134 = vmatprep.subr.bf16.mxu1 %v8746_v29  ;;  %v920_v1 = vld [vmem:[#allocation2 + $0x1be0] sm:$0xff]  ;;  %v917_v29 = vld [vmem:[#allocation2 + $0x1bc8] sm:$0xff] }
 0x2b5   :  { %v8800_v53 = vcombine.high %v916_v0, %v920_v1  ;;  %v8799_v16 = vcombine.low %v916_v0, %v920_v1  ;;  %v8801_v17 = vcombine.low %v917_v29, %v921_v2  ;;  %v969_v0 = vld [vmem:[#allocation2 + $0x1d68] sm:$0xff] }
 0x2b7   :  { %6971 = vmatpush1.bf16.msra.mxu0 %v8743_v8  ;;  %7135 = vmatpush1.bf16.msra.mxu1 %v8745_v9  ;;  %v8802_v8 = vcombine.high %v917_v29, %v921_v2  ;;  %v924_v9 = vld [vmem:[#allocation2 + $0x1c00] sm:$0xff] }
 0x2b8   :  { %6972 = vmatprep.subr.bf16.mxu0 %v8752_v12  ;;  %7136 = vmatprep.subr.bf16.mxu1 %v8754_v13  ;;  %v928_v12 = vld [vmem:[#allocation2 + $0x1c20] sm:$0xff]  ;;  %v925_v13 = vld [vmem:[#allocation2 + $0x1c08] sm:$0xff] }
 0x2b9   :  { %v8808_v18 = vcombine.high %v924_v9, %v928_v12  ;;  %v8807_v25 = vcombine.low %v924_v9, %v928_v12  ;;  %v8809_v26 = vcombine.low %v925_v13, %v929_v15  ;;  %v977_v9 = vld [vmem:[#allocation2 + $0x1da8] sm:$0xff] }
 0x2bb   :  { %6973 = vmatpush1.bf16.msra.mxu0 %v8751_v19  ;;  %7137 = vmatpush1.bf16.msra.mxu1 %v8753_v20  ;;  %v8810_v19 = vcombine.high %v925_v13, %v929_v15  ;;  %v932_v20 = vld [vmem:[#allocation2 + $0x1c40] sm:$0xff] }
 0x2bc   :  { %6974 = vmatprep.subr.bf16.mxu0 %v8760_v21  ;;  %7138 = vmatprep.subr.bf16.mxu1 %v8762_v22  ;;  %v936_v21 = vld [vmem:[#allocation2 + $0x1c60] sm:$0xff]  ;;  %v933_v22 = vld [vmem:[#allocation2 + $0x1c48] sm:$0xff] }
 0x2bd   :  { %v8816_v59 = vcombine.high %v932_v20, %v936_v21  ;;  %v8815_v34 = vcombine.low %v932_v20, %v936_v21  ;;  %v8817_v35 = vcombine.low %v933_v22, %v937_v24 }
 0x2bf   :  { %6975 = vmatpush1.bf16.msra.mxu0 %v8759_v27  ;;  %7139 = vmatpush1.bf16.msra.mxu1 %v8761_v28  ;;  %v8818_v27 = vcombine.high %v933_v22, %v937_v24  ;;  %v940_v28 = vld [vmem:[#allocation2 + $0x1c80] sm:$0xff]  ;;  %v981_v22 = vld [vmem:[#allocation2 + $0x1dc8] sm:$0xff] }
 0x2c0   :  { %6976 = vmatprep.subr.bf16.mxu0 %v8768_v30  ;;  %7140 = vmatprep.subr.bf16.mxu1 %v8770_v32  ;;  %v944_v30 = vld [vmem:[#allocation2 + $0x1ca0] sm:$0xff]  ;;  %v941_v32 = vld [vmem:[#allocation2 + $0x1c88] sm:$0xff] }
 0x2c1   :  { %v8824_v36 = vcombine.high %v940_v28, %v944_v30  ;;  %v8823_v43 = vcombine.low %v940_v28, %v944_v30  ;;  %v8825_v45 = vcombine.low %v941_v32, %v945_v33  ;;  %v985_v24 = vld [vmem:[#allocation2 + $0x1de8] sm:$0xff] }
 0x2c3   :  { %6977 = vmatpush1.bf16.msra.mxu0 %v8767_v38  ;;  %7141 = vmatpush1.bf16.msra.mxu1 %v8769_v39  ;;  %v8826_v38 = vcombine.high %v941_v32, %v945_v33  ;;  %v948_v39 = vld [vmem:[#allocation2 + $0x1cc0] sm:$0xff] }
 0x2c4   :  { %6978 = vmatprep.subr.bf16.mxu0 %v8776_v40  ;;  %7142 = vmatprep.subr.bf16.mxu1 %v8778_v41  ;;  %v952_v40 = vld [vmem:[#allocation2 + $0x1ce0] sm:$0xff]  ;;  %v949_v41 = vld [vmem:[#allocation2 + $0x1cc8] sm:$0xff] }
 0x2c5   :  { %v8832_v46 = vcombine.high %v948_v39, %v952_v40  ;;  %v8831_v54 = vcombine.low %v948_v39, %v952_v40  ;;  %v8833_v55 = vcombine.low %v949_v41, %v953_v42  ;;  %v993_v39 = vld [vmem:[#allocation2 + $0x1e28] sm:$0xff] }
 0x2c7   :  { %6979 = vmatpush1.bf16.msra.mxu0 %v8775_v48  ;;  %7143 = vmatpush1.bf16.msra.mxu1 %v8777_v49  ;;  %v8834_v48 = vcombine.high %v949_v41, %v953_v42  ;;  %v956_v49 = vld [vmem:[#allocation2 + $0x1d00] sm:$0xff]  ;;  %v8865_v41 = vcombine.low %v981_v22, %v985_v24 }
 0x2c8   :  { %6980 = vmatprep.subr.bf16.mxu0 %v8784_v50  ;;  %7144 = vmatprep.subr.bf16.mxu1 %v8786_v51  ;;  %v960_v50 = vld [vmem:[#allocation2 + $0x1d20] sm:$0xff]  ;;  %v957_v51 = vld [vmem:[#allocation2 + $0x1d08] sm:$0xff] }
 0x2c9   :  { %v8840_v56 = vcombine.high %v956_v49, %v960_v50  ;;  %v8839_v1 = vcombine.low %v956_v49, %v960_v50  ;;  %v8841_v29 = vcombine.low %v957_v51, %v961_v52  ;;  %v1001_v49 = vld [vmem:[#allocation2 + $0x1e68] sm:$0xff] }
 0x2cb   :  { %6981 = vmatpush1.bf16.msra.mxu0 %v8783_v57  ;;  %7145 = vmatpush1.bf16.msra.mxu1 %v8785_v58  ;;  %v8842_v57 = vcombine.high %v957_v51, %v961_v52  ;;  %v964_v58 = vld [vmem:[#allocation2 + $0x1d40] sm:$0xff] }
 0x2cc   :  { %6982 = vmatprep.subr.bf16.mxu0 %v8792_v60  ;;  %7146 = vmatprep.subr.bf16.mxu1 %v8794_v62  ;;  %v968_v60 = vld [vmem:[#allocation2 + $0x1d60] sm:$0xff]  ;;  %v965_v62 = vld [vmem:[#allocation2 + $0x1d48] sm:$0xff] }
 0x2cd   :  { %v8848_v2 = vcombine.high %v964_v58, %v968_v60  ;;  %v8847_v12 = vcombine.low %v964_v58, %v968_v60  ;;  %v8849_v13 = vcombine.low %v965_v62, %v969_v0  ;;  %v1009_v58 = vld [vmem:[#allocation2 + $0x1ea8] sm:$0xff] }
 0x2cf   :  { %6983 = vmatpush1.bf16.msra.mxu0 %v8791_v4  ;;  %7147 = vmatpush1.bf16.msra.mxu1 %v8793_v5  ;;  %v8850_v4 = vcombine.high %v965_v62, %v969_v0  ;;  %v972_v5 = vld [vmem:[#allocation2 + $0x1d80] sm:$0xff] }
 0x2d0   :  { %6984 = vmatprep.subr.bf16.mxu0 %v8800_v53  ;;  %7148 = vmatprep.subr.bf16.mxu1 %v8802_v8  ;;  %v976_v53 = vld [vmem:[#allocation2 + $0x1da0] sm:$0xff]  ;;  %v973_v8 = vld [vmem:[#allocation2 + $0x1d88] sm:$0xff] }
 0x2d1   :  { %v8856_v15 = vcombine.high %v972_v5, %v976_v53  ;;  %v8857_v30 = vcombine.low %v973_v8, %v977_v9 }
 0x2d3   :  { %6985 = vmatpush1.bf16.msra.mxu0 %v8799_v16  ;;  %7149 = vmatpush1.bf16.msra.mxu1 %v8801_v17  ;;  %v8858_v17 = vcombine.high %v973_v8, %v977_v9 }
 0x2d4   :  { %6995 = vmatprep.subr.bf16.mxu0 %v8808_v18  ;;  %7159 = vmatprep.subr.bf16.mxu1 %v8810_v19  ;;  %v980_v18 = vld [vmem:[#allocation2 + $0x1dc0] sm:$0xff] }
 0x2d5   :  { %v984_v19 = vld [vmem:[#allocation2 + $0x1de0] sm:$0xff] }
 0x2d6   :  { %6987 = vmatmul.mubr.bf16.vlgmr.msra.gmra.mrb[8].mxu0 %v9137_v37  ;;  %7151 = vmatmul.mubr.bf16.vlgmr.msra.gmra.mrb[8].mxu1 %v9137_v37  ;;  %v8864_v32 = vcombine.high %v980_v18, %v984_v19  ;;  %v8863_v40 = vcombine.low %v980_v18, %v984_v19  ;;  %v1025_v18 = vld [vmem:[#allocation2 + $0x1f28] sm:$0xff] }
 0x2d7   :  { %6996 = vmatpush1.bf16.msra.mxu0 %v8807_v25  ;;  %7160 = vmatpush1.bf16.msra.mxu1 %v8809_v26 }
 0x2d8   :  { %6997 = vmatprep.subr.bf16.mxu0 %v8816_v59  ;;  %7161 = vmatprep.subr.bf16.mxu1 %v8818_v27  ;;  %v8855_v59 = vcombine.low %v972_v5, %v976_v53  ;;  %v1017_v5 = vld [vmem:[#allocation2 + $0x1ee8] sm:$0xff] }
 0x2d9   :  { %7027 = vmatprep.mubr.bf16.mxu0 %v9154_v7  ;;  %7191 = vmatprep.mubr.bf16.mxu1 %v9154_v7 }
 0x2db   :  { %6998 = vmatpush1.bf16.msra.mxu0 %v8815_v34  ;;  %7162 = vmatpush1.bf16.msra.mxu1 %v8817_v35  ;;  %v8866_v34 = vcombine.high %v981_v22, %v985_v24  ;;  %v988_v35 = vld [vmem:[#allocation2 + $0x1e00] sm:$0xff] }
 0x2dc   :  { %6999 = vmatprep.subr.bf16.mxu0 %v8824_v36  ;;  %7163 = vmatprep.subr.bf16.mxu1 %v8826_v38  ;;  %v992_v36 = vld [vmem:[#allocation2 + $0x1e20] sm:$0xff]  ;;  %v989_v38 = vld [vmem:[#allocation2 + $0x1e08] sm:$0xff] }
 0x2dd   :  { %v8872_v42 = vcombine.high %v988_v35, %v992_v36  ;;  %v8871_v50 = vcombine.low %v988_v35, %v992_v36  ;;  %v8873_v51 = vcombine.low %v989_v38, %v993_v39  ;;  %v1036_v36 = vld [vmem:[#allocation2 + $0x1f80] sm:$0xff] }
 0x2df   :  { %7000 = vmatpush1.bf16.msra.mxu0 %v8823_v43  ;;  %7164 = vmatpush1.bf16.msra.mxu1 %v8825_v45  ;;  %v8874_v43 = vcombine.high %v989_v38, %v993_v39  ;;  %v996_v45 = vld [vmem:[#allocation2 + $0x1e40] sm:$0xff]  ;;  %v1037_v39 = vld [vmem:[#allocation2 + $0x1f88] sm:$0xff] }
 0x2e0   :  { %7001 = vmatprep.subr.bf16.mxu0 %v8832_v46  ;;  %7165 = vmatprep.subr.bf16.mxu1 %v8834_v48  ;;  %v1000_v46 = vld [vmem:[#allocation2 + $0x1e60] sm:$0xff]  ;;  %v997_v48 = vld [vmem:[#allocation2 + $0x1e48] sm:$0xff] }
 0x2e1   :  { %v8880_v52 = vcombine.high %v996_v45, %v1000_v46  ;;  %v8879_v60 = vcombine.low %v996_v45, %v1000_v46  ;;  %v8881_v62 = vcombine.low %v997_v48, %v1001_v49  ;;  %v1040_v38 = vld [vmem:[#allocation2 + $0x1fa0] sm:$0xff] }
 0x2e2   :  { %v1044_v46 = vld [vmem:[#allocation2 + $0x1fc0] sm:$0xff] }
 0x2e3   :  { %7002 = vmatpush1.bf16.msra.mxu0 %v8831_v54  ;;  %7166 = vmatpush1.bf16.msra.mxu1 %v8833_v55  ;;  %v8882_v54 = vcombine.high %v997_v48, %v1001_v49  ;;  %v1004_v55 = vld [vmem:[#allocation2 + $0x1e80] sm:$0xff]  ;;  %v1045_v49 = vld [vmem:[#allocation2 + $0x1fc8] sm:$0xff] }
 0x2e4   :  { %7003 = vmatprep.subr.bf16.mxu0 %v8840_v56  ;;  %7167 = vmatprep.subr.bf16.mxu1 %v8842_v57  ;;  %v1008_v56 = vld [vmem:[#allocation2 + $0x1ea0] sm:$0xff]  ;;  %v1005_v57 = vld [vmem:[#allocation2 + $0x1e88] sm:$0xff] }
 0x2e5   :  { %v8888_v0 = vcombine.high %v1004_v55, %v1008_v56  ;;  %v8887_v53 = vcombine.low %v1004_v55, %v1008_v56  ;;  %v8889_v8 = vcombine.low %v1005_v57, %v1009_v58  ;;  %v1048_v48 = vld [vmem:[#allocation2 + $0x1fe0] sm:$0xff]  ;;  %v542_v56 = vld [vmem:[#allocation2 + $0x1010] sm:$0xff] }
 0x2e7   :  { %7004 = vmatpush1.bf16.msra.mxu0 %v8839_v1  ;;  %7168 = vmatpush1.bf16.msra.mxu1 %v8841_v29  ;;  %v8890_v1 = vcombine.high %v1005_v57, %v1009_v58  ;;  %v1012_v29 = vld [vmem:[#allocation2 + $0x1ec0] sm:$0xff]  ;;  %v546_v57 = vld [vmem:[#allocation2 + $0x1030] sm:$0xff]  ;;  %v543_v58 = vld [vmem:[#allocation2 + $0x1018] sm:$0xff] }
 0x2e8   :  { %7005 = vmatprep.subr.bf16.mxu0 %v8848_v2  ;;  %7169 = vmatprep.subr.bf16.mxu1 %v8850_v4  ;;  %v1016_v2 = vld [vmem:[#allocation2 + $0x1ee0] sm:$0xff]  ;;  %v1013_v4 = vld [vmem:[#allocation2 + $0x1ec8] sm:$0xff] }
 0x2e9   :  { %v9200_v16 = vpop.f32.mrb[4].mxu0  ;;  %v9202_v20 = vpop.f32.mrb[4].mxu1  ;;  %v8896_v9 = vcombine.high %v1012_v29, %v1016_v2  ;;  %v8895_v19 = vcombine.low %v1012_v29, %v1016_v2  ;;  %v8897_v22 = vcombine.low %v1013_v4, %v1017_v5  ;;  %v550_v2 = vld [vmem:[#allocation2 + $0x1050] sm:$0xff] }
 0x2ea   :  { %v9204_v21 = vpop.f32.mrb[5].mxu0  ;;  %v9206_v25 = vpop.f32.mrb[5].mxu1 }
 0x2eb   :  { %v4145_v26 = vpop.f32.mrb[6].mxu0  ;;  %7006 = vmatpush1.bf16.msra.mxu0 %v8847_v12  ;;  %v4309_v27 = vpop.f32.mrb[6].mxu1  ;;  %7170 = vmatpush1.bf16.msra.mxu1 %v8849_v13  ;;  %v8898_v12 = vcombine.high %v1013_v4, %v1017_v5  ;;  %v1020_v13 = vld [vmem:[#allocation2 + $0x1f00] sm:$0xff]  ;;  %v554_v4 = vld [vmem:[#allocation2 + $0x1070] sm:$0xff]  ;;  %v551_v5 = vld [vmem:[#allocation2 + $0x1058] sm:$0xff] }
 0x2ec   :  { %v4146_v28 = vpop.f32.mrb[7].mxu0  ;;  %7007 = vmatprep.subr.bf16.mxu0 %v8856_v15  ;;  %v4310_v33 = vpop.f32.mrb[7].mxu1  ;;  %7171 = vmatprep.subr.bf16.mxu1 %v8858_v17  ;;  %v1024_v15 = vld [vmem:[#allocation2 + $0x1f20] sm:$0xff]  ;;  %v1021_v17 = vld [vmem:[#allocation2 + $0x1f08] sm:$0xff] }
 0x2ed   :  { %v8904_v24 = vcombine.high %v1020_v13, %v1024_v15  ;;  %v8906_v26 = vcombine.high %v1021_v17, %v1025_v18  ;;  %v1032_v27 = vld [vmem:[#allocation2 + $0x1f60] sm:$0xff]  ;;  %v1029_v28 = vld [vmem:[#allocation2 + $0x1f48] sm:$0xff]  ;;  %v8905_v33 = vcombine.low %v1021_v17, %v1025_v18  ;;  %v562_v17 = vld [vmem:[#allocation2 + $0x10b0] sm:$0xff] }
 0x2ee   :  { %v559_v18 = vld [vmem:[#allocation2 + $0x1098] sm:$0xff] }
 0x2ef   :  { %7008 = vmatpush1.bf16.msra.mxu0 %v8855_v59  ;;  %7172 = vmatpush1.bf16.msra.mxu1 %v8857_v30  ;;  %v1028_v59 = vld [vmem:[#allocation2 + $0x1f40] sm:$0xff]  ;;  %v1033_v30 = vld [vmem:[#allocation2 + $0x1f68] sm:$0xff] }
 0x2f0   :  { %7009 = vmatprep.subr.bf16.mxu0 %v8864_v32  ;;  %7173 = vmatprep.subr.bf16.mxu1 %v8866_v34  ;;  %v8903_v32 = vcombine.low %v1020_v13, %v1024_v15  ;;  %v8912_v34 = vcombine.high %v1028_v59, %v1032_v27  ;;  %v8914_v35 = vcombine.high %v1029_v28, %v1033_v30  ;;  %v558_v15 = vld [vmem:[#allocation2 + $0x1090] sm:$0xff] }
 0x2f3   :  { %7010 = vmatpush1.bf16.msra.mxu0 %v8863_v40  ;;  %7174 = vmatpush1.bf16.msra.mxu1 %v8865_v41  ;;  %v1041_v40 = vld [vmem:[#allocation2 + $0x1fa8] sm:$0xff]  ;;  %v8911_v41 = vcombine.low %v1028_v59, %v1032_v27  ;;  %v566_v27 = vld [vmem:[#allocation2 + $0x10d0] sm:$0xff] }
 0x2f4   :  { %7011 = vmatprep.subr.bf16.mxu0 %v8872_v42  ;;  %7175 = vmatprep.subr.bf16.mxu1 %v8874_v43  ;;  %v8913_v42 = vcombine.low %v1029_v28, %v1033_v30  ;;  %v8920_v43 = vcombine.high %v1036_v36, %v1040_v38  ;;  %v8922_v45 = vcombine.high %v1037_v39, %v1041_v40  ;;  %v570_v28 = vld [vmem:[#allocation2 + $0x10f0] sm:$0xff]  ;;  %v567_v30 = vld [vmem:[#allocation2 + $0x10d8] sm:$0xff] }
 0x2f7   :  { %7012 = vmatpush1.bf16.msra.mxu0 %v8871_v50  ;;  %7176 = vmatpush1.bf16.msra.mxu1 %v8873_v51  ;;  %v1049_v50 = vld [vmem:[#allocation2 + $0x1fe8] sm:$0xff]  ;;  %v8919_v51 = vcombine.low %v1036_v36, %v1040_v38  ;;  %v574_v38 = vld [vmem:[#allocation2 + $0x1110] sm:$0xff] }
 0x2f8   :  { %7013 = vmatprep.subr.bf16.mxu0 %v8880_v52  ;;  %7177 = vmatprep.subr.bf16.mxu1 %v8882_v54  ;;  %v8921_v52 = vcombine.low %v1037_v39, %v1041_v40  ;;  %v8928_v54 = vcombine.high %v1044_v46, %v1048_v48  ;;  %v8930_v55 = vcombine.high %v1045_v49, %v1049_v50  ;;  %v578_v39 = vld [vmem:[#allocation2 + $0x1130] sm:$0xff]  ;;  %v575_v40 = vld [vmem:[#allocation2 + $0x1118] sm:$0xff] }
 0x2fb   :  { %7014 = vmatpush1.bf16.msra.mxu0 %v8879_v60  ;;  %7178 = vmatpush1.bf16.msra.mxu1 %v8881_v62  ;;  %v547_v60 = vld [vmem:[#allocation2 + $0x1038] sm:$0xff]  ;;  %v8927_v62 = vcombine.low %v1044_v46, %v1048_v48  ;;  %v582_v46 = vld [vmem:[#allocation2 + $0x1150] sm:$0xff] }
 0x2fc   :  { %7015 = vmatprep.subr.bf16.mxu0 %v8888_v0  ;;  %7179 = vmatprep.subr.bf16.mxu1 %v8890_v1  ;;  %v8929_v0 = vcombine.low %v1045_v49, %v1049_v50  ;;  %v8428_v1 = vcombine.high %v542_v56, %v546_v57  ;;  %v8430_v29 = vcombine.high %v543_v58, %v547_v60  ;;  %v586_v48 = vld [vmem:[#allocation2 + $0x1170] sm:$0xff]  ;;  %v583_v49 = vld [vmem:[#allocation2 + $0x1158] sm:$0xff] }
 0x2fd   :  { %v587_v50 = vld [vmem:[#allocation2 + $0x1178] sm:$0xff] }
 0x2ff   :  { %7016 = vmatpush1.bf16.msra.mxu0 %v8887_v53  ;;  %7180 = vmatpush1.bf16.msra.mxu1 %v8889_v8  ;;  %v555_v53 = vld [vmem:[#allocation2 + $0x1078] sm:$0xff]  ;;  %v8427_v8 = vcombine.low %v542_v56, %v546_v57  ;;  %v590_v56 = vld [vmem:[#allocation2 + $0x1190] sm:$0xff] }
 0x300   :  { %7017 = vmatprep.subr.bf16.mxu0 %v8896_v9  ;;  %7181 = vmatprep.subr.bf16.mxu1 %v8898_v12  ;;  %v8429_v9 = vcombine.low %v543_v58, %v547_v60  ;;  %v8436_v12 = vcombine.high %v550_v2, %v554_v4  ;;  %v8438_v13 = vcombine.high %v551_v5, %v555_v53  ;;  %v594_v57 = vld [vmem:[#allocation2 + $0x11b0] sm:$0xff]  ;;  %v591_v58 = vld [vmem:[#allocation2 + $0x1198] sm:$0xff] }
 0x301   :  { %v595_v60 = vld [vmem:[#allocation2 + $0x11b8] sm:$0xff] }
 0x303   :  { %7018 = vmatpush1.bf16.msra.mxu0 %v8895_v19  ;;  %7182 = vmatpush1.bf16.msra.mxu1 %v8897_v22  ;;  %v563_v19 = vld [vmem:[#allocation2 + $0x10b8] sm:$0xff]  ;;  %v8435_v22 = vcombine.low %v550_v2, %v554_v4  ;;  %v598_v2 = vld [vmem:[#allocation2 + $0x11d0] sm:$0xff] }
 0x304   :  { %7019 = vmatprep.subr.bf16.mxu0 %v8904_v24  ;;  %7183 = vmatprep.subr.bf16.mxu1 %v8906_v26  ;;  %v8437_v24 = vcombine.low %v551_v5, %v555_v53  ;;  %v8444_v26 = vcombine.high %v558_v15, %v562_v17  ;;  %v8446_v59 = vcombine.high %v559_v18, %v563_v19  ;;  %v602_v4 = vld [vmem:[#allocation2 + $0x11f0] sm:$0xff]  ;;  %v599_v5 = vld [vmem:[#allocation2 + $0x11d8] sm:$0xff] }
 0x305   :  { %v603_v53 = vld [vmem:[#allocation2 + $0x11f8] sm:$0xff] }
 0x307   :  { %7020 = vmatpush1.bf16.msra.mxu0 %v8903_v32  ;;  %7184 = vmatpush1.bf16.msra.mxu1 %v8905_v33  ;;  %v571_v32 = vld [vmem:[#allocation2 + $0x10f8] sm:$0xff]  ;;  %v8443_v33 = vcombine.low %v558_v15, %v562_v17  ;;  %v606_v15 = vld [vmem:[#allocation2 + $0x1210] sm:$0xff] }
 0x308   :  { %7021 = vmatprep.subr.bf16.mxu0 %v8912_v34  ;;  %7185 = vmatprep.subr.bf16.mxu1 %v8914_v35  ;;  %v8445_v34 = vcombine.low %v559_v18, %v563_v19  ;;  %v8452_v35 = vcombine.high %v566_v27, %v570_v28  ;;  %v8454_v36 = vcombine.high %v567_v30, %v571_v32  ;;  %v610_v17 = vld [vmem:[#allocation2 + $0x1230] sm:$0xff]  ;;  %v607_v18 = vld [vmem:[#allocation2 + $0x1218] sm:$0xff] }
 0x309   :  { %v611_v19 = vld [vmem:[#allocation2 + $0x1238] sm:$0xff] }
 0x30b   :  { %7022 = vmatpush1.bf16.msra.mxu0 %v8911_v41  ;;  %7186 = vmatpush1.bf16.msra.mxu1 %v8913_v42  ;;  %v579_v41 = vld [vmem:[#allocation2 + $0x1138] sm:$0xff]  ;;  %v8451_v42 = vcombine.low %v566_v27, %v570_v28  ;;  %v614_v27 = vld [vmem:[#allocation2 + $0x1250] sm:$0xff] }
 0x30c   :  { %7023 = vmatprep.subr.bf16.mxu0 %v8920_v43  ;;  %7187 = vmatprep.subr.bf16.mxu1 %v8922_v45  ;;  %v8453_v43 = vcombine.low %v567_v30, %v571_v32  ;;  %v8460_v45 = vcombine.high %v574_v38, %v578_v39  ;;  %v618_v28 = vld [vmem:[#allocation2 + $0x1270] sm:$0xff]  ;;  %v615_v30 = vld [vmem:[#allocation2 + $0x1258] sm:$0xff] }
 0x30d   :  { %v619_v32 = vld [vmem:[#allocation2 + $0x1278] sm:$0xff] }
 0x30f   :  { %7024 = vmatpush1.bf16.msra.mxu0 %v8919_v51  ;;  %7188 = vmatpush1.bf16.msra.mxu1 %v8921_v52  ;;  %v8459_v51 = vcombine.low %v574_v38, %v578_v39  ;;  %v8461_v52 = vcombine.low %v575_v40, %v579_v41  ;;  %v622_v38 = vld [vmem:[#allocation2 + $0x1290] sm:$0xff] }
 0x310   :  { %7025 = vmatprep.subr.bf16.mxu0 %v8928_v54  ;;  %7189 = vmatprep.subr.bf16.mxu1 %v8930_v55  ;;  %v8468_v54 = vcombine.high %v582_v46, %v586_v48  ;;  %v8470_v55 = vcombine.high %v583_v49, %v587_v50  ;;  %v626_v39 = vld [vmem:[#allocation2 + $0x12b0] sm:$0xff] }
 0x313   :  { %7026 = vmatpush1.bf16.msra.mxu0 %v8927_v62  ;;  %7190 = vmatpush1.bf16.msra.mxu1 %v8929_v0  ;;  %v8467_v62 = vcombine.low %v582_v46, %v586_v48  ;;  %v8469_v0 = vcombine.low %v583_v49, %v587_v50  ;;  %v630_v46 = vld [vmem:[#allocation2 + $0x12d0] sm:$0xff]  ;;  %v631_v49 = vld [vmem:[#allocation2 + $0x12d8] sm:$0xff] }
 0x314   :  { %7200 = vmatprep.subr.bf16.mxu0 %v8428_v1  ;;  %7364 = vmatprep.subr.bf16.mxu1 %v8430_v29  ;;  %v8476_v1 = vcombine.high %v590_v56, %v594_v57  ;;  %v8478_v29 = vcombine.high %v591_v58, %v595_v60  ;;  %v634_v48 = vld [vmem:[#allocation2 + $0x12f0] sm:$0xff]  ;;  %v635_v50 = vld [vmem:[#allocation2 + $0x12f8] sm:$0xff] }
 0x316   :  { %7028 = vmatmul.mubr.bf16.vlgmr.msra.gmra.mrb[8].mxu0 %v9150_v61  ;;  %7192 = vmatmul.mubr.bf16.vlgmr.msra.gmra.mrb[8].mxu1 %v9150_v61 }
 0x317   :  { %7201 = vmatpush1.bf16.msra.mxu0 %v8427_v8  ;;  %7365 = vmatpush1.bf16.msra.mxu1 %v8429_v9  ;;  %v8475_v8 = vcombine.low %v590_v56, %v594_v57  ;;  %v8477_v9 = vcombine.low %v591_v58, %v595_v60  ;;  %v638_v56 = vld [vmem:[#allocation2 + $0x1310] sm:$0xff]  ;;  %v639_v58 = vld [vmem:[#allocation2 + $0x1318] sm:$0xff] }
 0x318   :  { %7202 = vmatprep.subr.bf16.mxu0 %v8436_v12  ;;  %7366 = vmatprep.subr.bf16.mxu1 %v8438_v13  ;;  %v8484_v12 = vcombine.high %v598_v2, %v602_v4  ;;  %v8486_v13 = vcombine.high %v599_v5, %v603_v53  ;;  %v642_v57 = vld [vmem:[#allocation2 + $0x1330] sm:$0xff]  ;;  %v643_v60 = vld [vmem:[#allocation2 + $0x1338] sm:$0xff] }
 0x319   :  { %7232 = vmatprep.mubr.bf16.mxu0 %v9113_v3  ;;  %7396 = vmatprep.mubr.bf16.mxu1 %v9113_v3  ;;  %v8462_v3 = vcombine.high %v575_v40, %v579_v41  ;;  %v623_v40 = vld [vmem:[#allocation2 + $0x1298] sm:$0xff] }
 0x31a   :  { %v627_v41 = vld [vmem:[#allocation2 + $0x12b8] sm:$0xff] }
 0x31b   :  { %7203 = vmatpush1.bf16.msra.mxu0 %v8435_v22  ;;  %7367 = vmatpush1.bf16.msra.mxu1 %v8437_v24  ;;  %v8483_v22 = vcombine.low %v598_v2, %v602_v4  ;;  %v8485_v24 = vcombine.low %v599_v5, %v603_v53  ;;  %v646_v2 = vld [vmem:[#allocation2 + $0x1350] sm:$0xff]  ;;  %v647_v5 = vld [vmem:[#allocation2 + $0x1358] sm:$0xff] }
 0x31c   :  { %7204 = vmatprep.subr.bf16.mxu0 %v8444_v26  ;;  %7368 = vmatprep.subr.bf16.mxu1 %v8446_v59  ;;  %v8492_v26 = vcombine.high %v606_v15, %v610_v17  ;;  %v8494_v59 = vcombine.high %v607_v18, %v611_v19  ;;  %v650_v4 = vld [vmem:[#allocation2 + $0x1370] sm:$0xff]  ;;  %v651_v53 = vld [vmem:[#allocation2 + $0x1378] sm:$0xff] }
 0x31f   :  { %7205 = vmatpush1.bf16.msra.mxu0 %v8443_v33  ;;  %7369 = vmatpush1.bf16.msra.mxu1 %v8445_v34  ;;  %v8491_v33 = vcombine.low %v606_v15, %v610_v17  ;;  %v8493_v34 = vcombine.low %v607_v18, %v611_v19  ;;  %v654_v15 = vld [vmem:[#allocation2 + $0x1390] sm:$0xff]  ;;  %v655_v18 = vld [vmem:[#allocation2 + $0x1398] sm:$0xff] }
 0x320   :  { %7206 = vmatprep.subr.bf16.mxu0 %v8452_v35  ;;  %7370 = vmatprep.subr.bf16.mxu1 %v8454_v36  ;;  %v8500_v35 = vcombine.high %v614_v27, %v618_v28  ;;  %v8502_v36 = vcombine.high %v615_v30, %v619_v32  ;;  %v658_v17 = vld [vmem:[#allocation2 + $0x13b0] sm:$0xff]  ;;  %v659_v19 = vld [vmem:[#allocation2 + $0x13b8] sm:$0xff] }
 0x323   :  { %7207 = vmatpush1.bf16.msra.mxu0 %v8451_v42  ;;  %7371 = vmatpush1.bf16.msra.mxu1 %v8453_v43  ;;  %v8499_v42 = vcombine.low %v614_v27, %v618_v28  ;;  %v8501_v43 = vcombine.low %v615_v30, %v619_v32  ;;  %v662_v27 = vld [vmem:[#allocation2 + $0x13d0] sm:$0xff]  ;;  %v663_v30 = vld [vmem:[#allocation2 + $0x13d8] sm:$0xff] }
 0x324   :  { %7208 = vmatprep.subr.bf16.mxu0 %v8460_v45  ;;  %7372 = vmatprep.subr.bf16.mxu1 %v8462_v3  ;;  %v8508_v45 = vcombine.high %v622_v38, %v626_v39  ;;  %v8510_v3 = vcombine.high %v623_v40, %v627_v41  ;;  %v666_v28 = vld [vmem:[#allocation2 + $0x13f0] sm:$0xff]  ;;  %v667_v32 = vld [vmem:[#allocation2 + $0x13f8] sm:$0xff] }
 0x327   :  { %7209 = vmatpush1.bf16.msra.mxu0 %v8459_v51  ;;  %7373 = vmatpush1.bf16.msra.mxu1 %v8461_v52  ;;  %v8507_v51 = vcombine.low %v622_v38, %v626_v39  ;;  %v8509_v52 = vcombine.low %v623_v40, %v627_v41  ;;  %v670_v38 = vld [vmem:[#allocation2 + $0x1410] sm:$0xff]  ;;  %v671_v40 = vld [vmem:[#allocation2 + $0x1418] sm:$0xff] }
 0x328   :  { %7210 = vmatprep.subr.bf16.mxu0 %v8468_v54  ;;  %7374 = vmatprep.subr.bf16.mxu1 %v8470_v55  ;;  %v8516_v54 = vcombine.high %v630_v46, %v634_v48  ;;  %v8518_v55 = vcombine.high %v631_v49, %v635_v50  ;;  %v674_v39 = vld [vmem:[#allocation2 + $0x1430] sm:$0xff]  ;;  %v675_v41 = vld [vmem:[#allocation2 + $0x1438] sm:$0xff] }
 0x32b   :  { %7211 = vmatpush1.bf16.msra.mxu0 %v8467_v62  ;;  %7375 = vmatpush1.bf16.msra.mxu1 %v8469_v0  ;;  %v8515_v62 = vcombine.low %v630_v46, %v634_v48  ;;  %v8517_v0 = vcombine.low %v631_v49, %v635_v50  ;;  %v678_v46 = vld [vmem:[#allocation2 + $0x1450] sm:$0xff]  ;;  %v679_v49 = vld [vmem:[#allocation2 + $0x1458] sm:$0xff] }
 0x32c   :  { %7212 = vmatprep.subr.bf16.mxu0 %v8476_v1  ;;  %7376 = vmatprep.subr.bf16.mxu1 %v8478_v29  ;;  %v8524_v1 = vcombine.high %v638_v56, %v642_v57  ;;  %v8526_v29 = vcombine.high %v639_v58, %v643_v60  ;;  %v682_v48 = vld [vmem:[#allocation2 + $0x1470] sm:$0xff]  ;;  %v683_v50 = vld [vmem:[#allocation2 + $0x1478] sm:$0xff] }
 0x32f   :  { %7213 = vmatpush1.bf16.msra.mxu0 %v8475_v8  ;;  %7377 = vmatpush1.bf16.msra.mxu1 %v8477_v9  ;;  %v8523_v8 = vcombine.low %v638_v56, %v642_v57  ;;  %v8525_v9 = vcombine.low %v639_v58, %v643_v60  ;;  %v686_v56 = vld [vmem:[#allocation2 + $0x1490] sm:$0xff]  ;;  %v687_v58 = vld [vmem:[#allocation2 + $0x1498] sm:$0xff] }
 0x330   :  { %7214 = vmatprep.subr.bf16.mxu0 %v8484_v12  ;;  %7378 = vmatprep.subr.bf16.mxu1 %v8486_v13  ;;  %v8532_v12 = vcombine.high %v646_v2, %v650_v4  ;;  %v8534_v13 = vcombine.high %v647_v5, %v651_v53  ;;  %v690_v57 = vld [vmem:[#allocation2 + $0x14b0] sm:$0xff]  ;;  %v691_v60 = vld [vmem:[#allocation2 + $0x14b8] sm:$0xff] }
 0x333   :  { %7215 = vmatpush1.bf16.msra.mxu0 %v8483_v22  ;;  %7379 = vmatpush1.bf16.msra.mxu1 %v8485_v24  ;;  %v8531_v22 = vcombine.low %v646_v2, %v650_v4  ;;  %v8533_v24 = vcombine.low %v647_v5, %v651_v53  ;;  %v694_v2 = vld [vmem:[#allocation2 + $0x14d0] sm:$0xff]  ;;  %v695_v5 = vld [vmem:[#allocation2 + $0x14d8] sm:$0xff] }
 0x334   :  { %7216 = vmatprep.subr.bf16.mxu0 %v8492_v26  ;;  %7380 = vmatprep.subr.bf16.mxu1 %v8494_v59  ;;  %v8540_v26 = vcombine.high %v654_v15, %v658_v17  ;;  %v8542_v59 = vcombine.high %v655_v18, %v659_v19  ;;  %v698_v4 = vld [vmem:[#allocation2 + $0x14f0] sm:$0xff]  ;;  %v699_v53 = vld [vmem:[#allocation2 + $0x14f8] sm:$0xff] }
 0x337   :  { %7217 = vmatpush1.bf16.msra.mxu0 %v8491_v33  ;;  %7381 = vmatpush1.bf16.msra.mxu1 %v8493_v34  ;;  %v8539_v33 = vcombine.low %v654_v15, %v658_v17  ;;  %v8541_v34 = vcombine.low %v655_v18, %v659_v19  ;;  %v706_v15 = vld [vmem:[#allocation2 + $0x1530] sm:$0xff]  ;;  %v703_v17 = vld [vmem:[#allocation2 + $0x1518] sm:$0xff]  ;;  %v8579_v19 = vcombine.low %v694_v2, %v698_v4 }
 0x338   :  { %7218 = vmatprep.subr.bf16.mxu0 %v8500_v35  ;;  %7382 = vmatprep.subr.bf16.mxu1 %v8502_v36  ;;  %v8548_v35 = vcombine.high %v662_v27, %v666_v28  ;;  %v8550_v36 = vcombine.high %v663_v30, %v667_v32  ;;  %v707_v18 = vld [vmem:[#allocation2 + $0x1538] sm:$0xff] }
 0x33b   :  { %7219 = vmatpush1.bf16.msra.mxu0 %v8499_v42  ;;  %7383 = vmatpush1.bf16.msra.mxu1 %v8501_v43  ;;  %v8547_v42 = vcombine.low %v662_v27, %v666_v28  ;;  %v8549_v43 = vcombine.low %v663_v30, %v667_v32  ;;  %v711_v27 = vld [vmem:[#allocation2 + $0x1558] sm:$0xff]  ;;  %v8589_v32 = vcombine.low %v703_v17, %v707_v18 }
 0x33c   :  { %7220 = vmatprep.subr.bf16.mxu0 %v8508_v45  ;;  %7384 = vmatprep.subr.bf16.mxu1 %v8510_v3  ;;  %v8556_v45 = vcombine.high %v670_v38, %v674_v39  ;;  %v8558_v3 = vcombine.high %v671_v40, %v675_v41  ;;  %v715_v28 = vld [vmem:[#allocation2 + $0x1578] sm:$0xff] }
 0x33f   :  { %7221 = vmatpush1.bf16.msra.mxu0 %v8507_v51  ;;  %7385 = vmatpush1.bf16.msra.mxu1 %v8509_v52  ;;  %v8555_v51 = vcombine.low %v670_v38, %v674_v39  ;;  %v8557_v52 = vcombine.low %v671_v40, %v675_v41  ;;  %v719_v38 = vld [vmem:[#allocation2 + $0x1598] sm:$0xff]  ;;  %v8597_v41 = vcombine.low %v711_v27, %v715_v28 }
 0x340   :  { %7222 = vmatprep.subr.bf16.mxu0 %v8516_v54  ;;  %7386 = vmatprep.subr.bf16.mxu1 %v8518_v55  ;;  %v8564_v54 = vcombine.high %v678_v46, %v682_v48  ;;  %v8566_v55 = vcombine.high %v679_v49, %v683_v50  ;;  %v723_v39 = vld [vmem:[#allocation2 + $0x15b8] sm:$0xff] }
 0x343   :  { %7223 = vmatpush1.bf16.msra.mxu0 %v8515_v62  ;;  %7387 = vmatpush1.bf16.msra.mxu1 %v8517_v0  ;;  %v8563_v62 = vcombine.low %v678_v46, %v682_v48  ;;  %v8565_v0 = vcombine.low %v679_v49, %v683_v50  ;;  %v727_v46 = vld [vmem:[#allocation2 + $0x15d8] sm:$0xff]  ;;  %v8605_v50 = vcombine.low %v719_v38, %v723_v39 }
 0x344   :  { %7224 = vmatprep.subr.bf16.mxu0 %v8524_v1  ;;  %7388 = vmatprep.subr.bf16.mxu1 %v8526_v29  ;;  %v8572_v1 = vcombine.high %v686_v56, %v690_v57  ;;  %v8574_v29 = vcombine.high %v687_v58, %v691_v60  ;;  %v731_v48 = vld [vmem:[#allocation2 + $0x15f8] sm:$0xff] }
 0x347   :  { %7225 = vmatpush1.bf16.msra.mxu0 %v8523_v8  ;;  %7389 = vmatpush1.bf16.msra.mxu1 %v8525_v9  ;;  %v8571_v8 = vcombine.low %v686_v56, %v690_v57  ;;  %v8580_v9 = vcombine.high %v694_v2, %v698_v4  ;;  %v735_v56 = vld [vmem:[#allocation2 + $0x1618] sm:$0xff] }
 0x348   :  { %7226 = vmatprep.subr.bf16.mxu0 %v8532_v12  ;;  %7390 = vmatprep.subr.bf16.mxu1 %v8534_v13  ;;  %v8582_v12 = vcombine.high %v695_v5, %v699_v53  ;;  %v702_v13 = vld [vmem:[#allocation2 + $0x1510] sm:$0xff]  ;;  %v739_v57 = vld [vmem:[#allocation2 + $0x1638] sm:$0xff] }
 0x349   :  { %v8587_v30 = vcombine.low %v702_v13, %v706_v15  ;;  %v743_v2 = vld [vmem:[#allocation2 + $0x1658] sm:$0xff] }
 0x34a   :  { %v747_v4 = vld [vmem:[#allocation2 + $0x1678] sm:$0xff] }
 0x34b   :  { %7227 = vmatpush1.bf16.msra.mxu0 %v8531_v22  ;;  %7391 = vmatpush1.bf16.msra.mxu1 %v8533_v24  ;;  %v8581_v22 = vcombine.low %v695_v5, %v699_v53  ;;  %v8588_v24 = vcombine.high %v702_v13, %v706_v15  ;;  %v8621_v53 = vcombine.low %v735_v56, %v739_v57  ;;  %v751_v13 = vld [vmem:[#allocation2 + $0x1698] sm:$0xff] }
 0x34c   :  { %7228 = vmatprep.subr.bf16.mxu0 %v8540_v26  ;;  %7392 = vmatprep.subr.bf16.mxu1 %v8542_v59  ;;  %v710_v26 = vld [vmem:[#allocation2 + $0x1550] sm:$0xff]  ;;  %v755_v15 = vld [vmem:[#allocation2 + $0x16b8] sm:$0xff] }
 0x34d   :  { %v714_v59 = vld [vmem:[#allocation2 + $0x1570] sm:$0xff] }
 0x34e   :  { %v8595_v40 = vcombine.low %v710_v26, %v714_v59 }
 0x34f   :  { %7229 = vmatpush1.bf16.msra.mxu0 %v8539_v33  ;;  %7393 = vmatpush1.bf16.msra.mxu1 %v8541_v34  ;;  %v8596_v33 = vcombine.high %v710_v26, %v714_v59  ;;  %v8598_v34 = vcombine.high %v711_v27, %v715_v28  ;;  %v759_v26 = vld [vmem:[#allocation2 + $0x16d8] sm:$0xff]  ;;  %v8637_v28 = vcombine.low %v751_v13, %v755_v15 }
 0x350   :  { %7230 = vmatprep.subr.bf16.mxu0 %v8548_v35  ;;  %7394 = vmatprep.subr.bf16.mxu1 %v8550_v36  ;;  %v718_v35 = vld [vmem:[#allocation2 + $0x1590] sm:$0xff]  ;;  %v763_v59 = vld [vmem:[#allocation2 + $0x16f8] sm:$0xff] }
 0x351   :  { %v722_v36 = vld [vmem:[#allocation2 + $0x15b0] sm:$0xff] }
 0x352   :  { %v8603_v49 = vcombine.low %v718_v35, %v722_v36 }
 0x353   :  { %7231 = vmatpush1.bf16.msra.mxu0 %v8547_v42  ;;  %7395 = vmatpush1.bf16.msra.mxu1 %v8549_v43  ;;  %v8604_v42 = vcombine.high %v718_v35, %v722_v36  ;;  %v8606_v43 = vcombine.high %v719_v38, %v723_v39  ;;  %v767_v35 = vld [vmem:[#allocation2 + $0x1718] sm:$0xff]  ;;  %v8645_v39 = vcombine.low %v759_v26, %v763_v59 }
 0x354   :  { %7241 = vmatprep.subr.bf16.mxu0 %v8556_v45  ;;  %7405 = vmatprep.subr.bf16.mxu1 %v8558_v3  ;;  %v726_v45 = vld [vmem:[#allocation2 + $0x15d0] sm:$0xff]  ;;  %v771_v36 = vld [vmem:[#allocation2 + $0x1738] sm:$0xff] }
 0x355   :  { %v730_v3 = vld [vmem:[#allocation2 + $0x15f0] sm:$0xff] }
 0x356   :  { %7233 = vmatmul.mubr.bf16.vlgmr.msra.gmra.mrb[12].mxu0 %v9109_v63  ;;  %7397 = vmatmul.mubr.bf16.vlgmr.msra.gmra.mrb[12].mxu1 %v9109_v63  ;;  %v8573_v63 = vcombine.low %v687_v58, %v691_v60  ;;  %v8611_v58 = vcombine.low %v726_v45, %v730_v3  ;;  %v8613_v60 = vcombine.low %v727_v46, %v731_v48 }
 0x357   :  { %7242 = vmatpush1.bf16.msra.mxu0 %v8555_v51  ;;  %7406 = vmatpush1.bf16.msra.mxu1 %v8557_v52  ;;  %v8612_v51 = vcombine.high %v726_v45, %v730_v3  ;;  %v8614_v52 = vcombine.high %v727_v46, %v731_v48  ;;  %v775_v45 = vld [vmem:[#allocation2 + $0x1758] sm:$0xff]  ;;  %v8653_v48 = vcombine.low %v767_v35, %v771_v36 }
 0x358   :  { %7243 = vmatprep.subr.bf16.mxu0 %v8564_v54  ;;  %7407 = vmatprep.subr.bf16.mxu1 %v8566_v55  ;;  %v734_v54 = vld [vmem:[#allocation2 + $0x1610] sm:$0xff]  ;;  %v779_v3 = vld [vmem:[#allocation2 + $0x1778] sm:$0xff] }
 0x359   :  { %7273 = vmatprep.mubr.bf16.mxu0 %v9124_v31  ;;  %7437 = vmatprep.mubr.bf16.mxu1 %v9124_v31  ;;  %v8590_v31 = vcombine.high %v703_v17, %v707_v18  ;;  %v738_v55 = vld [vmem:[#allocation2 + $0x1630] sm:$0xff]  ;;  %v8629_v18 = vcombine.low %v743_v2, %v747_v4 }
 0x35a   :  { %v8619_v5 = vcombine.low %v734_v54, %v738_v55 }
 0x35b   :  { %7244 = vmatpush1.bf16.msra.mxu0 %v8563_v62  ;;  %7408 = vmatpush1.bf16.msra.mxu1 %v8565_v0  ;;  %v8620_v62 = vcombine.high %v734_v54, %v738_v55  ;;  %v8622_v0 = vcombine.high %v735_v56, %v739_v57  ;;  %v783_v54 = vld [vmem:[#allocation2 + $0x1798] sm:$0xff]  ;;  %v8661_v57 = vcombine.low %v775_v45, %v779_v3 }
 0x35c   :  { %7245 = vmatprep.subr.bf16.mxu0 %v8572_v1  ;;  %7409 = vmatprep.subr.bf16.mxu1 %v8574_v29  ;;  %v742_v1 = vld [vmem:[#allocation2 + $0x1650] sm:$0xff]  ;;  %v787_v55 = vld [vmem:[#allocation2 + $0x17b8] sm:$0xff] }
 0x35d   :  { %v746_v29 = vld [vmem:[#allocation2 + $0x1670] sm:$0xff] }
 0x35e   :  { %v8627_v17 = vcombine.low %v742_v1, %v746_v29 }
 0x35f   :  { %7246 = vmatpush1.bf16.msra.mxu0 %v8571_v8  ;;  %7410 = vmatpush1.bf16.msra.mxu1 %v8573_v63  ;;  %v8628_v8 = vcombine.high %v742_v1, %v746_v29  ;;  %v8630_v63 = vcombine.high %v743_v2, %v747_v4  ;;  %v791_v1 = vld [vmem:[#allocation2 + $0x17d8] sm:$0xff]  ;;  %v8669_v4 = vcombine.low %v783_v54, %v787_v55 }
 0x360   :  { %7247 = vmatprep.subr.bf16.mxu0 %v8580_v9  ;;  %7411 = vmatprep.subr.bf16.mxu1 %v8582_v12  ;;  %v750_v9 = vld [vmem:[#allocation2 + $0x1690] sm:$0xff]  ;;  %v795_v29 = vld [vmem:[#allocation2 + $0x17f8] sm:$0xff] }
 0x361   :  { %v754_v12 = vld [vmem:[#allocation2 + $0x16b0] sm:$0xff] }
 0x362   :  { %v8635_v27 = vcombine.low %v750_v9, %v754_v12 }
 0x363   :  { %7248 = vmatpush1.bf16.msra.mxu0 %v8579_v19  ;;  %7412 = vmatpush1.bf16.msra.mxu1 %v8581_v22  ;;  %v8636_v19 = vcombine.high %v750_v9, %v754_v12  ;;  %v8638_v22 = vcombine.high %v751_v13, %v755_v15  ;;  %v799_v9 = vld [vmem:[#allocation2 + $0x1818] sm:$0xff]  ;;  %v8677_v15 = vcombine.low %v791_v1, %v795_v29 }
 0x364   :  { %7249 = vmatprep.subr.bf16.mxu0 %v8588_v24  ;;  %7413 = vmatprep.subr.bf16.mxu1 %v8590_v31  ;;  %v758_v24 = vld [vmem:[#allocation2 + $0x16d0] sm:$0xff]  ;;  %v803_v12 = vld [vmem:[#allocation2 + $0x1838] sm:$0xff] }
 0x365   :  { %v762_v31 = vld [vmem:[#allocation2 + $0x16f0] sm:$0xff] }
 0x366   :  { %v8643_v38 = vcombine.low %v758_v24, %v762_v31 }
 0x367   :  { %7250 = vmatpush1.bf16.msra.mxu0 %v8587_v30  ;;  %7414 = vmatpush1.bf16.msra.mxu1 %v8589_v32  ;;  %v8644_v30 = vcombine.high %v758_v24, %v762_v31  ;;  %v8646_v32 = vcombine.high %v759_v26, %v763_v59  ;;  %v807_v24 = vld [vmem:[#allocation2 + $0x1858] sm:$0xff]  ;;  %v8685_v59 = vcombine.low %v799_v9, %v803_v12 }
 0x368   :  { %7251 = vmatprep.subr.bf16.mxu0 %v8596_v33  ;;  %7415 = vmatprep.subr.bf16.mxu1 %v8598_v34  ;;  %v766_v33 = vld [vmem:[#allocation2 + $0x1710] sm:$0xff]  ;;  %v811_v31 = vld [vmem:[#allocation2 + $0x1878] sm:$0xff] }
 0x369   :  { %v770_v34 = vld [vmem:[#allocation2 + $0x1730] sm:$0xff] }
 0x36a   :  { %v8651_v46 = vcombine.low %v766_v33, %v770_v34 }
 0x36b   :  { %7252 = vmatpush1.bf16.msra.mxu0 %v8595_v40  ;;  %7416 = vmatpush1.bf16.msra.mxu1 %v8597_v41  ;;  %v8652_v40 = vcombine.high %v766_v33, %v770_v34  ;;  %v8654_v41 = vcombine.high %v767_v35, %v771_v36  ;;  %v815_v33 = vld [vmem:[#allocation2 + $0x1898] sm:$0xff]  ;;  %v8693_v36 = vcombine.low %v807_v24, %v811_v31 }
 0x36c   :  { %7253 = vmatprep.subr.bf16.mxu0 %v8604_v42  ;;  %7417 = vmatprep.subr.bf16.mxu1 %v8606_v43  ;;  %v774_v42 = vld [vmem:[#allocation2 + $0x1750] sm:$0xff]  ;;  %v819_v34 = vld [vmem:[#allocation2 + $0x18b8] sm:$0xff] }
 0x36d   :  { %v778_v43 = vld [vmem:[#allocation2 + $0x1770] sm:$0xff] }
 0x36e   :  { %v8659_v56 = vcombine.low %v774_v42, %v778_v43 }
 0x36f   :  { %7254 = vmatpush1.bf16.msra.mxu0 %v8603_v49  ;;  %7418 = vmatpush1.bf16.msra.mxu1 %v8605_v50  ;;  %v8660_v49 = vcombine.high %v774_v42, %v778_v43  ;;  %v8662_v50 = vcombine.high %v775_v45, %v779_v3  ;;  %v823_v42 = vld [vmem:[#allocation2 + $0x18d8] sm:$0xff] }
 0x370   :  { %7255 = vmatprep.subr.bf16.mxu0 %v8612_v51  ;;  %7419 = vmatprep.subr.bf16.mxu1 %v8614_v52  ;;  %v782_v51 = vld [vmem:[#allocation2 + $0x1790] sm:$0xff]  ;;  %v827_v43 = vld [vmem:[#allocation2 + $0x18f8] sm:$0xff] }
 0x371   :  { %v786_v52 = vld [vmem:[#allocation2 + $0x17b0] sm:$0xff] }
 0x372   :  { %v8667_v2 = vcombine.low %v782_v51, %v786_v52 }
 0x373   :  { %7256 = vmatpush1.bf16.msra.mxu0 %v8611_v58  ;;  %7420 = vmatpush1.bf16.msra.mxu1 %v8613_v60  ;;  %v8668_v58 = vcombine.high %v782_v51, %v786_v52  ;;  %v8670_v60 = vcombine.high %v783_v54, %v787_v55  ;;  %v835_v51 = vld [vmem:[#allocation2 + $0x1938] sm:$0xff]  ;;  %v8709_v54 = vcombine.low %v823_v42, %v827_v43 }
 0x374   :  { %7257 = vmatprep.subr.bf16.mxu0 %v8620_v62  ;;  %7421 = vmatprep.subr.bf16.mxu1 %v8622_v0  ;;  %v790_v62 = vld [vmem:[#allocation2 + $0x17d0] sm:$0xff] }
 0x375   :  { %v794_v0 = vld [vmem:[#allocation2 + $0x17f0] sm:$0xff] }
 0x376   :  { %v8675_v13 = vcombine.low %v790_v62, %v794_v0 }
 0x377   :  { %7258 = vmatpush1.bf16.msra.mxu0 %v8619_v5  ;;  %7422 = vmatpush1.bf16.msra.mxu1 %v8621_v53  ;;  %v8676_v5 = vcombine.high %v790_v62, %v794_v0  ;;  %v8678_v53 = vcombine.high %v791_v1, %v795_v29 }
 0x378   :  { %7259 = vmatprep.subr.bf16.mxu0 %v8628_v8  ;;  %7423 = vmatprep.subr.bf16.mxu1 %v8630_v63  ;;  %v798_v8 = vld [vmem:[#allocation2 + $0x1810] sm:$0xff] }
 0x379   :  { %v802_v63 = vld [vmem:[#allocation2 + $0x1830] sm:$0xff] }
 0x37a   :  { %v8683_v26 = vcombine.low %v798_v8, %v802_v63 }
 0x37b   :  { %7260 = vmatpush1.bf16.msra.mxu0 %v8627_v17  ;;  %7424 = vmatpush1.bf16.msra.mxu1 %v8629_v18  ;;  %v8684_v17 = vcombine.high %v798_v8, %v802_v63  ;;  %v8686_v18 = vcombine.high %v799_v9, %v803_v12 }
 0x37c   :  { %7261 = vmatprep.subr.bf16.mxu0 %v8636_v19  ;;  %7425 = vmatprep.subr.bf16.mxu1 %v8638_v22  ;;  %v806_v19 = vld [vmem:[#allocation2 + $0x1850] sm:$0xff] }
 0x37d   :  { %v810_v22 = vld [vmem:[#allocation2 + $0x1870] sm:$0xff] }
 0x37e   :  { %v8691_v35 = vcombine.low %v806_v19, %v810_v22 }
 0x37f   :  { %7262 = vmatpush1.bf16.msra.mxu0 %v8635_v27  ;;  %7426 = vmatpush1.bf16.msra.mxu1 %v8637_v28  ;;  %v8692_v27 = vcombine.high %v806_v19, %v810_v22  ;;  %v8694_v28 = vcombine.high %v807_v24, %v811_v31 }
 0x380   :  { %7263 = vmatprep.subr.bf16.mxu0 %v8644_v30  ;;  %7427 = vmatprep.subr.bf16.mxu1 %v8646_v32  ;;  %v814_v30 = vld [vmem:[#allocation2 + $0x1890] sm:$0xff] }
 0x381   :  { %v818_v32 = vld [vmem:[#allocation2 + $0x18b0] sm:$0xff] }
 0x382   :  { %v8699_v45 = vcombine.low %v814_v30, %v818_v32 }
 0x383   :  { %7264 = vmatpush1.bf16.msra.mxu0 %v8643_v38  ;;  %7428 = vmatpush1.bf16.msra.mxu1 %v8645_v39  ;;  %v8700_v38 = vcombine.high %v814_v30, %v818_v32  ;;  %v8702_v39 = vcombine.high %v815_v33, %v819_v34 }
 0x384   :  { %7265 = vmatprep.subr.bf16.mxu0 %v8652_v40  ;;  %7429 = vmatprep.subr.bf16.mxu1 %v8654_v41  ;;  %v822_v40 = vld [vmem:[#allocation2 + $0x18d0] sm:$0xff] }
 0x385   :  { %v826_v41 = vld [vmem:[#allocation2 + $0x18f0] sm:$0xff] }
 0x386   :  { %v8708_v3 = vcombine.high %v822_v40, %v826_v41  ;;  %v8707_v52 = vcombine.low %v822_v40, %v826_v41 }
 0x387   :  { %7266 = vmatpush1.bf16.msra.mxu0 %v8651_v46  ;;  %7430 = vmatpush1.bf16.msra.mxu1 %v8653_v48  ;;  %v8710_v46 = vcombine.high %v823_v42, %v827_v43  ;;  %v830_v48 = vld [vmem:[#allocation2 + $0x1910] sm:$0xff] }
 0x388   :  { %7267 = vmatprep.subr.bf16.mxu0 %v8660_v49  ;;  %7431 = vmatprep.subr.bf16.mxu1 %v8662_v50  ;;  %v834_v49 = vld [vmem:[#allocation2 + $0x1930] sm:$0xff]  ;;  %v831_v50 = vld [vmem:[#allocation2 + $0x1918] sm:$0xff] }
 0x389   :  { %v8716_v55 = vcombine.high %v830_v48, %v834_v49  ;;  %v8715_v62 = vcombine.low %v830_v48, %v834_v49  ;;  %v8717_v0 = vcombine.low %v831_v50, %v835_v51 }
 0x38b   :  { %7268 = vmatpush1.bf16.msra.mxu0 %v8659_v56  ;;  %7432 = vmatpush1.bf16.msra.mxu1 %v8661_v57  ;;  %v838_v56 = vld [vmem:[#allocation2 + $0x1950] sm:$0xff] }
 0x38c   :  { %7269 = vmatprep.subr.bf16.mxu0 %v8668_v58  ;;  %7433 = vmatprep.subr.bf16.mxu1 %v8670_v60  ;;  %v842_v57 = vld [vmem:[#allocation2 + $0x1970] sm:$0xff]  ;;  %v839_v58 = vld [vmem:[#allocation2 + $0x1958] sm:$0xff] }
 0x38d   :  { %v843_v60 = vld [vmem:[#allocation2 + $0x1978] sm:$0xff]  ;;  %v8724_v1 = vcombine.high %v838_v56, %v842_v57  ;;  %v8723_v8 = vcombine.low %v838_v56, %v842_v57 }
 0x38e   :  { %v8726_v29 = vcombine.high %v839_v58, %v843_v60  ;;  %v8725_v63 = vcombine.low %v839_v58, %v843_v60 }
 0x38f   :  { %7270 = vmatpush1.bf16.msra.mxu0 %v8667_v2  ;;  %7434 = vmatpush1.bf16.msra.mxu1 %v8669_v4  ;;  %v846_v2 = vld [vmem:[#allocation2 + $0x1990] sm:$0xff] }
 0x390   :  { %7271 = vmatprep.subr.bf16.mxu0 %v8676_v5  ;;  %7435 = vmatprep.subr.bf16.mxu1 %v8678_v53  ;;  %v850_v4 = vld [vmem:[#allocation2 + $0x19b0] sm:$0xff]  ;;  %v847_v5 = vld [vmem:[#allocation2 + $0x1998] sm:$0xff] }
 0x391   :  { %v851_v53 = vld [vmem:[#allocation2 + $0x19b8] sm:$0xff]  ;;  %v8732_v9 = vcombine.high %v846_v2, %v850_v4  ;;  %v8731_v19 = vcombine.low %v846_v2, %v850_v4 }
 0x392   :  { %v8734_v12 = vcombine.high %v847_v5, %v851_v53  ;;  %v8733_v22 = vcombine.low %v847_v5, %v851_v53 }
 0x393   :  { %7272 = vmatpush1.bf16.msra.mxu0 %v8675_v13  ;;  %7436 = vmatpush1.bf16.msra.mxu1 %v8677_v15  ;;  %v854_v13 = vld [vmem:[#allocation2 + $0x19d0] sm:$0xff] }
 0x394   :  { %7282 = vmatprep.subr.bf16.mxu0 %v8684_v17  ;;  %7446 = vmatprep.subr.bf16.mxu1 %v8686_v18  ;;  %v858_v15 = vld [vmem:[#allocation2 + $0x19f0] sm:$0xff]  ;;  %v855_v17 = vld [vmem:[#allocation2 + $0x19d8] sm:$0xff] }
 0x395   :  { %v859_v18 = vld [vmem:[#allocation2 + $0x19f8] sm:$0xff]  ;;  %v8740_v24 = vcombine.high %v854_v13, %v858_v15  ;;  %v8739_v30 = vcombine.low %v854_v13, %v858_v15 }
 0x396   :  { %7274 = vmatmul.mubr.bf16.vlgmr.msra.gmra.mrb[12].mxu0 %v9120_v23  ;;  %7438 = vmatmul.mubr.bf16.vlgmr.msra.gmra.mrb[12].mxu1 %v9120_v23  ;;  %v8701_v23 = vcombine.low %v815_v33, %v819_v34  ;;  %v8742_v31 = vcombine.high %v855_v17, %v859_v18  ;;  %v8741_v32 = vcombine.low %v855_v17, %v859_v18 }
 0x397   :  { %7283 = vmatpush1.bf16.msra.mxu0 %v8683_v26  ;;  %7447 = vmatpush1.bf16.msra.mxu1 %v8685_v59  ;;  %v862_v26 = vld [vmem:[#allocation2 + $0x1a10] sm:$0xff] }
 0x398   :  { %7284 = vmatprep.subr.bf16.mxu0 %v8692_v27  ;;  %7448 = vmatprep.subr.bf16.mxu1 %v8694_v28  ;;  %v866_v59 = vld [vmem:[#allocation2 + $0x1a30] sm:$0xff]  ;;  %v863_v27 = vld [vmem:[#allocation2 + $0x1a18] sm:$0xff] }
 0x399   :  { %7314 = vmatprep.mubr.bf16.mxu0 %v9141_v47  ;;  %7478 = vmatprep.mubr.bf16.mxu1 %v9141_v47  ;;  %v8718_v47 = vcombine.high %v831_v50, %v835_v51  ;;  %v867_v28 = vld [vmem:[#allocation2 + $0x1a38] sm:$0xff]  ;;  %v8748_v33 = vcombine.high %v862_v26, %v866_v59  ;;  %v8747_v40 = vcombine.low %v862_v26, %v866_v59 }
 0x39a   :  { %v8750_v34 = vcombine.high %v863_v27, %v867_v28  ;;  %v8749_v41 = vcombine.low %v863_v27, %v867_v28 }
 0x39b   :  { %7285 = vmatpush1.bf16.msra.mxu0 %v8691_v35  ;;  %7449 = vmatpush1.bf16.msra.mxu1 %v8693_v36  ;;  %v870_v35 = vld [vmem:[#allocation2 + $0x1a50] sm:$0xff] }
 0x39c   :  { %7286 = vmatprep.subr.bf16.mxu0 %v8700_v38  ;;  %7450 = vmatprep.subr.bf16.mxu1 %v8702_v39  ;;  %v874_v36 = vld [vmem:[#allocation2 + $0x1a70] sm:$0xff]  ;;  %v871_v38 = vld [vmem:[#allocation2 + $0x1a58] sm:$0xff] }
 0x39d   :  { %v875_v39 = vld [vmem:[#allocation2 + $0x1a78] sm:$0xff]  ;;  %v8756_v42 = vcombine.high %v870_v35, %v874_v36  ;;  %v8755_v48 = vcombine.low %v870_v35, %v874_v36 }
 0x39e   :  { %v8758_v43 = vcombine.high %v871_v38, %v875_v39  ;;  %v8757_v49 = vcombine.low %v871_v38, %v875_v39 }
 0x39f   :  { %7287 = vmatpush1.bf16.msra.mxu0 %v8699_v45  ;;  %7451 = vmatpush1.bf16.msra.mxu1 %v8701_v23  ;;  %v878_v45 = vld [vmem:[#allocation2 + $0x1a90] sm:$0xff] }
 0x3a0   :  { %7288 = vmatprep.subr.bf16.mxu0 %v8708_v3  ;;  %7452 = vmatprep.subr.bf16.mxu1 %v8710_v46  ;;  %v882_v23 = vld [vmem:[#allocation2 + $0x1ab0] sm:$0xff]  ;;  %v879_v3 = vld [vmem:[#allocation2 + $0x1a98] sm:$0xff] }
 0x3a1   :  { %v883_v46 = vld [vmem:[#allocation2 + $0x1ab8] sm:$0xff]  ;;  %v8764_v50 = vcombine.high %v878_v45, %v882_v23  ;;  %v8763_v56 = vcombine.low %v878_v45, %v882_v23 }
 0x3a2   :  { %v8766_v51 = vcombine.high %v879_v3, %v883_v46  ;;  %v8765_v57 = vcombine.low %v879_v3, %v883_v46 }
 0x3a3   :  { %7289 = vmatpush1.bf16.msra.mxu0 %v8707_v52  ;;  %7453 = vmatpush1.bf16.msra.mxu1 %v8709_v54  ;;  %v886_v52 = vld [vmem:[#allocation2 + $0x1ad0] sm:$0xff] }
 0x3a4   :  { %7290 = vmatprep.subr.bf16.mxu0 %v8716_v55  ;;  %7454 = vmatprep.subr.bf16.mxu1 %v8718_v47  ;;  %v890_v54 = vld [vmem:[#allocation2 + $0x1af0] sm:$0xff]  ;;  %v887_v55 = vld [vmem:[#allocation2 + $0x1ad8] sm:$0xff] }
 0x3a5   :  { %v891_v47 = vld [vmem:[#allocation2 + $0x1af8] sm:$0xff]  ;;  %v8772_v58 = vcombine.high %v886_v52, %v890_v54  ;;  %v8771_v2 = vcombine.low %v886_v52, %v890_v54 }
 0x3a6   :  { %v8774_v60 = vcombine.high %v887_v55, %v891_v47  ;;  %v8773_v4 = vcombine.low %v887_v55, %v891_v47 }
 0x3a7   :  { %7291 = vmatpush1.bf16.msra.mxu0 %v8715_v62  ;;  %7455 = vmatpush1.bf16.msra.mxu1 %v8717_v0  ;;  %v894_v62 = vld [vmem:[#allocation2 + $0x1b10] sm:$0xff] }
 0x3a8   :  { %7292 = vmatprep.subr.bf16.mxu0 %v8724_v1  ;;  %7456 = vmatprep.subr.bf16.mxu1 %v8726_v29  ;;  %v898_v0 = vld [vmem:[#allocation2 + $0x1b30] sm:$0xff]  ;;  %v895_v1 = vld [vmem:[#allocation2 + $0x1b18] sm:$0xff] }
 0x3a9   :  { %v899_v29 = vld [vmem:[#allocation2 + $0x1b38] sm:$0xff]  ;;  %v8780_v5 = vcombine.high %v894_v62, %v898_v0  ;;  %v8779_v13 = vcombine.low %v894_v62, %v898_v0 }
 0x3aa   :  { %v8782_v53 = vcombine.high %v895_v1, %v899_v29  ;;  %v8781_v15 = vcombine.low %v895_v1, %v899_v29 }
 0x3ab   :  { %7293 = vmatpush1.bf16.msra.mxu0 %v8723_v8  ;;  %7457 = vmatpush1.bf16.msra.mxu1 %v8725_v63  ;;  %v902_v8 = vld [vmem:[#allocation2 + $0x1b50] sm:$0xff] }
 0x3ac   :  { %7294 = vmatprep.subr.bf16.mxu0 %v8732_v9  ;;  %7458 = vmatprep.subr.bf16.mxu1 %v8734_v12  ;;  %v906_v63 = vld [vmem:[#allocation2 + $0x1b70] sm:$0xff]  ;;  %v903_v9 = vld [vmem:[#allocation2 + $0x1b58] sm:$0xff] }
 0x3ad   :  { %v907_v12 = vld [vmem:[#allocation2 + $0x1b78] sm:$0xff]  ;;  %v8788_v17 = vcombine.high %v902_v8, %v906_v63  ;;  %v8787_v26 = vcombine.low %v902_v8, %v906_v63 }
 0x3ae   :  { %v8790_v18 = vcombine.high %v903_v9, %v907_v12  ;;  %v8789_v59 = vcombine.low %v903_v9, %v907_v12  ;;  %v958_v12 = vld [vmem:[#allocation2 + $0x1d10] sm:$0xff] }
 0x3af   :  { %7295 = vmatpush1.bf16.msra.mxu0 %v8731_v19  ;;  %7459 = vmatpush1.bf16.msra.mxu1 %v8733_v22  ;;  %v910_v19 = vld [vmem:[#allocation2 + $0x1b90] sm:$0xff] }
 0x3b0   :  { %7296 = vmatprep.subr.bf16.mxu0 %v8740_v24  ;;  %7460 = vmatprep.subr.bf16.mxu1 %v8742_v31  ;;  %v914_v22 = vld [vmem:[#allocation2 + $0x1bb0] sm:$0xff]  ;;  %v911_v24 = vld [vmem:[#allocation2 + $0x1b98] sm:$0xff] }
 0x3b1   :  { %v915_v31 = vld [vmem:[#allocation2 + $0x1bb8] sm:$0xff]  ;;  %v8796_v27 = vcombine.high %v910_v19, %v914_v22  ;;  %v8795_v35 = vcombine.low %v910_v19, %v914_v22  ;;  %v7536_v19 = vrot.slane %v9176_v6, 2 }
 0x3b2   :  { %v8798_v28 = vcombine.high %v911_v24, %v915_v31  ;;  %v8797_v36 = vcombine.low %v911_v24, %v915_v31  ;;  %v7538_v24 = vrot.slane %v9178_v10, 2  ;;  %v7537_v31 = vrot.slane %v9180_v11, 2 }
 0x3b3   :  { %7297 = vmatpush1.bf16.msra.mxu0 %v8739_v30  ;;  %7461 = vmatpush1.bf16.msra.mxu1 %v8741_v32  ;;  %v918_v30 = vld [vmem:[#allocation2 + $0x1bd0] sm:$0xff] }
 0x3b4   :  { %7298 = vmatprep.subr.bf16.mxu0 %v8748_v33  ;;  %7462 = vmatprep.subr.bf16.mxu1 %v8750_v34  ;;  %v922_v32 = vld [vmem:[#allocation2 + $0x1bf0] sm:$0xff]  ;;  %v919_v33 = vld [vmem:[#allocation2 + $0x1bd8] sm:$0xff] }
 0x3b5   :  { %v923_v34 = vld [vmem:[#allocation2 + $0x1bf8] sm:$0xff]  ;;  %v8804_v38 = vcombine.high %v918_v30, %v922_v32  ;;  %v8803_v45 = vcombine.low %v918_v30, %v922_v32 }
 0x3b6   :  { %v8806_v39 = vcombine.high %v919_v33, %v923_v34  ;;  %v8805_v23 = vcombine.low %v919_v33, %v923_v34  ;;  %v967_v30 = vld [vmem:[#allocation2 + $0x1d58] sm:$0xff] }
 0x3b7   :  { %7299 = vmatpush1.bf16.msra.mxu0 %v8747_v40  ;;  %7463 = vmatpush1.bf16.msra.mxu1 %v8749_v41  ;;  %v926_v40 = vld [vmem:[#allocation2 + $0x1c10] sm:$0xff]  ;;  %v971_v32 = vld [vmem:[#allocation2 + $0x1d78] sm:$0xff] }
 0x3b8   :  { %7300 = vmatprep.subr.bf16.mxu0 %v8756_v42  ;;  %7464 = vmatprep.subr.bf16.mxu1 %v8758_v43  ;;  %v930_v41 = vld [vmem:[#allocation2 + $0x1c30] sm:$0xff]  ;;  %v927_v42 = vld [vmem:[#allocation2 + $0x1c18] sm:$0xff] }
 0x3b9   :  { %v931_v43 = vld [vmem:[#allocation2 + $0x1c38] sm:$0xff]  ;;  %v8812_v3 = vcombine.high %v926_v40, %v930_v41  ;;  %v8811_v52 = vcombine.low %v926_v40, %v930_v41  ;;  %v9232_v40 = vadd.f32 %v7538_v24, %v9178_v10  ;;  %v9235_v41 = vadd.f32 %v7537_v31, %v9180_v11 }
 0x3ba   :  { %v8814_v46 = vcombine.high %v927_v42, %v931_v43  ;;  %v8813_v54 = vcombine.low %v927_v42, %v931_v43  ;;  %v8854_v42 = vcombine.high %v967_v30, %v971_v32  ;;  %v974_v43 = vld [vmem:[#allocation2 + $0x1d90] sm:$0xff] }
 0x3bb   :  { %7301 = vmatpush1.bf16.msra.mxu0 %v8755_v48  ;;  %7465 = vmatpush1.bf16.msra.mxu1 %v8757_v49  ;;  %v934_v48 = vld [vmem:[#allocation2 + $0x1c50] sm:$0xff]  ;;  %v7634_v11 = vrot.slane %v9232_v40, 1 }
 0x3bc   :  { %7302 = vmatprep.subr.bf16.mxu0 %v8764_v50  ;;  %7466 = vmatprep.subr.bf16.mxu1 %v8766_v51  ;;  %v938_v49 = vld [vmem:[#allocation2 + $0x1c70] sm:$0xff]  ;;  %v935_v50 = vld [vmem:[#allocation2 + $0x1c58] sm:$0xff] }
 0x3bd   :  { %v939_v51 = vld [vmem:[#allocation2 + $0x1c78] sm:$0xff]  ;;  %v8820_v55 = vcombine.high %v934_v48, %v938_v49  ;;  %v8819_v62 = vcombine.low %v934_v48, %v938_v49  ;;  %v8853_v49 = vcombine.low %v967_v30, %v971_v32 }
 0x3be   :  { %v8822_v47 = vcombine.high %v935_v50, %v939_v51  ;;  %v8821_v0 = vcombine.low %v935_v50, %v939_v51  ;;  %v7633_v51 = vrot.slane %v9235_v41, 1 }
 0x3bf   :  { %7303 = vmatpush1.bf16.msra.mxu0 %v8763_v56  ;;  %7467 = vmatpush1.bf16.msra.mxu1 %v8765_v57  ;;  %v942_v56 = vld [vmem:[#allocation2 + $0x1c90] sm:$0xff] }
 0x3c0   :  { %7304 = vmatprep.subr.bf16.mxu0 %v8772_v58  ;;  %7468 = vmatprep.subr.bf16.mxu1 %v8774_v60  ;;  %v946_v57 = vld [vmem:[#allocation2 + $0x1cb0] sm:$0xff]  ;;  %v943_v58 = vld [vmem:[#allocation2 + $0x1c98] sm:$0xff] }
 0x3c1   :  { %v947_v60 = vld [vmem:[#allocation2 + $0x1cb8] sm:$0xff]  ;;  %v8828_v1 = vcombine.high %v942_v56, %v946_v57  ;;  %v8827_v8 = vcombine.low %v942_v56, %v946_v57 }
 0x3c2   :  { %v8830_v29 = vcombine.high %v943_v58, %v947_v60 }
 0x3c3   :  { %7305 = vmatpush1.bf16.msra.mxu0 %v8771_v2  ;;  %7469 = vmatpush1.bf16.msra.mxu1 %v8773_v4  ;;  %v950_v2 = vld [vmem:[#allocation2 + $0x1cd0] sm:$0xff] }
 0x3c4   :  { %7306 = vmatprep.subr.bf16.mxu0 %v8780_v5  ;;  %7470 = vmatprep.subr.bf16.mxu1 %v8782_v53  ;;  %v954_v4 = vld [vmem:[#allocation2 + $0x1cf0] sm:$0xff]  ;;  %v951_v5 = vld [vmem:[#allocation2 + $0x1cd8] sm:$0xff] }
 0x3c5   :  { %v955_v53 = vld [vmem:[#allocation2 + $0x1cf8] sm:$0xff]  ;;  %v8836_v63 = vcombine.high %v950_v2, %v954_v4 }
 0x3c6   :  { %v8838_v9 = vcombine.high %v951_v5, %v955_v53  ;;  %v8837_v22 = vcombine.low %v951_v5, %v955_v53 }
 0x3c7   :  { %7307 = vmatpush1.bf16.msra.mxu0 %v8779_v13  ;;  %7471 = vmatpush1.bf16.msra.mxu1 %v8781_v15  ;;  %v962_v13 = vld [vmem:[#allocation2 + $0x1d30] sm:$0xff]  ;;  %v959_v15 = vld [vmem:[#allocation2 + $0x1d18] sm:$0xff] }
 0x3c8   :  { %7308 = vmatprep.subr.bf16.mxu0 %v8788_v17  ;;  %7472 = vmatprep.subr.bf16.mxu1 %v8790_v18  ;;  %v963_v17 = vld [vmem:[#allocation2 + $0x1d38] sm:$0xff]  ;;  %v8835_v18 = vcombine.low %v950_v2, %v954_v4  ;;  %v8843_v33 = vcombine.low %v958_v12, %v962_v13 }
 0x3c9   :  { %v8845_v34 = vcombine.low %v959_v15, %v963_v17 }
 0x3cb   :  { %7309 = vmatpush1.bf16.msra.mxu0 %v8787_v26  ;;  %7473 = vmatpush1.bf16.msra.mxu1 %v8789_v59  ;;  %v8846_v26 = vcombine.high %v959_v15, %v963_v17  ;;  %v966_v59 = vld [vmem:[#allocation2 + $0x1d50] sm:$0xff] }
 0x3cc   :  { %7310 = vmatprep.subr.bf16.mxu0 %v8796_v27  ;;  %7474 = vmatprep.subr.bf16.mxu1 %v8798_v28  ;;  %v970_v27 = vld [vmem:[#allocation2 + $0x1d70] sm:$0xff]  ;;  %v7539_v28 = vrot.slane %v9182_v14, 2 }
 0x3cd   :  { %v8851_v48 = vcombine.low %v966_v59, %v970_v27 }
 0x3cf   :  { %7311 = vmatpush1.bf16.msra.mxu0 %v8795_v35  ;;  %7475 = vmatpush1.bf16.msra.mxu1 %v8797_v36  ;;  %v9069_v35 = vmov 1966171168  }
 0x3d0   :  { %7312 = vmatprep.subr.bf16.mxu0 %v8804_v38  ;;  %7476 = vmatprep.subr.bf16.mxu1 %v8806_v39  ;;  %v7673_v36 = vunpack.c.l.s4 %v9069_v35  ;;  %v8852_v38 = vcombine.high %v966_v59, %v970_v27  ;;  %v9229_v39 = vadd.f32 %v7536_v19, %v9176_v6  ;;  %v995_v27 = vld [vmem:[#allocation2 + $0x1e38] sm:$0xff] }
 0x3d2   :  { %v7674_v6 = vunpack.c.0.s8 %v7673_v36  ;;  %v7632_v50 = vrot.slane %v9229_v39, 1 }
 0x3d3   :  { %7313 = vmatpush1.bf16.msra.mxu0 %v8803_v45  ;;  %7477 = vmatpush1.bf16.msra.mxu1 %v8805_v23  ;;  %v978_v45 = vld [vmem:[#allocation2 + $0x1db0] sm:$0xff]  ;;  %v9238_v23 = vadd.f32 %v7539_v28, %v9182_v14 }
 0x3d4   :  { %7323 = vmatprep.subr.bf16.mxu0 %v8812_v3  ;;  %7487 = vmatprep.subr.bf16.mxu1 %v8814_v46  ;;  %v975_v3 = vld [vmem:[#allocation2 + $0x1d98] sm:$0xff]  ;;  %v8860_v10 = vcombine.high %v974_v43, %v978_v45  ;;  %v982_v14 = vld [vmem:[#allocation2 + $0x1dd0] sm:$0xff]  ;;  %v8859_v4 = vcombine.low %v974_v43, %v978_v45 }
 0x3d5   :  { %v979_v46 = vld [vmem:[#allocation2 + $0x1db8] sm:$0xff] }
 0x3d6   :  { %7315 = vmatmul.mubr.bf16.vlgmr.msra.gmra.mrb[12].mxu0 %v9137_v37  ;;  %7479 = vmatmul.mubr.bf16.vlgmr.msra.gmra.mrb[12].mxu1 %v9137_v37  ;;  %v8829_v37 = vcombine.low %v943_v58, %v947_v60  ;;  %v983_v60 = vld [vmem:[#allocation2 + $0x1dd8] sm:$0xff]  ;;  %v8861_v5 = vcombine.low %v975_v3, %v979_v46 }
 0x3d7   :  { %7324 = vmatpush1.bf16.msra.mxu0 %v8811_v52  ;;  %7488 = vmatpush1.bf16.msra.mxu1 %v8813_v54  ;;  %v8862_v54 = vcombine.high %v975_v3, %v979_v46  ;;  %v998_v46 = vld [vmem:[#allocation2 + $0x1e50] sm:$0xff] }
 0x3d8   :  { %7325 = vmatprep.subr.bf16.mxu0 %v8820_v55  ;;  %7489 = vmatprep.subr.bf16.mxu1 %v8822_v47  ;;  %v986_v55 = vld [vmem:[#allocation2 + $0x1df0] sm:$0xff]  ;;  %v7635_v47 = vrot.slane %v9238_v23, 1 }
 0x3d9   :  { %7355 = vmatprep.mubr.bf16.mxu0 %v9154_v7  ;;  %7519 = vmatprep.mubr.bf16.mxu1 %v9154_v7  ;;  %v8844_v7 = vcombine.high %v958_v12, %v962_v13  ;;  %v8868_v12 = vcombine.high %v982_v14, %v986_v55 }
 0x3db   :  { %7326 = vmatpush1.bf16.msra.mxu0 %v8819_v62  ;;  %7490 = vmatpush1.bf16.msra.mxu1 %v8821_v0  ;;  %v987_v62 = vld [vmem:[#allocation2 + $0x1df8] sm:$0xff] }
 0x3dc   :  { %7327 = vmatprep.subr.bf16.mxu0 %v8828_v1  ;;  %7491 = vmatprep.subr.bf16.mxu1 %v8830_v29  ;;  %v8870_v19 = vcombine.high %v983_v60, %v987_v62  ;;  %v8869_v59 = vcombine.low %v983_v60, %v987_v62  ;;  %v1011_v60 = vld [vmem:[#allocation2 + $0x1eb8] sm:$0xff] }
 0x3df   :  { %7328 = vmatpush1.bf16.msra.mxu0 %v8827_v8  ;;  %7492 = vmatpush1.bf16.msra.mxu1 %v8829_v37  ;;  %v9245_v8 = vsub.s32 %v7674_v6, %v9097_v44  ;;  %v991_v44 = vld [vmem:[#allocation2 + $0x1e18] sm:$0xff] }
 0x3e0   :  { %7329 = vmatprep.subr.bf16.mxu0 %v8836_v63  ;;  %7493 = vmatprep.subr.bf16.mxu1 %v8838_v9  ;;  %v8878_v3 = vcombine.high %v991_v44, %v995_v27 }
 0x3e3   :  { %7330 = vmatpush1.bf16.msra.mxu0 %v8835_v18  ;;  %7494 = vmatpush1.bf16.msra.mxu1 %v8837_v22  ;;  %v8867_v18 = vcombine.low %v982_v14, %v986_v55  ;;  %v990_v22 = vld [vmem:[#allocation2 + $0x1e10] sm:$0xff] }
 0x3e4   :  { %7331 = vmatprep.subr.bf16.mxu0 %v8844_v7  ;;  %7495 = vmatprep.subr.bf16.mxu1 %v8846_v26  ;;  %v994_v7 = vld [vmem:[#allocation2 + $0x1e30] sm:$0xff] }
 0x3e5   :  { %v1006_v55 = vld [vmem:[#allocation2 + $0x1e90] sm:$0xff] }
 0x3e7   :  { %7332 = vmatpush1.bf16.msra.mxu0 %v8843_v33  ;;  %7496 = vmatpush1.bf16.msra.mxu1 %v8845_v34 }
 0x3e8   :  { %7333 = vmatprep.subr.bf16.mxu0 %v8852_v38  ;;  %7497 = vmatprep.subr.bf16.mxu1 %v8854_v42  ;;  %v8876_v38 = vcombine.high %v990_v22, %v994_v7 }
 0x3e9   :  { %v7029_v52 = vpop.f32.mrb[8].mxu0  ;;  %v7193_v57 = vpop.f32.mrb[8].mxu1 }
 0x3ea   :  { %v7568_v56 = vrot.slane %v7029_v52, 2  ;;  %v7031_v58 = vpop.f32.mrb[9].mxu0  ;;  %v7570_v0 = vrot.slane %v7193_v57, 2  ;;  %v7195_v29 = vpop.f32.mrb[9].mxu1 }
 0x3eb   :  { %v7569_v1 = vrot.slane %v7031_v58, 2  ;;  %v7033_v2 = vpop.f32.mrb[10].mxu0  ;;  %7334 = vmatpush1.bf16.msra.mxu0 %v8851_v48  ;;  %v7571_v37 = vrot.slane %v7195_v29, 2  ;;  %v7197_v63 = vpop.f32.mrb[10].mxu1  ;;  %7498 = vmatpush1.bf16.msra.mxu1 %v8853_v49  ;;  %v1002_v48 = vld [vmem:[#allocation2 + $0x1e70] sm:$0xff] }
 0x3ec   :  { %v7584_v53 = vadd.f32 %v7568_v56, %v7029_v52  ;;  %v7034_v9 = vpop.f32.mrb[11].mxu0  ;;  %7335 = vmatprep.subr.bf16.mxu0 %v8860_v10  ;;  %v7586_v13 = vadd.f32 %v7570_v0, %v7193_v57  ;;  %v7198_v17 = vpop.f32.mrb[11].mxu1  ;;  %7499 = vmatprep.subr.bf16.mxu1 %v8862_v54  ;;  %v999_v10 = vld [vmem:[#allocation2 + $0x1e58] sm:$0xff]  ;;  %v8877_v52 = vcombine.low %v991_v44, %v995_v27 }
 0x3ed   :  { %v7585_v15 = vadd.f32 %v7569_v1, %v7031_v58  ;;  %v7587_v26 = vadd.f32 %v7571_v37, %v7195_v29  ;;  %v8884_v54 = vcombine.high %v998_v46, %v1002_v48  ;;  %v1007_v58 = vld [vmem:[#allocation2 + $0x1e98] sm:$0xff]  ;;  %v8883_v62 = vcombine.low %v998_v46, %v1002_v48  ;;  %v1026_v17 = vld [vmem:[#allocation2 + $0x1f30] sm:$0xff] }
 0x3ee   :  { %v7600_v24 = vrot.slane %v7584_v53, 1  ;;  %v7648_v31 = vadd.f32 %v7632_v50, %v7584_v53  ;;  %v7602_v28 = vrot.slane %v7586_v13, 1  ;;  %v7650_v30 = vadd.f32 %v7634_v11, %v7586_v13  ;;  %v1003_v50 = vld [vmem:[#allocation2 + $0x1e78] sm:$0xff]  ;;  %v1046_v46 = vld [vmem:[#allocation2 + $0x1fd0] sm:$0xff] }
 0x3ef   :  { %v7601_v32 = vrot.slane %v7585_v15, 1  ;;  %v7649_v33 = vadd.f32 %v7633_v51, %v7585_v15  ;;  %7336 = vmatpush1.bf16.msra.mxu0 %v8859_v4  ;;  %v7603_v35 = vrot.slane %v7587_v26, 1  ;;  %v7651_v36 = vadd.f32 %v7635_v47, %v7587_v26  ;;  %7500 = vmatpush1.bf16.msra.mxu1 %v8861_v5  ;;  %v1010_v47 = vld [vmem:[#allocation2 + $0x1eb0] sm:$0xff]  ;;  %v1015_v53 = vld [vmem:[#allocation2 + $0x1ed8] sm:$0xff] }
 0x3f0   :  { %v7616_v34 = vsub.f32 %v9229_v39, %v7600_v24  ;;  %7337 = vmatprep.subr.bf16.mxu0 %v8868_v12  ;;  %v7618_v42 = vsub.f32 %v9232_v40, %v7602_v28  ;;  %7501 = vmatprep.subr.bf16.mxu1 %v8870_v19  ;;  %v8875_v51 = vcombine.low %v990_v22, %v994_v7  ;;  %v1014_v4 = vld [vmem:[#allocation2 + $0x1ed0] sm:$0xff]  ;;  %v1019_v37 = vld [vmem:[#allocation2 + $0x1ef8] sm:$0xff] }
 0x3f1   :  { %v7617_v43 = vsub.f32 %v9235_v41, %v7601_v32  ;;  %v7727_v45 = vcombine.low %v7648_v31, %v7649_v33  ;;  %v7619_v6 = vsub.f32 %v9238_v23, %v7603_v35  ;;  %v7728_v49 = vcombine.low %v7650_v30, %v7651_v36  ;;  %v1018_v5 = vld [vmem:[#allocation2 + $0x1ef0] sm:$0xff]  ;;  %v1027_v19 = vld [vmem:[#allocation2 + $0x1f38] sm:$0xff] }
 0x3f2   :  { %v8886_v23 = vcombine.high %v999_v10, %v1003_v50  ;;  %v8885_v1 = vcombine.low %v999_v10, %v1003_v50  ;;  %v8892_v29 = vcombine.high %v1006_v55, %v1010_v47  ;;  %v8894_v2 = vcombine.high %v1007_v58, %v1011_v60  ;;  %v1022_v15 = vld [vmem:[#allocation2 + $0x1f10] sm:$0xff]  ;;  %v1031_v44 = vld [vmem:[#allocation2 + $0x1f58] sm:$0xff] }
 0x3f3   :  { %v7668_v39 = vcombine.low %v7616_v34, %v7617_v43  ;;  %v9252_v11 = vrot.slane %v7727_v45, %v9245_v8  ;;  %7338 = vmatpush1.bf16.msra.mxu0 %v8867_v18  ;;  %v7669_v40 = vcombine.low %v7618_v42, %v7619_v6  ;;  %v9255_v41 = vrot.slane %v7728_v49, %v9245_v8  ;;  %v1023_v18 = vld [vmem:[#allocation2 + $0x1f18] sm:$0xff]  ;;  %v1030_v26 = vld [vmem:[#allocation2 + $0x1f50] sm:$0xff] }
 0x3f4   :  { %7502 = vmatpush1.bf16.msra.mxu1 %v8869_v59  ;;  %7339 = vmatprep.subr.bf16.mxu0 %v8876_v38  ;;  %v8891_v63 = vcombine.low %v1006_v55, %v1010_v47  ;;  %v8893_v9 = vcombine.low %v1007_v58, %v1011_v60  ;;  %v8900_v12 = vcombine.high %v1014_v4, %v1018_v5  ;;  %v1034_v59 = vld [vmem:[#allocation2 + $0x1f70] sm:$0xff]  ;;  %v1035_v27 = vld [vmem:[#allocation2 + $0x1f78] sm:$0xff]  ;;  %v7541_v55 = vrot.slane %v9204_v21, 2 }
 0x3f5   :  { %v9258_v14 = vrot.slane %v7668_v39, %v9245_v8  ;;  %7503 = vmatprep.subr.bf16.mxu1 %v8878_v3  ;;  %v9261_v56 = vrot.slane %v7669_v40, %v9245_v8  ;;  %v7759_v57 = vcombine.low %v9252_v11, %v9255_v41  ;;  %v8902_v13 = vcombine.high %v1015_v53, %v1019_v37  ;;  %v1038_v34 = vld [vmem:[#allocation2 + $0x1f90] sm:$0xff]  ;;  %v1039_v36 = vld [vmem:[#allocation2 + $0x1f98] sm:$0xff] }
 0x3f6   :  { %v8899_v22 = vcombine.low %v1014_v4, %v1018_v5  ;;  %v8901_v7 = vcombine.low %v1015_v53, %v1019_v37  ;;  %v8908_v24 = vcombine.high %v1022_v15, %v1026_v17  ;;  %v8910_v31 = vcombine.high %v1023_v18, %v1027_v19  ;;  %v1042_v35 = vld [vmem:[#allocation2 + $0x1fb0] sm:$0xff]  ;;  %v1043_v38 = vld [vmem:[#allocation2 + $0x1fb8] sm:$0xff] }
 0x3f7   :  { %7340 = vmatpush1.bf16.msra.mxu0 %v8875_v51  ;;  %v7700_v0 = vcombine.low %v9258_v14, %v9261_v56  ;;  %v8907_v28 = vcombine.low %v1022_v15, %v1026_v17  ;;  %v8909_v30 = vcombine.low %v1023_v18, %v1027_v19  ;;  %v8916_v32 = vcombine.high %v1030_v26, %v1034_v59  ;;  %v1050_v48 = vld [vmem:[#allocation2 + $0x1ff0] sm:$0xff]  ;;  %v1047_v6 = vld [vmem:[#allocation2 + $0x1fd8] sm:$0xff] }
 0x3f8   :  { %7504 = vmatpush1.bf16.msra.mxu1 %v8877_v52  ;;  %7341 = vmatprep.subr.bf16.mxu0 %v8884_v54  ;;  %v8918_v33 = vcombine.high %v1031_v44, %v1035_v27  ;;  %v8915_v42 = vcombine.low %v1030_v26, %v1034_v59  ;;  %v8917_v43 = vcombine.low %v1031_v44, %v1035_v27  ;;  %v1051_v49 = vld [vmem:[#allocation2 + $0x1ff8] sm:$0xff]  ;;  %v7540_v54 = vrot.slane %v9200_v16, 2 }
 0x3f9   :  { %7505 = vmatprep.subr.bf16.mxu1 %v8886_v23  ;;  %v8924_v45 = vcombine.high %v1038_v34, %v1042_v35  ;;  %v8926_v3 = vcombine.high %v1039_v36, %v1043_v38  ;;  %v8923_v10 = vcombine.low %v1038_v34, %v1042_v35  ;;  %v8925_v50 = vcombine.low %v1039_v36, %v1043_v38 }
 0x3fa   :  { %v8932_v39 = vcombine.high %v1046_v46, %v1050_v48  ;;  %v8934_v51 = vcombine.high %v1047_v6, %v1051_v49  ;;  %v8931_v52 = vcombine.low %v1046_v46, %v1050_v48  ;;  %v8933_v40 = vcombine.low %v1047_v6, %v1051_v49 }
 0x3fb   :  { %7342 = vmatpush1.bf16.msra.mxu0 %v8883_v62  ;;  %v7542_v23 = vrot.slane %v9202_v20, 2  ;;  %v7543_v47 = vrot.slane %v9206_v25, 2  ;;  %v7556_v58 = vadd.f32 %v7540_v54, %v9200_v16  ;;  %v7557_v62 = vadd.f32 %v7541_v55, %v9204_v21 }
 0x3fc   :  { %7506 = vmatpush1.bf16.msra.mxu1 %v8885_v1  ;;  %7343 = vmatprep.subr.bf16.mxu0 %v8892_v29  ;;  %v7767_v6 = vrot.slane %v7759_v57, %v9245_v8 }
 0x3fd   :  { %7507 = vmatprep.subr.bf16.mxu1 %v8894_v2  ;;  %v7558_v60 = vadd.f32 %v7542_v23, %v9202_v20  ;;  %v7559_v29 = vadd.f32 %v7543_v47, %v9206_v25  ;;  %v7637_v18 = vrot.slane %v7557_v62, 1 }
 0x3ff   :  { %7344 = vmatpush1.bf16.msra.mxu0 %v8891_v63  ;;  %v7638_v16 = vrot.slane %v7558_v60, 1 }
 0x400   :  { %7508 = vmatpush1.bf16.msra.mxu1 %v8893_v9  ;;  %7345 = vmatprep.subr.bf16.mxu0 %v8900_v12  ;;  %v7636_v9 = vrot.slane %v7556_v58, 1 }
 0x401   :  { %7509 = vmatprep.subr.bf16.mxu1 %v8902_v13 }
 0x403   :  { %7346 = vmatpush1.bf16.msra.mxu0 %v8899_v22  ;;  %v7639_v22 = vrot.slane %v7559_v29, 1 }
 0x404   :  { %7510 = vmatpush1.bf16.msra.mxu1 %v8901_v7  ;;  %7347 = vmatprep.subr.bf16.mxu0 %v8908_v24 }
 0x405   :  { %7511 = vmatprep.subr.bf16.mxu1 %v8910_v31 }
 0x407   :  { %7348 = vmatpush1.bf16.msra.mxu0 %v8907_v28 }
 0x408   :  { %7512 = vmatpush1.bf16.msra.mxu1 %v8909_v30  ;;  %7349 = vmatprep.subr.bf16.mxu0 %v8916_v32 }
 0x409   :  { %7513 = vmatprep.subr.bf16.mxu1 %v8918_v33 }
 0x40b   :  { %7350 = vmatpush1.bf16.msra.mxu0 %v8915_v42 }
 0x40c   :  { %7514 = vmatpush1.bf16.msra.mxu1 %v8917_v43  ;;  %7351 = vmatprep.subr.bf16.mxu0 %v8924_v45 }
 0x40d   :  { %7515 = vmatprep.subr.bf16.mxu1 %v8926_v3 }
 0x40f   :  { %7352 = vmatpush1.bf16.msra.mxu0 %v8923_v10 }
 0x410   :  { %7516 = vmatpush1.bf16.msra.mxu1 %v8925_v50  ;;  %7353 = vmatprep.subr.bf16.mxu0 %v8932_v39  ;;  %v7708_v50 = vrot.slane %v7700_v0, %v9245_v8 }
 0x411   :  { %7517 = vmatprep.subr.bf16.mxu1 %v8934_v51 }
 0x413   :  { %7354 = vmatpush1.bf16.msra.mxu0 %v8931_v52 }
 0x414   :  { %7518 = vmatpush1.bf16.msra.mxu1 %v8933_v40 }
 0x416   :  { %7356 = vmatmul.mubr.bf16.vlgmr.msra.gmra.mrb[12].mxu0 %v9150_v61 }
 0x417   :  { %7520 = vmatmul.mubr.bf16.vlgmr.msra.gmra.mrb[12].mxu1 %v9150_v61 }
 0x4e9   :  { %v7357_v1 = vpop.f32.mrb[12].mxu0 }
 0x4ea   :  { %v7572_v2 = vrot.slane %v7357_v1, 2  ;;  %v7521_v4 = vpop.f32.mrb[12].mxu1  ;;  %v7359_v61 = vpop.f32.mrb[13].mxu0 }
 0x4eb   :  { %v7574_v5 = vrot.slane %v7521_v4, 2  ;;  %v7573_v53 = vrot.slane %v7359_v61, 2  ;;  %v7523_v37 = vpop.f32.mrb[13].mxu1  ;;  %v7361_v63 = vpop.f32.mrb[14].mxu0 }
 0x4ec   :  { %v7588_v12 = vadd.f32 %v7572_v2, %v7357_v1  ;;  %v7575_v13 = vrot.slane %v7523_v37, 2  ;;  %v7525_v15 = vpop.f32.mrb[14].mxu1  ;;  %v7362_v17 = vpop.f32.mrb[15].mxu0 }
 0x4ed   :  { %v7590_v20 = vadd.f32 %v7574_v5, %v7521_v4  ;;  %v7589_v19 = vadd.f32 %v7573_v53, %v7359_v61  ;;  %v7526_v21 = vpop.f32.mrb[15].mxu1 }
 0x4ee   :  { %v7604_v7 = vrot.slane %v7588_v12, 1  ;;  %v7652_v25 = vadd.f32 %v7636_v9, %v7588_v12  ;;  %v7591_v24 = vadd.f32 %v7575_v13, %v7523_v37 }
 0x4ef   :  { %v7606_v31 = vrot.slane %v7590_v20, 1  ;;  %v7654_v26 = vadd.f32 %v7638_v16, %v7590_v20  ;;  %v7605_v59 = vrot.slane %v7589_v19, 1  ;;  %v7653_v44 = vadd.f32 %v7637_v18, %v7589_v19 }
 0x4f0   :  { %v7620_v27 = vsub.f32 %v7556_v58, %v7604_v7  ;;  %v7607_v28 = vrot.slane %v7591_v24, 1  ;;  %v7655_v30 = vadd.f32 %v7639_v22, %v7591_v24 }
 0x4f1   :  { %v7622_v32 = vsub.f32 %v7558_v60, %v7606_v31  ;;  %v7621_v33 = vsub.f32 %v7557_v62, %v7605_v59  ;;  %v7729_v34 = vcombine.low %v7652_v25, %v7653_v44 }
 0x4f2   :  { %v7623_v35 = vsub.f32 %v7559_v29, %v7607_v28  ;;  %v7730_v36 = vcombine.low %v7654_v26, %v7655_v30 }
 0x4f3   :  { %v7670_v38 = vcombine.low %v7620_v27, %v7621_v33  ;;  %v7751_v42 = vrot.slane %v7729_v34, %v9245_v8 }
 0x4f4   :  { %v7671_v43 = vcombine.low %v7622_v32, %v7623_v35  ;;  %v7758_v45 = vrot.slane %v7730_v36, %v9245_v8 }
 0x4f5   :  { %v7692_v3 = vrot.slane %v7670_v38, %v9245_v8 }
 0x4f6   :  { %v7699_v46 = vrot.slane %v7671_v43, %v9245_v8  ;;  %v7760_v48 = vcombine.low %v7751_v42, %v7758_v45 }
 0x4f8   :  { %v7701_v49 = vcombine.low %v7692_v3, %v7699_v46  ;;  %v7774_v10 = vrot.slane %v7760_v48, %v9245_v8 }
 0x4fa   :  { %v7715_v39 = vrot.slane %v7701_v49, %v9245_v8  ;;  %v7775_v51 = vcombine.low %v7767_v6, %v7774_v10 }
 0x4fc   :  { %v7716_v52 = vcombine.low %v7708_v50, %v7715_v39  ;;  %8935 = vst [vmem:[%s9299_s2 + $0x1] ss:$2 sm:$0xff] %v7775_v51 }
 0x4fe   :  { %7718 = vst [vmem:[%s9299_s2] ss:$2 sm:$0xff] %v7716_v52 }
 0x4ff   :  { %7910 = vsyncpa [#allocation3], 1 }

// kernel: custom-call
= control target key start
LH: loop header
LB: loop body
LE: loop exit
PB: predicated region body
PF: predicated region fallthrough
CT: control target
= control target key end

     0   :  { %s126_s0 = inlined_call_operand.vmem [shape: f32[1,1024], index: 0, kind: input, shape index: {}]   ;;  %s127_s1 = inlined_call_operand.vmem [shape: f32[1,1024], index: 1, kind: input, shape index: {}]   ;;  %s128_s2 = inlined_call_operand.hbm [shape: c64[1,1024], index: 2, kind: output, shape index: {}]  }
   0x1   :  { %s87_s11 = scalar_lea.hbm %s128_s2, 128 }
   0x2   :  { %4 = vsyncpa [#allocation0], 0  ;;  %s5_s14 = sshll.u32 %s126_s0, 4  ;;  %s6_s14 = int_to_ptr.vmem [resolvable:$true] %s5_s14 }
   0x3   :  { %s18_s15 = scalar_lea.vmem %s6_s14, 128  ;;  %p23_p1 = scmp.lt.s32.totalorder %s6_s14, %s6_s14 }
   0x4   :  { %p19_p0 = scmp.ne.s32.totalorder %s6_s14, %s18_s15  ;;  %p24_p2 = scmp.lt.s32.totalorder %s18_s15, %s18_s15 }
   0x6   :  { %p25_p3 = por %p24_p2, %p23_p1 }
   0x8   :  { %p26_p4 = pnand %p25_p3, %p19_p0 }
   0xa   :  { %29 = shalt.err (!%p26_p4)  }
   0xb   :  { %p31_p5 = scmp.ne.s32.totalorder %s128_s2, %s87_s11  ;;  %s32_s0 = scalar_lea.hbm %s128_s2, 256 }
   0xc   :  { %p33_p6 = scmp.lt.u32.totalorder %s32_s0, %s87_s11  ;;  %p34_p7 = scmp.lt.u32.totalorder %s87_s11, %s128_s2 }
   0xe   :  { %p35_p8 = por %p34_p7, %p33_p6 }
  0x10   :  { %p36_p9 = pnand %p35_p8, %p31_p5 }
  0x12   :  { %39 = shalt.err (!%p36_p9)  }
  0x13   :  { %8 = dma.vmem_to_hbm [thread:$0]  %s6_s14, 128, %s128_s2, [#allocation0] }
  0x14   :  { %65 = dma.done.wait [#allocation0], 128  }
  0x15   :  { %66 = vsyncadd [#allocation0], 4294967168 }
  0x16   :  { %10 = vsyncpa [#allocation0], 1 }
  0x17   :  { %11 = vsyncpa [#allocation1], 0  ;;  %s12_s28 = sshll.u32 %s127_s1, 4  ;;  %s13_s28 = int_to_ptr.vmem [resolvable:$true] %s12_s28 }
  0x18   :  { %s40_s29 = scalar_lea.vmem %s13_s28, 128  ;;  %p45_p11 = scmp.lt.s32.totalorder %s13_s28, %s13_s28 }
  0x19   :  { %p41_p10 = scmp.ne.s32.totalorder %s13_s28, %s40_s29  ;;  %p46_p12 = scmp.lt.s32.totalorder %s40_s29, %s40_s29 }
  0x1b   :  { %p47_p13 = por %p46_p12, %p45_p11 }
  0x1d   :  { %p48_p0 = pnand %p47_p13, %p41_p10 }
  0x1f   :  { %51 = shalt.err (!%p48_p0)  }
  0x20   :  { %p53_p1 = scmp.ne.s32.totalorder %s87_s11, %s32_s0  ;;  %p56_p2 = scmp.lt.u32.totalorder %s32_s0, %s32_s0 }
  0x22   :  { %p57_p3 = por %p56_p2, %p34_p7 }
  0x24   :  { %p59_p4 = por %p57_p3, %p33_p6 }
  0x26   :  { %p60_p5 = pnand %p59_p4, %p53_p1 }
  0x28   :  { %63 = shalt.err (!%p60_p5)  }
  0x29   :  { %15 = dma.vmem_to_hbm [thread:$0]  %s13_s28, 128, %s87_s11, [#allocation1] }
  0x2a   :  { %67 = dma.done.wait [#allocation1], 128  }
  0x2b   :  { %68 = vsyncadd [#allocation1], 4294967168 }
  0x2c   :  { %17 = vsyncpa [#allocation1], 1 }

// kernel: fn.1
= control target key start
LH: loop header
LB: loop body
LE: loop exit
PB: predicated region body
PF: predicated region fallthrough
CT: control target
= control target key end

     0   :  { %7 = vsyncpa [#allocation3], 0  ;;  %s9065_s9 = smov [#allocation2]   ;;  %s9297_s0 = inlined_call_operand.vmem [shape: bf16[4,1024], index: 0, kind: input, shape index: {}]   ;;  %s9298_s1 = inlined_call_operand.hbm [shape: bf16[2,1024,1024], index: 1, kind: input, shape index: {}]   ;;  %s9299_s2 = inlined_call_operand.vmem [shape: f32[2,1024], index: 2, kind: output, shape index: {}]  }
   0x1   :  { %s15_s10 = sshll.u32 %s9065_s9, 4  ;;  %s9041_s13 = scalar_lea.hbm %s9298_s1, 131072  ;;  %s16_s10 = int_to_ptr.vmem [resolvable:$true] %s15_s10 }
   0x2   :  { %p9042_p0 = scmp.ne.s32.totalorder %s9298_s1, %s9041_s13  ;;  %p9045_p1 = scmp.lt.u32.totalorder %s9041_s13, %s9298_s1 }
   0x4   :  { %p9047_p2 = pnand %p9045_p1, %p9042_p0 }
   0x6   :  { %9050 = shalt.err (!%p9047_p2)
}
   0x7   :  { %s9051_s18 = scalar_lea.vmem %s16_s10, 131072  ;;  %p9056_p4 = scmp.lt.s32.totalorder %s16_s10, %s16_s10 }
   0x8   :  { %p9052_p3 = scmp.ne.s32.totalorder %s16_s10, %s9051_s18  ;;  %p9057_p5 = scmp.lt.s32.totalorder %s9051_s18, %s9051_s18 }
   0xa   :  { %p9058_p6 = por %p9057_p5, %p9056_p4 }
   0xc   :  { %p9059_p7 = pnand %p9058_p6, %p9052_p3 }
   0xe   :  { %9062 = shalt.err (!%p9059_p7)
}
   0xf   :  { %s9066_s19 = smov 512   ;;  %s9067_s20 = smov 32  }
  0x10   :  { %21 = dma.hbm_to_vmem [thread:$0]  %s9298_s1, 131072, %s16_s10, [#allocation3], %s9066_s19, %s9066_s19, %s9067_s20  }
  0x11   :  { %9063 = dma.done.wait [#allocation3], 131072  }
  0x12   :  { %9064 = vsyncadd [#allocation3], 4294836224  ;;  %v27_v0 = vld [vmem:[#allocation2] sm:$0xff]  ;;  %v28_v2 = vld [vmem:[#allocation2 + $0x8] sm:$0xff]  ;;  %v9068_v32 = vmov 1983009808   ;;  %v1058_v34 = vlaneseq }
  0x13   :  { %v31_v1 = vld [vmem:[#allocation2 + $0x20] sm:$0xff]  ;;  %v32_v4 = vld [vmem:[#allocation2 + $0x28] sm:$0xff]  ;;  %v1056_v33 = vunpack.c.l.s4 %v9068_v32  ;;  %v9105_v59 = vld [vmem:[%s9297_s0] sm:$0xff] }
  0x14   :  { %v7912_v3 = vcombine.high %v27_v0, %v31_v1  ;;  %v7911_v5 = vcombine.low %v27_v0, %v31_v1  ;;  %v35_v6 = vld [vmem:[#allocation2 + $0x40] sm:$0xff]  ;;  %v7914_v8 = vcombine.high %v28_v2, %v32_v4  ;;  %v7913_v9 = vcombine.low %v28_v2, %v32_v4  ;;  %v36_v11 = vld [vmem:[#allocation2 + $0x48] sm:$0xff] }
  0x15   :  { %v39_v7 = vld [vmem:[#allocation2 + $0x60] sm:$0xff]  ;;  %v40_v12 = vld [vmem:[#allocation2 + $0x68] sm:$0xff]  ;;  %v1057_v43 = vunpack.c.0.s8 %v1056_v33  ;;  %v9097_v44 = vshrl.u32 %v1058_v34, 7 }
  0x16   :  { %v7920_v10 = vcombine.high %v35_v6, %v39_v7  ;;  %v43_v13 = vld [vmem:[#allocation2 + $0x80] sm:$0xff]  ;;  %3656 = vmatprep.subr.bf16.mxu0 %v7912_v3  ;;  %v7922_v14 = vcombine.high %v36_v11, %v40_v12  ;;  %v44_v16 = vld [vmem:[#allocation2 + $0x88] sm:$0xff]  ;;  %3820 = vmatprep.subr.bf16.mxu1 %v7914_v8  ;;  %v7919_v18 = vcombine.low %v35_v6, %v39_v7 }
  0x17   :  { %v47_v15 = vld [vmem:[#allocation2 + $0xa0] sm:$0xff]  ;;  %v48_v17 = vld [vmem:[#allocation2 + $0xa8] sm:$0xff]  ;;  %3657 = vmatpush1.bf16.msra.mxu0 %v7911_v5  ;;  %3821 = vmatpush1.bf16.msra.mxu1 %v7913_v9  ;;  %v7921_v19 = vcombine.low %v36_v11, %v40_v12  ;;  %v9100_v53 = vsub.s32 %v1057_v43, %v9097_v44 }
  0x18   :  { %3658 = vmatprep.subr.bf16.mxu0 %v7920_v10  ;;  %v7928_v20 = vcombine.high %v43_v13, %v47_v15  ;;  %3822 = vmatprep.subr.bf16.mxu1 %v7922_v14  ;;  %v7930_v21 = vcombine.high %v44_v16, %v48_v17  ;;  %v51_v22 = vld [vmem:[#allocation2 + $0xc0] sm:$0xff]  ;;  %v52_v24 = vld [vmem:[#allocation2 + $0xc8] sm:$0xff]  ;;  %v7927_v26 = vcombine.low %v43_v13, %v47_v15 }
  0x19   :  { %v55_v23 = vld [vmem:[#allocation2 + $0xe0] sm:$0xff]  ;;  %v56_v25 = vld [vmem:[#allocation2 + $0xe8] sm:$0xff]  ;;  %v7929_v27 = vcombine.low %v44_v16, %v48_v17  ;;  %v9109_v63 = vrot.slane %v9105_v59, %v9100_v53 }
  0x1a   :  { %v7936_v28 = vcombine.high %v51_v22, %v55_v23  ;;  %v7938_v29 = vcombine.high %v52_v24, %v56_v25  ;;  %v59_v30 = vld [vmem:[#allocation2 + $0x100] sm:$0xff]  ;;  %v60_v35 = vld [vmem:[#allocation2 + $0x108] sm:$0xff]  ;;  %v7935_v37 = vcombine.low %v51_v22, %v55_v23  ;;  %v7937_v38 = vcombine.low %v52_v24, %v56_v25 }
  0x1b   :  { %3659 = vmatpush1.bf16.msra.mxu0 %v7919_v18  ;;  %3823 = vmatpush1.bf16.msra.mxu1 %v7921_v19  ;;  %v63_v31 = vld [vmem:[#allocation2 + $0x120] sm:$0xff]  ;;  %v64_v36 = vld [vmem:[#allocation2 + $0x128] sm:$0xff]  ;;  %v9113_v3 = vcombine.high %v9109_v63, %v9109_v63 }
  0x1c   :  { %3660 = vmatprep.subr.bf16.mxu0 %v7928_v20  ;;  %3824 = vmatprep.subr.bf16.mxu1 %v7930_v21  ;;  %v7944_v39 = vcombine.high %v59_v30, %v63_v31  ;;  %v7946_v40 = vcombine.high %v60_v35, %v64_v36  ;;  %v67_v41 = vld [vmem:[#allocation2 + $0x140] sm:$0xff]  ;;  %v68_v45 = vld [vmem:[#allocation2 + $0x148] sm:$0xff]  ;;  %v7943_v47 = vcombine.low %v59_v30, %v63_v31 }
  0x1d   :  { %v71_v42 = vld [vmem:[#allocation2 + $0x160] sm:$0xff]  ;;  %v72_v46 = vld [vmem:[#allocation2 + $0x168] sm:$0xff]  ;;  %v7945_v48 = vcombine.low %v60_v35, %v64_v36  ;;  %3688 = vmatprep.mubr.bf16.mxu0 %v9113_v3  ;;  %3852 = vmatprep.mubr.bf16.mxu1 %v9113_v3 }
  0x1e   :  { %v7952_v49 = vcombine.high %v67_v41, %v71_v42  ;;  %v7954_v50 = vcombine.high %v68_v45, %v72_v46  ;;  %v75_v51 = vld [vmem:[#allocation2 + $0x180] sm:$0xff]  ;;  %v76_v54 = vld [vmem:[#allocation2 + $0x188] sm:$0xff]  ;;  %v7951_v56 = vcombine.low %v67_v41, %v71_v42  ;;  %v7953_v57 = vcombine.low %v68_v45, %v72_v46 }
  0x1f   :  { %3661 = vmatpush1.bf16.msra.mxu0 %v7927_v26  ;;  %3825 = vmatpush1.bf16.msra.mxu1 %v7929_v27  ;;  %v79_v52 = vld [vmem:[#allocation2 + $0x1a0] sm:$0xff]  ;;  %v80_v55 = vld [vmem:[#allocation2 + $0x1a8] sm:$0xff] }
  0x20   :  { %3662 = vmatprep.subr.bf16.mxu0 %v7936_v28  ;;  %3826 = vmatprep.subr.bf16.mxu1 %v7938_v29  ;;  %v7960_v58 = vcombine.high %v75_v51, %v79_v52  ;;  %v7962_v60 = vcombine.high %v76_v54, %v80_v55  ;;  %v83_v61 = vld [vmem:[#allocation2 + $0x1c0] sm:$0xff]  ;;  %v84_v0 = vld [vmem:[#allocation2 + $0x1c8] sm:$0xff]  ;;  %v7959_v2 = vcombine.low %v75_v51, %v79_v52 }
  0x21   :  { %v87_v62 = vld [vmem:[#allocation2 + $0x1e0] sm:$0xff]  ;;  %v88_v1 = vld [vmem:[#allocation2 + $0x1e8] sm:$0xff]  ;;  %v7961_v4 = vcombine.low %v76_v54, %v80_v55 }
  0x22   :  { %v7968_v5 = vcombine.high %v83_v61, %v87_v62  ;;  %v7970_v6 = vcombine.high %v84_v0, %v88_v1  ;;  %v91_v7 = vld [vmem:[#allocation2 + $0x200] sm:$0xff]  ;;  %v92_v9 = vld [vmem:[#allocation2 + $0x208] sm:$0xff]  ;;  %v7967_v11 = vcombine.low %v83_v61, %v87_v62  ;;  %v7969_v12 = vcombine.low %v84_v0, %v88_v1 }
  0x23   :  { %3663 = vmatpush1.bf16.msra.mxu0 %v7935_v37  ;;  %3827 = vmatpush1.bf16.msra.mxu1 %v7937_v38  ;;  %v95_v8 = vld [vmem:[#allocation2 + $0x220] sm:$0xff]  ;;  %v96_v10 = vld [vmem:[#allocation2 + $0x228] sm:$0xff] }
  0x24   :  { %3664 = vmatprep.subr.bf16.mxu0 %v7944_v39  ;;  %3828 = vmatprep.subr.bf16.mxu1 %v7946_v40  ;;  %v7976_v13 = vcombine.high %v91_v7, %v95_v8  ;;  %v7978_v14 = vcombine.high %v92_v9, %v96_v10  ;;  %v99_v15 = vld [vmem:[#allocation2 + $0x240] sm:$0xff]  ;;  %v100_v17 = vld [vmem:[#allocation2 + $0x248] sm:$0xff]  ;;  %v7975_v19 = vcombine.low %v91_v7, %v95_v8 }
  0x25   :  { %v103_v16 = vld [vmem:[#allocation2 + $0x260] sm:$0xff]  ;;  %v104_v18 = vld [vmem:[#allocation2 + $0x268] sm:$0xff]  ;;  %v7977_v20 = vcombine.low %v92_v9, %v96_v10 }
  0x26   :  { %v7984_v21 = vcombine.high %v99_v15, %v103_v16  ;;  %v7986_v22 = vcombine.high %v100_v17, %v104_v18  ;;  %v107_v23 = vld [vmem:[#allocation2 + $0x280] sm:$0xff]  ;;  %v108_v25 = vld [vmem:[#allocation2 + $0x288] sm:$0xff]  ;;  %v7983_v27 = vcombine.low %v99_v15, %v103_v16  ;;  %v7985_v28 = vcombine.low %v100_v17, %v104_v18 }
  0x27   :  { %3665 = vmatpush1.bf16.msra.mxu0 %v7943_v47  ;;  %3829 = vmatpush1.bf16.msra.mxu1 %v7945_v48  ;;  %v111_v24 = vld [vmem:[#allocation2 + $0x2a0] sm:$0xff]  ;;  %v112_v26 = vld [vmem:[#allocation2 + $0x2a8] sm:$0xff] }
  0x28   :  { %3666 = vmatprep.subr.bf16.mxu0 %v7952_v49  ;;  %3830 = vmatprep.subr.bf16.mxu1 %v7954_v50  ;;  %v7992_v29 = vcombine.high %v107_v23, %v111_v24  ;;  %v7994_v30 = vcombine.high %v108_v25, %v112_v26  ;;  %v115_v31 = vld [vmem:[#allocation2 + $0x2c0] sm:$0xff]  ;;  %v116_v33 = vld [vmem:[#allocation2 + $0x2c8] sm:$0xff]  ;;  %v7991_v35 = vcombine.low %v107_v23, %v111_v24 }
  0x29   :  { %v119_v32 = vld [vmem:[#allocation2 + $0x2e0] sm:$0xff]  ;;  %v120_v34 = vld [vmem:[#allocation2 + $0x2e8] sm:$0xff]  ;;  %v7993_v36 = vcombine.low %v108_v25, %v112_v26 }
  0x2a   :  { %v8000_v37 = vcombine.high %v115_v31, %v119_v32  ;;  %v8002_v38 = vcombine.high %v116_v33, %v120_v34  ;;  %v123_v39 = vld [vmem:[#allocation2 + $0x300] sm:$0xff]  ;;  %v124_v41 = vld [vmem:[#allocation2 + $0x308] sm:$0xff]  ;;  %v7999_v43 = vcombine.low %v115_v31, %v119_v32  ;;  %v8001_v45 = vcombine.low %v116_v33, %v120_v34 }
  0x2b   :  { %3667 = vmatpush1.bf16.msra.mxu0 %v7951_v56  ;;  %3831 = vmatpush1.bf16.msra.mxu1 %v7953_v57  ;;  %v127_v40 = vld [vmem:[#allocation2 + $0x320] sm:$0xff]  ;;  %v128_v42 = vld [vmem:[#allocation2 + $0x328] sm:$0xff] }
  0x2c   :  { %3668 = vmatprep.subr.bf16.mxu0 %v7960_v58  ;;  %3832 = vmatprep.subr.bf16.mxu1 %v7962_v60  ;;  %v8008_v46 = vcombine.high %v123_v39, %v127_v40  ;;  %v8010_v47 = vcombine.high %v124_v41, %v128_v42  ;;  %v131_v48 = vld [vmem:[#allocation2 + $0x340] sm:$0xff]  ;;  %v132_v50 = vld [vmem:[#allocation2 + $0x348] sm:$0xff]  ;;  %v8007_v52 = vcombine.low %v123_v39, %v127_v40 }
  0x2d   :  { %v135_v49 = vld [vmem:[#allocation2 + $0x360] sm:$0xff]  ;;  %v136_v51 = vld [vmem:[#allocation2 + $0x368] sm:$0xff]  ;;  %v8009_v54 = vcombine.low %v124_v41, %v128_v42 }
  0x2e   :  { %v8016_v55 = vcombine.high %v131_v48, %v135_v49  ;;  %v8018_v56 = vcombine.high %v132_v50, %v136_v51  ;;  %v139_v57 = vld [vmem:[#allocation2 + $0x380] sm:$0xff]  ;;  %v140_v60 = vld [vmem:[#allocation2 + $0x388] sm:$0xff]  ;;  %v8015_v62 = vcombine.low %v131_v48, %v135_v49  ;;  %v8017_v0 = vcombine.low %v132_v50, %v136_v51 }
  0x2f   :  { %3669 = vmatpush1.bf16.msra.mxu0 %v7959_v2  ;;  %3833 = vmatpush1.bf16.msra.mxu1 %v7961_v4  ;;  %v143_v58 = vld [vmem:[#allocation2 + $0x3a0] sm:$0xff]  ;;  %v144_v61 = vld [vmem:[#allocation2 + $0x3a8] sm:$0xff] }
  0x30   :  { %3670 = vmatprep.subr.bf16.mxu0 %v7968_v5  ;;  %3834 = vmatprep.subr.bf16.mxu1 %v7970_v6  ;;  %v8024_v1 = vcombine.high %v139_v57, %v143_v58  ;;  %v8026_v2 = vcombine.high %v140_v60, %v144_v61  ;;  %v147_v4 = vld [vmem:[#allocation2 + $0x3c0] sm:$0xff]  ;;  %v148_v6 = vld [vmem:[#allocation2 + $0x3c8] sm:$0xff]  ;;  %v8023_v8 = vcombine.low %v139_v57, %v143_v58 }
  0x31   :  { %v151_v5 = vld [vmem:[#allocation2 + $0x3e0] sm:$0xff]  ;;  %v152_v7 = vld [vmem:[#allocation2 + $0x3e8] sm:$0xff]  ;;  %v8025_v9 = vcombine.low %v140_v60, %v144_v61 }
  0x32   :  { %v8032_v10 = vcombine.high %v147_v4, %v151_v5  ;;  %v156_v15 = vld [vmem:[#allocation2 + $0x408] sm:$0xff]  ;;  %v8031_v17 = vcombine.low %v147_v4, %v151_v5  ;;  %v8033_v18 = vcombine.low %v148_v6, %v152_v7  ;;  %v183_v39 = vld [vmem:[#allocation2 + $0x4e0] sm:$0xff] }
  0x33   :  { %3671 = vmatpush1.bf16.msra.mxu0 %v7967_v11  ;;  %3835 = vmatpush1.bf16.msra.mxu1 %v7969_v12  ;;  %v8034_v11 = vcombine.high %v148_v6, %v152_v7  ;;  %v155_v12 = vld [vmem:[#allocation2 + $0x400] sm:$0xff]  ;;  %v160_v16 = vld [vmem:[#allocation2 + $0x428] sm:$0xff] }
  0x34   :  { %3672 = vmatprep.subr.bf16.mxu0 %v7976_v13  ;;  %3836 = vmatprep.subr.bf16.mxu1 %v7978_v14  ;;  %v159_v13 = vld [vmem:[#allocation2 + $0x420] sm:$0xff]  ;;  %v1054_v14 = vcombine.high %v9105_v59, %v9105_v59  ;;  %v164_v24 = vld [vmem:[#allocation2 + $0x448] sm:$0xff]  ;;  %v8041_v59 = vcombine.low %v156_v15, %v160_v16 }
  0x35   :  { %v168_v25 = vld [vmem:[#allocation2 + $0x468] sm:$0xff]  ;;  %v8039_v26 = vcombine.low %v155_v12, %v159_v13  ;;  %v191_v48 = vld [vmem:[#allocation2 + $0x520] sm:$0xff] }
  0x36   :  { %v9120_v23 = vrot.slane %v1054_v14, %v9100_v53  ;;  %v172_v32 = vld [vmem:[#allocation2 + $0x488] sm:$0xff]  ;;  %v199_v57 = vld [vmem:[#allocation2 + $0x560] sm:$0xff] }
  0x37   :  { %3673 = vmatpush1.bf16.msra.mxu0 %v7975_v19  ;;  %3837 = vmatpush1.bf16.msra.mxu1 %v7977_v20  ;;  %v8040_v19 = vcombine.high %v155_v12, %v159_v13  ;;  %v8042_v20 = vcombine.high %v156_v15, %v160_v16  ;;  %v176_v33 = vld [vmem:[#allocation2 + $0x4a8] sm:$0xff]  ;;  %v207_v4 = vld [vmem:[#allocation2 + $0x5a0] sm:$0xff] }
  0x38   :  { %3674 = vmatprep.subr.bf16.mxu0 %v7984_v21  ;;  %3838 = vmatprep.subr.bf16.mxu1 %v7986_v22  ;;  %v163_v21 = vld [vmem:[#allocation2 + $0x440] sm:$0xff]  ;;  %v9124_v31 = vcombine.high %v9120_v23, %v9120_v23  ;;  %v180_v40 = vld [vmem:[#allocation2 + $0x4c8] sm:$0xff] }
  0x39   :  { %v167_v22 = vld [vmem:[#allocation2 + $0x460] sm:$0xff]  ;;  %v184_v41 = vld [vmem:[#allocation2 + $0x4e8] sm:$0xff] }
  0x3a   :  { %v8047_v34 = vcombine.low %v163_v21, %v167_v22  ;;  %v188_v49 = vld [vmem:[#allocation2 + $0x508] sm:$0xff]  ;;  %v215_v12 = vld [vmem:[#allocation2 + $0x5e0] sm:$0xff] }
  0x3b   :  { %3675 = vmatpush1.bf16.msra.mxu0 %v7983_v27  ;;  %3839 = vmatpush1.bf16.msra.mxu1 %v7985_v28  ;;  %v8048_v27 = vcombine.high %v163_v21, %v167_v22  ;;  %v8050_v28 = vcombine.high %v164_v24, %v168_v25  ;;  %v192_v50 = vld [vmem:[#allocation2 + $0x528] sm:$0xff] }
  0x3c   :  { %3676 = vmatprep.subr.bf16.mxu0 %v7992_v29  ;;  %3840 = vmatprep.subr.bf16.mxu1 %v7994_v30  ;;  %v171_v29 = vld [vmem:[#allocation2 + $0x480] sm:$0xff]  ;;  %v196_v58 = vld [vmem:[#allocation2 + $0x548] sm:$0xff] }
  0x3d   :  { %v175_v30 = vld [vmem:[#allocation2 + $0x4a0] sm:$0xff]  ;;  %v200_v60 = vld [vmem:[#allocation2 + $0x568] sm:$0xff] }
  0x3e   :  { %v8055_v42 = vcombine.low %v171_v29, %v175_v30  ;;  %v204_v5 = vld [vmem:[#allocation2 + $0x588] sm:$0xff] }
  0x3f   :  { %3677 = vmatpush1.bf16.msra.mxu0 %v7991_v35  ;;  %3841 = vmatpush1.bf16.msra.mxu1 %v7993_v36  ;;  %v8049_v35 = vcombine.low %v164_v24, %v168_v25  ;;  %v8056_v36 = vcombine.high %v171_v29, %v175_v30  ;;  %v208_v6 = vld [vmem:[#allocation2 + $0x5a8] sm:$0xff] }
  0x40   :  { %3678 = vmatprep.subr.bf16.mxu0 %v8000_v37  ;;  %3842 = vmatprep.subr.bf16.mxu1 %v8002_v38  ;;  %v8058_v37 = vcombine.high %v172_v32, %v176_v33  ;;  %v179_v38 = vld [vmem:[#allocation2 + $0x4c0] sm:$0xff]  ;;  %v212_v13 = vld [vmem:[#allocation2 + $0x5c8] sm:$0xff]  ;;  %v8089_v16 = vcombine.low %v204_v5, %v208_v6 }
  0x41   :  { %v8063_v51 = vcombine.low %v179_v38, %v183_v39  ;;  %v216_v14 = vld [vmem:[#allocation2 + $0x5e8] sm:$0xff] }
  0x42   :  { %v220_v21 = vld [vmem:[#allocation2 + $0x608] sm:$0xff]  ;;  %v8097_v25 = vcombine.low %v212_v13, %v216_v14 }
  0x43   :  { %3679 = vmatpush1.bf16.msra.mxu0 %v7999_v43  ;;  %3843 = vmatpush1.bf16.msra.mxu1 %v8001_v45  ;;  %v8057_v43 = vcombine.low %v172_v32, %v176_v33  ;;  %v8064_v45 = vcombine.high %v179_v38, %v183_v39  ;;  %v224_v22 = vld [vmem:[#allocation2 + $0x628] sm:$0xff] }
  0x44   :  { %3680 = vmatprep.subr.bf16.mxu0 %v8008_v46  ;;  %3844 = vmatprep.subr.bf16.mxu1 %v8010_v47  ;;  %v8066_v46 = vcombine.high %v180_v40, %v184_v41  ;;  %v187_v47 = vld [vmem:[#allocation2 + $0x500] sm:$0xff]  ;;  %v228_v29 = vld [vmem:[#allocation2 + $0x648] sm:$0xff]  ;;  %v8105_v33 = vcombine.low %v220_v21, %v224_v22 }
  0x45   :  { %v8071_v61 = vcombine.low %v187_v47, %v191_v48  ;;  %v232_v30 = vld [vmem:[#allocation2 + $0x668] sm:$0xff] }
  0x46   :  { %v236_v38 = vld [vmem:[#allocation2 + $0x688] sm:$0xff] }
  0x47   :  { %3681 = vmatpush1.bf16.msra.mxu0 %v8007_v52  ;;  %3845 = vmatpush1.bf16.msra.mxu1 %v8009_v54  ;;  %v8065_v52 = vcombine.low %v180_v40, %v184_v41  ;;  %v8072_v54 = vcombine.high %v187_v47, %v191_v48  ;;  %v240_v39 = vld [vmem:[#allocation2 + $0x6a8] sm:$0xff]  ;;  %v8113_v41 = vcombine.low %v228_v29, %v232_v30 }
  0x48   :  { %3682 = vmatprep.subr.bf16.mxu0 %v8016_v55  ;;  %3846 = vmatprep.subr.bf16.mxu1 %v8018_v56  ;;  %v8074_v55 = vcombine.high %v188_v49, %v192_v50  ;;  %v195_v56 = vld [vmem:[#allocation2 + $0x540] sm:$0xff]  ;;  %v244_v47 = vld [vmem:[#allocation2 + $0x6c8] sm:$0xff] }
  0x49   :  { %v8079_v7 = vcombine.low %v195_v56, %v199_v57  ;;  %v248_v48 = vld [vmem:[#allocation2 + $0x6e8] sm:$0xff] }
  0x4b   :  { %3683 = vmatpush1.bf16.msra.mxu0 %v8015_v62  ;;  %3847 = vmatpush1.bf16.msra.mxu1 %v8017_v0  ;;  %v8073_v62 = vcombine.low %v188_v49, %v192_v50  ;;  %v8080_v0 = vcombine.high %v195_v56, %v199_v57  ;;  %v8121_v50 = vcombine.low %v236_v38, %v240_v39  ;;  %v252_v56 = vld [vmem:[#allocation2 + $0x708] sm:$0xff] }
  0x4c   :  { %3684 = vmatprep.subr.bf16.mxu0 %v8024_v1  ;;  %3848 = vmatprep.subr.bf16.mxu1 %v8026_v2  ;;  %v8082_v1 = vcombine.high %v196_v58, %v200_v60  ;;  %v203_v2 = vld [vmem:[#allocation2 + $0x580] sm:$0xff]  ;;  %v256_v57 = vld [vmem:[#allocation2 + $0x728] sm:$0xff] }
  0x4d   :  { %v8087_v15 = vcombine.low %v203_v2, %v207_v4 }
  0x4f   :  { %3685 = vmatpush1.bf16.msra.mxu0 %v8023_v8  ;;  %3849 = vmatpush1.bf16.msra.mxu1 %v8025_v9  ;;  %v8081_v8 = vcombine.low %v196_v58, %v200_v60  ;;  %v8088_v9 = vcombine.high %v203_v2, %v207_v4  ;;  %v8129_v60 = vcombine.low %v244_v47, %v248_v48  ;;  %v260_v2 = vld [vmem:[#allocation2 + $0x748] sm:$0xff] }
  0x50   :  { %3686 = vmatprep.subr.bf16.mxu0 %v8032_v10  ;;  %3850 = vmatprep.subr.bf16.mxu1 %v8034_v11  ;;  %v8090_v10 = vcombine.high %v204_v5, %v208_v6  ;;  %v211_v11 = vld [vmem:[#allocation2 + $0x5c0] sm:$0xff]  ;;  %v264_v4 = vld [vmem:[#allocation2 + $0x768] sm:$0xff]  ;;  %v8137_v6 = vcombine.low %v252_v56, %v256_v57 }
  0x51   :  { %v8095_v24 = vcombine.low %v211_v11, %v215_v12 }
  0x53   :  { %3687 = vmatpush1.bf16.msra.mxu0 %v8031_v17  ;;  %3851 = vmatpush1.bf16.msra.mxu1 %v8033_v18  ;;  %v8096_v17 = vcombine.high %v211_v11, %v215_v12  ;;  %v8098_v18 = vcombine.high %v212_v13, %v216_v14  ;;  %v268_v11 = vld [vmem:[#allocation2 + $0x788] sm:$0xff]  ;;  %v8145_v14 = vcombine.low %v260_v2, %v264_v4 }
  0x54   :  { %3697 = vmatprep.subr.bf16.mxu0 %v8040_v19  ;;  %3861 = vmatprep.subr.bf16.mxu1 %v8042_v20  ;;  %v219_v19 = vld [vmem:[#allocation2 + $0x600] sm:$0xff]  ;;  %v272_v12 = vld [vmem:[#allocation2 + $0x7a8] sm:$0xff] }
  0x55   :  { %v223_v20 = vld [vmem:[#allocation2 + $0x620] sm:$0xff] }
  0x56   :  { %3689 = vmatmul.mubr.bf16.vlgmr.msra.gmra.mrb[0].mxu0 %v9109_v63  ;;  %3853 = vmatmul.mubr.bf16.vlgmr.msra.gmra.mrb[0].mxu1 %v9109_v63  ;;  %v8103_v32 = vcombine.low %v219_v19, %v223_v20 }
  0x57   :  { %3698 = vmatpush1.bf16.msra.mxu0 %v8039_v26  ;;  %3862 = vmatpush1.bf16.msra.mxu1 %v8041_v59  ;;  %v8104_v26 = vcombine.high %v219_v19, %v223_v20  ;;  %v8106_v59 = vcombine.high %v220_v21, %v224_v22  ;;  %v276_v19 = vld [vmem:[#allocation2 + $0x7c8] sm:$0xff]  ;;  %v8153_v22 = vcombine.low %v268_v11, %v272_v12 }
  0x58   :  { %3699 = vmatprep.subr.bf16.mxu0 %v8048_v27  ;;  %3863 = vmatprep.subr.bf16.mxu1 %v8050_v28  ;;  %v227_v27 = vld [vmem:[#allocation2 + $0x640] sm:$0xff]  ;;  %v280_v20 = vld [vmem:[#allocation2 + $0x7e8] sm:$0xff] }
  0x59   :  { %3729 = vmatprep.mubr.bf16.mxu0 %v9124_v31  ;;  %3893 = vmatprep.mubr.bf16.mxu1 %v9124_v31  ;;  %v231_v28 = vld [vmem:[#allocation2 + $0x660] sm:$0xff] }
  0x5a   :  { %v8111_v40 = vcombine.low %v227_v27, %v231_v28 }
  0x5b   :  { %3700 = vmatpush1.bf16.msra.mxu0 %v8047_v34  ;;  %3864 = vmatpush1.bf16.msra.mxu1 %v8049_v35  ;;  %v8112_v34 = vcombine.high %v227_v27, %v231_v28  ;;  %v8114_v35 = vcombine.high %v228_v29, %v232_v30  ;;  %v284_v27 = vld [vmem:[#allocation2 + $0x808] sm:$0xff]  ;;  %v9133_v29 = vld [vmem:[%s9297_s0 + $0x8] sm:$0xff] }
  0x5c   :  { %3701 = vmatprep.subr.bf16.mxu0 %v8056_v36  ;;  %3865 = vmatprep.subr.bf16.mxu1 %v8058_v37  ;;  %v235_v36 = vld [vmem:[#allocation2 + $0x680] sm:$0xff]  ;;  %v288_v28 = vld [vmem:[#allocation2 + $0x828] sm:$0xff] }
  0x5d   :  { %v239_v37 = vld [vmem:[#allocation2 + $0x6a0] sm:$0xff] }
  0x5e   :  { %v8119_v49 = vcombine.low %v235_v36, %v239_v37 }
  0x5f   :  { %3702 = vmatpush1.bf16.msra.mxu0 %v8055_v42  ;;  %3866 = vmatpush1.bf16.msra.mxu1 %v8057_v43  ;;  %v8120_v42 = vcombine.high %v235_v36, %v239_v37  ;;  %v8122_v43 = vcombine.high %v236_v38, %v240_v39  ;;  %v295_v36 = vld [vmem:[#allocation2 + $0x860] sm:$0xff]  ;;  %v9137_v37 = vrot.slane %v9133_v29, %v9100_v53  ;;  %v292_v38 = vld [vmem:[#allocation2 + $0x848] sm:$0xff] }
  0x60   :  { %3703 = vmatprep.subr.bf16.mxu0 %v8064_v45  ;;  %3867 = vmatprep.subr.bf16.mxu1 %v8066_v46  ;;  %v243_v45 = vld [vmem:[#allocation2 + $0x6c0] sm:$0xff]  ;;  %v296_v39 = vld [vmem:[#allocation2 + $0x868] sm:$0xff] }
  0x61   :  { %v247_v46 = vld [vmem:[#allocation2 + $0x6e0] sm:$0xff] }
  0x62   :  { %v8127_v58 = vcombine.low %v243_v45, %v247_v46 }
  0x63   :  { %3704 = vmatpush1.bf16.msra.mxu0 %v8063_v51  ;;  %3868 = vmatpush1.bf16.msra.mxu1 %v8065_v52  ;;  %v8128_v51 = vcombine.high %v243_v45, %v247_v46  ;;  %v8130_v52 = vcombine.high %v244_v47, %v248_v48  ;;  %v299_v45 = vld [vmem:[#allocation2 + $0x880] sm:$0xff]  ;;  %v9141_v47 = vcombine.high %v9137_v37, %v9137_v37  ;;  %v300_v48 = vld [vmem:[#allocation2 + $0x888] sm:$0xff] }
  0x64   :  { %3705 = vmatprep.subr.bf16.mxu0 %v8072_v54  ;;  %3869 = vmatprep.subr.bf16.mxu1 %v8074_v55  ;;  %v251_v54 = vld [vmem:[#allocation2 + $0x700] sm:$0xff] }
  0x65   :  { %v255_v55 = vld [vmem:[#allocation2 + $0x720] sm:$0xff] }
  0x66   :  { %v8135_v5 = vcombine.low %v251_v54, %v255_v55  ;;  %v303_v46 = vld [vmem:[#allocation2 + $0x8a0] sm:$0xff] }
  0x67   :  { %3706 = vmatpush1.bf16.msra.mxu0 %v8071_v61  ;;  %3870 = vmatpush1.bf16.msra.mxu1 %v8073_v62  ;;  %v8136_v61 = vcombine.high %v251_v54, %v255_v55  ;;  %v8138_v62 = vcombine.high %v252_v56, %v256_v57  ;;  %v307_v55 = vld [vmem:[#allocation2 + $0x8c0] sm:$0xff]  ;;  %v308_v57 = vld [vmem:[#allocation2 + $0x8c8] sm:$0xff] }
  0x68   :  { %3707 = vmatprep.subr.bf16.mxu0 %v8080_v0  ;;  %3871 = vmatprep.subr.bf16.mxu1 %v8082_v1  ;;  %v259_v0 = vld [vmem:[#allocation2 + $0x740] sm:$0xff] }
  0x69   :  { %v263_v1 = vld [vmem:[#allocation2 + $0x760] sm:$0xff] }
  0x6a   :  { %v8143_v13 = vcombine.low %v259_v0, %v263_v1  ;;  %v311_v56 = vld [vmem:[#allocation2 + $0x8e0] sm:$0xff] }
  0x6b   :  { %3708 = vmatpush1.bf16.msra.mxu0 %v8079_v7  ;;  %3872 = vmatpush1.bf16.msra.mxu1 %v8081_v8  ;;  %v8144_v7 = vcombine.high %v259_v0, %v263_v1  ;;  %v8146_v8 = vcombine.high %v260_v2, %v264_v4  ;;  %v315_v1 = vld [vmem:[#allocation2 + $0x900] sm:$0xff]  ;;  %v316_v4 = vld [vmem:[#allocation2 + $0x908] sm:$0xff] }
  0x6c   :  { %3709 = vmatprep.subr.bf16.mxu0 %v8088_v9  ;;  %3873 = vmatprep.subr.bf16.mxu1 %v8090_v10  ;;  %v267_v9 = vld [vmem:[#allocation2 + $0x780] sm:$0xff] }
  0x6d   :  { %v271_v10 = vld [vmem:[#allocation2 + $0x7a0] sm:$0xff] }
  0x6e   :  { %v8151_v21 = vcombine.low %v267_v9, %v271_v10  ;;  %v319_v2 = vld [vmem:[#allocation2 + $0x920] sm:$0xff] }
  0x6f   :  { %3710 = vmatpush1.bf16.msra.mxu0 %v8087_v15  ;;  %3874 = vmatpush1.bf16.msra.mxu1 %v8089_v16  ;;  %v8152_v15 = vcombine.high %v267_v9, %v271_v10  ;;  %v8154_v16 = vcombine.high %v268_v11, %v272_v12  ;;  %v323_v10 = vld [vmem:[#allocation2 + $0x940] sm:$0xff]  ;;  %v324_v12 = vld [vmem:[#allocation2 + $0x948] sm:$0xff] }
  0x70   :  { %3711 = vmatprep.subr.bf16.mxu0 %v8096_v17  ;;  %3875 = vmatprep.subr.bf16.mxu1 %v8098_v18  ;;  %v275_v17 = vld [vmem:[#allocation2 + $0x7c0] sm:$0xff] }
  0x71   :  { %v279_v18 = vld [vmem:[#allocation2 + $0x7e0] sm:$0xff] }
  0x72   :  { %v8159_v30 = vcombine.low %v275_v17, %v279_v18  ;;  %v327_v11 = vld [vmem:[#allocation2 + $0x960] sm:$0xff] }
  0x73   :  { %3712 = vmatpush1.bf16.msra.mxu0 %v8095_v24  ;;  %3876 = vmatpush1.bf16.msra.mxu1 %v8097_v25  ;;  %v8160_v24 = vcombine.high %v275_v17, %v279_v18  ;;  %v8162_v25 = vcombine.high %v276_v19, %v280_v20  ;;  %v331_v18 = vld [vmem:[#allocation2 + $0x980] sm:$0xff] }
  0x74   :  { %3713 = vmatprep.subr.bf16.mxu0 %v8104_v26  ;;  %3877 = vmatprep.subr.bf16.mxu1 %v8106_v59  ;;  %v283_v26 = vld [vmem:[#allocation2 + $0x800] sm:$0xff] }
  0x75   :  { %v287_v59 = vld [vmem:[#allocation2 + $0x820] sm:$0xff] }
  0x77   :  { %3714 = vmatpush1.bf16.msra.mxu0 %v8103_v32  ;;  %3878 = vmatpush1.bf16.msra.mxu1 %v8105_v33  ;;  %v8161_v32 = vcombine.low %v276_v19, %v280_v20  ;;  %v8168_v33 = vcombine.high %v283_v26, %v287_v59  ;;  %v335_v19 = vld [vmem:[#allocation2 + $0x9a0] sm:$0xff]  ;;  %v332_v20 = vld [vmem:[#allocation2 + $0x988] sm:$0xff] }
  0x78   :  { %3715 = vmatprep.subr.bf16.mxu0 %v8112_v34  ;;  %3879 = vmatprep.subr.bf16.mxu1 %v8114_v35  ;;  %v8170_v34 = vcombine.high %v284_v27, %v288_v28  ;;  %v291_v35 = vld [vmem:[#allocation2 + $0x840] sm:$0xff] }
  0x7b   :  { %3716 = vmatpush1.bf16.msra.mxu0 %v8111_v40  ;;  %3880 = vmatpush1.bf16.msra.mxu1 %v8113_v41  ;;  %v8167_v40 = vcombine.low %v283_v26, %v287_v59  ;;  %v8169_v41 = vcombine.low %v284_v27, %v288_v28  ;;  %v339_v59 = vld [vmem:[#allocation2 + $0x9c0] sm:$0xff]  ;;  %v340_v28 = vld [vmem:[#allocation2 + $0x9c8] sm:$0xff] }
  0x7c   :  { %3717 = vmatprep.subr.bf16.mxu0 %v8120_v42  ;;  %3881 = vmatprep.subr.bf16.mxu1 %v8122_v43  ;;  %v8176_v42 = vcombine.high %v291_v35, %v295_v36  ;;  %v8178_v43 = vcombine.high %v292_v38, %v296_v39  ;;  %v343_v27 = vld [vmem:[#allocation2 + $0x9e0] sm:$0xff] }
  0x7f   :  { %3718 = vmatpush1.bf16.msra.mxu0 %v8119_v49  ;;  %3882 = vmatpush1.bf16.msra.mxu1 %v8121_v50  ;;  %v304_v49 = vld [vmem:[#allocation2 + $0x8a8] sm:$0xff]  ;;  %v8175_v50 = vcombine.low %v291_v35, %v295_v36  ;;  %v347_v36 = vld [vmem:[#allocation2 + $0xa00] sm:$0xff] }
  0x80   :  { %3719 = vmatprep.subr.bf16.mxu0 %v8128_v51  ;;  %3883 = vmatprep.subr.bf16.mxu1 %v8130_v52  ;;  %v8177_v51 = vcombine.low %v292_v38, %v296_v39  ;;  %v8184_v52 = vcombine.high %v299_v45, %v303_v46  ;;  %v8186_v54 = vcombine.high %v300_v48, %v304_v49  ;;  %v351_v38 = vld [vmem:[#allocation2 + $0xa20] sm:$0xff]  ;;  %v348_v39 = vld [vmem:[#allocation2 + $0xa08] sm:$0xff] }
  0x83   :  { %3720 = vmatpush1.bf16.msra.mxu0 %v8127_v58  ;;  %3884 = vmatpush1.bf16.msra.mxu1 %v8129_v60  ;;  %v312_v58 = vld [vmem:[#allocation2 + $0x8e8] sm:$0xff]  ;;  %v8183_v60 = vcombine.low %v299_v45, %v303_v46  ;;  %v355_v46 = vld [vmem:[#allocation2 + $0xa40] sm:$0xff] }
  0x84   :  { %3721 = vmatprep.subr.bf16.mxu0 %v8136_v61  ;;  %3885 = vmatprep.subr.bf16.mxu1 %v8138_v62  ;;  %v8185_v61 = vcombine.low %v300_v48, %v304_v49  ;;  %v8192_v62 = vcombine.high %v307_v55, %v311_v56  ;;  %v8194_v0 = vcombine.high %v308_v57, %v312_v58  ;;  %v359_v48 = vld [vmem:[#allocation2 + $0xa60] sm:$0xff]  ;;  %v356_v49 = vld [vmem:[#allocation2 + $0xa48] sm:$0xff] }
  0x87   :  { %3722 = vmatpush1.bf16.msra.mxu0 %v8135_v5  ;;  %3886 = vmatpush1.bf16.msra.mxu1 %v8137_v6  ;;  %v320_v5 = vld [vmem:[#allocation2 + $0x928] sm:$0xff]  ;;  %v8191_v6 = vcombine.low %v307_v55, %v311_v56  ;;  %v363_v56 = vld [vmem:[#allocation2 + $0xa80] sm:$0xff] }
  0x88   :  { %3723 = vmatprep.subr.bf16.mxu0 %v8144_v7  ;;  %3887 = vmatprep.subr.bf16.mxu1 %v8146_v8  ;;  %v8193_v7 = vcombine.low %v308_v57, %v312_v58  ;;  %v8200_v8 = vcombine.high %v315_v1, %v319_v2  ;;  %v8202_v9 = vcombine.high %v316_v4, %v320_v5  ;;  %v367_v57 = vld [vmem:[#allocation2 + $0xaa0] sm:$0xff]  ;;  %v364_v58 = vld [vmem:[#allocation2 + $0xa88] sm:$0xff] }
  0x8b   :  { %3724 = vmatpush1.bf16.msra.mxu0 %v8143_v13  ;;  %3888 = vmatpush1.bf16.msra.mxu1 %v8145_v14  ;;  %v328_v13 = vld [vmem:[#allocation2 + $0x968] sm:$0xff]  ;;  %v8199_v14 = vcombine.low %v315_v1, %v319_v2  ;;  %v371_v2 = vld [vmem:[#allocation2 + $0xac0] sm:$0xff] }
  0x8c   :  { %3725 = vmatprep.subr.bf16.mxu0 %v8152_v15  ;;  %3889 = vmatprep.subr.bf16.mxu1 %v8154_v16  ;;  %v8201_v15 = vcombine.low %v316_v4, %v320_v5  ;;  %v8208_v16 = vcombine.high %v323_v10, %v327_v11  ;;  %v8210_v17 = vcombine.high %v324_v12, %v328_v13  ;;  %v375_v4 = vld [vmem:[#allocation2 + $0xae0] sm:$0xff]  ;;  %v372_v5 = vld [vmem:[#allocation2 + $0xac8] sm:$0xff] }
  0x8f   :  { %3726 = vmatpush1.bf16.msra.mxu0 %v8151_v21  ;;  %3890 = vmatpush1.bf16.msra.mxu1 %v8153_v22  ;;  %v336_v21 = vld [vmem:[#allocation2 + $0x9a8] sm:$0xff]  ;;  %v8207_v22 = vcombine.low %v323_v10, %v327_v11  ;;  %v379_v11 = vld [vmem:[#allocation2 + $0xb00] sm:$0xff] }
  0x90   :  { %3727 = vmatprep.subr.bf16.mxu0 %v8160_v24  ;;  %3891 = vmatprep.subr.bf16.mxu1 %v8162_v25  ;;  %v8209_v24 = vcombine.low %v324_v12, %v328_v13  ;;  %v8216_v25 = vcombine.high %v331_v18, %v335_v19  ;;  %v8218_v26 = vcombine.high %v332_v20, %v336_v21  ;;  %v383_v12 = vld [vmem:[#allocation2 + $0xb20] sm:$0xff]  ;;  %v380_v13 = vld [vmem:[#allocation2 + $0xb08] sm:$0xff] }
  0x93   :  { %3728 = vmatpush1.bf16.msra.mxu0 %v8159_v30  ;;  %3892 = vmatpush1.bf16.msra.mxu1 %v8161_v32  ;;  %v344_v30 = vld [vmem:[#allocation2 + $0x9e8] sm:$0xff]  ;;  %v8215_v32 = vcombine.low %v331_v18, %v335_v19  ;;  %v387_v19 = vld [vmem:[#allocation2 + $0xb40] sm:$0xff] }
  0x94   :  { %3738 = vmatprep.subr.bf16.mxu0 %v8168_v33  ;;  %3902 = vmatprep.subr.bf16.mxu1 %v8170_v34  ;;  %v8217_v33 = vcombine.low %v332_v20, %v336_v21  ;;  %v8224_v34 = vcombine.high %v339_v59, %v343_v27  ;;  %v8226_v35 = vcombine.high %v340_v28, %v344_v30  ;;  %v391_v20 = vld [vmem:[#allocation2 + $0xb60] sm:$0xff]  ;;  %v388_v21 = vld [vmem:[#allocation2 + $0xb48] sm:$0xff] }
  0x96   :  { %3730 = vmatmul.mubr.bf16.vlgmr.msra.gmra.mrb[0].mxu0 %v9120_v23  ;;  %3894 = vmatmul.mubr.bf16.vlgmr.msra.gmra.mrb[0].mxu1 %v9120_v23 }
  0x97   :  { %3739 = vmatpush1.bf16.msra.mxu0 %v8167_v40  ;;  %3903 = vmatpush1.bf16.msra.mxu1 %v8169_v41  ;;  %v352_v40 = vld [vmem:[#allocation2 + $0xa28] sm:$0xff]  ;;  %v8223_v41 = vcombine.low %v339_v59, %v343_v27  ;;  %v395_v27 = vld [vmem:[#allocation2 + $0xb80] sm:$0xff] }
  0x98   :  { %3740 = vmatprep.subr.bf16.mxu0 %v8176_v42  ;;  %3904 = vmatprep.subr.bf16.mxu1 %v8178_v43  ;;  %v8225_v42 = vcombine.low %v340_v28, %v344_v30  ;;  %v8232_v43 = vcombine.high %v347_v36, %v351_v38  ;;  %v8234_v45 = vcombine.high %v348_v39, %v352_v40  ;;  %v399_v28 = vld [vmem:[#allocation2 + $0xba0] sm:$0xff]  ;;  %v396_v30 = vld [vmem:[#allocation2 + $0xb88] sm:$0xff] }
  0x99   :  { %3770 = vmatprep.mubr.bf16.mxu0 %v9141_v47  ;;  %3934 = vmatprep.mubr.bf16.mxu1 %v9141_v47 }
  0x9b   :  { %3741 = vmatpush1.bf16.msra.mxu0 %v8175_v50  ;;  %3905 = vmatpush1.bf16.msra.mxu1 %v8177_v51  ;;  %v360_v50 = vld [vmem:[#allocation2 + $0xa68] sm:$0xff]  ;;  %v8231_v51 = vcombine.low %v347_v36, %v351_v38  ;;  %v403_v38 = vld [vmem:[#allocation2 + $0xbc0] sm:$0xff] }
  0x9c   :  { %3742 = vmatprep.subr.bf16.mxu0 %v8184_v52  ;;  %3906 = vmatprep.subr.bf16.mxu1 %v8186_v54  ;;  %v8233_v52 = vcombine.low %v348_v39, %v352_v40  ;;  %v8240_v54 = vcombine.high %v355_v46, %v359_v48  ;;  %v8242_v55 = vcombine.high %v356_v49, %v360_v50  ;;  %v407_v39 = vld [vmem:[#allocation2 + $0xbe0] sm:$0xff]  ;;  %v404_v40 = vld [vmem:[#allocation2 + $0xbc8] sm:$0xff] }
  0x9f   :  { %3743 = vmatpush1.bf16.msra.mxu0 %v8183_v60  ;;  %3907 = vmatpush1.bf16.msra.mxu1 %v8185_v61  ;;  %v368_v60 = vld [vmem:[#allocation2 + $0xaa8] sm:$0xff]  ;;  %v8239_v61 = vcombine.low %v355_v46, %v359_v48  ;;  %v411_v48 = vld [vmem:[#allocation2 + $0xc00] sm:$0xff] }
  0xa0   :  { %3744 = vmatprep.subr.bf16.mxu0 %v8192_v62  ;;  %3908 = vmatprep.subr.bf16.mxu1 %v8194_v0  ;;  %v8241_v62 = vcombine.low %v356_v49, %v360_v50  ;;  %v8248_v0 = vcombine.high %v363_v56, %v367_v57  ;;  %v8250_v1 = vcombine.high %v364_v58, %v368_v60  ;;  %v415_v49 = vld [vmem:[#allocation2 + $0xc20] sm:$0xff] }
  0xa1   :  { %v1071_v50 = vcombine.high %v9133_v29, %v9133_v29 }
  0xa3   :  { %3745 = vmatpush1.bf16.msra.mxu0 %v8191_v6  ;;  %3909 = vmatpush1.bf16.msra.mxu1 %v8193_v7  ;;  %v376_v6 = vld [vmem:[#allocation2 + $0xae8] sm:$0xff]  ;;  %v8247_v7 = vcombine.low %v363_v56, %v367_v57  ;;  %v8296_v56 = vcombine.high %v411_v48, %v415_v49 }
  0xa4   :  { %3746 = vmatprep.subr.bf16.mxu0 %v8200_v8  ;;  %3910 = vmatprep.subr.bf16.mxu1 %v8202_v9  ;;  %v8249_v8 = vcombine.low %v364_v58, %v368_v60  ;;  %v8256_v9 = vcombine.high %v371_v2, %v375_v4  ;;  %v8258_v10 = vcombine.high %v372_v5, %v376_v6  ;;  %v419_v58 = vld [vmem:[#allocation2 + $0xc40] sm:$0xff] }
  0xa5   :  { %v423_v60 = vld [vmem:[#allocation2 + $0xc60] sm:$0xff] }
  0xa7   :  { %3747 = vmatpush1.bf16.msra.mxu0 %v8199_v14  ;;  %3911 = vmatpush1.bf16.msra.mxu1 %v8201_v15  ;;  %v384_v14 = vld [vmem:[#allocation2 + $0xb28] sm:$0xff]  ;;  %v8255_v15 = vcombine.low %v371_v2, %v375_v4  ;;  %v8304_v2 = vcombine.high %v419_v58, %v423_v60 }
  0xa8   :  { %3748 = vmatprep.subr.bf16.mxu0 %v8208_v16  ;;  %3912 = vmatprep.subr.bf16.mxu1 %v8210_v17  ;;  %v8257_v16 = vcombine.low %v372_v5, %v376_v6  ;;  %v8264_v17 = vcombine.high %v379_v11, %v383_v12  ;;  %v8266_v18 = vcombine.high %v380_v13, %v384_v14  ;;  %v427_v5 = vld [vmem:[#allocation2 + $0xc80] sm:$0xff] }
  0xa9   :  { %v431_v6 = vld [vmem:[#allocation2 + $0xca0] sm:$0xff] }
  0xab   :  { %3749 = vmatpush1.bf16.msra.mxu0 %v8207_v22  ;;  %3913 = vmatpush1.bf16.msra.mxu1 %v8209_v24  ;;  %v392_v22 = vld [vmem:[#allocation2 + $0xb68] sm:$0xff]  ;;  %v8263_v24 = vcombine.low %v379_v11, %v383_v12  ;;  %v8312_v11 = vcombine.high %v427_v5, %v431_v6 }
  0xac   :  { %3750 = vmatprep.subr.bf16.mxu0 %v8216_v25  ;;  %3914 = vmatprep.subr.bf16.mxu1 %v8218_v26  ;;  %v8265_v25 = vcombine.low %v380_v13, %v384_v14  ;;  %v8272_v26 = vcombine.high %v387_v19, %v391_v20  ;;  %v8274_v59 = vcombine.high %v388_v21, %v392_v22  ;;  %v435_v13 = vld [vmem:[#allocation2 + $0xcc0] sm:$0xff] }
  0xad   :  { %v439_v14 = vld [vmem:[#allocation2 + $0xce0] sm:$0xff] }
  0xaf   :  { %3751 = vmatpush1.bf16.msra.mxu0 %v8215_v32  ;;  %3915 = vmatpush1.bf16.msra.mxu1 %v8217_v33  ;;  %v400_v32 = vld [vmem:[#allocation2 + $0xba8] sm:$0xff]  ;;  %v8271_v33 = vcombine.low %v387_v19, %v391_v20  ;;  %v8320_v19 = vcombine.high %v435_v13, %v439_v14 }
  0xb0   :  { %3752 = vmatprep.subr.bf16.mxu0 %v8224_v34  ;;  %3916 = vmatprep.subr.bf16.mxu1 %v8226_v35  ;;  %v8273_v34 = vcombine.low %v388_v21, %v392_v22  ;;  %v8280_v35 = vcombine.high %v395_v27, %v399_v28  ;;  %v8282_v36 = vcombine.high %v396_v30, %v400_v32  ;;  %v443_v21 = vld [vmem:[#allocation2 + $0xd00] sm:$0xff] }
  0xb1   :  { %v447_v22 = vld [vmem:[#allocation2 + $0xd20] sm:$0xff] }
  0xb3   :  { %3753 = vmatpush1.bf16.msra.mxu0 %v8223_v41  ;;  %3917 = vmatpush1.bf16.msra.mxu1 %v8225_v42  ;;  %v408_v41 = vld [vmem:[#allocation2 + $0xbe8] sm:$0xff]  ;;  %v8279_v42 = vcombine.low %v395_v27, %v399_v28  ;;  %v8328_v27 = vcombine.high %v443_v21, %v447_v22 }
  0xb4   :  { %3754 = vmatprep.subr.bf16.mxu0 %v8232_v43  ;;  %3918 = vmatprep.subr.bf16.mxu1 %v8234_v45  ;;  %v8281_v43 = vcombine.low %v396_v30, %v400_v32  ;;  %v8288_v45 = vcombine.high %v403_v38, %v407_v39  ;;  %v8290_v46 = vcombine.high %v404_v40, %v408_v41  ;;  %v451_v30 = vld [vmem:[#allocation2 + $0xd40] sm:$0xff] }
  0xb5   :  { %v455_v32 = vld [vmem:[#allocation2 + $0xd60] sm:$0xff] }
  0xb7   :  { %3755 = vmatpush1.bf16.msra.mxu0 %v8231_v51  ;;  %3919 = vmatpush1.bf16.msra.mxu1 %v8233_v52  ;;  %v412_v51 = vld [vmem:[#allocation2 + $0xc08] sm:$0xff] }
  0xb8   :  { %3756 = vmatprep.subr.bf16.mxu0 %v8240_v54  ;;  %3920 = vmatprep.subr.bf16.mxu1 %v8242_v55  ;;  %v416_v52 = vld [vmem:[#allocation2 + $0xc28] sm:$0xff]  ;;  %v8287_v54 = vcombine.low %v403_v38, %v407_v39  ;;  %v8289_v55 = vcombine.low %v404_v40, %v408_v41  ;;  %v8336_v38 = vcombine.high %v451_v30, %v455_v32  ;;  %v459_v40 = vld [vmem:[#allocation2 + $0xd80] sm:$0xff] }
  0xb9   :  { %v8298_v57 = vcombine.high %v412_v51, %v416_v52  ;;  %v8297_v29 = vcombine.low %v412_v51, %v416_v52  ;;  %v463_v41 = vld [vmem:[#allocation2 + $0xda0] sm:$0xff]  ;;  %v468_v52 = vld [vmem:[#allocation2 + $0xdc8] sm:$0xff] }
  0xba   :  { %v471_v51 = vld [vmem:[#allocation2 + $0xde0] sm:$0xff] }
  0xbb   :  { %3757 = vmatpush1.bf16.msra.mxu0 %v8239_v61  ;;  %3921 = vmatpush1.bf16.msra.mxu1 %v8241_v62  ;;  %v9150_v61 = vrot.slane %v1071_v50, %v9100_v53  ;;  %v420_v62 = vld [vmem:[#allocation2 + $0xc48] sm:$0xff]  ;;  %v467_v50 = vld [vmem:[#allocation2 + $0xdc0] sm:$0xff] }
  0xbc   :  { %3758 = vmatprep.subr.bf16.mxu0 %v8248_v0  ;;  %3922 = vmatprep.subr.bf16.mxu1 %v8250_v1  ;;  %v424_v0 = vld [vmem:[#allocation2 + $0xc68] sm:$0xff]  ;;  %v8295_v1 = vcombine.low %v411_v48, %v415_v49  ;;  %v8344_v48 = vcombine.high %v459_v40, %v463_v41 }
  0xbd   :  { %v8306_v4 = vcombine.high %v420_v62, %v424_v0  ;;  %v428_v53 = vld [vmem:[#allocation2 + $0xc88] sm:$0xff] }
  0xbf   :  { %3759 = vmatpush1.bf16.msra.mxu0 %v8247_v7  ;;  %3923 = vmatpush1.bf16.msra.mxu1 %v8249_v8  ;;  %v9154_v7 = vcombine.high %v9150_v61, %v9150_v61  ;;  %v432_v8 = vld [vmem:[#allocation2 + $0xca8] sm:$0xff] }
  0xc0   :  { %3760 = vmatprep.subr.bf16.mxu0 %v8256_v9  ;;  %3924 = vmatprep.subr.bf16.mxu1 %v8258_v10  ;;  %v8303_v9 = vcombine.low %v419_v58, %v423_v60  ;;  %v8305_v10 = vcombine.low %v420_v62, %v424_v0  ;;  %v8314_v12 = vcombine.high %v428_v53, %v432_v8  ;;  %v475_v60 = vld [vmem:[#allocation2 + $0xe00] sm:$0xff]  ;;  %v476_v0 = vld [vmem:[#allocation2 + $0xe08] sm:$0xff] }
  0xc1   :  { %v479_v62 = vld [vmem:[#allocation2 + $0xe20] sm:$0xff] }
  0xc3   :  { %3761 = vmatpush1.bf16.msra.mxu0 %v8255_v15  ;;  %3925 = vmatpush1.bf16.msra.mxu1 %v8257_v16  ;;  %v436_v15 = vld [vmem:[#allocation2 + $0xcc8] sm:$0xff] }
  0xc4   :  { %3762 = vmatprep.subr.bf16.mxu0 %v8264_v17  ;;  %3926 = vmatprep.subr.bf16.mxu1 %v8266_v18  ;;  %v440_v16 = vld [vmem:[#allocation2 + $0xce8] sm:$0xff]  ;;  %v8311_v17 = vcombine.low %v427_v5, %v431_v6  ;;  %v8313_v18 = vcombine.low %v428_v53, %v432_v8  ;;  %v483_v6 = vld [vmem:[#allocation2 + $0xe40] sm:$0xff] }
  0xc5   :  { %v8322_v20 = vcombine.high %v436_v15, %v440_v16  ;;  %v487_v53 = vld [vmem:[#allocation2 + $0xe60] sm:$0xff]  ;;  %v484_v8 = vld [vmem:[#allocation2 + $0xe48] sm:$0xff] }
  0xc7   :  { %3763 = vmatpush1.bf16.msra.mxu0 %v8263_v24  ;;  %3927 = vmatpush1.bf16.msra.mxu1 %v8265_v25  ;;  %v444_v24 = vld [vmem:[#allocation2 + $0xd08] sm:$0xff] }
  0xc8   :  { %3764 = vmatprep.subr.bf16.mxu0 %v8272_v26  ;;  %3928 = vmatprep.subr.bf16.mxu1 %v8274_v59  ;;  %v448_v25 = vld [vmem:[#allocation2 + $0xd28] sm:$0xff]  ;;  %v8319_v26 = vcombine.low %v435_v13, %v439_v14  ;;  %v8321_v59 = vcombine.low %v436_v15, %v440_v16  ;;  %v491_v14 = vld [vmem:[#allocation2 + $0xe80] sm:$0xff] }
  0xc9   :  { %v8330_v28 = vcombine.high %v444_v24, %v448_v25  ;;  %v495_v15 = vld [vmem:[#allocation2 + $0xea0] sm:$0xff]  ;;  %v492_v16 = vld [vmem:[#allocation2 + $0xe88] sm:$0xff] }
  0xcb   :  { %3765 = vmatpush1.bf16.msra.mxu0 %v8271_v33  ;;  %3929 = vmatpush1.bf16.msra.mxu1 %v8273_v34  ;;  %v452_v33 = vld [vmem:[#allocation2 + $0xd48] sm:$0xff] }
  0xcc   :  { %3766 = vmatprep.subr.bf16.mxu0 %v8280_v35  ;;  %3930 = vmatprep.subr.bf16.mxu1 %v8282_v36  ;;  %v456_v34 = vld [vmem:[#allocation2 + $0xd68] sm:$0xff]  ;;  %v8327_v35 = vcombine.low %v443_v21, %v447_v22  ;;  %v8329_v36 = vcombine.low %v444_v24, %v448_v25  ;;  %v499_v22 = vld [vmem:[#allocation2 + $0xec0] sm:$0xff] }
  0xcd   :  { %v8338_v39 = vcombine.high %v452_v33, %v456_v34  ;;  %v503_v24 = vld [vmem:[#allocation2 + $0xee0] sm:$0xff]  ;;  %v500_v25 = vld [vmem:[#allocation2 + $0xec8] sm:$0xff] }
  0xcf   :  { %3767 = vmatpush1.bf16.msra.mxu0 %v8279_v42  ;;  %3931 = vmatpush1.bf16.msra.mxu1 %v8281_v43  ;;  %v460_v42 = vld [vmem:[#allocation2 + $0xd88] sm:$0xff] }
  0xd0   :  { %3768 = vmatprep.subr.bf16.mxu0 %v8288_v45  ;;  %3932 = vmatprep.subr.bf16.mxu1 %v8290_v46  ;;  %v464_v43 = vld [vmem:[#allocation2 + $0xda8] sm:$0xff]  ;;  %v8335_v45 = vcombine.low %v451_v30, %v455_v32  ;;  %v8337_v46 = vcombine.low %v452_v33, %v456_v34  ;;  %v507_v32 = vld [vmem:[#allocation2 + $0xf00] sm:$0xff] }
  0xd1   :  { %v8346_v49 = vcombine.high %v460_v42, %v464_v43  ;;  %v511_v33 = vld [vmem:[#allocation2 + $0xf20] sm:$0xff]  ;;  %v508_v34 = vld [vmem:[#allocation2 + $0xf08] sm:$0xff] }
  0xd3   :  { %3769 = vmatpush1.bf16.msra.mxu0 %v8287_v54  ;;  %3933 = vmatpush1.bf16.msra.mxu1 %v8289_v55  ;;  %v472_v54 = vld [vmem:[#allocation2 + $0xde8] sm:$0xff]  ;;  %v8343_v55 = vcombine.low %v459_v40, %v463_v41  ;;  %v515_v41 = vld [vmem:[#allocation2 + $0xf40] sm:$0xff] }
  0xd4   :  { %3779 = vmatprep.subr.bf16.mxu0 %v8296_v56  ;;  %3943 = vmatprep.subr.bf16.mxu1 %v8298_v57  ;;  %v8345_v56 = vcombine.low %v460_v42, %v464_v43  ;;  %v8352_v57 = vcombine.high %v467_v50, %v471_v51  ;;  %v8354_v58 = vcombine.high %v468_v52, %v472_v54  ;;  %v519_v42 = vld [vmem:[#allocation2 + $0xf60] sm:$0xff]  ;;  %v516_v43 = vld [vmem:[#allocation2 + $0xf48] sm:$0xff] }
  0xd6   :  { %3771 = vmatmul.mubr.bf16.vlgmr.msra.gmra.mrb[0].mxu0 %v9137_v37  ;;  %3935 = vmatmul.mubr.bf16.vlgmr.msra.gmra.mrb[0].mxu1 %v9137_v37 }
  0xd7   :  { %3780 = vmatpush1.bf16.msra.mxu0 %v8295_v1  ;;  %3944 = vmatpush1.bf16.msra.mxu1 %v8297_v29  ;;  %v480_v1 = vld [vmem:[#allocation2 + $0xe28] sm:$0xff]  ;;  %v8351_v29 = vcombine.low %v467_v50, %v471_v51  ;;  %v523_v51 = vld [vmem:[#allocation2 + $0xf80] sm:$0xff] }
  0xd8   :  { %3781 = vmatprep.subr.bf16.mxu0 %v8304_v2  ;;  %3945 = vmatprep.subr.bf16.mxu1 %v8306_v4  ;;  %v8353_v2 = vcombine.low %v468_v52, %v472_v54  ;;  %v8360_v4 = vcombine.high %v475_v60, %v479_v62  ;;  %v8362_v5 = vcombine.high %v476_v0, %v480_v1  ;;  %v527_v52 = vld [vmem:[#allocation2 + $0xfa0] sm:$0xff]  ;;  %v524_v54 = vld [vmem:[#allocation2 + $0xf88] sm:$0xff] }
  0xd9   :  { %3811 = vmatprep.mubr.bf16.mxu0 %v9154_v7  ;;  %3975 = vmatprep.mubr.bf16.mxu1 %v9154_v7 }
  0xdb   :  { %3782 = vmatpush1.bf16.msra.mxu0 %v8303_v9  ;;  %3946 = vmatpush1.bf16.msra.mxu1 %v8305_v10  ;;  %v488_v9 = vld [vmem:[#allocation2 + $0xe68] sm:$0xff]  ;;  %v8359_v10 = vcombine.low %v475_v60, %v479_v62  ;;  %v531_v62 = vld [vmem:[#allocation2 + $0xfc0] sm:$0xff] }
  0xdc   :  { %3783 = vmatprep.subr.bf16.mxu0 %v8312_v11  ;;  %3947 = vmatprep.subr.bf16.mxu1 %v8314_v12  ;;  %v8361_v11 = vcombine.low %v476_v0, %v480_v1  ;;  %v8368_v12 = vcombine.high %v483_v6, %v487_v53  ;;  %v8370_v13 = vcombine.high %v484_v8, %v488_v9  ;;  %v535_v0 = vld [vmem:[#allocation2 + $0xfe0] sm:$0xff]  ;;  %v532_v1 = vld [vmem:[#allocation2 + $0xfc8] sm:$0xff] }
  0xdf   :  { %3784 = vmatpush1.bf16.msra.mxu0 %v8311_v17  ;;  %3948 = vmatpush1.bf16.msra.mxu1 %v8313_v18  ;;  %v496_v17 = vld [vmem:[#allocation2 + $0xea8] sm:$0xff]  ;;  %v8367_v18 = vcombine.low %v483_v6, %v487_v53  ;;  %v29_v53 = vld [vmem:[#allocation2 + $0x10] sm:$0xff] }
  0xe0   :  { %3785 = vmatprep.subr.bf16.mxu0 %v8320_v19  ;;  %3949 = vmatprep.subr.bf16.mxu1 %v8322_v20  ;;  %v8369_v19 = vcombine.low %v484_v8, %v488_v9  ;;  %v8376_v20 = vcombine.high %v491_v14, %v495_v15  ;;  %v8378_v21 = vcombine.high %v492_v16, %v496_v17  ;;  %v33_v8 = vld [vmem:[#allocation2 + $0x30] sm:$0xff]  ;;  %v30_v9 = vld [vmem:[#allocation2 + $0x18] sm:$0xff] }
  0xe3   :  { %3786 = vmatpush1.bf16.msra.mxu0 %v8319_v26  ;;  %3950 = vmatpush1.bf16.msra.mxu1 %v8321_v59  ;;  %v504_v26 = vld [vmem:[#allocation2 + $0xee8] sm:$0xff]  ;;  %v8375_v59 = vcombine.low %v491_v14, %v495_v15  ;;  %v37_v15 = vld [vmem:[#allocation2 + $0x50] sm:$0xff] }
  0xe4   :  { %3787 = vmatprep.subr.bf16.mxu0 %v8328_v27  ;;  %3951 = vmatprep.subr.bf16.mxu1 %v8330_v28  ;;  %v8377_v27 = vcombine.low %v492_v16, %v496_v17  ;;  %v8384_v28 = vcombine.high %v499_v22, %v503_v24  ;;  %v8386_v30 = vcombine.high %v500_v25, %v504_v26  ;;  %v41_v16 = vld [vmem:[#allocation2 + $0x70] sm:$0xff]  ;;  %v38_v17 = vld [vmem:[#allocation2 + $0x58] sm:$0xff] }
  0xe7   :  { %3788 = vmatpush1.bf16.msra.mxu0 %v8327_v35  ;;  %3952 = vmatpush1.bf16.msra.mxu1 %v8329_v36  ;;  %v512_v35 = vld [vmem:[#allocation2 + $0xf28] sm:$0xff]  ;;  %v8383_v36 = vcombine.low %v499_v22, %v503_v24  ;;  %v45_v24 = vld [vmem:[#allocation2 + $0x90] sm:$0xff] }
  0xe8   :  { %3789 = vmatprep.subr.bf16.mxu0 %v8336_v38  ;;  %3953 = vmatprep.subr.bf16.mxu1 %v8338_v39  ;;  %v8385_v38 = vcombine.low %v500_v25, %v504_v26  ;;  %v8392_v39 = vcombine.high %v507_v32, %v511_v33  ;;  %v8394_v40 = vcombine.high %v508_v34, %v512_v35  ;;  %v49_v25 = vld [vmem:[#allocation2 + $0xb0] sm:$0xff]  ;;  %v46_v26 = vld [vmem:[#allocation2 + $0x98] sm:$0xff] }
  0xeb   :  { %3790 = vmatpush1.bf16.msra.mxu0 %v8335_v45  ;;  %3954 = vmatpush1.bf16.msra.mxu1 %v8337_v46  ;;  %v520_v45 = vld [vmem:[#allocation2 + $0xf68] sm:$0xff]  ;;  %v8391_v46 = vcombine.low %v507_v32, %v511_v33  ;;  %v53_v33 = vld [vmem:[#allocation2 + $0xd0] sm:$0xff] }
  0xec   :  { %3791 = vmatprep.subr.bf16.mxu0 %v8344_v48  ;;  %3955 = vmatprep.subr.bf16.mxu1 %v8346_v49  ;;  %v8393_v48 = vcombine.low %v508_v34, %v512_v35  ;;  %v8400_v49 = vcombine.high %v515_v41, %v519_v42  ;;  %v8402_v50 = vcombine.high %v516_v43, %v520_v45  ;;  %v57_v34 = vld [vmem:[#allocation2 + $0xf0] sm:$0xff]  ;;  %v54_v35 = vld [vmem:[#allocation2 + $0xd8] sm:$0xff] }
  0xef   :  { %3792 = vmatpush1.bf16.msra.mxu0 %v8343_v55  ;;  %3956 = vmatpush1.bf16.msra.mxu1 %v8345_v56  ;;  %v528_v55 = vld [vmem:[#allocation2 + $0xfa8] sm:$0xff]  ;;  %v8399_v56 = vcombine.low %v515_v41, %v519_v42  ;;  %v61_v42 = vld [vmem:[#allocation2 + $0x110] sm:$0xff] }
  0xf0   :  { %3793 = vmatprep.subr.bf16.mxu0 %v8352_v57  ;;  %3957 = vmatprep.subr.bf16.mxu1 %v8354_v58  ;;  %v8401_v57 = vcombine.low %v516_v43, %v520_v45  ;;  %v8408_v58 = vcombine.high %v523_v51, %v527_v52  ;;  %v8410_v60 = vcombine.high %v524_v54, %v528_v55  ;;  %v65_v43 = vld [vmem:[#allocation2 + $0x130] sm:$0xff]  ;;  %v62_v45 = vld [vmem:[#allocation2 + $0x118] sm:$0xff] }
  0xf3   :  { %3794 = vmatpush1.bf16.msra.mxu0 %v8351_v29  ;;  %3958 = vmatpush1.bf16.msra.mxu1 %v8353_v2  ;;  %v536_v29 = vld [vmem:[#allocation2 + $0xfe8] sm:$0xff]  ;;  %v8407_v2 = vcombine.low %v523_v51, %v527_v52  ;;  %v69_v52 = vld [vmem:[#allocation2 + $0x150] sm:$0xff] }
  0xf4   :  { %3795 = vmatprep.subr.bf16.mxu0 %v8360_v4  ;;  %3959 = vmatprep.subr.bf16.mxu1 %v8362_v5  ;;  %v8409_v4 = vcombine.low %v524_v54, %v528_v55  ;;  %v8416_v5 = vcombine.high %v531_v62, %v535_v0  ;;  %v8418_v6 = vcombine.high %v532_v1, %v536_v29  ;;  %v73_v54 = vld [vmem:[#allocation2 + $0x170] sm:$0xff]  ;;  %v70_v55 = vld [vmem:[#allocation2 + $0x158] sm:$0xff] }
  0xf7   :  { %3796 = vmatpush1.bf16.msra.mxu0 %v8359_v10  ;;  %3960 = vmatpush1.bf16.msra.mxu1 %v8361_v11  ;;  %v34_v10 = vld [vmem:[#allocation2 + $0x38] sm:$0xff]  ;;  %v8415_v11 = vcombine.low %v531_v62, %v535_v0  ;;  %v77_v0 = vld [vmem:[#allocation2 + $0x190] sm:$0xff] }
  0xf8   :  { %3797 = vmatprep.subr.bf16.mxu0 %v8368_v12  ;;  %3961 = vmatprep.subr.bf16.mxu1 %v8370_v13  ;;  %v8417_v12 = vcombine.low %v532_v1, %v536_v29  ;;  %v7916_v13 = vcombine.high %v29_v53, %v33_v8  ;;  %v7918_v14 = vcombine.high %v30_v9, %v34_v10  ;;  %v81_v1 = vld [vmem:[#allocation2 + $0x1b0] sm:$0xff]  ;;  %v78_v29 = vld [vmem:[#allocation2 + $0x198] sm:$0xff] }
  0xfb   :  { %3798 = vmatpush1.bf16.msra.mxu0 %v8367_v18  ;;  %3962 = vmatpush1.bf16.msra.mxu1 %v8369_v19  ;;  %v42_v18 = vld [vmem:[#allocation2 + $0x78] sm:$0xff]  ;;  %v7915_v19 = vcombine.low %v29_v53, %v33_v8  ;;  %v85_v8 = vld [vmem:[#allocation2 + $0x1d0] sm:$0xff] }
  0xfc   :  { %3799 = vmatprep.subr.bf16.mxu0 %v8376_v20  ;;  %3963 = vmatprep.subr.bf16.mxu1 %v8378_v21  ;;  %v7917_v20 = vcombine.low %v30_v9, %v34_v10  ;;  %v7924_v21 = vcombine.high %v37_v15, %v41_v16  ;;  %v7926_v22 = vcombine.high %v38_v17, %v42_v18  ;;  %v89_v9 = vld [vmem:[#allocation2 + $0x1f0] sm:$0xff]  ;;  %v86_v10 = vld [vmem:[#allocation2 + $0x1d8] sm:$0xff] }
  0xff   :  { %3800 = vmatpush1.bf16.msra.mxu0 %v8375_v59  ;;  %3964 = vmatpush1.bf16.msra.mxu1 %v8377_v27  ;;  %v50_v59 = vld [vmem:[#allocation2 + $0xb8] sm:$0xff]  ;;  %v7923_v27 = vcombine.low %v37_v15, %v41_v16  ;;  %v93_v16 = vld [vmem:[#allocation2 + $0x210] sm:$0xff] }
 0x100   :  { %3801 = vmatprep.subr.bf16.mxu0 %v8384_v28  ;;  %3965 = vmatprep.subr.bf16.mxu1 %v8386_v30  ;;  %v7925_v28 = vcombine.low %v38_v17, %v42_v18  ;;  %v7932_v30 = vcombine.high %v45_v24, %v49_v25  ;;  %v7934_v32 = vcombine.high %v46_v26, %v50_v59  ;;  %v97_v17 = vld [vmem:[#allocation2 + $0x230] sm:$0xff]  ;;  %v94_v18 = vld [vmem:[#allocation2 + $0x218] sm:$0xff] }
 0x103   :  { %3802 = vmatpush1.bf16.msra.mxu0 %v8383_v36  ;;  %3966 = vmatpush1.bf16.msra.mxu1 %v8385_v38  ;;  %v58_v36 = vld [vmem:[#allocation2 + $0xf8] sm:$0xff]  ;;  %v7931_v38 = vcombine.low %v45_v24, %v49_v25  ;;  %v101_v25 = vld [vmem:[#allocation2 + $0x250] sm:$0xff] }
 0x104   :  { %3803 = vmatprep.subr.bf16.mxu0 %v8392_v39  ;;  %3967 = vmatprep.subr.bf16.mxu1 %v8394_v40  ;;  %v7933_v39 = vcombine.low %v46_v26, %v50_v59  ;;  %v7940_v40 = vcombine.high %v53_v33, %v57_v34  ;;  %v7942_v41 = vcombine.high %v54_v35, %v58_v36  ;;  %v105_v26 = vld [vmem:[#allocation2 + $0x270] sm:$0xff]  ;;  %v102_v59 = vld [vmem:[#allocation2 + $0x258] sm:$0xff] }
 0x107   :  { %3804 = vmatpush1.bf16.msra.mxu0 %v8391_v46  ;;  %3968 = vmatpush1.bf16.msra.mxu1 %v8393_v48  ;;  %v66_v46 = vld [vmem:[#allocation2 + $0x138] sm:$0xff]  ;;  %v7939_v48 = vcombine.low %v53_v33, %v57_v34  ;;  %v109_v34 = vld [vmem:[#allocation2 + $0x290] sm:$0xff] }
 0x108   :  { %3805 = vmatprep.subr.bf16.mxu0 %v8400_v49  ;;  %3969 = vmatprep.subr.bf16.mxu1 %v8402_v50  ;;  %v7941_v49 = vcombine.low %v54_v35, %v58_v36  ;;  %v7948_v50 = vcombine.high %v61_v42, %v65_v43  ;;  %v7950_v51 = vcombine.high %v62_v45, %v66_v46  ;;  %v113_v35 = vld [vmem:[#allocation2 + $0x2b0] sm:$0xff]  ;;  %v110_v36 = vld [vmem:[#allocation2 + $0x298] sm:$0xff] }
 0x10b   :  { %3806 = vmatpush1.bf16.msra.mxu0 %v8399_v56  ;;  %3970 = vmatpush1.bf16.msra.mxu1 %v8401_v57  ;;  %v74_v56 = vld [vmem:[#allocation2 + $0x178] sm:$0xff]  ;;  %v7947_v57 = vcombine.low %v61_v42, %v65_v43  ;;  %v117_v43 = vld [vmem:[#allocation2 + $0x2d0] sm:$0xff] }
 0x10c   :  { %3807 = vmatprep.subr.bf16.mxu0 %v8408_v58  ;;  %3971 = vmatprep.subr.bf16.mxu1 %v8410_v60  ;;  %v7949_v58 = vcombine.low %v62_v45, %v66_v46  ;;  %v7956_v60 = vcombine.high %v69_v52, %v73_v54  ;;  %v7958_v62 = vcombine.high %v70_v55, %v74_v56  ;;  %v121_v45 = vld [vmem:[#allocation2 + $0x2f0] sm:$0xff]  ;;  %v118_v46 = vld [vmem:[#allocation2 + $0x2d8] sm:$0xff] }
 0x10f   :  { %3808 = vmatpush1.bf16.msra.mxu0 %v8407_v2  ;;  %3972 = vmatpush1.bf16.msra.mxu1 %v8409_v4  ;;  %v82_v2 = vld [vmem:[#allocation2 + $0x1b8] sm:$0xff]  ;;  %v7955_v4 = vcombine.low %v69_v52, %v73_v54  ;;  %v125_v54 = vld [vmem:[#allocation2 + $0x310] sm:$0xff] }
 0x110   :  { %3809 = vmatprep.subr.bf16.mxu0 %v8416_v5  ;;  %3973 = vmatprep.subr.bf16.mxu1 %v8418_v6  ;;  %v7957_v5 = vcombine.low %v70_v55, %v74_v56  ;;  %v7964_v6 = vcombine.high %v77_v0, %v81_v1  ;;  %v7966_v53 = vcombine.high %v78_v29, %v82_v2  ;;  %v129_v55 = vld [vmem:[#allocation2 + $0x330] sm:$0xff]  ;;  %v126_v56 = vld [vmem:[#allocation2 + $0x318] sm:$0xff] }
 0x113   :  { %3810 = vmatpush1.bf16.msra.mxu0 %v8415_v11  ;;  %3974 = vmatpush1.bf16.msra.mxu1 %v8417_v12  ;;  %v90_v11 = vld [vmem:[#allocation2 + $0x1f8] sm:$0xff]  ;;  %v7963_v12 = vcombine.low %v77_v0, %v81_v1  ;;  %v133_v1 = vld [vmem:[#allocation2 + $0x350] sm:$0xff] }
 0x114   :  { %3984 = vmatprep.subr.bf16.mxu0 %v7916_v13  ;;  %4148 = vmatprep.subr.bf16.mxu1 %v7918_v14  ;;  %v7965_v13 = vcombine.low %v78_v29, %v82_v2  ;;  %v7972_v14 = vcombine.high %v85_v8, %v89_v9  ;;  %v7974_v15 = vcombine.high %v86_v10, %v90_v11  ;;  %v137_v29 = vld [vmem:[#allocation2 + $0x370] sm:$0xff]  ;;  %v134_v2 = vld [vmem:[#allocation2 + $0x358] sm:$0xff] }
 0x116   :  { %3812 = vmatmul.mubr.bf16.vlgmr.msra.gmra.mrb[0].mxu0 %v9150_v61  ;;  %3976 = vmatmul.mubr.bf16.vlgmr.msra.gmra.mrb[0].mxu1 %v9150_v61 }
 0x117   :  { %3985 = vmatpush1.bf16.msra.mxu0 %v7915_v19  ;;  %4149 = vmatpush1.bf16.msra.mxu1 %v7917_v20  ;;  %v98_v19 = vld [vmem:[#allocation2 + $0x238] sm:$0xff]  ;;  %v7971_v20 = vcombine.low %v85_v8, %v89_v9  ;;  %v141_v9 = vld [vmem:[#allocation2 + $0x390] sm:$0xff] }
 0x118   :  { %3986 = vmatprep.subr.bf16.mxu0 %v7924_v21  ;;  %4150 = vmatprep.subr.bf16.mxu1 %v7926_v22  ;;  %v7973_v21 = vcombine.low %v86_v10, %v90_v11  ;;  %v7980_v22 = vcombine.high %v93_v16, %v97_v17  ;;  %v7982_v24 = vcombine.high %v94_v18, %v98_v19  ;;  %v145_v10 = vld [vmem:[#allocation2 + $0x3b0] sm:$0xff]  ;;  %v142_v11 = vld [vmem:[#allocation2 + $0x398] sm:$0xff] }
 0x119   :  { %4016 = vmatprep.mubr.bf16.mxu0 %v9113_v3  ;;  %4180 = vmatprep.mubr.bf16.mxu1 %v9113_v3 }
 0x11b   :  { %3987 = vmatpush1.bf16.msra.mxu0 %v7923_v27  ;;  %4151 = vmatpush1.bf16.msra.mxu1 %v7925_v28  ;;  %v106_v27 = vld [vmem:[#allocation2 + $0x278] sm:$0xff]  ;;  %v7979_v28 = vcombine.low %v93_v16, %v97_v17  ;;  %v149_v17 = vld [vmem:[#allocation2 + $0x3d0] sm:$0xff] }
 0x11c   :  { %3988 = vmatprep.subr.bf16.mxu0 %v7932_v30  ;;  %4152 = vmatprep.subr.bf16.mxu1 %v7934_v32  ;;  %v7981_v30 = vcombine.low %v94_v18, %v98_v19  ;;  %v7988_v32 = vcombine.high %v101_v25, %v105_v26  ;;  %v7990_v33 = vcombine.high %v102_v59, %v106_v27  ;;  %v153_v18 = vld [vmem:[#allocation2 + $0x3f0] sm:$0xff]  ;;  %v150_v19 = vld [vmem:[#allocation2 + $0x3d8] sm:$0xff] }
 0x11f   :  { %3989 = vmatpush1.bf16.msra.mxu0 %v7931_v38  ;;  %4153 = vmatpush1.bf16.msra.mxu1 %v7933_v39  ;;  %v114_v38 = vld [vmem:[#allocation2 + $0x2b8] sm:$0xff]  ;;  %v7987_v39 = vcombine.low %v101_v25, %v105_v26  ;;  %v157_v26 = vld [vmem:[#allocation2 + $0x410] sm:$0xff] }
 0x120   :  { %3990 = vmatprep.subr.bf16.mxu0 %v7940_v40  ;;  %4154 = vmatprep.subr.bf16.mxu1 %v7942_v41  ;;  %v7989_v40 = vcombine.low %v102_v59, %v106_v27  ;;  %v7996_v41 = vcombine.high %v109_v34, %v113_v35  ;;  %v7998_v42 = vcombine.high %v110_v36, %v114_v38  ;;  %v161_v59 = vld [vmem:[#allocation2 + $0x430] sm:$0xff]  ;;  %v158_v27 = vld [vmem:[#allocation2 + $0x418] sm:$0xff] }
 0x123   :  { %3991 = vmatpush1.bf16.msra.mxu0 %v7939_v48  ;;  %4155 = vmatpush1.bf16.msra.mxu1 %v7941_v49  ;;  %v122_v48 = vld [vmem:[#allocation2 + $0x2f8] sm:$0xff]  ;;  %v7995_v49 = vcombine.low %v109_v34, %v113_v35  ;;  %v165_v35 = vld [vmem:[#allocation2 + $0x450] sm:$0xff] }
 0x124   :  { %3992 = vmatprep.subr.bf16.mxu0 %v7948_v50  ;;  %4156 = vmatprep.subr.bf16.mxu1 %v7950_v51  ;;  %v7997_v50 = vcombine.low %v110_v36, %v114_v38  ;;  %v8004_v51 = vcombine.high %v117_v43, %v121_v45  ;;  %v8006_v52 = vcombine.high %v118_v46, %v122_v48  ;;  %v169_v36 = vld [vmem:[#allocation2 + $0x470] sm:$0xff]  ;;  %v166_v38 = vld [vmem:[#allocation2 + $0x458] sm:$0xff] }
 0x127   :  { %3993 = vmatpush1.bf16.msra.mxu0 %v7947_v57  ;;  %4157 = vmatpush1.bf16.msra.mxu1 %v7949_v58  ;;  %v130_v57 = vld [vmem:[#allocation2 + $0x338] sm:$0xff]  ;;  %v8003_v58 = vcombine.low %v117_v43, %v121_v45  ;;  %v173_v45 = vld [vmem:[#allocation2 + $0x490] sm:$0xff] }
 0x128   :  { %3994 = vmatprep.subr.bf16.mxu0 %v7956_v60  ;;  %4158 = vmatprep.subr.bf16.mxu1 %v7958_v62  ;;  %v8005_v60 = vcombine.low %v118_v46, %v122_v48  ;;  %v8012_v62 = vcombine.high %v125_v54, %v129_v55  ;;  %v8014_v0 = vcombine.high %v126_v56, %v130_v57  ;;  %v177_v46 = vld [vmem:[#allocation2 + $0x4b0] sm:$0xff]  ;;  %v174_v48 = vld [vmem:[#allocation2 + $0x498] sm:$0xff] }
 0x12b   :  { %3995 = vmatpush1.bf16.msra.mxu0 %v7955_v4  ;;  %4159 = vmatpush1.bf16.msra.mxu1 %v7957_v5  ;;  %v138_v4 = vld [vmem:[#allocation2 + $0x378] sm:$0xff]  ;;  %v8011_v5 = vcombine.low %v125_v54, %v129_v55  ;;  %v181_v55 = vld [vmem:[#allocation2 + $0x4d0] sm:$0xff] }
 0x12c   :  { %3996 = vmatprep.subr.bf16.mxu0 %v7964_v6  ;;  %4160 = vmatprep.subr.bf16.mxu1 %v7966_v53  ;;  %v8013_v6 = vcombine.low %v126_v56, %v130_v57  ;;  %v8020_v53 = vcombine.high %v133_v1, %v137_v29  ;;  %v8022_v8 = vcombine.high %v134_v2, %v138_v4  ;;  %v185_v56 = vld [vmem:[#allocation2 + $0x4f0] sm:$0xff]  ;;  %v182_v57 = vld [vmem:[#allocation2 + $0x4d8] sm:$0xff] }
 0x12f   :  { %3997 = vmatpush1.bf16.msra.mxu0 %v7963_v12  ;;  %4161 = vmatpush1.bf16.msra.mxu1 %v7965_v13  ;;  %v146_v12 = vld [vmem:[#allocation2 + $0x3b8] sm:$0xff]  ;;  %v8019_v13 = vcombine.low %v133_v1, %v137_v29  ;;  %v189_v29 = vld [vmem:[#allocation2 + $0x510] sm:$0xff] }
 0x130   :  { %3998 = vmatprep.subr.bf16.mxu0 %v7972_v14  ;;  %4162 = vmatprep.subr.bf16.mxu1 %v7974_v15  ;;  %v8021_v14 = vcombine.low %v134_v2, %v138_v4  ;;  %v8028_v15 = vcombine.high %v141_v9, %v145_v10  ;;  %v8030_v16 = vcombine.high %v142_v11, %v146_v12  ;;  %v193_v2 = vld [vmem:[#allocation2 + $0x530] sm:$0xff]  ;;  %v190_v4 = vld [vmem:[#allocation2 + $0x518] sm:$0xff] }
 0x133   :  { %3999 = vmatpush1.bf16.msra.mxu0 %v7971_v20  ;;  %4163 = vmatpush1.bf16.msra.mxu1 %v7973_v21  ;;  %v154_v20 = vld [vmem:[#allocation2 + $0x3f8] sm:$0xff]  ;;  %v8027_v21 = vcombine.low %v141_v9, %v145_v10  ;;  %v197_v10 = vld [vmem:[#allocation2 + $0x550] sm:$0xff] }
 0x134   :  { %4000 = vmatprep.subr.bf16.mxu0 %v7980_v22  ;;  %4164 = vmatprep.subr.bf16.mxu1 %v7982_v24  ;;  %v8029_v22 = vcombine.low %v142_v11, %v146_v12  ;;  %v8036_v24 = vcombine.high %v149_v17, %v153_v18  ;;  %v8038_v25 = vcombine.high %v150_v19, %v154_v20  ;;  %v201_v11 = vld [vmem:[#allocation2 + $0x570] sm:$0xff]  ;;  %v198_v12 = vld [vmem:[#allocation2 + $0x558] sm:$0xff] }
 0x137   :  { %4001 = vmatpush1.bf16.msra.mxu0 %v7979_v28  ;;  %4165 = vmatpush1.bf16.msra.mxu1 %v7981_v30  ;;  %v162_v28 = vld [vmem:[#allocation2 + $0x438] sm:$0xff]  ;;  %v8035_v30 = vcombine.low %v149_v17, %v153_v18  ;;  %v205_v18 = vld [vmem:[#allocation2 + $0x590] sm:$0xff] }
 0x138   :  { %4002 = vmatprep.subr.bf16.mxu0 %v7988_v32  ;;  %4166 = vmatprep.subr.bf16.mxu1 %v7990_v33  ;;  %v8037_v32 = vcombine.low %v150_v19, %v154_v20  ;;  %v8044_v33 = vcombine.high %v157_v26, %v161_v59  ;;  %v8046_v34 = vcombine.high %v158_v27, %v162_v28  ;;  %v209_v19 = vld [vmem:[#allocation2 + $0x5b0] sm:$0xff]  ;;  %v206_v20 = vld [vmem:[#allocation2 + $0x598] sm:$0xff] }
 0x13b   :  { %4003 = vmatpush1.bf16.msra.mxu0 %v7987_v39  ;;  %4167 = vmatpush1.bf16.msra.mxu1 %v7989_v40  ;;  %v170_v39 = vld [vmem:[#allocation2 + $0x478] sm:$0xff]  ;;  %v8043_v40 = vcombine.low %v157_v26, %v161_v59  ;;  %v213_v59 = vld [vmem:[#allocation2 + $0x5d0] sm:$0xff] }
 0x13c   :  { %4004 = vmatprep.subr.bf16.mxu0 %v7996_v41  ;;  %4168 = vmatprep.subr.bf16.mxu1 %v7998_v42  ;;  %v8045_v41 = vcombine.low %v158_v27, %v162_v28  ;;  %v8052_v42 = vcombine.high %v165_v35, %v169_v36  ;;  %v8054_v43 = vcombine.high %v166_v38, %v170_v39  ;;  %v217_v27 = vld [vmem:[#allocation2 + $0x5f0] sm:$0xff]  ;;  %v214_v28 = vld [vmem:[#allocation2 + $0x5d8] sm:$0xff] }
 0x13f   :  { %4005 = vmatpush1.bf16.msra.mxu0 %v7995_v49  ;;  %4169 = vmatpush1.bf16.msra.mxu1 %v7997_v50  ;;  %v178_v49 = vld [vmem:[#allocation2 + $0x4b8] sm:$0xff]  ;;  %v8051_v50 = vcombine.low %v165_v35, %v169_v36  ;;  %v221_v36 = vld [vmem:[#allocation2 + $0x610] sm:$0xff] }
 0x140   :  { %4006 = vmatprep.subr.bf16.mxu0 %v8004_v51  ;;  %4170 = vmatprep.subr.bf16.mxu1 %v8006_v52  ;;  %v8053_v51 = vcombine.low %v166_v38, %v170_v39  ;;  %v8060_v52 = vcombine.high %v173_v45, %v177_v46  ;;  %v8062_v54 = vcombine.high %v174_v48, %v178_v49  ;;  %v225_v38 = vld [vmem:[#allocation2 + $0x630] sm:$0xff]  ;;  %v222_v39 = vld [vmem:[#allocation2 + $0x618] sm:$0xff] }
 0x143   :  { %4007 = vmatpush1.bf16.msra.mxu0 %v8003_v58  ;;  %4171 = vmatpush1.bf16.msra.mxu1 %v8005_v60  ;;  %v186_v58 = vld [vmem:[#allocation2 + $0x4f8] sm:$0xff]  ;;  %v8059_v60 = vcombine.low %v173_v45, %v177_v46  ;;  %v229_v46 = vld [vmem:[#allocation2 + $0x650] sm:$0xff] }
 0x144   :  { %4008 = vmatprep.subr.bf16.mxu0 %v8012_v62  ;;  %4172 = vmatprep.subr.bf16.mxu1 %v8014_v0  ;;  %v8061_v62 = vcombine.low %v174_v48, %v178_v49  ;;  %v8068_v0 = vcombine.high %v181_v55, %v185_v56  ;;  %v8070_v1 = vcombine.high %v182_v57, %v186_v58  ;;  %v233_v48 = vld [vmem:[#allocation2 + $0x670] sm:$0xff]  ;;  %v230_v49 = vld [vmem:[#allocation2 + $0x658] sm:$0xff] }
 0x147   :  { %4009 = vmatpush1.bf16.msra.mxu0 %v8011_v5  ;;  %4173 = vmatpush1.bf16.msra.mxu1 %v8013_v6  ;;  %v194_v5 = vld [vmem:[#allocation2 + $0x538] sm:$0xff]  ;;  %v8067_v6 = vcombine.low %v181_v55, %v185_v56  ;;  %v237_v56 = vld [vmem:[#allocation2 + $0x690] sm:$0xff] }
 0x148   :  { %4010 = vmatprep.subr.bf16.mxu0 %v8020_v53  ;;  %4174 = vmatprep.subr.bf16.mxu1 %v8022_v8  ;;  %v8069_v53 = vcombine.low %v182_v57, %v186_v58  ;;  %v8076_v8 = vcombine.high %v189_v29, %v193_v2  ;;  %v8078_v9 = vcombine.high %v190_v4, %v194_v5  ;;  %v241_v57 = vld [vmem:[#allocation2 + $0x6b0] sm:$0xff]  ;;  %v238_v58 = vld [vmem:[#allocation2 + $0x698] sm:$0xff] }
 0x14b   :  { %4011 = vmatpush1.bf16.msra.mxu0 %v8019_v13  ;;  %4175 = vmatpush1.bf16.msra.mxu1 %v8021_v14  ;;  %v202_v13 = vld [vmem:[#allocation2 + $0x578] sm:$0xff]  ;;  %v8075_v14 = vcombine.low %v189_v29, %v193_v2  ;;  %v245_v2 = vld [vmem:[#allocation2 + $0x6d0] sm:$0xff] }
 0x14c   :  { %4012 = vmatprep.subr.bf16.mxu0 %v8028_v15  ;;  %4176 = vmatprep.subr.bf16.mxu1 %v8030_v16  ;;  %v8077_v15 = vcombine.low %v190_v4, %v194_v5  ;;  %v8084_v16 = vcombine.high %v197_v10, %v201_v11  ;;  %v8086_v17 = vcombine.high %v198_v12, %v202_v13  ;;  %v249_v4 = vld [vmem:[#allocation2 + $0x6f0] sm:$0xff]  ;;  %v246_v5 = vld [vmem:[#allocation2 + $0x6d8] sm:$0xff] }
 0x14f   :  { %4013 = vmatpush1.bf16.msra.mxu0 %v8027_v21  ;;  %4177 = vmatpush1.bf16.msra.mxu1 %v8029_v22  ;;  %v210_v21 = vld [vmem:[#allocation2 + $0x5b8] sm:$0xff]  ;;  %v8083_v22 = vcombine.low %v197_v10, %v201_v11  ;;  %v253_v11 = vld [vmem:[#allocation2 + $0x710] sm:$0xff] }
 0x150   :  { %4014 = vmatprep.subr.bf16.mxu0 %v8036_v24  ;;  %4178 = vmatprep.subr.bf16.mxu1 %v8038_v25  ;;  %v8085_v24 = vcombine.low %v198_v12, %v202_v13  ;;  %v8092_v25 = vcombine.high %v205_v18, %v209_v19  ;;  %v8094_v26 = vcombine.high %v206_v20, %v210_v21  ;;  %v257_v12 = vld [vmem:[#allocation2 + $0x730] sm:$0xff]  ;;  %v254_v13 = vld [vmem:[#allocation2 + $0x718] sm:$0xff] }
 0x153   :  { %4015 = vmatpush1.bf16.msra.mxu0 %v8035_v30  ;;  %4179 = vmatpush1.bf16.msra.mxu1 %v8037_v32  ;;  %v218_v30 = vld [vmem:[#allocation2 + $0x5f8] sm:$0xff]  ;;  %v8091_v32 = vcombine.low %v205_v18, %v209_v19  ;;  %v261_v19 = vld [vmem:[#allocation2 + $0x750] sm:$0xff] }
 0x154   :  { %4025 = vmatprep.subr.bf16.mxu0 %v8044_v33  ;;  %4189 = vmatprep.subr.bf16.mxu1 %v8046_v34  ;;  %v8093_v33 = vcombine.low %v206_v20, %v210_v21  ;;  %v8100_v34 = vcombine.high %v213_v59, %v217_v27  ;;  %v8102_v35 = vcombine.high %v214_v28, %v218_v30  ;;  %v265_v20 = vld [vmem:[#allocation2 + $0x770] sm:$0xff]  ;;  %v262_v21 = vld [vmem:[#allocation2 + $0x758] sm:$0xff] }
 0x156   :  { %4017 = vmatmul.mubr.bf16.vlgmr.msra.gmra.mrb[4].mxu0 %v9109_v63  ;;  %4181 = vmatmul.mubr.bf16.vlgmr.msra.gmra.mrb[4].mxu1 %v9109_v63 }
 0x157   :  { %4026 = vmatpush1.bf16.msra.mxu0 %v8043_v40  ;;  %4190 = vmatpush1.bf16.msra.mxu1 %v8045_v41  ;;  %v226_v40 = vld [vmem:[#allocation2 + $0x638] sm:$0xff]  ;;  %v8099_v41 = vcombine.low %v213_v59, %v217_v27  ;;  %v269_v27 = vld [vmem:[#allocation2 + $0x790] sm:$0xff] }
 0x158   :  { %4027 = vmatprep.subr.bf16.mxu0 %v8052_v42  ;;  %4191 = vmatprep.subr.bf16.mxu1 %v8054_v43  ;;  %v8101_v42 = vcombine.low %v214_v28, %v218_v30  ;;  %v8108_v43 = vcombine.high %v221_v36, %v225_v38  ;;  %v8110_v45 = vcombine.high %v222_v39, %v226_v40  ;;  %v273_v28 = vld [vmem:[#allocation2 + $0x7b0] sm:$0xff]  ;;  %v270_v30 = vld [vmem:[#allocation2 + $0x798] sm:$0xff] }
 0x159   :  { %4057 = vmatprep.mubr.bf16.mxu0 %v9124_v31  ;;  %4221 = vmatprep.mubr.bf16.mxu1 %v9124_v31 }
 0x15b   :  { %4028 = vmatpush1.bf16.msra.mxu0 %v8051_v50  ;;  %4192 = vmatpush1.bf16.msra.mxu1 %v8053_v51  ;;  %v234_v50 = vld [vmem:[#allocation2 + $0x678] sm:$0xff]  ;;  %v8107_v51 = vcombine.low %v221_v36, %v225_v38  ;;  %v277_v38 = vld [vmem:[#allocation2 + $0x7d0] sm:$0xff] }
 0x15c   :  { %4029 = vmatprep.subr.bf16.mxu0 %v8060_v52  ;;  %4193 = vmatprep.subr.bf16.mxu1 %v8062_v54  ;;  %v8109_v52 = vcombine.low %v222_v39, %v226_v40  ;;  %v8116_v54 = vcombine.high %v229_v46, %v233_v48  ;;  %v8118_v55 = vcombine.high %v230_v49, %v234_v50  ;;  %v281_v39 = vld [vmem:[#allocation2 + $0x7f0] sm:$0xff]  ;;  %v278_v40 = vld [vmem:[#allocation2 + $0x7d8] sm:$0xff] }
 0x15f   :  { %4030 = vmatpush1.bf16.msra.mxu0 %v8059_v60  ;;  %4194 = vmatpush1.bf16.msra.mxu1 %v8061_v62  ;;  %v242_v60 = vld [vmem:[#allocation2 + $0x6b8] sm:$0xff]  ;;  %v8115_v62 = vcombine.low %v229_v46, %v233_v48  ;;  %v285_v48 = vld [vmem:[#allocation2 + $0x810] sm:$0xff] }
 0x160   :  { %4031 = vmatprep.subr.bf16.mxu0 %v8068_v0  ;;  %4195 = vmatprep.subr.bf16.mxu1 %v8070_v1  ;;  %v8117_v0 = vcombine.low %v230_v49, %v234_v50  ;;  %v8124_v1 = vcombine.high %v237_v56, %v241_v57  ;;  %v8126_v29 = vcombine.high %v238_v58, %v242_v60  ;;  %v289_v49 = vld [vmem:[#allocation2 + $0x830] sm:$0xff]  ;;  %v286_v50 = vld [vmem:[#allocation2 + $0x818] sm:$0xff] }
 0x163   :  { %4032 = vmatpush1.bf16.msra.mxu0 %v8067_v6  ;;  %4196 = vmatpush1.bf16.msra.mxu1 %v8069_v53  ;;  %v250_v6 = vld [vmem:[#allocation2 + $0x6f8] sm:$0xff]  ;;  %v8123_v53 = vcombine.low %v237_v56, %v241_v57  ;;  %v293_v57 = vld [vmem:[#allocation2 + $0x850] sm:$0xff] }
 0x164   :  { %4033 = vmatprep.subr.bf16.mxu0 %v8076_v8  ;;  %4197 = vmatprep.subr.bf16.mxu1 %v8078_v9  ;;  %v8125_v8 = vcombine.low %v238_v58, %v242_v60  ;;  %v8132_v9 = vcombine.high %v245_v2, %v249_v4  ;;  %v8134_v10 = vcombine.high %v246_v5, %v250_v6  ;;  %v297_v58 = vld [vmem:[#allocation2 + $0x870] sm:$0xff]  ;;  %v294_v60 = vld [vmem:[#allocation2 + $0x858] sm:$0xff] }
 0x167   :  { %4034 = vmatpush1.bf16.msra.mxu0 %v8075_v14  ;;  %4198 = vmatpush1.bf16.msra.mxu1 %v8077_v15  ;;  %v258_v14 = vld [vmem:[#allocation2 + $0x738] sm:$0xff]  ;;  %v8131_v15 = vcombine.low %v245_v2, %v249_v4  ;;  %v301_v4 = vld [vmem:[#allocation2 + $0x890] sm:$0xff] }
 0x168   :  { %4035 = vmatprep.subr.bf16.mxu0 %v8084_v16  ;;  %4199 = vmatprep.subr.bf16.mxu1 %v8086_v17  ;;  %v8133_v16 = vcombine.low %v246_v5, %v250_v6  ;;  %v8140_v17 = vcombine.high %v253_v11, %v257_v12  ;;  %v8142_v18 = vcombine.high %v254_v13, %v258_v14  ;;  %v305_v5 = vld [vmem:[#allocation2 + $0x8b0] sm:$0xff]  ;;  %v302_v6 = vld [vmem:[#allocation2 + $0x898] sm:$0xff] }
 0x16b   :  { %4036 = vmatpush1.bf16.msra.mxu0 %v8083_v22  ;;  %4200 = vmatpush1.bf16.msra.mxu1 %v8085_v24  ;;  %v266_v22 = vld [vmem:[#allocation2 + $0x778] sm:$0xff]  ;;  %v8139_v24 = vcombine.low %v253_v11, %v257_v12  ;;  %v309_v12 = vld [vmem:[#allocation2 + $0x8d0] sm:$0xff] }
 0x16c   :  { %4037 = vmatprep.subr.bf16.mxu0 %v8092_v25  ;;  %4201 = vmatprep.subr.bf16.mxu1 %v8094_v26  ;;  %v8141_v25 = vcombine.low %v254_v13, %v258_v14  ;;  %v8148_v26 = vcombine.high %v261_v19, %v265_v20  ;;  %v8150_v59 = vcombine.high %v262_v21, %v266_v22  ;;  %v313_v13 = vld [vmem:[#allocation2 + $0x8f0] sm:$0xff]  ;;  %v310_v14 = vld [vmem:[#allocation2 + $0x8d8] sm:$0xff] }
 0x16f   :  { %4038 = vmatpush1.bf16.msra.mxu0 %v8091_v32  ;;  %4202 = vmatpush1.bf16.msra.mxu1 %v8093_v33  ;;  %v274_v32 = vld [vmem:[#allocation2 + $0x7b8] sm:$0xff]  ;;  %v8147_v33 = vcombine.low %v261_v19, %v265_v20  ;;  %v317_v20 = vld [vmem:[#allocation2 + $0x910] sm:$0xff] }
 0x170   :  { %4039 = vmatprep.subr.bf16.mxu0 %v8100_v34  ;;  %4203 = vmatprep.subr.bf16.mxu1 %v8102_v35  ;;  %v8149_v34 = vcombine.low %v262_v21, %v266_v22  ;;  %v8156_v35 = vcombine.high %v269_v27, %v273_v28  ;;  %v8158_v36 = vcombine.high %v270_v30, %v274_v32  ;;  %v321_v21 = vld [vmem:[#allocation2 + $0x930] sm:$0xff]  ;;  %v318_v22 = vld [vmem:[#allocation2 + $0x918] sm:$0xff] }
 0x173   :  { %4040 = vmatpush1.bf16.msra.mxu0 %v8099_v41  ;;  %4204 = vmatpush1.bf16.msra.mxu1 %v8101_v42  ;;  %v282_v41 = vld [vmem:[#allocation2 + $0x7f8] sm:$0xff]  ;;  %v8155_v42 = vcombine.low %v269_v27, %v273_v28  ;;  %v325_v28 = vld [vmem:[#allocation2 + $0x950] sm:$0xff] }
 0x174   :  { %4041 = vmatprep.subr.bf16.mxu0 %v8108_v43  ;;  %4205 = vmatprep.subr.bf16.mxu1 %v8110_v45  ;;  %v8157_v43 = vcombine.low %v270_v30, %v274_v32  ;;  %v8164_v45 = vcombine.high %v277_v38, %v281_v39  ;;  %v8166_v46 = vcombine.high %v278_v40, %v282_v41  ;;  %v329_v30 = vld [vmem:[#allocation2 + $0x970] sm:$0xff]  ;;  %v326_v32 = vld [vmem:[#allocation2 + $0x958] sm:$0xff] }
 0x177   :  { %4042 = vmatpush1.bf16.msra.mxu0 %v8107_v51  ;;  %4206 = vmatpush1.bf16.msra.mxu1 %v8109_v52  ;;  %v290_v51 = vld [vmem:[#allocation2 + $0x838] sm:$0xff]  ;;  %v8163_v52 = vcombine.low %v277_v38, %v281_v39  ;;  %v333_v39 = vld [vmem:[#allocation2 + $0x990] sm:$0xff] }
 0x178   :  { %4043 = vmatprep.subr.bf16.mxu0 %v8116_v54  ;;  %4207 = vmatprep.subr.bf16.mxu1 %v8118_v55  ;;  %v8165_v54 = vcombine.low %v278_v40, %v282_v41  ;;  %v8172_v55 = vcombine.high %v285_v48, %v289_v49  ;;  %v8174_v56 = vcombine.high %v286_v50, %v290_v51  ;;  %v337_v40 = vld [vmem:[#allocation2 + $0x9b0] sm:$0xff]  ;;  %v334_v41 = vld [vmem:[#allocation2 + $0x998] sm:$0xff] }
 0x17b   :  { %4044 = vmatpush1.bf16.msra.mxu0 %v8115_v62  ;;  %4208 = vmatpush1.bf16.msra.mxu1 %v8117_v0  ;;  %v298_v62 = vld [vmem:[#allocation2 + $0x878] sm:$0xff]  ;;  %v8171_v0 = vcombine.low %v285_v48, %v289_v49  ;;  %v341_v49 = vld [vmem:[#allocation2 + $0x9d0] sm:$0xff] }
 0x17c   :  { %4045 = vmatprep.subr.bf16.mxu0 %v8124_v1  ;;  %4209 = vmatprep.subr.bf16.mxu1 %v8126_v29  ;;  %v8173_v1 = vcombine.low %v286_v50, %v290_v51  ;;  %v8180_v29 = vcombine.high %v293_v57, %v297_v58  ;;  %v8182_v2 = vcombine.high %v294_v60, %v298_v62  ;;  %v345_v50 = vld [vmem:[#allocation2 + $0x9f0] sm:$0xff]  ;;  %v342_v51 = vld [vmem:[#allocation2 + $0x9d8] sm:$0xff] }
 0x17f   :  { %4046 = vmatpush1.bf16.msra.mxu0 %v8123_v53  ;;  %4210 = vmatpush1.bf16.msra.mxu1 %v8125_v8  ;;  %v306_v53 = vld [vmem:[#allocation2 + $0x8b8] sm:$0xff]  ;;  %v8179_v8 = vcombine.low %v293_v57, %v297_v58  ;;  %v349_v58 = vld [vmem:[#allocation2 + $0xa10] sm:$0xff] }
 0x180   :  { %4047 = vmatprep.subr.bf16.mxu0 %v8132_v9  ;;  %4211 = vmatprep.subr.bf16.mxu1 %v8134_v10  ;;  %v8181_v9 = vcombine.low %v294_v60, %v298_v62  ;;  %v8188_v10 = vcombine.high %v301_v4, %v305_v5  ;;  %v8190_v11 = vcombine.high %v302_v6, %v306_v53  ;;  %v353_v60 = vld [vmem:[#allocation2 + $0xa30] sm:$0xff]  ;;  %v350_v62 = vld [vmem:[#allocation2 + $0xa18] sm:$0xff] }
 0x183   :  { %4048 = vmatpush1.bf16.msra.mxu0 %v8131_v15  ;;  %4212 = vmatpush1.bf16.msra.mxu1 %v8133_v16  ;;  %v314_v15 = vld [vmem:[#allocation2 + $0x8f8] sm:$0xff]  ;;  %v8187_v16 = vcombine.low %v301_v4, %v305_v5  ;;  %v357_v5 = vld [vmem:[#allocation2 + $0xa50] sm:$0xff] }
 0x184   :  { %4049 = vmatprep.subr.bf16.mxu0 %v8140_v17  ;;  %4213 = vmatprep.subr.bf16.mxu1 %v8142_v18  ;;  %v8189_v17 = vcombine.low %v302_v6, %v306_v53  ;;  %v8196_v18 = vcombine.high %v309_v12, %v313_v13  ;;  %v8198_v19 = vcombine.high %v310_v14, %v314_v15  ;;  %v361_v6 = vld [vmem:[#allocation2 + $0xa70] sm:$0xff]  ;;  %v358_v53 = vld [vmem:[#allocation2 + $0xa58] sm:$0xff] }
 0x187   :  { %4050 = vmatpush1.bf16.msra.mxu0 %v8139_v24  ;;  %4214 = vmatpush1.bf16.msra.mxu1 %v8141_v25  ;;  %v322_v24 = vld [vmem:[#allocation2 + $0x938] sm:$0xff]  ;;  %v8195_v25 = vcombine.low %v309_v12, %v313_v13  ;;  %v365_v13 = vld [vmem:[#allocation2 + $0xa90] sm:$0xff] }
 0x188   :  { %4051 = vmatprep.subr.bf16.mxu0 %v8148_v26  ;;  %4215 = vmatprep.subr.bf16.mxu1 %v8150_v59  ;;  %v8197_v26 = vcombine.low %v310_v14, %v314_v15  ;;  %v8204_v59 = vcombine.high %v317_v20, %v321_v21  ;;  %v8206_v27 = vcombine.high %v318_v22, %v322_v24  ;;  %v369_v14 = vld [vmem:[#allocation2 + $0xab0] sm:$0xff]  ;;  %v366_v15 = vld [vmem:[#allocation2 + $0xa98] sm:$0xff] }
 0x18b   :  { %4052 = vmatpush1.bf16.msra.mxu0 %v8147_v33  ;;  %4216 = vmatpush1.bf16.msra.mxu1 %v8149_v34  ;;  %v330_v33 = vld [vmem:[#allocation2 + $0x978] sm:$0xff]  ;;  %v8203_v34 = vcombine.low %v317_v20, %v321_v21  ;;  %v373_v21 = vld [vmem:[#allocation2 + $0xad0] sm:$0xff] }
 0x18c   :  { %4053 = vmatprep.subr.bf16.mxu0 %v8156_v35  ;;  %4217 = vmatprep.subr.bf16.mxu1 %v8158_v36  ;;  %v8205_v35 = vcombine.low %v318_v22, %v322_v24  ;;  %v8212_v36 = vcombine.high %v325_v28, %v329_v30  ;;  %v8214_v38 = vcombine.high %v326_v32, %v330_v33  ;;  %v377_v22 = vld [vmem:[#allocation2 + $0xaf0] sm:$0xff]  ;;  %v374_v24 = vld [vmem:[#allocation2 + $0xad8] sm:$0xff] }
 0x18f   :  { %4054 = vmatpush1.bf16.msra.mxu0 %v8155_v42  ;;  %4218 = vmatpush1.bf16.msra.mxu1 %v8157_v43  ;;  %v338_v42 = vld [vmem:[#allocation2 + $0x9b8] sm:$0xff]  ;;  %v8211_v43 = vcombine.low %v325_v28, %v329_v30  ;;  %v381_v30 = vld [vmem:[#allocation2 + $0xb10] sm:$0xff] }
 0x190   :  { %4055 = vmatprep.subr.bf16.mxu0 %v8164_v45  ;;  %4219 = vmatprep.subr.bf16.mxu1 %v8166_v46  ;;  %v8213_v45 = vcombine.low %v326_v32, %v330_v33  ;;  %v8220_v46 = vcombine.high %v333_v39, %v337_v40  ;;  %v8222_v48 = vcombine.high %v334_v41, %v338_v42  ;;  %v385_v32 = vld [vmem:[#allocation2 + $0xb30] sm:$0xff]  ;;  %v382_v33 = vld [vmem:[#allocation2 + $0xb18] sm:$0xff] }
 0x193   :  { %4056 = vmatpush1.bf16.msra.mxu0 %v8163_v52  ;;  %4220 = vmatpush1.bf16.msra.mxu1 %v8165_v54  ;;  %v346_v52 = vld [vmem:[#allocation2 + $0x9f8] sm:$0xff]  ;;  %v8219_v54 = vcombine.low %v333_v39, %v337_v40  ;;  %v389_v40 = vld [vmem:[#allocation2 + $0xb50] sm:$0xff] }
 0x194   :  { %4066 = vmatprep.subr.bf16.mxu0 %v8172_v55  ;;  %4230 = vmatprep.subr.bf16.mxu1 %v8174_v56  ;;  %v8221_v55 = vcombine.low %v334_v41, %v338_v42  ;;  %v8228_v56 = vcombine.high %v341_v49, %v345_v50  ;;  %v8230_v57 = vcombine.high %v342_v51, %v346_v52  ;;  %v393_v41 = vld [vmem:[#allocation2 + $0xb70] sm:$0xff]  ;;  %v390_v42 = vld [vmem:[#allocation2 + $0xb58] sm:$0xff] }
 0x196   :  { %4058 = vmatmul.mubr.bf16.vlgmr.msra.gmra.mrb[4].mxu0 %v9120_v23  ;;  %4222 = vmatmul.mubr.bf16.vlgmr.msra.gmra.mrb[4].mxu1 %v9120_v23 }
 0x197   :  { %4067 = vmatpush1.bf16.msra.mxu0 %v8171_v0  ;;  %4231 = vmatpush1.bf16.msra.mxu1 %v8173_v1  ;;  %v354_v0 = vld [vmem:[#allocation2 + $0xa38] sm:$0xff]  ;;  %v8227_v1 = vcombine.low %v341_v49, %v345_v50  ;;  %v397_v50 = vld [vmem:[#allocation2 + $0xb90] sm:$0xff] }
 0x198   :  { %4068 = vmatprep.subr.bf16.mxu0 %v8180_v29  ;;  %4232 = vmatprep.subr.bf16.mxu1 %v8182_v2  ;;  %v8229_v29 = vcombine.low %v342_v51, %v346_v52  ;;  %v8236_v2 = vcombine.high %v349_v58, %v353_v60  ;;  %v8238_v4 = vcombine.high %v350_v62, %v354_v0  ;;  %v401_v51 = vld [vmem:[#allocation2 + $0xbb0] sm:$0xff]  ;;  %v398_v52 = vld [vmem:[#allocation2 + $0xb98] sm:$0xff] }
 0x199   :  { %4098 = vmatprep.mubr.bf16.mxu0 %v9141_v47  ;;  %4262 = vmatprep.mubr.bf16.mxu1 %v9141_v47 }
 0x19b   :  { %4069 = vmatpush1.bf16.msra.mxu0 %v8179_v8  ;;  %4233 = vmatpush1.bf16.msra.mxu1 %v8181_v9  ;;  %v362_v8 = vld [vmem:[#allocation2 + $0xa78] sm:$0xff]  ;;  %v8235_v9 = vcombine.low %v349_v58, %v353_v60  ;;  %v405_v60 = vld [vmem:[#allocation2 + $0xbd0] sm:$0xff] }
 0x19c   :  { %4070 = vmatprep.subr.bf16.mxu0 %v8188_v10  ;;  %4234 = vmatprep.subr.bf16.mxu1 %v8190_v11  ;;  %v8237_v10 = vcombine.low %v350_v62, %v354_v0  ;;  %v8244_v11 = vcombine.high %v357_v5, %v361_v6  ;;  %v8246_v12 = vcombine.high %v358_v53, %v362_v8  ;;  %v409_v62 = vld [vmem:[#allocation2 + $0xbf0] sm:$0xff]  ;;  %v406_v0 = vld [vmem:[#allocation2 + $0xbd8] sm:$0xff] }
 0x19f   :  { %4071 = vmatpush1.bf16.msra.mxu0 %v8187_v16  ;;  %4235 = vmatpush1.bf16.msra.mxu1 %v8189_v17  ;;  %v370_v16 = vld [vmem:[#allocation2 + $0xab8] sm:$0xff]  ;;  %v8243_v17 = vcombine.low %v357_v5, %v361_v6  ;;  %v413_v6 = vld [vmem:[#allocation2 + $0xc10] sm:$0xff] }
 0x1a0   :  { %4072 = vmatprep.subr.bf16.mxu0 %v8196_v18  ;;  %4236 = vmatprep.subr.bf16.mxu1 %v8198_v19  ;;  %v8245_v18 = vcombine.low %v358_v53, %v362_v8  ;;  %v8252_v19 = vcombine.high %v365_v13, %v369_v14  ;;  %v8254_v20 = vcombine.high %v366_v15, %v370_v16  ;;  %v417_v53 = vld [vmem:[#allocation2 + $0xc30] sm:$0xff]  ;;  %v414_v8 = vld [vmem:[#allocation2 + $0xc18] sm:$0xff] }
 0x1a3   :  { %4073 = vmatpush1.bf16.msra.mxu0 %v8195_v25  ;;  %4237 = vmatpush1.bf16.msra.mxu1 %v8197_v26  ;;  %v378_v25 = vld [vmem:[#allocation2 + $0xaf8] sm:$0xff]  ;;  %v8251_v26 = vcombine.low %v365_v13, %v369_v14  ;;  %v421_v14 = vld [vmem:[#allocation2 + $0xc50] sm:$0xff] }
 0x1a4   :  { %4074 = vmatprep.subr.bf16.mxu0 %v8204_v59  ;;  %4238 = vmatprep.subr.bf16.mxu1 %v8206_v27  ;;  %v8253_v59 = vcombine.low %v366_v15, %v370_v16  ;;  %v8260_v27 = vcombine.high %v373_v21, %v377_v22  ;;  %v8262_v28 = vcombine.high %v374_v24, %v378_v25  ;;  %v425_v15 = vld [vmem:[#allocation2 + $0xc70] sm:$0xff]  ;;  %v422_v16 = vld [vmem:[#allocation2 + $0xc58] sm:$0xff] }
 0x1a7   :  { %4075 = vmatpush1.bf16.msra.mxu0 %v8203_v34  ;;  %4239 = vmatpush1.bf16.msra.mxu1 %v8205_v35  ;;  %v386_v34 = vld [vmem:[#allocation2 + $0xb38] sm:$0xff]  ;;  %v8259_v35 = vcombine.low %v373_v21, %v377_v22  ;;  %v429_v22 = vld [vmem:[#allocation2 + $0xc90] sm:$0xff] }
 0x1a8   :  { %4076 = vmatprep.subr.bf16.mxu0 %v8212_v36  ;;  %4240 = vmatprep.subr.bf16.mxu1 %v8214_v38  ;;  %v8261_v36 = vcombine.low %v374_v24, %v378_v25  ;;  %v8268_v38 = vcombine.high %v381_v30, %v385_v32  ;;  %v8270_v39 = vcombine.high %v382_v33, %v386_v34  ;;  %v433_v24 = vld [vmem:[#allocation2 + $0xcb0] sm:$0xff]  ;;  %v430_v25 = vld [vmem:[#allocation2 + $0xc98] sm:$0xff] }
 0x1ab   :  { %4077 = vmatpush1.bf16.msra.mxu0 %v8211_v43  ;;  %4241 = vmatpush1.bf16.msra.mxu1 %v8213_v45  ;;  %v394_v43 = vld [vmem:[#allocation2 + $0xb78] sm:$0xff]  ;;  %v8267_v45 = vcombine.low %v381_v30, %v385_v32  ;;  %v437_v32 = vld [vmem:[#allocation2 + $0xcd0] sm:$0xff] }
 0x1ac   :  { %4078 = vmatprep.subr.bf16.mxu0 %v8220_v46  ;;  %4242 = vmatprep.subr.bf16.mxu1 %v8222_v48  ;;  %v8269_v46 = vcombine.low %v382_v33, %v386_v34  ;;  %v8276_v48 = vcombine.high %v389_v40, %v393_v41  ;;  %v8278_v49 = vcombine.high %v390_v42, %v394_v43  ;;  %v441_v33 = vld [vmem:[#allocation2 + $0xcf0] sm:$0xff]  ;;  %v438_v34 = vld [vmem:[#allocation2 + $0xcd8] sm:$0xff] }
 0x1af   :  { %4079 = vmatpush1.bf16.msra.mxu0 %v8219_v54  ;;  %4243 = vmatpush1.bf16.msra.mxu1 %v8221_v55  ;;  %v402_v54 = vld [vmem:[#allocation2 + $0xbb8] sm:$0xff]  ;;  %v8275_v55 = vcombine.low %v389_v40, %v393_v41  ;;  %v445_v41 = vld [vmem:[#allocation2 + $0xd10] sm:$0xff] }
 0x1b0   :  { %4080 = vmatprep.subr.bf16.mxu0 %v8228_v56  ;;  %4244 = vmatprep.subr.bf16.mxu1 %v8230_v57  ;;  %v8277_v56 = vcombine.low %v390_v42, %v394_v43  ;;  %v8284_v57 = vcombine.high %v397_v50, %v401_v51  ;;  %v8286_v58 = vcombine.high %v398_v52, %v402_v54  ;;  %v449_v42 = vld [vmem:[#allocation2 + $0xd30] sm:$0xff]  ;;  %v446_v43 = vld [vmem:[#allocation2 + $0xd18] sm:$0xff] }
 0x1b3   :  { %4081 = vmatpush1.bf16.msra.mxu0 %v8227_v1  ;;  %4245 = vmatpush1.bf16.msra.mxu1 %v8229_v29  ;;  %v410_v1 = vld [vmem:[#allocation2 + $0xbf8] sm:$0xff]  ;;  %v8283_v29 = vcombine.low %v397_v50, %v401_v51  ;;  %v453_v51 = vld [vmem:[#allocation2 + $0xd50] sm:$0xff] }
 0x1b4   :  { %4082 = vmatprep.subr.bf16.mxu0 %v8236_v2  ;;  %4246 = vmatprep.subr.bf16.mxu1 %v8238_v4  ;;  %v8285_v2 = vcombine.low %v398_v52, %v402_v54  ;;  %v8292_v4 = vcombine.high %v405_v60, %v409_v62  ;;  %v8294_v5 = vcombine.high %v406_v0, %v410_v1  ;;  %v457_v52 = vld [vmem:[#allocation2 + $0xd70] sm:$0xff]  ;;  %v454_v54 = vld [vmem:[#allocation2 + $0xd58] sm:$0xff] }
 0x1b7   :  { %4083 = vmatpush1.bf16.msra.mxu0 %v8235_v9  ;;  %4247 = vmatpush1.bf16.msra.mxu1 %v8237_v10  ;;  %v418_v9 = vld [vmem:[#allocation2 + $0xc38] sm:$0xff]  ;;  %v8291_v10 = vcombine.low %v405_v60, %v409_v62  ;;  %v461_v62 = vld [vmem:[#allocation2 + $0xd90] sm:$0xff] }
 0x1b8   :  { %4084 = vmatprep.subr.bf16.mxu0 %v8244_v11  ;;  %4248 = vmatprep.subr.bf16.mxu1 %v8246_v12  ;;  %v8293_v11 = vcombine.low %v406_v0, %v410_v1  ;;  %v8300_v12 = vcombine.high %v413_v6, %v417_v53  ;;  %v8302_v13 = vcombine.high %v414_v8, %v418_v9  ;;  %v465_v0 = vld [vmem:[#allocation2 + $0xdb0] sm:$0xff]  ;;  %v462_v1 = vld [vmem:[#allocation2 + $0xd98] sm:$0xff] }
 0x1bb   :  { %4085 = vmatpush1.bf16.msra.mxu0 %v8243_v17  ;;  %4249 = vmatpush1.bf16.msra.mxu1 %v8245_v18  ;;  %v426_v17 = vld [vmem:[#allocation2 + $0xc78] sm:$0xff]  ;;  %v8299_v18 = vcombine.low %v413_v6, %v417_v53 }
 0x1bc   :  { %4086 = vmatprep.subr.bf16.mxu0 %v8252_v19  ;;  %4250 = vmatprep.subr.bf16.mxu1 %v8254_v20  ;;  %v8301_v19 = vcombine.low %v414_v8, %v418_v9  ;;  %v8308_v20 = vcombine.high %v421_v14, %v425_v15  ;;  %v8310_v21 = vcombine.high %v422_v16, %v426_v17  ;;  %v469_v8 = vld [vmem:[#allocation2 + $0xdd0] sm:$0xff] }
 0x1bd   :  { %v473_v9 = vld [vmem:[#allocation2 + $0xdf0] sm:$0xff] }
 0x1bf   :  { %4087 = vmatpush1.bf16.msra.mxu0 %v8251_v26  ;;  %4251 = vmatpush1.bf16.msra.mxu1 %v8253_v59  ;;  %v434_v26 = vld [vmem:[#allocation2 + $0xcb8] sm:$0xff]  ;;  %v8307_v59 = vcombine.low %v421_v14, %v425_v15 }
 0x1c0   :  { %4088 = vmatprep.subr.bf16.mxu0 %v8260_v27  ;;  %4252 = vmatprep.subr.bf16.mxu1 %v8262_v28  ;;  %v8309_v27 = vcombine.low %v422_v16, %v426_v17  ;;  %v8316_v28 = vcombine.high %v429_v22, %v433_v24  ;;  %v8318_v30 = vcombine.high %v430_v25, %v434_v26 }
 0x1c1   :  { %v8347_v16 = vcombine.low %v461_v62, %v465_v0 }
 0x1c3   :  { %4089 = vmatpush1.bf16.msra.mxu0 %v8259_v35  ;;  %4253 = vmatpush1.bf16.msra.mxu1 %v8261_v36  ;;  %v442_v35 = vld [vmem:[#allocation2 + $0xcf8] sm:$0xff]  ;;  %v8315_v36 = vcombine.low %v429_v22, %v433_v24  ;;  %v477_v24 = vld [vmem:[#allocation2 + $0xe10] sm:$0xff] }
 0x1c4   :  { %4090 = vmatprep.subr.bf16.mxu0 %v8268_v38  ;;  %4254 = vmatprep.subr.bf16.mxu1 %v8270_v39  ;;  %v8317_v38 = vcombine.low %v430_v25, %v434_v26  ;;  %v8324_v39 = vcombine.high %v437_v32, %v441_v33  ;;  %v8326_v40 = vcombine.high %v438_v34, %v442_v35  ;;  %v481_v25 = vld [vmem:[#allocation2 + $0xe30] sm:$0xff]  ;;  %v478_v26 = vld [vmem:[#allocation2 + $0xe18] sm:$0xff] }
 0x1c7   :  { %4091 = vmatpush1.bf16.msra.mxu0 %v8267_v45  ;;  %4255 = vmatpush1.bf16.msra.mxu1 %v8269_v46  ;;  %v450_v45 = vld [vmem:[#allocation2 + $0xd38] sm:$0xff]  ;;  %v8323_v46 = vcombine.low %v437_v32, %v441_v33  ;;  %v485_v33 = vld [vmem:[#allocation2 + $0xe50] sm:$0xff] }
 0x1c8   :  { %4092 = vmatprep.subr.bf16.mxu0 %v8276_v48  ;;  %4256 = vmatprep.subr.bf16.mxu1 %v8278_v49  ;;  %v8325_v48 = vcombine.low %v438_v34, %v442_v35  ;;  %v8332_v49 = vcombine.high %v445_v41, %v449_v42  ;;  %v8334_v50 = vcombine.high %v446_v43, %v450_v45  ;;  %v489_v34 = vld [vmem:[#allocation2 + $0xe70] sm:$0xff]  ;;  %v486_v35 = vld [vmem:[#allocation2 + $0xe58] sm:$0xff] }
 0x1cb   :  { %4093 = vmatpush1.bf16.msra.mxu0 %v8275_v55  ;;  %4257 = vmatpush1.bf16.msra.mxu1 %v8277_v56  ;;  %v458_v55 = vld [vmem:[#allocation2 + $0xd78] sm:$0xff]  ;;  %v8331_v56 = vcombine.low %v445_v41, %v449_v42  ;;  %v493_v42 = vld [vmem:[#allocation2 + $0xe90] sm:$0xff] }
 0x1cc   :  { %4094 = vmatprep.subr.bf16.mxu0 %v8284_v57  ;;  %4258 = vmatprep.subr.bf16.mxu1 %v8286_v58  ;;  %v8333_v57 = vcombine.low %v446_v43, %v450_v45  ;;  %v8340_v58 = vcombine.high %v453_v51, %v457_v52  ;;  %v8342_v60 = vcombine.high %v454_v54, %v458_v55  ;;  %v497_v43 = vld [vmem:[#allocation2 + $0xeb0] sm:$0xff]  ;;  %v494_v45 = vld [vmem:[#allocation2 + $0xe98] sm:$0xff] }
 0x1cf   :  { %4095 = vmatpush1.bf16.msra.mxu0 %v8283_v29  ;;  %4259 = vmatpush1.bf16.msra.mxu1 %v8285_v2  ;;  %v466_v29 = vld [vmem:[#allocation2 + $0xdb8] sm:$0xff]  ;;  %v8339_v2 = vcombine.low %v453_v51, %v457_v52  ;;  %v501_v52 = vld [vmem:[#allocation2 + $0xed0] sm:$0xff] }
 0x1d0   :  { %4096 = vmatprep.subr.bf16.mxu0 %v8292_v4  ;;  %4260 = vmatprep.subr.bf16.mxu1 %v8294_v5  ;;  %v8341_v4 = vcombine.low %v454_v54, %v458_v55  ;;  %v8348_v5 = vcombine.high %v461_v62, %v465_v0  ;;  %v8350_v53 = vcombine.high %v462_v1, %v466_v29  ;;  %v505_v54 = vld [vmem:[#allocation2 + $0xef0] sm:$0xff]  ;;  %v502_v55 = vld [vmem:[#allocation2 + $0xed8] sm:$0xff] }
 0x1d1   :  { %v509_v0 = vld [vmem:[#allocation2 + $0xf10] sm:$0xff] }
 0x1d3   :  { %4097 = vmatpush1.bf16.msra.mxu0 %v8291_v10  ;;  %4261 = vmatpush1.bf16.msra.mxu1 %v8293_v11 }
 0x1d4   :  { %4107 = vmatprep.subr.bf16.mxu0 %v8300_v12  ;;  %4271 = vmatprep.subr.bf16.mxu1 %v8302_v13  ;;  %v470_v12 = vld [vmem:[#allocation2 + $0xdd8] sm:$0xff] }
 0x1d5   :  { %v474_v13 = vld [vmem:[#allocation2 + $0xdf8] sm:$0xff] }
 0x1d6   :  { %4099 = vmatmul.mubr.bf16.vlgmr.msra.gmra.mrb[4].mxu0 %v9137_v37  ;;  %4263 = vmatmul.mubr.bf16.vlgmr.msra.gmra.mrb[4].mxu1 %v9137_v37  ;;  %v8358_v22 = vcombine.high %v470_v12, %v474_v13 }
 0x1d7   :  { %4108 = vmatpush1.bf16.msra.mxu0 %v8299_v18  ;;  %4272 = vmatpush1.bf16.msra.mxu1 %v8301_v19  ;;  %v8349_v19 = vcombine.low %v462_v1, %v466_v29  ;;  %v513_v1 = vld [vmem:[#allocation2 + $0xf30] sm:$0xff]  ;;  %v510_v29 = vld [vmem:[#allocation2 + $0xf18] sm:$0xff] }
 0x1d8   :  { %4109 = vmatprep.subr.bf16.mxu0 %v8308_v20  ;;  %4273 = vmatprep.subr.bf16.mxu1 %v8310_v21  ;;  %v8356_v20 = vcombine.high %v469_v8, %v473_v9 }
 0x1d9   :  { %4139 = vmatprep.mubr.bf16.mxu0 %v9154_v7  ;;  %4303 = vmatprep.mubr.bf16.mxu1 %v9154_v7 }
 0x1db   :  { %4110 = vmatpush1.bf16.msra.mxu0 %v8307_v59  ;;  %4274 = vmatpush1.bf16.msra.mxu1 %v8309_v27  ;;  %v482_v59 = vld [vmem:[#allocation2 + $0xe38] sm:$0xff]  ;;  %v8355_v27 = vcombine.low %v469_v8, %v473_v9  ;;  %v517_v9 = vld [vmem:[#allocation2 + $0xf50] sm:$0xff] }
 0x1dc   :  { %4111 = vmatprep.subr.bf16.mxu0 %v8316_v28  ;;  %4275 = vmatprep.subr.bf16.mxu1 %v8318_v30  ;;  %v8357_v28 = vcombine.low %v470_v12, %v474_v13  ;;  %v8364_v30 = vcombine.high %v477_v24, %v481_v25  ;;  %v8366_v32 = vcombine.high %v478_v26, %v482_v59  ;;  %v521_v12 = vld [vmem:[#allocation2 + $0xf70] sm:$0xff]  ;;  %v518_v13 = vld [vmem:[#allocation2 + $0xf58] sm:$0xff] }
 0x1df   :  { %4112 = vmatpush1.bf16.msra.mxu0 %v8315_v36  ;;  %4276 = vmatpush1.bf16.msra.mxu1 %v8317_v38  ;;  %v490_v36 = vld [vmem:[#allocation2 + $0xe78] sm:$0xff]  ;;  %v8363_v38 = vcombine.low %v477_v24, %v481_v25  ;;  %v8403_v25 = vcombine.low %v517_v9, %v521_v12 }
 0x1e0   :  { %4113 = vmatprep.subr.bf16.mxu0 %v8324_v39  ;;  %4277 = vmatprep.subr.bf16.mxu1 %v8326_v40  ;;  %v8365_v39 = vcombine.low %v478_v26, %v482_v59  ;;  %v8372_v40 = vcombine.high %v485_v33, %v489_v34  ;;  %v8374_v41 = vcombine.high %v486_v35, %v490_v36  ;;  %v530_v24 = vld [vmem:[#allocation2 + $0xfb8] sm:$0xff] }
 0x1e3   :  { %4114 = vmatpush1.bf16.msra.mxu0 %v8323_v46  ;;  %4278 = vmatpush1.bf16.msra.mxu1 %v8325_v48  ;;  %v498_v46 = vld [vmem:[#allocation2 + $0xeb8] sm:$0xff]  ;;  %v8371_v48 = vcombine.low %v485_v33, %v489_v34 }
 0x1e4   :  { %4115 = vmatprep.subr.bf16.mxu0 %v8332_v49  ;;  %4279 = vmatprep.subr.bf16.mxu1 %v8334_v50  ;;  %v8373_v49 = vcombine.low %v486_v35, %v490_v36  ;;  %v8380_v50 = vcombine.high %v493_v42, %v497_v43  ;;  %v8382_v51 = vcombine.high %v494_v45, %v498_v46  ;;  %v538_v33 = vld [vmem:[#allocation2 + $0xff8] sm:$0xff] }
 0x1e7   :  { %4116 = vmatpush1.bf16.msra.mxu0 %v8331_v56  ;;  %4280 = vmatpush1.bf16.msra.mxu1 %v8333_v57  ;;  %v506_v56 = vld [vmem:[#allocation2 + $0xef8] sm:$0xff]  ;;  %v8379_v57 = vcombine.low %v493_v42, %v497_v43  ;;  %v545_v42 = vld [vmem:[#allocation2 + $0x1028] sm:$0xff] }
 0x1e8   :  { %4117 = vmatprep.subr.bf16.mxu0 %v8340_v58  ;;  %4281 = vmatprep.subr.bf16.mxu1 %v8342_v60  ;;  %v8381_v58 = vcombine.low %v494_v45, %v498_v46  ;;  %v8388_v60 = vcombine.high %v501_v52, %v505_v54  ;;  %v8390_v62 = vcombine.high %v502_v55, %v506_v56 }
 0x1e9   :  { %v9176_v6 = vpop.f32.mrb[0].mxu0  ;;  %v9178_v10 = vpop.f32.mrb[0].mxu1 }
 0x1ea   :  { %v9180_v11 = vpop.f32.mrb[1].mxu0  ;;  %v9182_v14 = vpop.f32.mrb[1].mxu1 }
 0x1eb   :  { %v3817_v15 = vpop.f32.mrb[2].mxu0  ;;  %4118 = vmatpush1.bf16.msra.mxu0 %v8339_v2  ;;  %v3981_v17 = vpop.f32.mrb[2].mxu1  ;;  %4282 = vmatpush1.bf16.msra.mxu1 %v8341_v4  ;;  %v514_v2 = vld [vmem:[#allocation2 + $0xf38] sm:$0xff]  ;;  %v8387_v4 = vcombine.low %v501_v52, %v505_v54  ;;  %v553_v52 = vld [vmem:[#allocation2 + $0x1068] sm:$0xff] }
 0x1ec   :  { %v3818_v18 = vpop.f32.mrb[3].mxu0  ;;  %4119 = vmatprep.subr.bf16.mxu0 %v8348_v5  ;;  %v3982_v21 = vpop.f32.mrb[3].mxu1  ;;  %4283 = vmatprep.subr.bf16.mxu1 %v8350_v53  ;;  %v8389_v5 = vcombine.low %v502_v55, %v506_v56  ;;  %v8396_v53 = vcombine.high %v509_v0, %v513_v1  ;;  %v8398_v8 = vcombine.high %v510_v29, %v514_v2  ;;  %v522_v15 = vld [vmem:[#allocation2 + $0xf78] sm:$0xff] }
 0x1ed   :  { %v8397_v17 = vcombine.low %v510_v29, %v514_v2  ;;  %v8404_v18 = vcombine.high %v517_v9, %v521_v12  ;;  %v529_v21 = vld [vmem:[#allocation2 + $0xfb0] sm:$0xff]  ;;  %v8405_v26 = vcombine.low %v518_v13, %v522_v15  ;;  %v569_v9 = vld [vmem:[#allocation2 + $0x10e8] sm:$0xff] }
 0x1ef   :  { %4120 = vmatpush1.bf16.msra.mxu0 %v8347_v16  ;;  %4284 = vmatpush1.bf16.msra.mxu1 %v8349_v19  ;;  %v8395_v16 = vcombine.low %v509_v0, %v513_v1  ;;  %v8406_v19 = vcombine.high %v518_v13, %v522_v15  ;;  %v561_v0 = vld [vmem:[#allocation2 + $0x10a8] sm:$0xff] }
 0x1f0   :  { %4121 = vmatprep.subr.bf16.mxu0 %v8356_v20  ;;  %4285 = vmatprep.subr.bf16.mxu1 %v8358_v22  ;;  %v525_v20 = vld [vmem:[#allocation2 + $0xf90] sm:$0xff]  ;;  %v526_v22 = vld [vmem:[#allocation2 + $0xf98] sm:$0xff] }
 0x1f1   :  { %v8412_v59 = vcombine.high %v525_v20, %v529_v21  ;;  %v8411_v34 = vcombine.low %v525_v20, %v529_v21  ;;  %v8413_v35 = vcombine.low %v526_v22, %v530_v24  ;;  %v577_v20 = vld [vmem:[#allocation2 + $0x1128] sm:$0xff] }
 0x1f3   :  { %4122 = vmatpush1.bf16.msra.mxu0 %v8355_v27  ;;  %4286 = vmatpush1.bf16.msra.mxu1 %v8357_v28  ;;  %v8414_v27 = vcombine.high %v526_v22, %v530_v24  ;;  %v533_v28 = vld [vmem:[#allocation2 + $0xfd0] sm:$0xff] }
 0x1f4   :  { %4123 = vmatprep.subr.bf16.mxu0 %v8364_v30  ;;  %4287 = vmatprep.subr.bf16.mxu1 %v8366_v32  ;;  %v537_v30 = vld [vmem:[#allocation2 + $0xff0] sm:$0xff]  ;;  %v534_v32 = vld [vmem:[#allocation2 + $0xfd8] sm:$0xff] }
 0x1f5   :  { %v8420_v36 = vcombine.high %v533_v28, %v537_v30  ;;  %v8419_v43 = vcombine.low %v533_v28, %v537_v30  ;;  %v8421_v45 = vcombine.low %v534_v32, %v538_v33  ;;  %v585_v28 = vld [vmem:[#allocation2 + $0x1168] sm:$0xff] }
 0x1f7   :  { %4124 = vmatpush1.bf16.msra.mxu0 %v8363_v38  ;;  %4288 = vmatpush1.bf16.msra.mxu1 %v8365_v39  ;;  %v8422_v38 = vcombine.high %v534_v32, %v538_v33  ;;  %v540_v39 = vld [vmem:[#allocation2 + $0x1000] sm:$0xff] }
 0x1f8   :  { %4125 = vmatprep.subr.bf16.mxu0 %v8372_v40  ;;  %4289 = vmatprep.subr.bf16.mxu1 %v8374_v41  ;;  %v544_v40 = vld [vmem:[#allocation2 + $0x1020] sm:$0xff]  ;;  %v541_v41 = vld [vmem:[#allocation2 + $0x1008] sm:$0xff] }
 0x1f9   :  { %v8424_v46 = vcombine.high %v540_v39, %v544_v40  ;;  %v8423_v54 = vcombine.low %v540_v39, %v544_v40  ;;  %v8425_v55 = vcombine.low %v541_v41, %v545_v42  ;;  %v593_v39 = vld [vmem:[#allocation2 + $0x11a8] sm:$0xff] }
 0x1fb   :  { %4126 = vmatpush1.bf16.msra.mxu0 %v8371_v48  ;;  %4290 = vmatpush1.bf16.msra.mxu1 %v8373_v49  ;;  %v8426_v48 = vcombine.high %v541_v41, %v545_v42  ;;  %v548_v49 = vld [vmem:[#allocation2 + $0x1040] sm:$0xff] }
 0x1fc   :  { %4127 = vmatprep.subr.bf16.mxu0 %v8380_v50  ;;  %4291 = vmatprep.subr.bf16.mxu1 %v8382_v51  ;;  %v552_v50 = vld [vmem:[#allocation2 + $0x1060] sm:$0xff]  ;;  %v549_v51 = vld [vmem:[#allocation2 + $0x1048] sm:$0xff] }
 0x1fd   :  { %v8432_v56 = vcombine.high %v548_v49, %v552_v50  ;;  %v8431_v1 = vcombine.low %v548_v49, %v552_v50  ;;  %v8433_v29 = vcombine.low %v549_v51, %v553_v52  ;;  %v601_v49 = vld [vmem:[#allocation2 + $0x11e8] sm:$0xff] }
 0x1ff   :  { %4128 = vmatpush1.bf16.msra.mxu0 %v8379_v57  ;;  %4292 = vmatpush1.bf16.msra.mxu1 %v8381_v58  ;;  %v8434_v57 = vcombine.high %v549_v51, %v553_v52  ;;  %v556_v58 = vld [vmem:[#allocation2 + $0x1080] sm:$0xff] }
 0x200   :  { %4129 = vmatprep.subr.bf16.mxu0 %v8388_v60  ;;  %4293 = vmatprep.subr.bf16.mxu1 %v8390_v62  ;;  %v560_v60 = vld [vmem:[#allocation2 + $0x10a0] sm:$0xff]  ;;  %v557_v62 = vld [vmem:[#allocation2 + $0x1088] sm:$0xff] }
 0x201   :  { %v8440_v2 = vcombine.high %v556_v58, %v560_v60  ;;  %v8439_v12 = vcombine.low %v556_v58, %v560_v60  ;;  %v8441_v13 = vcombine.low %v557_v62, %v561_v0  ;;  %v609_v58 = vld [vmem:[#allocation2 + $0x1228] sm:$0xff] }
 0x203   :  { %4130 = vmatpush1.bf16.msra.mxu0 %v8387_v4  ;;  %4294 = vmatpush1.bf16.msra.mxu1 %v8389_v5  ;;  %v8442_v4 = vcombine.high %v557_v62, %v561_v0  ;;  %v564_v5 = vld [vmem:[#allocation2 + $0x10c0] sm:$0xff] }
 0x204   :  { %4131 = vmatprep.subr.bf16.mxu0 %v8396_v53  ;;  %4295 = vmatprep.subr.bf16.mxu1 %v8398_v8  ;;  %v568_v53 = vld [vmem:[#allocation2 + $0x10e0] sm:$0xff]  ;;  %v565_v8 = vld [vmem:[#allocation2 + $0x10c8] sm:$0xff] }
 0x205   :  { %v8448_v15 = vcombine.high %v564_v5, %v568_v53  ;;  %v8447_v21 = vcombine.low %v564_v5, %v568_v53  ;;  %v8449_v22 = vcombine.low %v565_v8, %v569_v9  ;;  %v617_v5 = vld [vmem:[#allocation2 + $0x1268] sm:$0xff] }
 0x207   :  { %4132 = vmatpush1.bf16.msra.mxu0 %v8395_v16  ;;  %4296 = vmatpush1.bf16.msra.mxu1 %v8397_v17  ;;  %v8450_v16 = vcombine.high %v565_v8, %v569_v9  ;;  %v572_v17 = vld [vmem:[#allocation2 + $0x1100] sm:$0xff] }
 0x208   :  { %4133 = vmatprep.subr.bf16.mxu0 %v8404_v18  ;;  %4297 = vmatprep.subr.bf16.mxu1 %v8406_v19  ;;  %v576_v18 = vld [vmem:[#allocation2 + $0x1120] sm:$0xff]  ;;  %v573_v19 = vld [vmem:[#allocation2 + $0x1108] sm:$0xff] }
 0x209   :  { %v8456_v24 = vcombine.high %v572_v17, %v576_v18  ;;  %v8455_v30 = vcombine.low %v572_v17, %v576_v18  ;;  %v8457_v32 = vcombine.low %v573_v19, %v577_v20  ;;  %v625_v17 = vld [vmem:[#allocation2 + $0x12a8] sm:$0xff] }
 0x20b   :  { %4134 = vmatpush1.bf16.msra.mxu0 %v8403_v25  ;;  %4298 = vmatpush1.bf16.msra.mxu1 %v8405_v26  ;;  %v8458_v25 = vcombine.high %v573_v19, %v577_v20  ;;  %v580_v26 = vld [vmem:[#allocation2 + $0x1140] sm:$0xff] }
 0x20c   :  { %4135 = vmatprep.subr.bf16.mxu0 %v8412_v59  ;;  %4299 = vmatprep.subr.bf16.mxu1 %v8414_v27  ;;  %v584_v59 = vld [vmem:[#allocation2 + $0x1160] sm:$0xff]  ;;  %v581_v27 = vld [vmem:[#allocation2 + $0x1148] sm:$0xff] }
 0x20d   :  { %v8464_v33 = vcombine.high %v580_v26, %v584_v59  ;;  %v8463_v40 = vcombine.low %v580_v26, %v584_v59  ;;  %v8465_v41 = vcombine.low %v581_v27, %v585_v28  ;;  %v633_v26 = vld [vmem:[#allocation2 + $0x12e8] sm:$0xff] }
 0x20f   :  { %4136 = vmatpush1.bf16.msra.mxu0 %v8411_v34  ;;  %4300 = vmatpush1.bf16.msra.mxu1 %v8413_v35  ;;  %v8466_v34 = vcombine.high %v581_v27, %v585_v28  ;;  %v588_v35 = vld [vmem:[#allocation2 + $0x1180] sm:$0xff] }
 0x210   :  { %4137 = vmatprep.subr.bf16.mxu0 %v8420_v36  ;;  %4301 = vmatprep.subr.bf16.mxu1 %v8422_v38  ;;  %v592_v36 = vld [vmem:[#allocation2 + $0x11a0] sm:$0xff]  ;;  %v589_v38 = vld [vmem:[#allocation2 + $0x1188] sm:$0xff] }
 0x211   :  { %v8472_v42 = vcombine.high %v588_v35, %v592_v36  ;;  %v8471_v50 = vcombine.low %v588_v35, %v592_v36  ;;  %v8473_v51 = vcombine.low %v589_v38, %v593_v39  ;;  %v641_v35 = vld [vmem:[#allocation2 + $0x1328] sm:$0xff] }
 0x213   :  { %4138 = vmatpush1.bf16.msra.mxu0 %v8419_v43  ;;  %4302 = vmatpush1.bf16.msra.mxu1 %v8421_v45  ;;  %v8474_v43 = vcombine.high %v589_v38, %v593_v39  ;;  %v596_v45 = vld [vmem:[#allocation2 + $0x11c0] sm:$0xff] }
 0x214   :  { %6872 = vmatprep.subr.bf16.mxu0 %v8424_v46  ;;  %7036 = vmatprep.subr.bf16.mxu1 %v8426_v48  ;;  %v600_v46 = vld [vmem:[#allocation2 + $0x11e0] sm:$0xff]  ;;  %v597_v48 = vld [vmem:[#allocation2 + $0x11c8] sm:$0xff] }
 0x215   :  { %v8480_v52 = vcombine.high %v596_v45, %v600_v46  ;;  %v8479_v60 = vcombine.low %v596_v45, %v600_v46  ;;  %v8481_v62 = vcombine.low %v597_v48, %v601_v49  ;;  %v649_v45 = vld [vmem:[#allocation2 + $0x1368] sm:$0xff] }
 0x216   :  { %4140 = vmatmul.mubr.bf16.vlgmr.msra.gmra.mrb[4].mxu0 %v9150_v61  ;;  %4304 = vmatmul.mubr.bf16.vlgmr.msra.gmra.mrb[4].mxu1 %v9150_v61 }
 0x217   :  { %6873 = vmatpush1.bf16.msra.mxu0 %v8423_v54  ;;  %7037 = vmatpush1.bf16.msra.mxu1 %v8425_v55  ;;  %v8482_v54 = vcombine.high %v597_v48, %v601_v49  ;;  %v604_v55 = vld [vmem:[#allocation2 + $0x1200] sm:$0xff] }
 0x218   :  { %6874 = vmatprep.subr.bf16.mxu0 %v8432_v56  ;;  %7038 = vmatprep.subr.bf16.mxu1 %v8434_v57  ;;  %v608_v56 = vld [vmem:[#allocation2 + $0x1220] sm:$0xff]  ;;  %v605_v57 = vld [vmem:[#allocation2 + $0x1208] sm:$0xff] }
 0x219   :  { %6904 = vmatprep.mubr.bf16.mxu0 %v9113_v3  ;;  %7068 = vmatprep.mubr.bf16.mxu1 %v9113_v3  ;;  %v8488_v0 = vcombine.high %v604_v55, %v608_v56  ;;  %v8487_v53 = vcombine.low %v604_v55, %v608_v56  ;;  %v8489_v8 = vcombine.low %v605_v57, %v609_v58  ;;  %v657_v55 = vld [vmem:[#allocation2 + $0x13a8] sm:$0xff] }
 0x21b   :  { %6875 = vmatpush1.bf16.msra.mxu0 %v8431_v1  ;;  %7039 = vmatpush1.bf16.msra.mxu1 %v8433_v29  ;;  %v8490_v1 = vcombine.high %v605_v57, %v609_v58  ;;  %v612_v29 = vld [vmem:[#allocation2 + $0x1240] sm:$0xff] }
 0x21c   :  { %6876 = vmatprep.subr.bf16.mxu0 %v8440_v2  ;;  %7040 = vmatprep.subr.bf16.mxu1 %v8442_v4  ;;  %v616_v2 = vld [vmem:[#allocation2 + $0x1260] sm:$0xff]  ;;  %v613_v4 = vld [vmem:[#allocation2 + $0x1248] sm:$0xff] }
 0x21d   :  { %v8496_v9 = vcombine.high %v612_v29, %v616_v2  ;;  %v8495_v18 = vcombine.low %v612_v29, %v616_v2  ;;  %v8497_v19 = vcombine.low %v613_v4, %v617_v5  ;;  %v665_v29 = vld [vmem:[#allocation2 + $0x13e8] sm:$0xff] }
 0x21f   :  { %6877 = vmatpush1.bf16.msra.mxu0 %v8439_v12  ;;  %7041 = vmatpush1.bf16.msra.mxu1 %v8441_v13  ;;  %v8498_v12 = vcombine.high %v613_v4, %v617_v5  ;;  %v620_v13 = vld [vmem:[#allocation2 + $0x1280] sm:$0xff] }
 0x220   :  { %6878 = vmatprep.subr.bf16.mxu0 %v8448_v15  ;;  %7042 = vmatprep.subr.bf16.mxu1 %v8450_v16  ;;  %v624_v15 = vld [vmem:[#allocation2 + $0x12a0] sm:$0xff]  ;;  %v621_v16 = vld [vmem:[#allocation2 + $0x1288] sm:$0xff] }
 0x221   :  { %v8504_v20 = vcombine.high %v620_v13, %v624_v15  ;;  %v8503_v59 = vcombine.low %v620_v13, %v624_v15  ;;  %v8505_v27 = vcombine.low %v621_v16, %v625_v17  ;;  %v673_v13 = vld [vmem:[#allocation2 + $0x1428] sm:$0xff] }
 0x223   :  { %6879 = vmatpush1.bf16.msra.mxu0 %v8447_v21  ;;  %7043 = vmatpush1.bf16.msra.mxu1 %v8449_v22  ;;  %v8506_v21 = vcombine.high %v621_v16, %v625_v17  ;;  %v628_v22 = vld [vmem:[#allocation2 + $0x12c0] sm:$0xff] }
 0x224   :  { %6880 = vmatprep.subr.bf16.mxu0 %v8456_v24  ;;  %7044 = vmatprep.subr.bf16.mxu1 %v8458_v25  ;;  %v632_v24 = vld [vmem:[#allocation2 + $0x12e0] sm:$0xff]  ;;  %v629_v25 = vld [vmem:[#allocation2 + $0x12c8] sm:$0xff] }
 0x225   :  { %v8512_v28 = vcombine.high %v628_v22, %v632_v24  ;;  %v8511_v36 = vcombine.low %v628_v22, %v632_v24  ;;  %v8513_v38 = vcombine.low %v629_v25, %v633_v26  ;;  %v681_v22 = vld [vmem:[#allocation2 + $0x1468] sm:$0xff] }
 0x227   :  { %6881 = vmatpush1.bf16.msra.mxu0 %v8455_v30  ;;  %7045 = vmatpush1.bf16.msra.mxu1 %v8457_v32  ;;  %v8514_v30 = vcombine.high %v629_v25, %v633_v26  ;;  %v636_v32 = vld [vmem:[#allocation2 + $0x1300] sm:$0xff] }
 0x228   :  { %6882 = vmatprep.subr.bf16.mxu0 %v8464_v33  ;;  %7046 = vmatprep.subr.bf16.mxu1 %v8466_v34  ;;  %v640_v33 = vld [vmem:[#allocation2 + $0x1320] sm:$0xff]  ;;  %v637_v34 = vld [vmem:[#allocation2 + $0x1308] sm:$0xff] }
 0x229   :  { %v8520_v39 = vcombine.high %v636_v32, %v640_v33  ;;  %v8519_v46 = vcombine.low %v636_v32, %v640_v33  ;;  %v8521_v48 = vcombine.low %v637_v34, %v641_v35  ;;  %v689_v32 = vld [vmem:[#allocation2 + $0x14a8] sm:$0xff] }
 0x22b   :  { %6883 = vmatpush1.bf16.msra.mxu0 %v8463_v40  ;;  %7047 = vmatpush1.bf16.msra.mxu1 %v8465_v41  ;;  %v8522_v40 = vcombine.high %v637_v34, %v641_v35  ;;  %v644_v41 = vld [vmem:[#allocation2 + $0x1340] sm:$0xff] }
 0x22c   :  { %6884 = vmatprep.subr.bf16.mxu0 %v8472_v42  ;;  %7048 = vmatprep.subr.bf16.mxu1 %v8474_v43  ;;  %v648_v42 = vld [vmem:[#allocation2 + $0x1360] sm:$0xff]  ;;  %v645_v43 = vld [vmem:[#allocation2 + $0x1348] sm:$0xff] }
 0x22d   :  { %v8528_v49 = vcombine.high %v644_v41, %v648_v42  ;;  %v8527_v56 = vcombine.low %v644_v41, %v648_v42  ;;  %v8529_v57 = vcombine.low %v645_v43, %v649_v45  ;;  %v697_v41 = vld [vmem:[#allocation2 + $0x14e8] sm:$0xff] }
 0x22f   :  { %6885 = vmatpush1.bf16.msra.mxu0 %v8471_v50  ;;  %7049 = vmatpush1.bf16.msra.mxu1 %v8473_v51  ;;  %v8530_v50 = vcombine.high %v645_v43, %v649_v45  ;;  %v652_v51 = vld [vmem:[#allocation2 + $0x1380] sm:$0xff] }
 0x230   :  { %6886 = vmatprep.subr.bf16.mxu0 %v8480_v52  ;;  %7050 = vmatprep.subr.bf16.mxu1 %v8482_v54  ;;  %v656_v52 = vld [vmem:[#allocation2 + $0x13a0] sm:$0xff]  ;;  %v653_v54 = vld [vmem:[#allocation2 + $0x1388] sm:$0xff] }
 0x231   :  { %v8536_v58 = vcombine.high %v652_v51, %v656_v52  ;;  %v8535_v2 = vcombine.low %v652_v51, %v656_v52  ;;  %v8537_v4 = vcombine.low %v653_v54, %v657_v55  ;;  %v705_v51 = vld [vmem:[#allocation2 + $0x1528] sm:$0xff] }
 0x233   :  { %6887 = vmatpush1.bf16.msra.mxu0 %v8479_v60  ;;  %7051 = vmatpush1.bf16.msra.mxu1 %v8481_v62  ;;  %v8538_v60 = vcombine.high %v653_v54, %v657_v55  ;;  %v660_v62 = vld [vmem:[#allocation2 + $0x13c0] sm:$0xff] }
 0x234   :  { %6888 = vmatprep.subr.bf16.mxu0 %v8488_v0  ;;  %7052 = vmatprep.subr.bf16.mxu1 %v8490_v1  ;;  %v664_v0 = vld [vmem:[#allocation2 + $0x13e0] sm:$0xff]  ;;  %v661_v1 = vld [vmem:[#allocation2 + $0x13c8] sm:$0xff] }
 0x235   :  { %v8544_v5 = vcombine.high %v660_v62, %v664_v0  ;;  %v8543_v15 = vcombine.low %v660_v62, %v664_v0  ;;  %v8545_v16 = vcombine.low %v661_v1, %v665_v29  ;;  %v713_v62 = vld [vmem:[#allocation2 + $0x1568] sm:$0xff] }
 0x237   :  { %6889 = vmatpush1.bf16.msra.mxu0 %v8487_v53  ;;  %7053 = vmatpush1.bf16.msra.mxu1 %v8489_v8  ;;  %v8546_v53 = vcombine.high %v661_v1, %v665_v29  ;;  %v668_v8 = vld [vmem:[#allocation2 + $0x1400] sm:$0xff] }
 0x238   :  { %6890 = vmatprep.subr.bf16.mxu0 %v8496_v9  ;;  %7054 = vmatprep.subr.bf16.mxu1 %v8498_v12  ;;  %v672_v9 = vld [vmem:[#allocation2 + $0x1420] sm:$0xff]  ;;  %v669_v12 = vld [vmem:[#allocation2 + $0x1408] sm:$0xff] }
 0x239   :  { %v8552_v17 = vcombine.high %v668_v8, %v672_v9  ;;  %v8551_v24 = vcombine.low %v668_v8, %v672_v9  ;;  %v8553_v25 = vcombine.low %v669_v12, %v673_v13  ;;  %v721_v8 = vld [vmem:[#allocation2 + $0x15a8] sm:$0xff] }
 0x23b   :  { %6891 = vmatpush1.bf16.msra.mxu0 %v8495_v18  ;;  %7055 = vmatpush1.bf16.msra.mxu1 %v8497_v19  ;;  %v8554_v18 = vcombine.high %v669_v12, %v673_v13  ;;  %v676_v19 = vld [vmem:[#allocation2 + $0x1440] sm:$0xff] }
 0x23c   :  { %6892 = vmatprep.subr.bf16.mxu0 %v8504_v20  ;;  %7056 = vmatprep.subr.bf16.mxu1 %v8506_v21  ;;  %v680_v20 = vld [vmem:[#allocation2 + $0x1460] sm:$0xff]  ;;  %v677_v21 = vld [vmem:[#allocation2 + $0x1448] sm:$0xff] }
 0x23d   :  { %v8560_v26 = vcombine.high %v676_v19, %v680_v20  ;;  %v8559_v33 = vcombine.low %v676_v19, %v680_v20  ;;  %v8561_v34 = vcombine.low %v677_v21, %v681_v22  ;;  %v729_v19 = vld [vmem:[#allocation2 + $0x15e8] sm:$0xff] }
 0x23f   :  { %6893 = vmatpush1.bf16.msra.mxu0 %v8503_v59  ;;  %7057 = vmatpush1.bf16.msra.mxu1 %v8505_v27  ;;  %v8562_v59 = vcombine.high %v677_v21, %v681_v22  ;;  %v684_v27 = vld [vmem:[#allocation2 + $0x1480] sm:$0xff] }
 0x240   :  { %6894 = vmatprep.subr.bf16.mxu0 %v8512_v28  ;;  %7058 = vmatprep.subr.bf16.mxu1 %v8514_v30  ;;  %v688_v28 = vld [vmem:[#allocation2 + $0x14a0] sm:$0xff]  ;;  %v685_v30 = vld [vmem:[#allocation2 + $0x1488] sm:$0xff] }
 0x241   :  { %v8568_v35 = vcombine.high %v684_v27, %v688_v28  ;;  %v8567_v42 = vcombine.low %v684_v27, %v688_v28  ;;  %v8569_v43 = vcombine.low %v685_v30, %v689_v32  ;;  %v737_v27 = vld [vmem:[#allocation2 + $0x1628] sm:$0xff] }
 0x243   :  { %6895 = vmatpush1.bf16.msra.mxu0 %v8511_v36  ;;  %7059 = vmatpush1.bf16.msra.mxu1 %v8513_v38  ;;  %v8570_v36 = vcombine.high %v685_v30, %v689_v32  ;;  %v692_v38 = vld [vmem:[#allocation2 + $0x14c0] sm:$0xff] }
 0x244   :  { %6896 = vmatprep.subr.bf16.mxu0 %v8520_v39  ;;  %7060 = vmatprep.subr.bf16.mxu1 %v8522_v40  ;;  %v696_v39 = vld [vmem:[#allocation2 + $0x14e0] sm:$0xff]  ;;  %v693_v40 = vld [vmem:[#allocation2 + $0x14c8] sm:$0xff] }
 0x245   :  { %v8576_v45 = vcombine.high %v692_v38, %v696_v39  ;;  %v8575_v52 = vcombine.low %v692_v38, %v696_v39  ;;  %v8577_v54 = vcombine.low %v693_v40, %v697_v41  ;;  %v745_v38 = vld [vmem:[#allocation2 + $0x1668] sm:$0xff] }
 0x247   :  { %6897 = vmatpush1.bf16.msra.mxu0 %v8519_v46  ;;  %7061 = vmatpush1.bf16.msra.mxu1 %v8521_v48  ;;  %v8578_v46 = vcombine.high %v693_v40, %v697_v41  ;;  %v700_v48 = vld [vmem:[#allocation2 + $0x1500] sm:$0xff] }
 0x248   :  { %6898 = vmatprep.subr.bf16.mxu0 %v8528_v49  ;;  %7062 = vmatprep.subr.bf16.mxu1 %v8530_v50  ;;  %v704_v49 = vld [vmem:[#allocation2 + $0x1520] sm:$0xff]  ;;  %v701_v50 = vld [vmem:[#allocation2 + $0x1508] sm:$0xff] }
 0x249   :  { %v8584_v55 = vcombine.high %v700_v48, %v704_v49  ;;  %v8583_v0 = vcombine.low %v700_v48, %v704_v49  ;;  %v8585_v1 = vcombine.low %v701_v50, %v705_v51  ;;  %v753_v48 = vld [vmem:[#allocation2 + $0x16a8] sm:$0xff] }
 0x24b   :  { %6899 = vmatpush1.bf16.msra.mxu0 %v8527_v56  ;;  %7063 = vmatpush1.bf16.msra.mxu1 %v8529_v57  ;;  %v8586_v56 = vcombine.high %v701_v50, %v705_v51  ;;  %v708_v57 = vld [vmem:[#allocation2 + $0x1540] sm:$0xff] }
 0x24c   :  { %6900 = vmatprep.subr.bf16.mxu0 %v8536_v58  ;;  %7064 = vmatprep.subr.bf16.mxu1 %v8538_v60  ;;  %v712_v58 = vld [vmem:[#allocation2 + $0x1560] sm:$0xff]  ;;  %v709_v60 = vld [vmem:[#allocation2 + $0x1548] sm:$0xff] }
 0x24d   :  { %v8592_v29 = vcombine.high %v708_v57, %v712_v58  ;;  %v8591_v9 = vcombine.low %v708_v57, %v712_v58  ;;  %v8593_v12 = vcombine.low %v709_v60, %v713_v62  ;;  %v761_v57 = vld [vmem:[#allocation2 + $0x16e8] sm:$0xff] }
 0x24f   :  { %6901 = vmatpush1.bf16.msra.mxu0 %v8535_v2  ;;  %7065 = vmatpush1.bf16.msra.mxu1 %v8537_v4  ;;  %v8594_v2 = vcombine.high %v709_v60, %v713_v62  ;;  %v716_v4 = vld [vmem:[#allocation2 + $0x1580] sm:$0xff] }
 0x250   :  { %6902 = vmatprep.subr.bf16.mxu0 %v8544_v5  ;;  %7066 = vmatprep.subr.bf16.mxu1 %v8546_v53  ;;  %v720_v5 = vld [vmem:[#allocation2 + $0x15a0] sm:$0xff]  ;;  %v717_v53 = vld [vmem:[#allocation2 + $0x1588] sm:$0xff] }
 0x251   :  { %v8600_v13 = vcombine.high %v716_v4, %v720_v5  ;;  %v8599_v20 = vcombine.low %v716_v4, %v720_v5  ;;  %v8601_v21 = vcombine.low %v717_v53, %v721_v8  ;;  %v769_v4 = vld [vmem:[#allocation2 + $0x1728] sm:$0xff] }
 0x253   :  { %6903 = vmatpush1.bf16.msra.mxu0 %v8543_v15  ;;  %7067 = vmatpush1.bf16.msra.mxu1 %v8545_v16  ;;  %v8602_v15 = vcombine.high %v717_v53, %v721_v8  ;;  %v724_v16 = vld [vmem:[#allocation2 + $0x15c0] sm:$0xff] }
 0x254   :  { %6913 = vmatprep.subr.bf16.mxu0 %v8552_v17  ;;  %7077 = vmatprep.subr.bf16.mxu1 %v8554_v18  ;;  %v728_v17 = vld [vmem:[#allocation2 + $0x15e0] sm:$0xff]  ;;  %v725_v18 = vld [vmem:[#allocation2 + $0x15c8] sm:$0xff] }
 0x255   :  { %v8608_v22 = vcombine.high %v724_v16, %v728_v17  ;;  %v8607_v28 = vcombine.low %v724_v16, %v728_v17  ;;  %v8609_v30 = vcombine.low %v725_v18, %v729_v19  ;;  %v777_v16 = vld [vmem:[#allocation2 + $0x1768] sm:$0xff] }
 0x256   :  { %6905 = vmatmul.mubr.bf16.vlgmr.msra.gmra.mrb[8].mxu0 %v9109_v63  ;;  %7069 = vmatmul.mubr.bf16.vlgmr.msra.gmra.mrb[8].mxu1 %v9109_v63 }
 0x257   :  { %6914 = vmatpush1.bf16.msra.mxu0 %v8551_v24  ;;  %7078 = vmatpush1.bf16.msra.mxu1 %v8553_v25  ;;  %v8610_v24 = vcombine.high %v725_v18, %v729_v19  ;;  %v732_v25 = vld [vmem:[#allocation2 + $0x1600] sm:$0xff] }
 0x258   :  { %6915 = vmatprep.subr.bf16.mxu0 %v8560_v26  ;;  %7079 = vmatprep.subr.bf16.mxu1 %v8562_v59  ;;  %v736_v26 = vld [vmem:[#allocation2 + $0x1620] sm:$0xff]  ;;  %v733_v59 = vld [vmem:[#allocation2 + $0x1608] sm:$0xff] }
 0x259   :  { %6945 = vmatprep.mubr.bf16.mxu0 %v9124_v31  ;;  %7109 = vmatprep.mubr.bf16.mxu1 %v9124_v31  ;;  %v8616_v32 = vcombine.high %v732_v25, %v736_v26  ;;  %v8615_v39 = vcombine.low %v732_v25, %v736_v26  ;;  %v8617_v40 = vcombine.low %v733_v59, %v737_v27  ;;  %v785_v25 = vld [vmem:[#allocation2 + $0x17a8] sm:$0xff] }
 0x25b   :  { %6916 = vmatpush1.bf16.msra.mxu0 %v8559_v33  ;;  %7080 = vmatpush1.bf16.msra.mxu1 %v8561_v34  ;;  %v8618_v33 = vcombine.high %v733_v59, %v737_v27  ;;  %v740_v34 = vld [vmem:[#allocation2 + $0x1640] sm:$0xff] }
 0x25c   :  { %6917 = vmatprep.subr.bf16.mxu0 %v8568_v35  ;;  %7081 = vmatprep.subr.bf16.mxu1 %v8570_v36  ;;  %v744_v35 = vld [vmem:[#allocation2 + $0x1660] sm:$0xff]  ;;  %v741_v36 = vld [vmem:[#allocation2 + $0x1648] sm:$0xff] }
 0x25d   :  { %v8624_v41 = vcombine.high %v740_v34, %v744_v35  ;;  %v8623_v49 = vcombine.low %v740_v34, %v744_v35  ;;  %v8625_v50 = vcombine.low %v741_v36, %v745_v38  ;;  %v793_v34 = vld [vmem:[#allocation2 + $0x17e8] sm:$0xff] }
 0x25f   :  { %6918 = vmatpush1.bf16.msra.mxu0 %v8567_v42  ;;  %7082 = vmatpush1.bf16.msra.mxu1 %v8569_v43  ;;  %v8626_v42 = vcombine.high %v741_v36, %v745_v38  ;;  %v748_v43 = vld [vmem:[#allocation2 + $0x1680] sm:$0xff] }
 0x260   :  { %6919 = vmatprep.subr.bf16.mxu0 %v8576_v45  ;;  %7083 = vmatprep.subr.bf16.mxu1 %v8578_v46  ;;  %v752_v45 = vld [vmem:[#allocation2 + $0x16a0] sm:$0xff]  ;;  %v749_v46 = vld [vmem:[#allocation2 + $0x1688] sm:$0xff] }
 0x261   :  { %v8632_v51 = vcombine.high %v748_v43, %v752_v45  ;;  %v8631_v58 = vcombine.low %v748_v43, %v752_v45  ;;  %v8633_v60 = vcombine.low %v749_v46, %v753_v48  ;;  %v801_v43 = vld [vmem:[#allocation2 + $0x1828] sm:$0xff] }
 0x263   :  { %6920 = vmatpush1.bf16.msra.mxu0 %v8575_v52  ;;  %7084 = vmatpush1.bf16.msra.mxu1 %v8577_v54  ;;  %v8634_v52 = vcombine.high %v749_v46, %v753_v48  ;;  %v756_v54 = vld [vmem:[#allocation2 + $0x16c0] sm:$0xff] }
 0x264   :  { %6921 = vmatprep.subr.bf16.mxu0 %v8584_v55  ;;  %7085 = vmatprep.subr.bf16.mxu1 %v8586_v56  ;;  %v760_v55 = vld [vmem:[#allocation2 + $0x16e0] sm:$0xff]  ;;  %v757_v56 = vld [vmem:[#allocation2 + $0x16c8] sm:$0xff] }
 0x265   :  { %v8640_v62 = vcombine.high %v756_v54, %v760_v55  ;;  %v8639_v5 = vcombine.low %v756_v54, %v760_v55  ;;  %v8641_v53 = vcombine.low %v757_v56, %v761_v57  ;;  %v809_v54 = vld [vmem:[#allocation2 + $0x1868] sm:$0xff] }
 0x267   :  { %6922 = vmatpush1.bf16.msra.mxu0 %v8583_v0  ;;  %7086 = vmatpush1.bf16.msra.mxu1 %v8585_v1  ;;  %v8642_v0 = vcombine.high %v757_v56, %v761_v57  ;;  %v764_v1 = vld [vmem:[#allocation2 + $0x1700] sm:$0xff] }
 0x268   :  { %6923 = vmatprep.subr.bf16.mxu0 %v8592_v29  ;;  %7087 = vmatprep.subr.bf16.mxu1 %v8594_v2  ;;  %v768_v29 = vld [vmem:[#allocation2 + $0x1720] sm:$0xff]  ;;  %v765_v2 = vld [vmem:[#allocation2 + $0x1708] sm:$0xff] }
 0x269   :  { %v8648_v8 = vcombine.high %v764_v1, %v768_v29  ;;  %v8647_v17 = vcombine.low %v764_v1, %v768_v29  ;;  %v8649_v18 = vcombine.low %v765_v2, %v769_v4  ;;  %v817_v1 = vld [vmem:[#allocation2 + $0x18a8] sm:$0xff] }
 0x26b   :  { %6924 = vmatpush1.bf16.msra.mxu0 %v8591_v9  ;;  %7088 = vmatpush1.bf16.msra.mxu1 %v8593_v12  ;;  %v8650_v9 = vcombine.high %v765_v2, %v769_v4  ;;  %v772_v12 = vld [vmem:[#allocation2 + $0x1740] sm:$0xff] }
 0x26c   :  { %6925 = vmatprep.subr.bf16.mxu0 %v8600_v13  ;;  %7089 = vmatprep.subr.bf16.mxu1 %v8602_v15  ;;  %v776_v13 = vld [vmem:[#allocation2 + $0x1760] sm:$0xff]  ;;  %v773_v15 = vld [vmem:[#allocation2 + $0x1748] sm:$0xff] }
 0x26d   :  { %v8656_v19 = vcombine.high %v772_v12, %v776_v13  ;;  %v8655_v26 = vcombine.low %v772_v12, %v776_v13  ;;  %v8657_v59 = vcombine.low %v773_v15, %v777_v16  ;;  %v825_v12 = vld [vmem:[#allocation2 + $0x18e8] sm:$0xff] }
 0x26f   :  { %6926 = vmatpush1.bf16.msra.mxu0 %v8599_v20  ;;  %7090 = vmatpush1.bf16.msra.mxu1 %v8601_v21  ;;  %v8658_v20 = vcombine.high %v773_v15, %v777_v16  ;;  %v780_v21 = vld [vmem:[#allocation2 + $0x1780] sm:$0xff] }
 0x270   :  { %6927 = vmatprep.subr.bf16.mxu0 %v8608_v22  ;;  %7091 = vmatprep.subr.bf16.mxu1 %v8610_v24  ;;  %v784_v22 = vld [vmem:[#allocation2 + $0x17a0] sm:$0xff]  ;;  %v781_v24 = vld [vmem:[#allocation2 + $0x1788] sm:$0xff] }
 0x271   :  { %v8664_v27 = vcombine.high %v780_v21, %v784_v22  ;;  %v8663_v35 = vcombine.low %v780_v21, %v784_v22  ;;  %v8665_v36 = vcombine.low %v781_v24, %v785_v25  ;;  %v833_v21 = vld [vmem:[#allocation2 + $0x1928] sm:$0xff] }
 0x273   :  { %6928 = vmatpush1.bf16.msra.mxu0 %v8607_v28  ;;  %7092 = vmatpush1.bf16.msra.mxu1 %v8609_v30  ;;  %v8666_v28 = vcombine.high %v781_v24, %v785_v25  ;;  %v788_v30 = vld [vmem:[#allocation2 + $0x17c0] sm:$0xff] }
 0x274   :  { %6929 = vmatprep.subr.bf16.mxu0 %v8616_v32  ;;  %7093 = vmatprep.subr.bf16.mxu1 %v8618_v33  ;;  %v792_v32 = vld [vmem:[#allocation2 + $0x17e0] sm:$0xff]  ;;  %v789_v33 = vld [vmem:[#allocation2 + $0x17c8] sm:$0xff] }
 0x275   :  { %v8672_v38 = vcombine.high %v788_v30, %v792_v32  ;;  %v8671_v45 = vcombine.low %v788_v30, %v792_v32  ;;  %v8673_v46 = vcombine.low %v789_v33, %v793_v34  ;;  %v841_v30 = vld [vmem:[#allocation2 + $0x1968] sm:$0xff] }
 0x277   :  { %6930 = vmatpush1.bf16.msra.mxu0 %v8615_v39  ;;  %7094 = vmatpush1.bf16.msra.mxu1 %v8617_v40  ;;  %v8674_v39 = vcombine.high %v789_v33, %v793_v34  ;;  %v796_v40 = vld [vmem:[#allocation2 + $0x1800] sm:$0xff] }
 0x278   :  { %6931 = vmatprep.subr.bf16.mxu0 %v8624_v41  ;;  %7095 = vmatprep.subr.bf16.mxu1 %v8626_v42  ;;  %v800_v41 = vld [vmem:[#allocation2 + $0x1820] sm:$0xff]  ;;  %v797_v42 = vld [vmem:[#allocation2 + $0x1808] sm:$0xff] }
 0x279   :  { %v8680_v48 = vcombine.high %v796_v40, %v800_v41  ;;  %v8679_v55 = vcombine.low %v796_v40, %v800_v41  ;;  %v8681_v56 = vcombine.low %v797_v42, %v801_v43  ;;  %v849_v40 = vld [vmem:[#allocation2 + $0x19a8] sm:$0xff] }
 0x27b   :  { %6932 = vmatpush1.bf16.msra.mxu0 %v8623_v49  ;;  %7096 = vmatpush1.bf16.msra.mxu1 %v8625_v50  ;;  %v8682_v49 = vcombine.high %v797_v42, %v801_v43  ;;  %v804_v50 = vld [vmem:[#allocation2 + $0x1840] sm:$0xff] }
 0x27c   :  { %6933 = vmatprep.subr.bf16.mxu0 %v8632_v51  ;;  %7097 = vmatprep.subr.bf16.mxu1 %v8634_v52  ;;  %v808_v51 = vld [vmem:[#allocation2 + $0x1860] sm:$0xff]  ;;  %v805_v52 = vld [vmem:[#allocation2 + $0x1848] sm:$0xff] }
 0x27d   :  { %v8688_v57 = vcombine.high %v804_v50, %v808_v51  ;;  %v8687_v29 = vcombine.low %v804_v50, %v808_v51  ;;  %v8689_v2 = vcombine.low %v805_v52, %v809_v54  ;;  %v857_v50 = vld [vmem:[#allocation2 + $0x19e8] sm:$0xff] }
 0x27f   :  { %6934 = vmatpush1.bf16.msra.mxu0 %v8631_v58  ;;  %7098 = vmatpush1.bf16.msra.mxu1 %v8633_v60  ;;  %v8690_v58 = vcombine.high %v805_v52, %v809_v54  ;;  %v812_v60 = vld [vmem:[#allocation2 + $0x1880] sm:$0xff] }
 0x280   :  { %6935 = vmatprep.subr.bf16.mxu0 %v8640_v62  ;;  %7099 = vmatprep.subr.bf16.mxu1 %v8642_v0  ;;  %v816_v62 = vld [vmem:[#allocation2 + $0x18a0] sm:$0xff]  ;;  %v813_v0 = vld [vmem:[#allocation2 + $0x1888] sm:$0xff] }
 0x281   :  { %v8696_v4 = vcombine.high %v812_v60, %v816_v62  ;;  %v8695_v13 = vcombine.low %v812_v60, %v816_v62  ;;  %v8697_v15 = vcombine.low %v813_v0, %v817_v1  ;;  %v865_v60 = vld [vmem:[#allocation2 + $0x1a28] sm:$0xff] }
 0x283   :  { %6936 = vmatpush1.bf16.msra.mxu0 %v8639_v5  ;;  %7100 = vmatpush1.bf16.msra.mxu1 %v8641_v53  ;;  %v8698_v5 = vcombine.high %v813_v0, %v817_v1  ;;  %v820_v53 = vld [vmem:[#allocation2 + $0x18c0] sm:$0xff] }
 0x284   :  { %6937 = vmatprep.subr.bf16.mxu0 %v8648_v8  ;;  %7101 = vmatprep.subr.bf16.mxu1 %v8650_v9  ;;  %v824_v8 = vld [vmem:[#allocation2 + $0x18e0] sm:$0xff]  ;;  %v821_v9 = vld [vmem:[#allocation2 + $0x18c8] sm:$0xff] }
 0x285   :  { %v8704_v16 = vcombine.high %v820_v53, %v824_v8  ;;  %v8703_v22 = vcombine.low %v820_v53, %v824_v8  ;;  %v8705_v24 = vcombine.low %v821_v9, %v825_v12  ;;  %v873_v53 = vld [vmem:[#allocation2 + $0x1a68] sm:$0xff] }
 0x287   :  { %6938 = vmatpush1.bf16.msra.mxu0 %v8647_v17  ;;  %7102 = vmatpush1.bf16.msra.mxu1 %v8649_v18  ;;  %v8706_v17 = vcombine.high %v821_v9, %v825_v12  ;;  %v828_v18 = vld [vmem:[#allocation2 + $0x1900] sm:$0xff] }
 0x288   :  { %6939 = vmatprep.subr.bf16.mxu0 %v8656_v19  ;;  %7103 = vmatprep.subr.bf16.mxu1 %v8658_v20  ;;  %v832_v19 = vld [vmem:[#allocation2 + $0x1920] sm:$0xff]  ;;  %v829_v20 = vld [vmem:[#allocation2 + $0x1908] sm:$0xff] }
 0x289   :  { %v8712_v25 = vcombine.high %v828_v18, %v832_v19  ;;  %v8711_v32 = vcombine.low %v828_v18, %v832_v19  ;;  %v8713_v33 = vcombine.low %v829_v20, %v833_v21  ;;  %v881_v18 = vld [vmem:[#allocation2 + $0x1aa8] sm:$0xff] }
 0x28b   :  { %6940 = vmatpush1.bf16.msra.mxu0 %v8655_v26  ;;  %7104 = vmatpush1.bf16.msra.mxu1 %v8657_v59  ;;  %v8714_v26 = vcombine.high %v829_v20, %v833_v21  ;;  %v836_v59 = vld [vmem:[#allocation2 + $0x1940] sm:$0xff] }
 0x28c   :  { %6941 = vmatprep.subr.bf16.mxu0 %v8664_v27  ;;  %7105 = vmatprep.subr.bf16.mxu1 %v8666_v28  ;;  %v840_v27 = vld [vmem:[#allocation2 + $0x1960] sm:$0xff]  ;;  %v837_v28 = vld [vmem:[#allocation2 + $0x1948] sm:$0xff] }
 0x28d   :  { %v8720_v34 = vcombine.high %v836_v59, %v840_v27  ;;  %v8719_v41 = vcombine.low %v836_v59, %v840_v27  ;;  %v8721_v42 = vcombine.low %v837_v28, %v841_v30  ;;  %v889_v59 = vld [vmem:[#allocation2 + $0x1ae8] sm:$0xff] }
 0x28f   :  { %6942 = vmatpush1.bf16.msra.mxu0 %v8663_v35  ;;  %7106 = vmatpush1.bf16.msra.mxu1 %v8665_v36  ;;  %v8722_v35 = vcombine.high %v837_v28, %v841_v30  ;;  %v844_v36 = vld [vmem:[#allocation2 + $0x1980] sm:$0xff] }
 0x290   :  { %6943 = vmatprep.subr.bf16.mxu0 %v8672_v38  ;;  %7107 = vmatprep.subr.bf16.mxu1 %v8674_v39  ;;  %v848_v38 = vld [vmem:[#allocation2 + $0x19a0] sm:$0xff]  ;;  %v845_v39 = vld [vmem:[#allocation2 + $0x1988] sm:$0xff] }
 0x291   :  { %v8728_v43 = vcombine.high %v844_v36, %v848_v38  ;;  %v8727_v51 = vcombine.low %v844_v36, %v848_v38  ;;  %v8729_v52 = vcombine.low %v845_v39, %v849_v40  ;;  %v897_v36 = vld [vmem:[#allocation2 + $0x1b28] sm:$0xff] }
 0x293   :  { %6944 = vmatpush1.bf16.msra.mxu0 %v8671_v45  ;;  %7108 = vmatpush1.bf16.msra.mxu1 %v8673_v46  ;;  %v8730_v45 = vcombine.high %v845_v39, %v849_v40  ;;  %v852_v46 = vld [vmem:[#allocation2 + $0x19c0] sm:$0xff] }
 0x294   :  { %6954 = vmatprep.subr.bf16.mxu0 %v8680_v48  ;;  %7118 = vmatprep.subr.bf16.mxu1 %v8682_v49  ;;  %v856_v48 = vld [vmem:[#allocation2 + $0x19e0] sm:$0xff]  ;;  %v853_v49 = vld [vmem:[#allocation2 + $0x19c8] sm:$0xff] }
 0x295   :  { %v8736_v54 = vcombine.high %v852_v46, %v856_v48  ;;  %v8735_v62 = vcombine.low %v852_v46, %v856_v48  ;;  %v8737_v0 = vcombine.low %v853_v49, %v857_v50  ;;  %v905_v46 = vld [vmem:[#allocation2 + $0x1b68] sm:$0xff] }
 0x296   :  { %6946 = vmatmul.mubr.bf16.vlgmr.msra.gmra.mrb[8].mxu0 %v9120_v23  ;;  %7110 = vmatmul.mubr.bf16.vlgmr.msra.gmra.mrb[8].mxu1 %v9120_v23 }
 0x297   :  { %6955 = vmatpush1.bf16.msra.mxu0 %v8679_v55  ;;  %7119 = vmatpush1.bf16.msra.mxu1 %v8681_v56  ;;  %v8738_v55 = vcombine.high %v853_v49, %v857_v50  ;;  %v860_v56 = vld [vmem:[#allocation2 + $0x1a00] sm:$0xff] }
 0x298   :  { %6956 = vmatprep.subr.bf16.mxu0 %v8688_v57  ;;  %7120 = vmatprep.subr.bf16.mxu1 %v8690_v58  ;;  %v864_v57 = vld [vmem:[#allocation2 + $0x1a20] sm:$0xff]  ;;  %v861_v58 = vld [vmem:[#allocation2 + $0x1a08] sm:$0xff] }
 0x299   :  { %6986 = vmatprep.mubr.bf16.mxu0 %v9141_v47  ;;  %7150 = vmatprep.mubr.bf16.mxu1 %v9141_v47  ;;  %v8744_v1 = vcombine.high %v860_v56, %v864_v57  ;;  %v8743_v8 = vcombine.low %v860_v56, %v864_v57  ;;  %v8745_v9 = vcombine.low %v861_v58, %v865_v60  ;;  %v913_v56 = vld [vmem:[#allocation2 + $0x1ba8] sm:$0xff] }
 0x29b   :  { %6957 = vmatpush1.bf16.msra.mxu0 %v8687_v29  ;;  %7121 = vmatpush1.bf16.msra.mxu1 %v8689_v2  ;;  %v8746_v29 = vcombine.high %v861_v58, %v865_v60  ;;  %v868_v2 = vld [vmem:[#allocation2 + $0x1a40] sm:$0xff] }
 0x29c   :  { %6958 = vmatprep.subr.bf16.mxu0 %v8696_v4  ;;  %7122 = vmatprep.subr.bf16.mxu1 %v8698_v5  ;;  %v872_v4 = vld [vmem:[#allocation2 + $0x1a60] sm:$0xff]  ;;  %v869_v5 = vld [vmem:[#allocation2 + $0x1a48] sm:$0xff] }
 0x29d   :  { %v8752_v12 = vcombine.high %v868_v2, %v872_v4  ;;  %v8751_v19 = vcombine.low %v868_v2, %v872_v4  ;;  %v8753_v20 = vcombine.low %v869_v5, %v873_v53  ;;  %v921_v2 = vld [vmem:[#allocation2 + $0x1be8] sm:$0xff] }
 0x29f   :  { %6959 = vmatpush1.bf16.msra.mxu0 %v8695_v13  ;;  %7123 = vmatpush1.bf16.msra.mxu1 %v8697_v15  ;;  %v8754_v13 = vcombine.high %v869_v5, %v873_v53  ;;  %v876_v15 = vld [vmem:[#allocation2 + $0x1a80] sm:$0xff] }
 0x2a0   :  { %6960 = vmatprep.subr.bf16.mxu0 %v8704_v16  ;;  %7124 = vmatprep.subr.bf16.mxu1 %v8706_v17  ;;  %v880_v16 = vld [vmem:[#allocation2 + $0x1aa0] sm:$0xff]  ;;  %v877_v17 = vld [vmem:[#allocation2 + $0x1a88] sm:$0xff] }
 0x2a1   :  { %v8760_v21 = vcombine.high %v876_v15, %v880_v16  ;;  %v8759_v27 = vcombine.low %v876_v15, %v880_v16  ;;  %v8761_v28 = vcombine.low %v877_v17, %v881_v18  ;;  %v929_v15 = vld [vmem:[#allocation2 + $0x1c28] sm:$0xff] }
 0x2a3   :  { %6961 = vmatpush1.bf16.msra.mxu0 %v8703_v22  ;;  %7125 = vmatpush1.bf16.msra.mxu1 %v8705_v24  ;;  %v8762_v22 = vcombine.high %v877_v17, %v881_v18  ;;  %v884_v24 = vld [vmem:[#allocation2 + $0x1ac0] sm:$0xff] }
 0x2a4   :  { %6962 = vmatprep.subr.bf16.mxu0 %v8712_v25  ;;  %7126 = vmatprep.subr.bf16.mxu1 %v8714_v26  ;;  %v888_v25 = vld [vmem:[#allocation2 + $0x1ae0] sm:$0xff]  ;;  %v885_v26 = vld [vmem:[#allocation2 + $0x1ac8] sm:$0xff] }
 0x2a5   :  { %v8768_v30 = vcombine.high %v884_v24, %v888_v25  ;;  %v8767_v38 = vcombine.low %v884_v24, %v888_v25  ;;  %v8769_v39 = vcombine.low %v885_v26, %v889_v59  ;;  %v937_v24 = vld [vmem:[#allocation2 + $0x1c68] sm:$0xff] }
 0x2a7   :  { %6963 = vmatpush1.bf16.msra.mxu0 %v8711_v32  ;;  %7127 = vmatpush1.bf16.msra.mxu1 %v8713_v33  ;;  %v8770_v32 = vcombine.high %v885_v26, %v889_v59  ;;  %v892_v33 = vld [vmem:[#allocation2 + $0x1b00] sm:$0xff] }
 0x2a8   :  { %6964 = vmatprep.subr.bf16.mxu0 %v8720_v34  ;;  %7128 = vmatprep.subr.bf16.mxu1 %v8722_v35  ;;  %v896_v34 = vld [vmem:[#allocation2 + $0x1b20] sm:$0xff]  ;;  %v893_v35 = vld [vmem:[#allocation2 + $0x1b08] sm:$0xff] }
 0x2a9   :  { %v8776_v40 = vcombine.high %v892_v33, %v896_v34  ;;  %v8775_v48 = vcombine.low %v892_v33, %v896_v34  ;;  %v8777_v49 = vcombine.low %v893_v35, %v897_v36  ;;  %v945_v33 = vld [vmem:[#allocation2 + $0x1ca8] sm:$0xff] }
 0x2ab   :  { %6965 = vmatpush1.bf16.msra.mxu0 %v8719_v41  ;;  %7129 = vmatpush1.bf16.msra.mxu1 %v8721_v42  ;;  %v8778_v41 = vcombine.high %v893_v35, %v897_v36  ;;  %v900_v42 = vld [vmem:[#allocation2 + $0x1b40] sm:$0xff] }
 0x2ac   :  { %6966 = vmatprep.subr.bf16.mxu0 %v8728_v43  ;;  %7130 = vmatprep.subr.bf16.mxu1 %v8730_v45  ;;  %v904_v43 = vld [vmem:[#allocation2 + $0x1b60] sm:$0xff]  ;;  %v901_v45 = vld [vmem:[#allocation2 + $0x1b48] sm:$0xff] }
 0x2ad   :  { %v8784_v50 = vcombine.high %v900_v42, %v904_v43  ;;  %v8783_v57 = vcombine.low %v900_v42, %v904_v43  ;;  %v8785_v58 = vcombine.low %v901_v45, %v905_v46  ;;  %v953_v42 = vld [vmem:[#allocation2 + $0x1ce8] sm:$0xff] }
 0x2af   :  { %6967 = vmatpush1.bf16.msra.mxu0 %v8727_v51  ;;  %7131 = vmatpush1.bf16.msra.mxu1 %v8729_v52  ;;  %v8786_v51 = vcombine.high %v901_v45, %v905_v46  ;;  %v908_v52 = vld [vmem:[#allocation2 + $0x1b80] sm:$0xff] }
 0x2b0   :  { %6968 = vmatprep.subr.bf16.mxu0 %v8736_v54  ;;  %7132 = vmatprep.subr.bf16.mxu1 %v8738_v55  ;;  %v912_v54 = vld [vmem:[#allocation2 + $0x1ba0] sm:$0xff]  ;;  %v909_v55 = vld [vmem:[#allocation2 + $0x1b88] sm:$0xff] }
 0x2b1   :  { %v8792_v60 = vcombine.high %v908_v52, %v912_v54  ;;  %v8791_v4 = vcombine.low %v908_v52, %v912_v54  ;;  %v8793_v5 = vcombine.low %v909_v55, %v913_v56  ;;  %v961_v52 = vld [vmem:[#allocation2 + $0x1d28] sm:$0xff] }
 0x2b3   :  { %6969 = vmatpush1.bf16.msra.mxu0 %v8735_v62  ;;  %7133 = vmatpush1.bf16.msra.mxu1 %v8737_v0  ;;  %v8794_v62 = vcombine.high %v909_v55, %v913_v56  ;;  %v916_v0 = vld [vmem:[#allocation2 + $0x1bc0] sm:$0xff] }
 0x2b4   :  { %6970 = vmatprep.subr.bf16.mxu0 %v8744_v1  ;;  %7134 = vmatprep.subr.bf16.mxu1 %v8746_v29  ;;  %v920_v1 = vld [vmem:[#allocation2 + $0x1be0] sm:$0xff]  ;;  %v917_v29 = vld [vmem:[#allocation2 + $0x1bc8] sm:$0xff] }
 0x2b5   :  { %v8800_v53 = vcombine.high %v916_v0, %v920_v1  ;;  %v8799_v16 = vcombine.low %v916_v0, %v920_v1  ;;  %v8801_v17 = vcombine.low %v917_v29, %v921_v2  ;;  %v969_v0 = vld [vmem:[#allocation2 + $0x1d68] sm:$0xff] }
 0x2b7   :  { %6971 = vmatpush1.bf16.msra.mxu0 %v8743_v8  ;;  %7135 = vmatpush1.bf16.msra.mxu1 %v8745_v9  ;;  %v8802_v8 = vcombine.high %v917_v29, %v921_v2  ;;  %v924_v9 = vld [vmem:[#allocation2 + $0x1c00] sm:$0xff] }
 0x2b8   :  { %6972 = vmatprep.subr.bf16.mxu0 %v8752_v12  ;;  %7136 = vmatprep.subr.bf16.mxu1 %v8754_v13  ;;  %v928_v12 = vld [vmem:[#allocation2 + $0x1c20] sm:$0xff]  ;;  %v925_v13 = vld [vmem:[#allocation2 + $0x1c08] sm:$0xff] }
 0x2b9   :  { %v8808_v18 = vcombine.high %v924_v9, %v928_v12  ;;  %v8807_v25 = vcombine.low %v924_v9, %v928_v12  ;;  %v8809_v26 = vcombine.low %v925_v13, %v929_v15  ;;  %v977_v9 = vld [vmem:[#allocation2 + $0x1da8] sm:$0xff] }
 0x2bb   :  { %6973 = vmatpush1.bf16.msra.mxu0 %v8751_v19  ;;  %7137 = vmatpush1.bf16.msra.mxu1 %v8753_v20  ;;  %v8810_v19 = vcombine.high %v925_v13, %v929_v15  ;;  %v932_v20 = vld [vmem:[#allocation2 + $0x1c40] sm:$0xff] }
 0x2bc   :  { %6974 = vmatprep.subr.bf16.mxu0 %v8760_v21  ;;  %7138 = vmatprep.subr.bf16.mxu1 %v8762_v22  ;;  %v936_v21 = vld [vmem:[#allocation2 + $0x1c60] sm:$0xff]  ;;  %v933_v22 = vld [vmem:[#allocation2 + $0x1c48] sm:$0xff] }
 0x2bd   :  { %v8816_v59 = vcombine.high %v932_v20, %v936_v21  ;;  %v8815_v34 = vcombine.low %v932_v20, %v936_v21  ;;  %v8817_v35 = vcombine.low %v933_v22, %v937_v24 }
 0x2bf   :  { %6975 = vmatpush1.bf16.msra.mxu0 %v8759_v27  ;;  %7139 = vmatpush1.bf16.msra.mxu1 %v8761_v28  ;;  %v8818_v27 = vcombine.high %v933_v22, %v937_v24  ;;  %v940_v28 = vld [vmem:[#allocation2 + $0x1c80] sm:$0xff]  ;;  %v981_v22 = vld [vmem:[#allocation2 + $0x1dc8] sm:$0xff] }
 0x2c0   :  { %6976 = vmatprep.subr.bf16.mxu0 %v8768_v30  ;;  %7140 = vmatprep.subr.bf16.mxu1 %v8770_v32  ;;  %v944_v30 = vld [vmem:[#allocation2 + $0x1ca0] sm:$0xff]  ;;  %v941_v32 = vld [vmem:[#allocation2 + $0x1c88] sm:$0xff] }
 0x2c1   :  { %v8824_v36 = vcombine.high %v940_v28, %v944_v30  ;;  %v8823_v43 = vcombine.low %v940_v28, %v944_v30  ;;  %v8825_v45 = vcombine.low %v941_v32, %v945_v33  ;;  %v985_v24 = vld [vmem:[#allocation2 + $0x1de8] sm:$0xff] }
 0x2c3   :  { %6977 = vmatpush1.bf16.msra.mxu0 %v8767_v38  ;;  %7141 = vmatpush1.bf16.msra.mxu1 %v8769_v39  ;;  %v8826_v38 = vcombine.high %v941_v32, %v945_v33  ;;  %v948_v39 = vld [vmem:[#allocation2 + $0x1cc0] sm:$0xff] }
 0x2c4   :  { %6978 = vmatprep.subr.bf16.mxu0 %v8776_v40  ;;  %7142 = vmatprep.subr.bf16.mxu1 %v8778_v41  ;;  %v952_v40 = vld [vmem:[#allocation2 + $0x1ce0] sm:$0xff]  ;;  %v949_v41 = vld [vmem:[#allocation2 + $0x1cc8] sm:$0xff] }
 0x2c5   :  { %v8832_v46 = vcombine.high %v948_v39, %v952_v40  ;;  %v8831_v54 = vcombine.low %v948_v39, %v952_v40  ;;  %v8833_v55 = vcombine.low %v949_v41, %v953_v42  ;;  %v993_v39 = vld [vmem:[#allocation2 + $0x1e28] sm:$0xff] }
 0x2c7   :  { %6979 = vmatpush1.bf16.msra.mxu0 %v8775_v48  ;;  %7143 = vmatpush1.bf16.msra.mxu1 %v8777_v49  ;;  %v8834_v48 = vcombine.high %v949_v41, %v953_v42  ;;  %v956_v49 = vld [vmem:[#allocation2 + $0x1d00] sm:$0xff]  ;;  %v8865_v41 = vcombine.low %v981_v22, %v985_v24 }
 0x2c8   :  { %6980 = vmatprep.subr.bf16.mxu0 %v8784_v50  ;;  %7144 = vmatprep.subr.bf16.mxu1 %v8786_v51  ;;  %v960_v50 = vld [vmem:[#allocation2 + $0x1d20] sm:$0xff]  ;;  %v957_v51 = vld [vmem:[#allocation2 + $0x1d08] sm:$0xff] }
 0x2c9   :  { %v8840_v56 = vcombine.high %v956_v49, %v960_v50  ;;  %v8839_v1 = vcombine.low %v956_v49, %v960_v50  ;;  %v8841_v29 = vcombine.low %v957_v51, %v961_v52  ;;  %v1001_v49 = vld [vmem:[#allocation2 + $0x1e68] sm:$0xff] }
 0x2cb   :  { %6981 = vmatpush1.bf16.msra.mxu0 %v8783_v57  ;;  %7145 = vmatpush1.bf16.msra.mxu1 %v8785_v58  ;;  %v8842_v57 = vcombine.high %v957_v51, %v961_v52  ;;  %v964_v58 = vld [vmem:[#allocation2 + $0x1d40] sm:$0xff] }
 0x2cc   :  { %6982 = vmatprep.subr.bf16.mxu0 %v8792_v60  ;;  %7146 = vmatprep.subr.bf16.mxu1 %v8794_v62  ;;  %v968_v60 = vld [vmem:[#allocation2 + $0x1d60] sm:$0xff]  ;;  %v965_v62 = vld [vmem:[#allocation2 + $0x1d48] sm:$0xff] }
 0x2cd   :  { %v8848_v2 = vcombine.high %v964_v58, %v968_v60  ;;  %v8847_v12 = vcombine.low %v964_v58, %v968_v60  ;;  %v8849_v13 = vcombine.low %v965_v62, %v969_v0  ;;  %v1009_v58 = vld [vmem:[#allocation2 + $0x1ea8] sm:$0xff] }
 0x2cf   :  { %6983 = vmatpush1.bf16.msra.mxu0 %v8791_v4  ;;  %7147 = vmatpush1.bf16.msra.mxu1 %v8793_v5  ;;  %v8850_v4 = vcombine.high %v965_v62, %v969_v0  ;;  %v972_v5 = vld [vmem:[#allocation2 + $0x1d80] sm:$0xff] }
 0x2d0   :  { %6984 = vmatprep.subr.bf16.mxu0 %v8800_v53  ;;  %7148 = vmatprep.subr.bf16.mxu1 %v8802_v8  ;;  %v976_v53 = vld [vmem:[#allocation2 + $0x1da0] sm:$0xff]  ;;  %v973_v8 = vld [vmem:[#allocation2 + $0x1d88] sm:$0xff] }
 0x2d1   :  { %v8856_v15 = vcombine.high %v972_v5, %v976_v53  ;;  %v8857_v30 = vcombine.low %v973_v8, %v977_v9 }
 0x2d3   :  { %6985 = vmatpush1.bf16.msra.mxu0 %v8799_v16  ;;  %7149 = vmatpush1.bf16.msra.mxu1 %v8801_v17  ;;  %v8858_v17 = vcombine.high %v973_v8, %v977_v9 }
 0x2d4   :  { %6995 = vmatprep.subr.bf16.mxu0 %v8808_v18  ;;  %7159 = vmatprep.subr.bf16.mxu1 %v8810_v19  ;;  %v980_v18 = vld [vmem:[#allocation2 + $0x1dc0] sm:$0xff] }
 0x2d5   :  { %v984_v19 = vld [vmem:[#allocation2 + $0x1de0] sm:$0xff] }
 0x2d6   :  { %6987 = vmatmul.mubr.bf16.vlgmr.msra.gmra.mrb[8].mxu0 %v9137_v37  ;;  %7151 = vmatmul.mubr.bf16.vlgmr.msra.gmra.mrb[8].mxu1 %v9137_v37  ;;  %v8864_v32 = vcombine.high %v980_v18, %v984_v19  ;;  %v8863_v40 = vcombine.low %v980_v18, %v984_v19  ;;  %v1025_v18 = vld [vmem:[#allocation2 + $0x1f28] sm:$0xff] }
 0x2d7   :  { %6996 = vmatpush1.bf16.msra.mxu0 %v8807_v25  ;;  %7160 = vmatpush1.bf16.msra.mxu1 %v8809_v26 }
 0x2d8   :  { %6997 = vmatprep.subr.bf16.mxu0 %v8816_v59  ;;  %7161 = vmatprep.subr.bf16.mxu1 %v8818_v27  ;;  %v8855_v59 = vcombine.low %v972_v5, %v976_v53  ;;  %v1017_v5 = vld [vmem:[#allocation2 + $0x1ee8] sm:$0xff] }
 0x2d9   :  { %7027 = vmatprep.mubr.bf16.mxu0 %v9154_v7  ;;  %7191 = vmatprep.mubr.bf16.mxu1 %v9154_v7 }
 0x2db   :  { %6998 = vmatpush1.bf16.msra.mxu0 %v8815_v34  ;;  %7162 = vmatpush1.bf16.msra.mxu1 %v8817_v35  ;;  %v8866_v34 = vcombine.high %v981_v22, %v985_v24  ;;  %v988_v35 = vld [vmem:[#allocation2 + $0x1e00] sm:$0xff] }
 0x2dc   :  { %6999 = vmatprep.subr.bf16.mxu0 %v8824_v36  ;;  %7163 = vmatprep.subr.bf16.mxu1 %v8826_v38  ;;  %v992_v36 = vld [vmem:[#allocation2 + $0x1e20] sm:$0xff]  ;;  %v989_v38 = vld [vmem:[#allocation2 + $0x1e08] sm:$0xff] }
 0x2dd   :  { %v8872_v42 = vcombine.high %v988_v35, %v992_v36  ;;  %v8871_v50 = vcombine.low %v988_v35, %v992_v36  ;;  %v8873_v51 = vcombine.low %v989_v38, %v993_v39  ;;  %v1036_v36 = vld [vmem:[#allocation2 + $0x1f80] sm:$0xff] }
 0x2df   :  { %7000 = vmatpush1.bf16.msra.mxu0 %v8823_v43  ;;  %7164 = vmatpush1.bf16.msra.mxu1 %v8825_v45  ;;  %v8874_v43 = vcombine.high %v989_v38, %v993_v39  ;;  %v996_v45 = vld [vmem:[#allocation2 + $0x1e40] sm:$0xff]  ;;  %v1037_v39 = vld [vmem:[#allocation2 + $0x1f88] sm:$0xff] }
 0x2e0   :  { %7001 = vmatprep.subr.bf16.mxu0 %v8832_v46  ;;  %7165 = vmatprep.subr.bf16.mxu1 %v8834_v48  ;;  %v1000_v46 = vld [vmem:[#allocation2 + $0x1e60] sm:$0xff]  ;;  %v997_v48 = vld [vmem:[#allocation2 + $0x1e48] sm:$0xff] }
 0x2e1   :  { %v8880_v52 = vcombine.high %v996_v45, %v1000_v46  ;;  %v8879_v60 = vcombine.low %v996_v45, %v1000_v46  ;;  %v8881_v62 = vcombine.low %v997_v48, %v1001_v49  ;;  %v1040_v38 = vld [vmem:[#allocation2 + $0x1fa0] sm:$0xff] }
 0x2e2   :  { %v1044_v46 = vld [vmem:[#allocation2 + $0x1fc0] sm:$0xff] }
 0x2e3   :  { %7002 = vmatpush1.bf16.msra.mxu0 %v8831_v54  ;;  %7166 = vmatpush1.bf16.msra.mxu1 %v8833_v55  ;;  %v8882_v54 = vcombine.high %v997_v48, %v1001_v49  ;;  %v1004_v55 = vld [vmem:[#allocation2 + $0x1e80] sm:$0xff]  ;;  %v1045_v49 = vld [vmem:[#allocation2 + $0x1fc8] sm:$0xff] }
 0x2e4   :  { %7003 = vmatprep.subr.bf16.mxu0 %v8840_v56  ;;  %7167 = vmatprep.subr.bf16.mxu1 %v8842_v57  ;;  %v1008_v56 = vld [vmem:[#allocation2 + $0x1ea0] sm:$0xff]  ;;  %v1005_v57 = vld [vmem:[#allocation2 + $0x1e88] sm:$0xff] }
 0x2e5   :  { %v8888_v0 = vcombine.high %v1004_v55, %v1008_v56  ;;  %v8887_v53 = vcombine.low %v1004_v55, %v1008_v56  ;;  %v8889_v8 = vcombine.low %v1005_v57, %v1009_v58  ;;  %v1048_v48 = vld [vmem:[#allocation2 + $0x1fe0] sm:$0xff]  ;;  %v542_v56 = vld [vmem:[#allocation2 + $0x1010] sm:$0xff] }
 0x2e7   :  { %7004 = vmatpush1.bf16.msra.mxu0 %v8839_v1  ;;  %7168 = vmatpush1.bf16.msra.mxu1 %v8841_v29  ;;  %v8890_v1 = vcombine.high %v1005_v57, %v1009_v58  ;;  %v1012_v29 = vld [vmem:[#allocation2 + $0x1ec0] sm:$0xff]  ;;  %v546_v57 = vld [vmem:[#allocation2 + $0x1030] sm:$0xff]  ;;  %v543_v58 = vld [vmem:[#allocation2 + $0x1018] sm:$0xff] }
 0x2e8   :  { %7005 = vmatprep.subr.bf16.mxu0 %v8848_v2  ;;  %7169 = vmatprep.subr.bf16.mxu1 %v8850_v4  ;;  %v1016_v2 = vld [vmem:[#allocation2 + $0x1ee0] sm:$0xff]  ;;  %v1013_v4 = vld [vmem:[#allocation2 + $0x1ec8] sm:$0xff] }
 0x2e9   :  { %v9200_v16 = vpop.f32.mrb[4].mxu0  ;;  %v9202_v20 = vpop.f32.mrb[4].mxu1  ;;  %v8896_v9 = vcombine.high %v1012_v29, %v1016_v2  ;;  %v8895_v19 = vcombine.low %v1012_v29, %v1016_v2  ;;  %v8897_v22 = vcombine.low %v1013_v4, %v1017_v5  ;;  %v550_v2 = vld [vmem:[#allocation2 + $0x1050] sm:$0xff] }
 0x2ea   :  { %v9204_v21 = vpop.f32.mrb[5].mxu0  ;;  %v9206_v25 = vpop.f32.mrb[5].mxu1 }
 0x2eb   :  { %v4145_v26 = vpop.f32.mrb[6].mxu0  ;;  %7006 = vmatpush1.bf16.msra.mxu0 %v8847_v12  ;;  %v4309_v27 = vpop.f32.mrb[6].mxu1  ;;  %7170 = vmatpush1.bf16.msra.mxu1 %v8849_v13  ;;  %v8898_v12 = vcombine.high %v1013_v4, %v1017_v5  ;;  %v1020_v13 = vld [vmem:[#allocation2 + $0x1f00] sm:$0xff]  ;;  %v554_v4 = vld [vmem:[#allocation2 + $0x1070] sm:$0xff]  ;;  %v551_v5 = vld [vmem:[#allocation2 + $0x1058] sm:$0xff] }
 0x2ec   :  { %v4146_v28 = vpop.f32.mrb[7].mxu0  ;;  %7007 = vmatprep.subr.bf16.mxu0 %v8856_v15  ;;  %v4310_v33 = vpop.f32.mrb[7].mxu1  ;;  %7171 = vmatprep.subr.bf16.mxu1 %v8858_v17  ;;  %v1024_v15 = vld [vmem:[#allocation2 + $0x1f20] sm:$0xff]  ;;  %v1021_v17 = vld [vmem:[#allocation2 + $0x1f08] sm:$0xff] }
 0x2ed   :  { %v8904_v24 = vcombine.high %v1020_v13, %v1024_v15  ;;  %v8906_v26 = vcombine.high %v1021_v17, %v1025_v18  ;;  %v1032_v27 = vld [vmem:[#allocation2 + $0x1f60] sm:$0xff]  ;;  %v1029_v28 = vld [vmem:[#allocation2 + $0x1f48] sm:$0xff]  ;;  %v8905_v33 = vcombine.low %v1021_v17, %v1025_v18  ;;  %v562_v17 = vld [vmem:[#allocation2 + $0x10b0] sm:$0xff] }
 0x2ee   :  { %v559_v18 = vld [vmem:[#allocation2 + $0x1098] sm:$0xff] }
 0x2ef   :  { %7008 = vmatpush1.bf16.msra.mxu0 %v8855_v59  ;;  %7172 = vmatpush1.bf16.msra.mxu1 %v8857_v30  ;;  %v1028_v59 = vld [vmem:[#allocation2 + $0x1f40] sm:$0xff]  ;;  %v1033_v30 = vld [vmem:[#allocation2 + $0x1f68] sm:$0xff] }
 0x2f0   :  { %7009 = vmatprep.subr.bf16.mxu0 %v8864_v32  ;;  %7173 = vmatprep.subr.bf16.mxu1 %v8866_v34  ;;  %v8903_v32 = vcombine.low %v1020_v13, %v1024_v15  ;;  %v8912_v34 = vcombine.high %v1028_v59, %v1032_v27  ;;  %v8914_v35 = vcombine.high %v1029_v28, %v1033_v30  ;;  %v558_v15 = vld [vmem:[#allocation2 + $0x1090] sm:$0xff] }
 0x2f3   :  { %7010 = vmatpush1.bf16.msra.mxu0 %v8863_v40  ;;  %7174 = vmatpush1.bf16.msra.mxu1 %v8865_v41  ;;  %v1041_v40 = vld [vmem:[#allocation2 + $0x1fa8] sm:$0xff]  ;;  %v8911_v41 = vcombine.low %v1028_v59, %v1032_v27  ;;  %v566_v27 = vld [vmem:[#allocation2 + $0x10d0] sm:$0xff] }
 0x2f4   :  { %7011 = vmatprep.subr.bf16.mxu0 %v8872_v42  ;;  %7175 = vmatprep.subr.bf16.mxu1 %v8874_v43  ;;  %v8913_v42 = vcombine.low %v1029_v28, %v1033_v30  ;;  %v8920_v43 = vcombine.high %v1036_v36, %v1040_v38  ;;  %v8922_v45 = vcombine.high %v1037_v39, %v1041_v40  ;;  %v570_v28 = vld [vmem:[#allocation2 + $0x10f0] sm:$0xff]  ;;  %v567_v30 = vld [vmem:[#allocation2 + $0x10d8] sm:$0xff] }
 0x2f7   :  { %7012 = vmatpush1.bf16.msra.mxu0 %v8871_v50  ;;  %7176 = vmatpush1.bf16.msra.mxu1 %v8873_v51  ;;  %v1049_v50 = vld [vmem:[#allocation2 + $0x1fe8] sm:$0xff]  ;;  %v8919_v51 = vcombine.low %v1036_v36, %v1040_v38  ;;  %v574_v38 = vld [vmem:[#allocation2 + $0x1110] sm:$0xff] }
 0x2f8   :  { %7013 = vmatprep.subr.bf16.mxu0 %v8880_v52  ;;  %7177 = vmatprep.subr.bf16.mxu1 %v8882_v54  ;;  %v8921_v52 = vcombine.low %v1037_v39, %v1041_v40  ;;  %v8928_v54 = vcombine.high %v1044_v46, %v1048_v48  ;;  %v8930_v55 = vcombine.high %v1045_v49, %v1049_v50  ;;  %v578_v39 = vld [vmem:[#allocation2 + $0x1130] sm:$0xff]  ;;  %v575_v40 = vld [vmem:[#allocation2 + $0x1118] sm:$0xff] }
 0x2fb   :  { %7014 = vmatpush1.bf16.msra.mxu0 %v8879_v60  ;;  %7178 = vmatpush1.bf16.msra.mxu1 %v8881_v62  ;;  %v547_v60 = vld [vmem:[#allocation2 + $0x1038] sm:$0xff]  ;;  %v8927_v62 = vcombine.low %v1044_v46, %v1048_v48  ;;  %v582_v46 = vld [vmem:[#allocation2 + $0x1150] sm:$0xff] }
 0x2fc   :  { %7015 = vmatprep.subr.bf16.mxu0 %v8888_v0  ;;  %7179 = vmatprep.subr.bf16.mxu1 %v8890_v1  ;;  %v8929_v0 = vcombine.low %v1045_v49, %v1049_v50  ;;  %v8428_v1 = vcombine.high %v542_v56, %v546_v57  ;;  %v8430_v29 = vcombine.high %v543_v58, %v547_v60  ;;  %v586_v48 = vld [vmem:[#allocation2 + $0x1170] sm:$0xff]  ;;  %v583_v49 = vld [vmem:[#allocation2 + $0x1158] sm:$0xff] }
 0x2fd   :  { %v587_v50 = vld [vmem:[#allocation2 + $0x1178] sm:$0xff] }
 0x2ff   :  { %7016 = vmatpush1.bf16.msra.mxu0 %v8887_v53  ;;  %7180 = vmatpush1.bf16.msra.mxu1 %v8889_v8  ;;  %v555_v53 = vld [vmem:[#allocation2 + $0x1078] sm:$0xff]  ;;  %v8427_v8 = vcombine.low %v542_v56, %v546_v57  ;;  %v590_v56 = vld [vmem:[#allocation2 + $0x1190] sm:$0xff] }
 0x300   :  { %7017 = vmatprep.subr.bf16.mxu0 %v8896_v9  ;;  %7181 = vmatprep.subr.bf16.mxu1 %v8898_v12  ;;  %v8429_v9 = vcombine.low %v543_v58, %v547_v60  ;;  %v8436_v12 = vcombine.high %v550_v2, %v554_v4  ;;  %v8438_v13 = vcombine.high %v551_v5, %v555_v53  ;;  %v594_v57 = vld [vmem:[#allocation2 + $0x11b0] sm:$0xff]  ;;  %v591_v58 = vld [vmem:[#allocation2 + $0x1198] sm:$0xff] }
 0x301   :  { %v595_v60 = vld [vmem:[#allocation2 + $0x11b8] sm:$0xff] }
 0x303   :  { %7018 = vmatpush1.bf16.msra.mxu0 %v8895_v19  ;;  %7182 = vmatpush1.bf16.msra.mxu1 %v8897_v22  ;;  %v563_v19 = vld [vmem:[#allocation2 + $0x10b8] sm:$0xff]  ;;  %v8435_v22 = vcombine.low %v550_v2, %v554_v4  ;;  %v598_v2 = vld [vmem:[#allocation2 + $0x11d0] sm:$0xff] }
 0x304   :  { %7019 = vmatprep.subr.bf16.mxu0 %v8904_v24  ;;  %7183 = vmatprep.subr.bf16.mxu1 %v8906_v26  ;;  %v8437_v24 = vcombine.low %v551_v5, %v555_v53  ;;  %v8444_v26 = vcombine.high %v558_v15, %v562_v17  ;;  %v8446_v59 = vcombine.high %v559_v18, %v563_v19  ;;  %v602_v4 = vld [vmem:[#allocation2 + $0x11f0] sm:$0xff]  ;;  %v599_v5 = vld [vmem:[#allocation2 + $0x11d8] sm:$0xff] }
 0x305   :  { %v603_v53 = vld [vmem:[#allocation2 + $0x11f8] sm:$0xff] }
 0x307   :  { %7020 = vmatpush1.bf16.msra.mxu0 %v8903_v32  ;;  %7184 = vmatpush1.bf16.msra.mxu1 %v8905_v33  ;;  %v571_v32 = vld [vmem:[#allocation2 + $0x10f8] sm:$0xff]  ;;  %v8443_v33 = vcombine.low %v558_v15, %v562_v17  ;;  %v606_v15 = vld [vmem:[#allocation2 + $0x1210] sm:$0xff] }
 0x308   :  { %7021 = vmatprep.subr.bf16.mxu0 %v8912_v34  ;;  %7185 = vmatprep.subr.bf16.mxu1 %v8914_v35  ;;  %v8445_v34 = vcombine.low %v559_v18, %v563_v19  ;;  %v8452_v35 = vcombine.high %v566_v27, %v570_v28  ;;  %v8454_v36 = vcombine.high %v567_v30, %v571_v32  ;;  %v610_v17 = vld [vmem:[#allocation2 + $0x1230] sm:$0xff]  ;;  %v607_v18 = vld [vmem:[#allocation2 + $0x1218] sm:$0xff] }
 0x309   :  { %v611_v19 = vld [vmem:[#allocation2 + $0x1238] sm:$0xff] }
 0x30b   :  { %7022 = vmatpush1.bf16.msra.mxu0 %v8911_v41  ;;  %7186 = vmatpush1.bf16.msra.mxu1 %v8913_v42  ;;  %v579_v41 = vld [vmem:[#allocation2 + $0x1138] sm:$0xff]  ;;  %v8451_v42 = vcombine.low %v566_v27, %v570_v28  ;;  %v614_v27 = vld [vmem:[#allocation2 + $0x1250] sm:$0xff] }
 0x30c   :  { %7023 = vmatprep.subr.bf16.mxu0 %v8920_v43  ;;  %7187 = vmatprep.subr.bf16.mxu1 %v8922_v45  ;;  %v8453_v43 = vcombine.low %v567_v30, %v571_v32  ;;  %v8460_v45 = vcombine.high %v574_v38, %v578_v39  ;;  %v618_v28 = vld [vmem:[#allocation2 + $0x1270] sm:$0xff]  ;;  %v615_v30 = vld [vmem:[#allocation2 + $0x1258] sm:$0xff] }
 0x30d   :  { %v619_v32 = vld [vmem:[#allocation2 + $0x1278] sm:$0xff] }
 0x30f   :  { %7024 = vmatpush1.bf16.msra.mxu0 %v8919_v51  ;;  %7188 = vmatpush1.bf16.msra.mxu1 %v8921_v52  ;;  %v8459_v51 = vcombine.low %v574_v38, %v578_v39  ;;  %v8461_v52 = vcombine.low %v575_v40, %v579_v41  ;;  %v622_v38 = vld [vmem:[#allocation2 + $0x1290] sm:$0xff] }
 0x310   :  { %7025 = vmatprep.subr.bf16.mxu0 %v8928_v54  ;;  %7189 = vmatprep.subr.bf16.mxu1 %v8930_v55  ;;  %v8468_v54 = vcombine.high %v582_v46, %v586_v48  ;;  %v8470_v55 = vcombine.high %v583_v49, %v587_v50  ;;  %v626_v39 = vld [vmem:[#allocation2 + $0x12b0] sm:$0xff] }
 0x313   :  { %7026 = vmatpush1.bf16.msra.mxu0 %v8927_v62  ;;  %7190 = vmatpush1.bf16.msra.mxu1 %v8929_v0  ;;  %v8467_v62 = vcombine.low %v582_v46, %v586_v48  ;;  %v8469_v0 = vcombine.low %v583_v49, %v587_v50  ;;  %v630_v46 = vld [vmem:[#allocation2 + $0x12d0] sm:$0xff]  ;;  %v631_v49 = vld [vmem:[#allocation2 + $0x12d8] sm:$0xff] }
 0x314   :  { %7200 = vmatprep.subr.bf16.mxu0 %v8428_v1  ;;  %7364 = vmatprep.subr.bf16.mxu1 %v8430_v29  ;;  %v8476_v1 = vcombine.high %v590_v56, %v594_v57  ;;  %v8478_v29 = vcombine.high %v591_v58, %v595_v60  ;;  %v634_v48 = vld [vmem:[#allocation2 + $0x12f0] sm:$0xff]  ;;  %v635_v50 = vld [vmem:[#allocation2 + $0x12f8] sm:$0xff] }
 0x316   :  { %7028 = vmatmul.mubr.bf16.vlgmr.msra.gmra.mrb[8].mxu0 %v9150_v61  ;;  %7192 = vmatmul.mubr.bf16.vlgmr.msra.gmra.mrb[8].mxu1 %v9150_v61 }
 0x317   :  { %7201 = vmatpush1.bf16.msra.mxu0 %v8427_v8  ;;  %7365 = vmatpush1.bf16.msra.mxu1 %v8429_v9  ;;  %v8475_v8 = vcombine.low %v590_v56, %v594_v57  ;;  %v8477_v9 = vcombine.low %v591_v58, %v595_v60  ;;  %v638_v56 = vld [vmem:[#allocation2 + $0x1310] sm:$0xff]  ;;  %v639_v58 = vld [vmem:[#allocation2 + $0x1318] sm:$0xff] }
 0x318   :  { %7202 = vmatprep.subr.bf16.mxu0 %v8436_v12  ;;  %7366 = vmatprep.subr.bf16.mxu1 %v8438_v13  ;;  %v8484_v12 = vcombine.high %v598_v2, %v602_v4  ;;  %v8486_v13 = vcombine.high %v599_v5, %v603_v53  ;;  %v642_v57 = vld [vmem:[#allocation2 + $0x1330] sm:$0xff]  ;;  %v643_v60 = vld [vmem:[#allocation2 + $0x1338] sm:$0xff] }
 0x319   :  { %7232 = vmatprep.mubr.bf16.mxu0 %v9113_v3  ;;  %7396 = vmatprep.mubr.bf16.mxu1 %v9113_v3  ;;  %v8462_v3 = vcombine.high %v575_v40, %v579_v41  ;;  %v623_v40 = vld [vmem:[#allocation2 + $0x1298] sm:$0xff] }
 0x31a   :  { %v627_v41 = vld [vmem:[#allocation2 + $0x12b8] sm:$0xff] }
 0x31b   :  { %7203 = vmatpush1.bf16.msra.mxu0 %v8435_v22  ;;  %7367 = vmatpush1.bf16.msra.mxu1 %v8437_v24  ;;  %v8483_v22 = vcombine.low %v598_v2, %v602_v4  ;;  %v8485_v24 = vcombine.low %v599_v5, %v603_v53  ;;  %v646_v2 = vld [vmem:[#allocation2 + $0x1350] sm:$0xff]  ;;  %v647_v5 = vld [vmem:[#allocation2 + $0x1358] sm:$0xff] }
 0x31c   :  { %7204 = vmatprep.subr.bf16.mxu0 %v8444_v26  ;;  %7368 = vmatprep.subr.bf16.mxu1 %v8446_v59  ;;  %v8492_v26 = vcombine.high %v606_v15, %v610_v17  ;;  %v8494_v59 = vcombine.high %v607_v18, %v611_v19  ;;  %v650_v4 = vld [vmem:[#allocation2 + $0x1370] sm:$0xff]  ;;  %v651_v53 = vld [vmem:[#allocation2 + $0x1378] sm:$0xff] }
 0x31f   :  { %7205 = vmatpush1.bf16.msra.mxu0 %v8443_v33  ;;  %7369 = vmatpush1.bf16.msra.mxu1 %v8445_v34  ;;  %v8491_v33 = vcombine.low %v606_v15, %v610_v17  ;;  %v8493_v34 = vcombine.low %v607_v18, %v611_v19  ;;  %v654_v15 = vld [vmem:[#allocation2 + $0x1390] sm:$0xff]  ;;  %v655_v18 = vld [vmem:[#allocation2 + $0x1398] sm:$0xff] }
 0x320   :  { %7206 = vmatprep.subr.bf16.mxu0 %v8452_v35  ;;  %7370 = vmatprep.subr.bf16.mxu1 %v8454_v36  ;;  %v8500_v35 = vcombine.high %v614_v27, %v618_v28  ;;  %v8502_v36 = vcombine.high %v615_v30, %v619_v32  ;;  %v658_v17 = vld [vmem:[#allocation2 + $0x13b0] sm:$0xff]  ;;  %v659_v19 = vld [vmem:[#allocation2 + $0x13b8] sm:$0xff] }
 0x323   :  { %7207 = vmatpush1.bf16.msra.mxu0 %v8451_v42  ;;  %7371 = vmatpush1.bf16.msra.mxu1 %v8453_v43  ;;  %v8499_v42 = vcombine.low %v614_v27, %v618_v28  ;;  %v8501_v43 = vcombine.low %v615_v30, %v619_v32  ;;  %v662_v27 = vld [vmem:[#allocation2 + $0x13d0] sm:$0xff]  ;;  %v663_v30 = vld [vmem:[#allocation2 + $0x13d8] sm:$0xff] }
 0x324   :  { %7208 = vmatprep.subr.bf16.mxu0 %v8460_v45  ;;  %7372 = vmatprep.subr.bf16.mxu1 %v8462_v3  ;;  %v8508_v45 = vcombine.high %v622_v38, %v626_v39  ;;  %v8510_v3 = vcombine.high %v623_v40, %v627_v41  ;;  %v666_v28 = vld [vmem:[#allocation2 + $0x13f0] sm:$0xff]  ;;  %v667_v32 = vld [vmem:[#allocation2 + $0x13f8] sm:$0xff] }
 0x327   :  { %7209 = vmatpush1.bf16.msra.mxu0 %v8459_v51  ;;  %7373 = vmatpush1.bf16.msra.mxu1 %v8461_v52  ;;  %v8507_v51 = vcombine.low %v622_v38, %v626_v39  ;;  %v8509_v52 = vcombine.low %v623_v40, %v627_v41  ;;  %v670_v38 = vld [vmem:[#allocation2 + $0x1410] sm:$0xff]  ;;  %v671_v40 = vld [vmem:[#allocation2 + $0x1418] sm:$0xff] }
 0x328   :  { %7210 = vmatprep.subr.bf16.mxu0 %v8468_v54  ;;  %7374 = vmatprep.subr.bf16.mxu1 %v8470_v55  ;;  %v8516_v54 = vcombine.high %v630_v46, %v634_v48  ;;  %v8518_v55 = vcombine.high %v631_v49, %v635_v50  ;;  %v674_v39 = vld [vmem:[#allocation2 + $0x1430] sm:$0xff]  ;;  %v675_v41 = vld [vmem:[#allocation2 + $0x1438] sm:$0xff] }
 0x32b   :  { %7211 = vmatpush1.bf16.msra.mxu0 %v8467_v62  ;;  %7375 = vmatpush1.bf16.msra.mxu1 %v8469_v0  ;;  %v8515_v62 = vcombine.low %v630_v46, %v634_v48  ;;  %v8517_v0 = vcombine.low %v631_v49, %v635_v50  ;;  %v678_v46 = vld [vmem:[#allocation2 + $0x1450] sm:$0xff]  ;;  %v679_v49 = vld [vmem:[#allocation2 + $0x1458] sm:$0xff] }
 0x32c   :  { %7212 = vmatprep.subr.bf16.mxu0 %v8476_v1  ;;  %7376 = vmatprep.subr.bf16.mxu1 %v8478_v29  ;;  %v8524_v1 = vcombine.high %v638_v56, %v642_v57  ;;  %v8526_v29 = vcombine.high %v639_v58, %v643_v60  ;;  %v682_v48 = vld [vmem:[#allocation2 + $0x1470] sm:$0xff]  ;;  %v683_v50 = vld [vmem:[#allocation2 + $0x1478] sm:$0xff] }
 0x32f   :  { %7213 = vmatpush1.bf16.msra.mxu0 %v8475_v8  ;;  %7377 = vmatpush1.bf16.msra.mxu1 %v8477_v9  ;;  %v8523_v8 = vcombine.low %v638_v56, %v642_v57  ;;  %v8525_v9 = vcombine.low %v639_v58, %v643_v60  ;;  %v686_v56 = vld [vmem:[#allocation2 + $0x1490] sm:$0xff]  ;;  %v687_v58 = vld [vmem:[#allocation2 + $0x1498] sm:$0xff] }
 0x330   :  { %7214 = vmatprep.subr.bf16.mxu0 %v8484_v12  ;;  %7378 = vmatprep.subr.bf16.mxu1 %v8486_v13  ;;  %v8532_v12 = vcombine.high %v646_v2, %v650_v4  ;;  %v8534_v13 = vcombine.high %v647_v5, %v651_v53  ;;  %v690_v57 = vld [vmem:[#allocation2 + $0x14b0] sm:$0xff]  ;;  %v691_v60 = vld [vmem:[#allocation2 + $0x14b8] sm:$0xff] }
 0x333   :  { %7215 = vmatpush1.bf16.msra.mxu0 %v8483_v22  ;;  %7379 = vmatpush1.bf16.msra.mxu1 %v8485_v24  ;;  %v8531_v22 = vcombine.low %v646_v2, %v650_v4  ;;  %v8533_v24 = vcombine.low %v647_v5, %v651_v53  ;;  %v694_v2 = vld [vmem:[#allocation2 + $0x14d0] sm:$0xff]  ;;  %v695_v5 = vld [vmem:[#allocation2 + $0x14d8] sm:$0xff] }
 0x334   :  { %7216 = vmatprep.subr.bf16.mxu0 %v8492_v26  ;;  %7380 = vmatprep.subr.bf16.mxu1 %v8494_v59  ;;  %v8540_v26 = vcombine.high %v654_v15, %v658_v17  ;;  %v8542_v59 = vcombine.high %v655_v18, %v659_v19  ;;  %v698_v4 = vld [vmem:[#allocation2 + $0x14f0] sm:$0xff]  ;;  %v699_v53 = vld [vmem:[#allocation2 + $0x14f8] sm:$0xff] }
 0x337   :  { %7217 = vmatpush1.bf16.msra.mxu0 %v8491_v33  ;;  %7381 = vmatpush1.bf16.msra.mxu1 %v8493_v34  ;;  %v8539_v33 = vcombine.low %v654_v15, %v658_v17  ;;  %v8541_v34 = vcombine.low %v655_v18, %v659_v19  ;;  %v706_v15 = vld [vmem:[#allocation2 + $0x1530] sm:$0xff]  ;;  %v703_v17 = vld [vmem:[#allocation2 + $0x1518] sm:$0xff]  ;;  %v8579_v19 = vcombine.low %v694_v2, %v698_v4 }
 0x338   :  { %7218 = vmatprep.subr.bf16.mxu0 %v8500_v35  ;;  %7382 = vmatprep.subr.bf16.mxu1 %v8502_v36  ;;  %v8548_v35 = vcombine.high %v662_v27, %v666_v28  ;;  %v8550_v36 = vcombine.high %v663_v30, %v667_v32  ;;  %v707_v18 = vld [vmem:[#allocation2 + $0x1538] sm:$0xff] }
 0x33b   :  { %7219 = vmatpush1.bf16.msra.mxu0 %v8499_v42  ;;  %7383 = vmatpush1.bf16.msra.mxu1 %v8501_v43  ;;  %v8547_v42 = vcombine.low %v662_v27, %v666_v28  ;;  %v8549_v43 = vcombine.low %v663_v30, %v667_v32  ;;  %v711_v27 = vld [vmem:[#allocation2 + $0x1558] sm:$0xff]  ;;  %v8589_v32 = vcombine.low %v703_v17, %v707_v18 }
 0x33c   :  { %7220 = vmatprep.subr.bf16.mxu0 %v8508_v45  ;;  %7384 = vmatprep.subr.bf16.mxu1 %v8510_v3  ;;  %v8556_v45 = vcombine.high %v670_v38, %v674_v39  ;;  %v8558_v3 = vcombine.high %v671_v40, %v675_v41  ;;  %v715_v28 = vld [vmem:[#allocation2 + $0x1578] sm:$0xff] }
 0x33f   :  { %7221 = vmatpush1.bf16.msra.mxu0 %v8507_v51  ;;  %7385 = vmatpush1.bf16.msra.mxu1 %v8509_v52  ;;  %v8555_v51 = vcombine.low %v670_v38, %v674_v39  ;;  %v8557_v52 = vcombine.low %v671_v40, %v675_v41  ;;  %v719_v38 = vld [vmem:[#allocation2 + $0x1598] sm:$0xff]  ;;  %v8597_v41 = vcombine.low %v711_v27, %v715_v28 }
 0x340   :  { %7222 = vmatprep.subr.bf16.mxu0 %v8516_v54  ;;  %7386 = vmatprep.subr.bf16.mxu1 %v8518_v55  ;;  %v8564_v54 = vcombine.high %v678_v46, %v682_v48  ;;  %v8566_v55 = vcombine.high %v679_v49, %v683_v50  ;;  %v723_v39 = vld [vmem:[#allocation2 + $0x15b8] sm:$0xff] }
 0x343   :  { %7223 = vmatpush1.bf16.msra.mxu0 %v8515_v62  ;;  %7387 = vmatpush1.bf16.msra.mxu1 %v8517_v0  ;;  %v8563_v62 = vcombine.low %v678_v46, %v682_v48  ;;  %v8565_v0 = vcombine.low %v679_v49, %v683_v50  ;;  %v727_v46 = vld [vmem:[#allocation2 + $0x15d8] sm:$0xff]  ;;  %v8605_v50 = vcombine.low %v719_v38, %v723_v39 }
 0x344   :  { %7224 = vmatprep.subr.bf16.mxu0 %v8524_v1  ;;  %7388 = vmatprep.subr.bf16.mxu1 %v8526_v29  ;;  %v8572_v1 = vcombine.high %v686_v56, %v690_v57  ;;  %v8574_v29 = vcombine.high %v687_v58, %v691_v60  ;;  %v731_v48 = vld [vmem:[#allocation2 + $0x15f8] sm:$0xff] }
 0x347   :  { %7225 = vmatpush1.bf16.msra.mxu0 %v8523_v8  ;;  %7389 = vmatpush1.bf16.msra.mxu1 %v8525_v9  ;;  %v8571_v8 = vcombine.low %v686_v56, %v690_v57  ;;  %v8580_v9 = vcombine.high %v694_v2, %v698_v4  ;;  %v735_v56 = vld [vmem:[#allocation2 + $0x1618] sm:$0xff] }
 0x348   :  { %7226 = vmatprep.subr.bf16.mxu0 %v8532_v12  ;;  %7390 = vmatprep.subr.bf16.mxu1 %v8534_v13  ;;  %v8582_v12 = vcombine.high %v695_v5, %v699_v53  ;;  %v702_v13 = vld [vmem:[#allocation2 + $0x1510] sm:$0xff]  ;;  %v739_v57 = vld [vmem:[#allocation2 + $0x1638] sm:$0xff] }
 0x349   :  { %v8587_v30 = vcombine.low %v702_v13, %v706_v15  ;;  %v743_v2 = vld [vmem:[#allocation2 + $0x1658] sm:$0xff] }
 0x34a   :  { %v747_v4 = vld [vmem:[#allocation2 + $0x1678] sm:$0xff] }
 0x34b   :  { %7227 = vmatpush1.bf16.msra.mxu0 %v8531_v22  ;;  %7391 = vmatpush1.bf16.msra.mxu1 %v8533_v24  ;;  %v8581_v22 = vcombine.low %v695_v5, %v699_v53  ;;  %v8588_v24 = vcombine.high %v702_v13, %v706_v15  ;;  %v8621_v53 = vcombine.low %v735_v56, %v739_v57  ;;  %v751_v13 = vld [vmem:[#allocation2 + $0x1698] sm:$0xff] }
 0x34c   :  { %7228 = vmatprep.subr.bf16.mxu0 %v8540_v26  ;;  %7392 = vmatprep.subr.bf16.mxu1 %v8542_v59  ;;  %v710_v26 = vld [vmem:[#allocation2 + $0x1550] sm:$0xff]  ;;  %v755_v15 = vld [vmem:[#allocation2 + $0x16b8] sm:$0xff] }
 0x34d   :  { %v714_v59 = vld [vmem:[#allocation2 + $0x1570] sm:$0xff] }
 0x34e   :  { %v8595_v40 = vcombine.low %v710_v26, %v714_v59 }
 0x34f   :  { %7229 = vmatpush1.bf16.msra.mxu0 %v8539_v33  ;;  %7393 = vmatpush1.bf16.msra.mxu1 %v8541_v34  ;;  %v8596_v33 = vcombine.high %v710_v26, %v714_v59  ;;  %v8598_v34 = vcombine.high %v711_v27, %v715_v28  ;;  %v759_v26 = vld [vmem:[#allocation2 + $0x16d8] sm:$0xff]  ;;  %v8637_v28 = vcombine.low %v751_v13, %v755_v15 }
 0x350   :  { %7230 = vmatprep.subr.bf16.mxu0 %v8548_v35  ;;  %7394 = vmatprep.subr.bf16.mxu1 %v8550_v36  ;;  %v718_v35 = vld [vmem:[#allocation2 + $0x1590] sm:$0xff]  ;;  %v763_v59 = vld [vmem:[#allocation2 + $0x16f8] sm:$0xff] }
 0x351   :  { %v722_v36 = vld [vmem:[#allocation2 + $0x15b0] sm:$0xff] }
 0x352   :  { %v8603_v49 = vcombine.low %v718_v35, %v722_v36 }
 0x353   :  { %7231 = vmatpush1.bf16.msra.mxu0 %v8547_v42  ;;  %7395 = vmatpush1.bf16.msra.mxu1 %v8549_v43  ;;  %v8604_v42 = vcombine.high %v718_v35, %v722_v36  ;;  %v8606_v43 = vcombine.high %v719_v38, %v723_v39  ;;  %v767_v35 = vld [vmem:[#allocation2 + $0x1718] sm:$0xff]  ;;  %v8645_v39 = vcombine.low %v759_v26, %v763_v59 }
 0x354   :  { %7241 = vmatprep.subr.bf16.mxu0 %v8556_v45  ;;  %7405 = vmatprep.subr.bf16.mxu1 %v8558_v3  ;;  %v726_v45 = vld [vmem:[#allocation2 + $0x15d0] sm:$0xff]  ;;  %v771_v36 = vld [vmem:[#allocation2 + $0x1738] sm:$0xff] }
 0x355   :  { %v730_v3 = vld [vmem:[#allocation2 + $0x15f0] sm:$0xff] }
 0x356   :  { %7233 = vmatmul.mubr.bf16.vlgmr.msra.gmra.mrb[12].mxu0 %v9109_v63  ;;  %7397 = vmatmul.mubr.bf16.vlgmr.msra.gmra.mrb[12].mxu1 %v9109_v63  ;;  %v8573_v63 = vcombine.low %v687_v58, %v691_v60  ;;  %v8611_v58 = vcombine.low %v726_v45, %v730_v3  ;;  %v8613_v60 = vcombine.low %v727_v46, %v731_v48 }
 0x357   :  { %7242 = vmatpush1.bf16.msra.mxu0 %v8555_v51  ;;  %7406 = vmatpush1.bf16.msra.mxu1 %v8557_v52  ;;  %v8612_v51 = vcombine.high %v726_v45, %v730_v3  ;;  %v8614_v52 = vcombine.high %v727_v46, %v731_v48  ;;  %v775_v45 = vld [vmem:[#allocation2 + $0x1758] sm:$0xff]  ;;  %v8653_v48 = vcombine.low %v767_v35, %v771_v36 }
 0x358   :  { %7243 = vmatprep.subr.bf16.mxu0 %v8564_v54  ;;  %7407 = vmatprep.subr.bf16.mxu1 %v8566_v55  ;;  %v734_v54 = vld [vmem:[#allocation2 + $0x1610] sm:$0xff]  ;;  %v779_v3 = vld [vmem:[#allocation2 + $0x1778] sm:$0xff] }
 0x359   :  { %7273 = vmatprep.mubr.bf16.mxu0 %v9124_v31  ;;  %7437 = vmatprep.mubr.bf16.mxu1 %v9124_v31  ;;  %v8590_v31 = vcombine.high %v703_v17, %v707_v18  ;;  %v738_v55 = vld [vmem:[#allocation2 + $0x1630] sm:$0xff]  ;;  %v8629_v18 = vcombine.low %v743_v2, %v747_v4 }
 0x35a   :  { %v8619_v5 = vcombine.low %v734_v54, %v738_v55 }
 0x35b   :  { %7244 = vmatpush1.bf16.msra.mxu0 %v8563_v62  ;;  %7408 = vmatpush1.bf16.msra.mxu1 %v8565_v0  ;;  %v8620_v62 = vcombine.high %v734_v54, %v738_v55  ;;  %v8622_v0 = vcombine.high %v735_v56, %v739_v57  ;;  %v783_v54 = vld [vmem:[#allocation2 + $0x1798] sm:$0xff]  ;;  %v8661_v57 = vcombine.low %v775_v45, %v779_v3 }
 0x35c   :  { %7245 = vmatprep.subr.bf16.mxu0 %v8572_v1  ;;  %7409 = vmatprep.subr.bf16.mxu1 %v8574_v29  ;;  %v742_v1 = vld [vmem:[#allocation2 + $0x1650] sm:$0xff]  ;;  %v787_v55 = vld [vmem:[#allocation2 + $0x17b8] sm:$0xff] }
 0x35d   :  { %v746_v29 = vld [vmem:[#allocation2 + $0x1670] sm:$0xff] }
 0x35e   :  { %v8627_v17 = vcombine.low %v742_v1, %v746_v29 }
 0x35f   :  { %7246 = vmatpush1.bf16.msra.mxu0 %v8571_v8  ;;  %7410 = vmatpush1.bf16.msra.mxu1 %v8573_v63  ;;  %v8628_v8 = vcombine.high %v742_v1, %v746_v29  ;;  %v8630_v63 = vcombine.high %v743_v2, %v747_v4  ;;  %v791_v1 = vld [vmem:[#allocation2 + $0x17d8] sm:$0xff]  ;;  %v8669_v4 = vcombine.low %v783_v54, %v787_v55 }
 0x360   :  { %7247 = vmatprep.subr.bf16.mxu0 %v8580_v9  ;;  %7411 = vmatprep.subr.bf16.mxu1 %v8582_v12  ;;  %v750_v9 = vld [vmem:[#allocation2 + $0x1690] sm:$0xff]  ;;  %v795_v29 = vld [vmem:[#allocation2 + $0x17f8] sm:$0xff] }
 0x361   :  { %v754_v12 = vld [vmem:[#allocation2 + $0x16b0] sm:$0xff] }
 0x362   :  { %v8635_v27 = vcombine.low %v750_v9, %v754_v12 }
 0x363   :  { %7248 = vmatpush1.bf16.msra.mxu0 %v8579_v19  ;;  %7412 = vmatpush1.bf16.msra.mxu1 %v8581_v22  ;;  %v8636_v19 = vcombine.high %v750_v9, %v754_v12  ;;  %v8638_v22 = vcombine.high %v751_v13, %v755_v15  ;;  %v799_v9 = vld [vmem:[#allocation2 + $0x1818] sm:$0xff]  ;;  %v8677_v15 = vcombine.low %v791_v1, %v795_v29 }
 0x364   :  { %7249 = vmatprep.subr.bf16.mxu0 %v8588_v24  ;;  %7413 = vmatprep.subr.bf16.mxu1 %v8590_v31  ;;  %v758_v24 = vld [vmem:[#allocation2 + $0x16d0] sm:$0xff]  ;;  %v803_v12 = vld [vmem:[#allocation2 + $0x1838] sm:$0xff] }
 0x365   :  { %v762_v31 = vld [vmem:[#allocation2 + $0x16f0] sm:$0xff] }
 0x366   :  { %v8643_v38 = vcombine.low %v758_v24, %v762_v31 }
 0x367   :  { %7250 = vmatpush1.bf16.msra.mxu0 %v8587_v30  ;;  %7414 = vmatpush1.bf16.msra.mxu1 %v8589_v32  ;;  %v8644_v30 = vcombine.high %v758_v24, %v762_v31  ;;  %v8646_v32 = vcombine.high %v759_v26, %v763_v59  ;;  %v807_v24 = vld [vmem:[#allocation2 + $0x1858] sm:$0xff]  ;;  %v8685_v59 = vcombine.low %v799_v9, %v803_v12 }
 0x368   :  { %7251 = vmatprep.subr.bf16.mxu0 %v8596_v33  ;;  %7415 = vmatprep.subr.bf16.mxu1 %v8598_v34  ;;  %v766_v33 = vld [vmem:[#allocation2 + $0x1710] sm:$0xff]  ;;  %v811_v31 = vld [vmem:[#allocation2 + $0x1878] sm:$0xff] }
 0x369   :  { %v770_v34 = vld [vmem:[#allocation2 + $0x1730] sm:$0xff] }
 0x36a   :  { %v8651_v46 = vcombine.low %v766_v33, %v770_v34 }
 0x36b   :  { %7252 = vmatpush1.bf16.msra.mxu0 %v8595_v40  ;;  %7416 = vmatpush1.bf16.msra.mxu1 %v8597_v41  ;;  %v8652_v40 = vcombine.high %v766_v33, %v770_v34  ;;  %v8654_v41 = vcombine.high %v767_v35, %v771_v36  ;;  %v815_v33 = vld [vmem:[#allocation2 + $0x1898] sm:$0xff]  ;;  %v8693_v36 = vcombine.low %v807_v24, %v811_v31 }
 0x36c   :  { %7253 = vmatprep.subr.bf16.mxu0 %v8604_v42  ;;  %7417 = vmatprep.subr.bf16.mxu1 %v8606_v43  ;;  %v774_v42 = vld [vmem:[#allocation2 + $0x1750] sm:$0xff]  ;;  %v819_v34 = vld [vmem:[#allocation2 + $0x18b8] sm:$0xff] }
 0x36d   :  { %v778_v43 = vld [vmem:[#allocation2 + $0x1770] sm:$0xff] }
 0x36e   :  { %v8659_v56 = vcombine.low %v774_v42, %v778_v43 }
 0x36f   :  { %7254 = vmatpush1.bf16.msra.mxu0 %v8603_v49  ;;  %7418 = vmatpush1.bf16.msra.mxu1 %v8605_v50  ;;  %v8660_v49 = vcombine.high %v774_v42, %v778_v43  ;;  %v8662_v50 = vcombine.high %v775_v45, %v779_v3  ;;  %v823_v42 = vld [vmem:[#allocation2 + $0x18d8] sm:$0xff] }
 0x370   :  { %7255 = vmatprep.subr.bf16.mxu0 %v8612_v51  ;;  %7419 = vmatprep.subr.bf16.mxu1 %v8614_v52  ;;  %v782_v51 = vld [vmem:[#allocation2 + $0x1790] sm:$0xff]  ;;  %v827_v43 = vld [vmem:[#allocation2 + $0x18f8] sm:$0xff] }
 0x371   :  { %v786_v52 = vld [vmem:[#allocation2 + $0x17b0] sm:$0xff] }
 0x372   :  { %v8667_v2 = vcombine.low %v782_v51, %v786_v52 }
 0x373   :  { %7256 = vmatpush1.bf16.msra.mxu0 %v8611_v58  ;;  %7420 = vmatpush1.bf16.msra.mxu1 %v8613_v60  ;;  %v8668_v58 = vcombine.high %v782_v51, %v786_v52  ;;  %v8670_v60 = vcombine.high %v783_v54, %v787_v55  ;;  %v835_v51 = vld [vmem:[#allocation2 + $0x1938] sm:$0xff]  ;;  %v8709_v54 = vcombine.low %v823_v42, %v827_v43 }
 0x374   :  { %7257 = vmatprep.subr.bf16.mxu0 %v8620_v62  ;;  %7421 = vmatprep.subr.bf16.mxu1 %v8622_v0  ;;  %v790_v62 = vld [vmem:[#allocation2 + $0x17d0] sm:$0xff] }
 0x375   :  { %v794_v0 = vld [vmem:[#allocation2 + $0x17f0] sm:$0xff] }
 0x376   :  { %v8675_v13 = vcombine.low %v790_v62, %v794_v0 }
 0x377   :  { %7258 = vmatpush1.bf16.msra.mxu0 %v8619_v5  ;;  %7422 = vmatpush1.bf16.msra.mxu1 %v8621_v53  ;;  %v8676_v5 = vcombine.high %v790_v62, %v794_v0  ;;  %v8678_v53 = vcombine.high %v791_v1, %v795_v29 }
 0x378   :  { %7259 = vmatprep.subr.bf16.mxu0 %v8628_v8  ;;  %7423 = vmatprep.subr.bf16.mxu1 %v8630_v63  ;;  %v798_v8 = vld [vmem:[#allocation2 + $0x1810] sm:$0xff] }
 0x379   :  { %v802_v63 = vld [vmem:[#allocation2 + $0x1830] sm:$0xff] }
 0x37a   :  { %v8683_v26 = vcombine.low %v798_v8, %v802_v63 }
 0x37b   :  { %7260 = vmatpush1.bf16.msra.mxu0 %v8627_v17  ;;  %7424 = vmatpush1.bf16.msra.mxu1 %v8629_v18  ;;  %v8684_v17 = vcombine.high %v798_v8, %v802_v63  ;;  %v8686_v18 = vcombine.high %v799_v9, %v803_v12 }
 0x37c   :  { %7261 = vmatprep.subr.bf16.mxu0 %v8636_v19  ;;  %7425 = vmatprep.subr.bf16.mxu1 %v8638_v22  ;;  %v806_v19 = vld [vmem:[#allocation2 + $0x1850] sm:$0xff] }
 0x37d   :  { %v810_v22 = vld [vmem:[#allocation2 + $0x1870] sm:$0xff] }
 0x37e   :  { %v8691_v35 = vcombine.low %v806_v19, %v810_v22 }
 0x37f   :  { %7262 = vmatpush1.bf16.msra.mxu0 %v8635_v27  ;;  %7426 = vmatpush1.bf16.msra.mxu1 %v8637_v28  ;;  %v8692_v27 = vcombine.high %v806_v19, %v810_v22  ;;  %v8694_v28 = vcombine.high %v807_v24, %v811_v31 }
 0x380   :  { %7263 = vmatprep.subr.bf16.mxu0 %v8644_v30  ;;  %7427 = vmatprep.subr.bf16.mxu1 %v8646_v32  ;;  %v814_v30 = vld [vmem:[#allocation2 + $0x1890] sm:$0xff] }
 0x381   :  { %v818_v32 = vld [vmem:[#allocation2 + $0x18b0] sm:$0xff] }
 0x382   :  { %v8699_v45 = vcombine.low %v814_v30, %v818_v32 }
 0x383   :  { %7264 = vmatpush1.bf16.msra.mxu0 %v8643_v38  ;;  %7428 = vmatpush1.bf16.msra.mxu1 %v8645_v39  ;;  %v8700_v38 = vcombine.high %v814_v30, %v818_v32  ;;  %v8702_v39 = vcombine.high %v815_v33, %v819_v34 }
 0x384   :  { %7265 = vmatprep.subr.bf16.mxu0 %v8652_v40  ;;  %7429 = vmatprep.subr.bf16.mxu1 %v8654_v41  ;;  %v822_v40 = vld [vmem:[#allocation2 + $0x18d0] sm:$0xff] }
 0x385   :  { %v826_v41 = vld [vmem:[#allocation2 + $0x18f0] sm:$0xff] }
 0x386   :  { %v8708_v3 = vcombine.high %v822_v40, %v826_v41  ;;  %v8707_v52 = vcombine.low %v822_v40, %v826_v41 }
 0x387   :  { %7266 = vmatpush1.bf16.msra.mxu0 %v8651_v46  ;;  %7430 = vmatpush1.bf16.msra.mxu1 %v8653_v48  ;;  %v8710_v46 = vcombine.high %v823_v42, %v827_v43  ;;  %v830_v48 = vld [vmem:[#allocation2 + $0x1910] sm:$0xff] }
 0x388   :  { %7267 = vmatprep.subr.bf16.mxu0 %v8660_v49  ;;  %7431 = vmatprep.subr.bf16.mxu1 %v8662_v50  ;;  %v834_v49 = vld [vmem:[#allocation2 + $0x1930] sm:$0xff]  ;;  %v831_v50 = vld [vmem:[#allocation2 + $0x1918] sm:$0xff] }
 0x389   :  { %v8716_v55 = vcombine.high %v830_v48, %v834_v49  ;;  %v8715_v62 = vcombine.low %v830_v48, %v834_v49  ;;  %v8717_v0 = vcombine.low %v831_v50, %v835_v51 }
 0x38b   :  { %7268 = vmatpush1.bf16.msra.mxu0 %v8659_v56  ;;  %7432 = vmatpush1.bf16.msra.mxu1 %v8661_v57  ;;  %v838_v56 = vld [vmem:[#allocation2 + $0x1950] sm:$0xff] }
 0x38c   :  { %7269 = vmatprep.subr.bf16.mxu0 %v8668_v58  ;;  %7433 = vmatprep.subr.bf16.mxu1 %v8670_v60  ;;  %v842_v57 = vld [vmem:[#allocation2 + $0x1970] sm:$0xff]  ;;  %v839_v58 = vld [vmem:[#allocation2 + $0x1958] sm:$0xff] }
 0x38d   :  { %v843_v60 = vld [vmem:[#allocation2 + $0x1978] sm:$0xff]  ;;  %v8724_v1 = vcombine.high %v838_v56, %v842_v57  ;;  %v8723_v8 = vcombine.low %v838_v56, %v842_v57 }
 0x38e   :  { %v8726_v29 = vcombine.high %v839_v58, %v843_v60  ;;  %v8725_v63 = vcombine.low %v839_v58, %v843_v60 }
 0x38f   :  { %7270 = vmatpush1.bf16.msra.mxu0 %v8667_v2  ;;  %7434 = vmatpush1.bf16.msra.mxu1 %v8669_v4  ;;  %v846_v2 = vld [vmem:[#allocation2 + $0x1990] sm:$0xff] }
 0x390   :  { %7271 = vmatprep.subr.bf16.mxu0 %v8676_v5  ;;  %7435 = vmatprep.subr.bf16.mxu1 %v8678_v53  ;;  %v850_v4 = vld [vmem:[#allocation2 + $0x19b0] sm:$0xff]  ;;  %v847_v5 = vld [vmem:[#allocation2 + $0x1998] sm:$0xff] }
 0x391   :  { %v851_v53 = vld [vmem:[#allocation2 + $0x19b8] sm:$0xff]  ;;  %v8732_v9 = vcombine.high %v846_v2, %v850_v4  ;;  %v8731_v19 = vcombine.low %v846_v2, %v850_v4 }
 0x392   :  { %v8734_v12 = vcombine.high %v847_v5, %v851_v53  ;;  %v8733_v22 = vcombine.low %v847_v5, %v851_v53 }
 0x393   :  { %7272 = vmatpush1.bf16.msra.mxu0 %v8675_v13  ;;  %7436 = vmatpush1.bf16.msra.mxu1 %v8677_v15  ;;  %v854_v13 = vld [vmem:[#allocation2 + $0x19d0] sm:$0xff] }
 0x394   :  { %7282 = vmatprep.subr.bf16.mxu0 %v8684_v17  ;;  %7446 = vmatprep.subr.bf16.mxu1 %v8686_v18  ;;  %v858_v15 = vld [vmem:[#allocation2 + $0x19f0] sm:$0xff]  ;;  %v855_v17 = vld [vmem:[#allocation2 + $0x19d8] sm:$0xff] }
 0x395   :  { %v859_v18 = vld [vmem:[#allocation2 + $0x19f8] sm:$0xff]  ;;  %v8740_v24 = vcombine.high %v854_v13, %v858_v15  ;;  %v8739_v30 = vcombine.low %v854_v13, %v858_v15 }
 0x396   :  { %7274 = vmatmul.mubr.bf16.vlgmr.msra.gmra.mrb[12].mxu0 %v9120_v23  ;;  %7438 = vmatmul.mubr.bf16.vlgmr.msra.gmra.mrb[12].mxu1 %v9120_v23  ;;  %v8701_v23 = vcombine.low %v815_v33, %v819_v34  ;;  %v8742_v31 = vcombine.high %v855_v17, %v859_v18  ;;  %v8741_v32 = vcombine.low %v855_v17, %v859_v18 }
 0x397   :  { %7283 = vmatpush1.bf16.msra.mxu0 %v8683_v26  ;;  %7447 = vmatpush1.bf16.msra.mxu1 %v8685_v59  ;;  %v862_v26 = vld [vmem:[#allocation2 + $0x1a10] sm:$0xff] }
 0x398   :  { %7284 = vmatprep.subr.bf16.mxu0 %v8692_v27  ;;  %7448 = vmatprep.subr.bf16.mxu1 %v8694_v28  ;;  %v866_v59 = vld [vmem:[#allocation2 + $0x1a30] sm:$0xff]  ;;  %v863_v27 = vld [vmem:[#allocation2 + $0x1a18] sm:$0xff] }
 0x399   :  { %7314 = vmatprep.mubr.bf16.mxu0 %v9141_v47  ;;  %7478 = vmatprep.mubr.bf16.mxu1 %v9141_v47  ;;  %v8718_v47 = vcombine.high %v831_v50, %v835_v51  ;;  %v867_v28 = vld [vmem:[#allocation2 + $0x1a38] sm:$0xff]  ;;  %v8748_v33 = vcombine.high %v862_v26, %v866_v59  ;;  %v8747_v40 = vcombine.low %v862_v26, %v866_v59 }
 0x39a   :  { %v8750_v34 = vcombine.high %v863_v27, %v867_v28  ;;  %v8749_v41 = vcombine.low %v863_v27, %v867_v28 }
 0x39b   :  { %7285 = vmatpush1.bf16.msra.mxu0 %v8691_v35  ;;  %7449 = vmatpush1.bf16.msra.mxu1 %v8693_v36  ;;  %v870_v35 = vld [vmem:[#allocation2 + $0x1a50] sm:$0xff] }
 0x39c   :  { %7286 = vmatprep.subr.bf16.mxu0 %v8700_v38  ;;  %7450 = vmatprep.subr.bf16.mxu1 %v8702_v39  ;;  %v874_v36 = vld [vmem:[#allocation2 + $0x1a70] sm:$0xff]  ;;  %v871_v38 = vld [vmem:[#allocation2 + $0x1a58] sm:$0xff] }
 0x39d   :  { %v875_v39 = vld [vmem:[#allocation2 + $0x1a78] sm:$0xff]  ;;  %v8756_v42 = vcombine.high %v870_v35, %v874_v36  ;;  %v8755_v48 = vcombine.low %v870_v35, %v874_v36 }
 0x39e   :  { %v8758_v43 = vcombine.high %v871_v38, %v875_v39  ;;  %v8757_v49 = vcombine.low %v871_v38, %v875_v39 }
 0x39f   :  { %7287 = vmatpush1.bf16.msra.mxu0 %v8699_v45  ;;  %7451 = vmatpush1.bf16.msra.mxu1 %v8701_v23  ;;  %v878_v45 = vld [vmem:[#allocation2 + $0x1a90] sm:$0xff] }
 0x3a0   :  { %7288 = vmatprep.subr.bf16.mxu0 %v8708_v3  ;;  %7452 = vmatprep.subr.bf16.mxu1 %v8710_v46  ;;  %v882_v23 = vld [vmem:[#allocation2 + $0x1ab0] sm:$0xff]  ;;  %v879_v3 = vld [vmem:[#allocation2 + $0x1a98] sm:$0xff] }
 0x3a1   :  { %v883_v46 = vld [vmem:[#allocation2 + $0x1ab8] sm:$0xff]  ;;  %v8764_v50 = vcombine.high %v878_v45, %v882_v23  ;;  %v8763_v56 = vcombine.low %v878_v45, %v882_v23 }
 0x3a2   :  { %v8766_v51 = vcombine.high %v879_v3, %v883_v46  ;;  %v8765_v57 = vcombine.low %v879_v3, %v883_v46 }
 0x3a3   :  { %7289 = vmatpush1.bf16.msra.mxu0 %v8707_v52  ;;  %7453 = vmatpush1.bf16.msra.mxu1 %v8709_v54  ;;  %v886_v52 = vld [vmem:[#allocation2 + $0x1ad0] sm:$0xff] }
 0x3a4   :  { %7290 = vmatprep.subr.bf16.mxu0 %v8716_v55  ;;  %7454 = vmatprep.subr.bf16.mxu1 %v8718_v47  ;;  %v890_v54 = vld [vmem:[#allocation2 + $0x1af0] sm:$0xff]  ;;  %v887_v55 = vld [vmem:[#allocation2 + $0x1ad8] sm:$0xff] }
 0x3a5   :  { %v891_v47 = vld [vmem:[#allocation2 + $0x1af8] sm:$0xff]  ;;  %v8772_v58 = vcombine.high %v886_v52, %v890_v54  ;;  %v8771_v2 = vcombine.low %v886_v52, %v890_v54 }
 0x3a6   :  { %v8774_v60 = vcombine.high %v887_v55, %v891_v47  ;;  %v8773_v4 = vcombine.low %v887_v55, %v891_v47 }
 0x3a7   :  { %7291 = vmatpush1.bf16.msra.mxu0 %v8715_v62  ;;  %7455 = vmatpush1.bf16.msra.mxu1 %v8717_v0  ;;  %v894_v62 = vld [vmem:[#allocation2 + $0x1b10] sm:$0xff] }
 0x3a8   :  { %7292 = vmatprep.subr.bf16.mxu0 %v8724_v1  ;;  %7456 = vmatprep.subr.bf16.mxu1 %v8726_v29  ;;  %v898_v0 = vld [vmem:[#allocation2 + $0x1b30] sm:$0xff]  ;;  %v895_v1 = vld [vmem:[#allocation2 + $0x1b18] sm:$0xff] }
 0x3a9   :  { %v899_v29 = vld [vmem:[#allocation2 + $0x1b38] sm:$0xff]  ;;  %v8780_v5 = vcombine.high %v894_v62, %v898_v0  ;;  %v8779_v13 = vcombine.low %v894_v62, %v898_v0 }
 0x3aa   :  { %v8782_v53 = vcombine.high %v895_v1, %v899_v29  ;;  %v8781_v15 = vcombine.low %v895_v1, %v899_v29 }
 0x3ab   :  { %7293 = vmatpush1.bf16.msra.mxu0 %v8723_v8  ;;  %7457 = vmatpush1.bf16.msra.mxu1 %v8725_v63  ;;  %v902_v8 = vld [vmem:[#allocation2 + $0x1b50] sm:$0xff] }
 0x3ac   :  { %7294 = vmatprep.subr.bf16.mxu0 %v8732_v9  ;;  %7458 = vmatprep.subr.bf16.mxu1 %v8734_v12  ;;  %v906_v63 = vld [vmem:[#allocation2 + $0x1b70] sm:$0xff]  ;;  %v903_v9 = vld [vmem:[#allocation2 + $0x1b58] sm:$0xff] }
 0x3ad   :  { %v907_v12 = vld [vmem:[#allocation2 + $0x1b78] sm:$0xff]  ;;  %v8788_v17 = vcombine.high %v902_v8, %v906_v63  ;;  %v8787_v26 = vcombine.low %v902_v8, %v906_v63 }
 0x3ae   :  { %v8790_v18 = vcombine.high %v903_v9, %v907_v12  ;;  %v8789_v59 = vcombine.low %v903_v9, %v907_v12  ;;  %v958_v12 = vld [vmem:[#allocation2 + $0x1d10] sm:$0xff] }
 0x3af   :  { %7295 = vmatpush1.bf16.msra.mxu0 %v8731_v19  ;;  %7459 = vmatpush1.bf16.msra.mxu1 %v8733_v22  ;;  %v910_v19 = vld [vmem:[#allocation2 + $0x1b90] sm:$0xff] }
 0x3b0   :  { %7296 = vmatprep.subr.bf16.mxu0 %v8740_v24  ;;  %7460 = vmatprep.subr.bf16.mxu1 %v8742_v31  ;;  %v914_v22 = vld [vmem:[#allocation2 + $0x1bb0] sm:$0xff]  ;;  %v911_v24 = vld [vmem:[#allocation2 + $0x1b98] sm:$0xff] }
 0x3b1   :  { %v915_v31 = vld [vmem:[#allocation2 + $0x1bb8] sm:$0xff]  ;;  %v8796_v27 = vcombine.high %v910_v19, %v914_v22  ;;  %v8795_v35 = vcombine.low %v910_v19, %v914_v22  ;;  %v7536_v19 = vrot.slane %v9176_v6, 2 }
 0x3b2   :  { %v8798_v28 = vcombine.high %v911_v24, %v915_v31  ;;  %v8797_v36 = vcombine.low %v911_v24, %v915_v31  ;;  %v7538_v24 = vrot.slane %v9178_v10, 2  ;;  %v7537_v31 = vrot.slane %v9180_v11, 2 }
 0x3b3   :  { %7297 = vmatpush1.bf16.msra.mxu0 %v8739_v30  ;;  %7461 = vmatpush1.bf16.msra.mxu1 %v8741_v32  ;;  %v918_v30 = vld [vmem:[#allocation2 + $0x1bd0] sm:$0xff] }
 0x3b4   :  { %7298 = vmatprep.subr.bf16.mxu0 %v8748_v33  ;;  %7462 = vmatprep.subr.bf16.mxu1 %v8750_v34  ;;  %v922_v32 = vld [vmem:[#allocation2 + $0x1bf0] sm:$0xff]  ;;  %v919_v33 = vld [vmem:[#allocation2 + $0x1bd8] sm:$0xff] }
 0x3b5   :  { %v923_v34 = vld [vmem:[#allocation2 + $0x1bf8] sm:$0xff]  ;;  %v8804_v38 = vcombine.high %v918_v30, %v922_v32  ;;  %v8803_v45 = vcombine.low %v918_v30, %v922_v32 }
 0x3b6   :  { %v8806_v39 = vcombine.high %v919_v33, %v923_v34  ;;  %v8805_v23 = vcombine.low %v919_v33, %v923_v34  ;;  %v967_v30 = vld [vmem:[#allocation2 + $0x1d58] sm:$0xff] }
 0x3b7   :  { %7299 = vmatpush1.bf16.msra.mxu0 %v8747_v40  ;;  %7463 = vmatpush1.bf16.msra.mxu1 %v8749_v41  ;;  %v926_v40 = vld [vmem:[#allocation2 + $0x1c10] sm:$0xff]  ;;  %v971_v32 = vld [vmem:[#allocation2 + $0x1d78] sm:$0xff] }
 0x3b8   :  { %7300 = vmatprep.subr.bf16.mxu0 %v8756_v42  ;;  %7464 = vmatprep.subr.bf16.mxu1 %v8758_v43  ;;  %v930_v41 = vld [vmem:[#allocation2 + $0x1c30] sm:$0xff]  ;;  %v927_v42 = vld [vmem:[#allocation2 + $0x1c18] sm:$0xff] }
 0x3b9   :  { %v931_v43 = vld [vmem:[#allocation2 + $0x1c38] sm:$0xff]  ;;  %v8812_v3 = vcombine.high %v926_v40, %v930_v41  ;;  %v8811_v52 = vcombine.low %v926_v40, %v930_v41  ;;  %v9232_v40 = vadd.f32 %v7538_v24, %v9178_v10  ;;  %v9235_v41 = vadd.f32 %v7537_v31, %v9180_v11 }
 0x3ba   :  { %v8814_v46 = vcombine.high %v927_v42, %v931_v43  ;;  %v8813_v54 = vcombine.low %v927_v42, %v931_v43  ;;  %v8854_v42 = vcombine.high %v967_v30, %v971_v32  ;;  %v974_v43 = vld [vmem:[#allocation2 + $0x1d90] sm:$0xff] }
 0x3bb   :  { %7301 = vmatpush1.bf16.msra.mxu0 %v8755_v48  ;;  %7465 = vmatpush1.bf16.msra.mxu1 %v8757_v49  ;;  %v934_v48 = vld [vmem:[#allocation2 + $0x1c50] sm:$0xff]  ;;  %v7634_v11 = vrot.slane %v9232_v40, 1 }
 0x3bc   :  { %7302 = vmatprep.subr.bf16.mxu0 %v8764_v50  ;;  %7466 = vmatprep.subr.bf16.mxu1 %v8766_v51  ;;  %v938_v49 = vld [vmem:[#allocation2 + $0x1c70] sm:$0xff]  ;;  %v935_v50 = vld [vmem:[#allocation2 + $0x1c58] sm:$0xff] }
 0x3bd   :  { %v939_v51 = vld [vmem:[#allocation2 + $0x1c78] sm:$0xff]  ;;  %v8820_v55 = vcombine.high %v934_v48, %v938_v49  ;;  %v8819_v62 = vcombine.low %v934_v48, %v938_v49  ;;  %v8853_v49 = vcombine.low %v967_v30, %v971_v32 }
 0x3be   :  { %v8822_v47 = vcombine.high %v935_v50, %v939_v51  ;;  %v8821_v0 = vcombine.low %v935_v50, %v939_v51  ;;  %v7633_v51 = vrot.slane %v9235_v41, 1 }
 0x3bf   :  { %7303 = vmatpush1.bf16.msra.mxu0 %v8763_v56  ;;  %7467 = vmatpush1.bf16.msra.mxu1 %v8765_v57  ;;  %v942_v56 = vld [vmem:[#allocation2 + $0x1c90] sm:$0xff] }
 0x3c0   :  { %7304 = vmatprep.subr.bf16.mxu0 %v8772_v58  ;;  %7468 = vmatprep.subr.bf16.mxu1 %v8774_v60  ;;  %v946_v57 = vld [vmem:[#allocation2 + $0x1cb0] sm:$0xff]  ;;  %v943_v58 = vld [vmem:[#allocation2 + $0x1c98] sm:$0xff] }
 0x3c1   :  { %v947_v60 = vld [vmem:[#allocation2 + $0x1cb8] sm:$0xff]  ;;  %v8828_v1 = vcombine.high %v942_v56, %v946_v57  ;;  %v8827_v8 = vcombine.low %v942_v56, %v946_v57 }
 0x3c2   :  { %v8830_v29 = vcombine.high %v943_v58, %v947_v60 }
 0x3c3   :  { %7305 = vmatpush1.bf16.msra.mxu0 %v8771_v2  ;;  %7469 = vmatpush1.bf16.msra.mxu1 %v8773_v4  ;;  %v950_v2 = vld [vmem:[#allocation2 + $0x1cd0] sm:$0xff] }
 0x3c4   :  { %7306 = vmatprep.subr.bf16.mxu0 %v8780_v5  ;;  %7470 = vmatprep.subr.bf16.mxu1 %v8782_v53  ;;  %v954_v4 = vld [vmem:[#allocation2 + $0x1cf0] sm:$0xff]  ;;  %v951_v5 = vld [vmem:[#allocation2 + $0x1cd8] sm:$0xff] }
 0x3c5   :  { %v955_v53 = vld [vmem:[#allocation2 + $0x1cf8] sm:$0xff]  ;;  %v8836_v63 = vcombine.high %v950_v2, %v954_v4 }
 0x3c6   :  { %v8838_v9 = vcombine.high %v951_v5, %v955_v53  ;;  %v8837_v22 = vcombine.low %v951_v5, %v955_v53 }
 0x3c7   :  { %7307 = vmatpush1.bf16.msra.mxu0 %v8779_v13  ;;  %7471 = vmatpush1.bf16.msra.mxu1 %v8781_v15  ;;  %v962_v13 = vld [vmem:[#allocation2 + $0x1d30] sm:$0xff]  ;;  %v959_v15 = vld [vmem:[#allocation2 + $0x1d18] sm:$0xff] }
 0x3c8   :  { %7308 = vmatprep.subr.bf16.mxu0 %v8788_v17  ;;  %7472 = vmatprep.subr.bf16.mxu1 %v8790_v18  ;;  %v963_v17 = vld [vmem:[#allocation2 + $0x1d38] sm:$0xff]  ;;  %v8835_v18 = vcombine.low %v950_v2, %v954_v4  ;;  %v8843_v33 = vcombine.low %v958_v12, %v962_v13 }
 0x3c9   :  { %v8845_v34 = vcombine.low %v959_v15, %v963_v17 }
 0x3cb   :  { %7309 = vmatpush1.bf16.msra.mxu0 %v8787_v26  ;;  %7473 = vmatpush1.bf16.msra.mxu1 %v8789_v59  ;;  %v8846_v26 = vcombine.high %v959_v15, %v963_v17  ;;  %v966_v59 = vld [vmem:[#allocation2 + $0x1d50] sm:$0xff] }
 0x3cc   :  { %7310 = vmatprep.subr.bf16.mxu0 %v8796_v27  ;;  %7474 = vmatprep.subr.bf16.mxu1 %v8798_v28  ;;  %v970_v27 = vld [vmem:[#allocation2 + $0x1d70] sm:$0xff]  ;;  %v7539_v28 = vrot.slane %v9182_v14, 2 }
 0x3cd   :  { %v8851_v48 = vcombine.low %v966_v59, %v970_v27 }
 0x3cf   :  { %7311 = vmatpush1.bf16.msra.mxu0 %v8795_v35  ;;  %7475 = vmatpush1.bf16.msra.mxu1 %v8797_v36  ;;  %v9069_v35 = vmov 1966171168  }
 0x3d0   :  { %7312 = vmatprep.subr.bf16.mxu0 %v8804_v38  ;;  %7476 = vmatprep.subr.bf16.mxu1 %v8806_v39  ;;  %v7673_v36 = vunpack.c.l.s4 %v9069_v35  ;;  %v8852_v38 = vcombine.high %v966_v59, %v970_v27  ;;  %v9229_v39 = vadd.f32 %v7536_v19, %v9176_v6  ;;  %v995_v27 = vld [vmem:[#allocation2 + $0x1e38] sm:$0xff] }
 0x3d2   :  { %v7674_v6 = vunpack.c.0.s8 %v7673_v36  ;;  %v7632_v50 = vrot.slane %v9229_v39, 1 }
 0x3d3   :  { %7313 = vmatpush1.bf16.msra.mxu0 %v8803_v45  ;;  %7477 = vmatpush1.bf16.msra.mxu1 %v8805_v23  ;;  %v978_v45 = vld [vmem:[#allocation2 + $0x1db0] sm:$0xff]  ;;  %v9238_v23 = vadd.f32 %v7539_v28, %v9182_v14 }
 0x3d4   :  { %7323 = vmatprep.subr.bf16.mxu0 %v8812_v3  ;;  %7487 = vmatprep.subr.bf16.mxu1 %v8814_v46  ;;  %v975_v3 = vld [vmem:[#allocation2 + $0x1d98] sm:$0xff]  ;;  %v8860_v10 = vcombine.high %v974_v43, %v978_v45  ;;  %v982_v14 = vld [vmem:[#allocation2 + $0x1dd0] sm:$0xff]  ;;  %v8859_v4 = vcombine.low %v974_v43, %v978_v45 }
 0x3d5   :  { %v979_v46 = vld [vmem:[#allocation2 + $0x1db8] sm:$0xff] }
 0x3d6   :  { %7315 = vmatmul.mubr.bf16.vlgmr.msra.gmra.mrb[12].mxu0 %v9137_v37  ;;  %7479 = vmatmul.mubr.bf16.vlgmr.msra.gmra.mrb[12].mxu1 %v9137_v37  ;;  %v8829_v37 = vcombine.low %v943_v58, %v947_v60  ;;  %v983_v60 = vld [vmem:[#allocation2 + $0x1dd8] sm:$0xff]  ;;  %v8861_v5 = vcombine.low %v975_v3, %v979_v46 }
 0x3d7   :  { %7324 = vmatpush1.bf16.msra.mxu0 %v8811_v52  ;;  %7488 = vmatpush1.bf16.msra.mxu1 %v8813_v54  ;;  %v8862_v54 = vcombine.high %v975_v3, %v979_v46  ;;  %v998_v46 = vld [vmem:[#allocation2 + $0x1e50] sm:$0xff] }
 0x3d8   :  { %7325 = vmatprep.subr.bf16.mxu0 %v8820_v55  ;;  %7489 = vmatprep.subr.bf16.mxu1 %v8822_v47  ;;  %v986_v55 = vld [vmem:[#allocation2 + $0x1df0] sm:$0xff]  ;;  %v7635_v47 = vrot.slane %v9238_v23, 1 }
 0x3d9   :  { %7355 = vmatprep.mubr.bf16.mxu0 %v9154_v7  ;;  %7519 = vmatprep.mubr.bf16.mxu1 %v9154_v7  ;;  %v8844_v7 = vcombine.high %v958_v12, %v962_v13  ;;  %v8868_v12 = vcombine.high %v982_v14, %v986_v55 }
 0x3db   :  { %7326 = vmatpush1.bf16.msra.mxu0 %v8819_v62  ;;  %7490 = vmatpush1.bf16.msra.mxu1 %v8821_v0  ;;  %v987_v62 = vld [vmem:[#allocation2 + $0x1df8] sm:$0xff] }
 0x3dc   :  { %7327 = vmatprep.subr.bf16.mxu0 %v8828_v1  ;;  %7491 = vmatprep.subr.bf16.mxu1 %v8830_v29  ;;  %v8870_v19 = vcombine.high %v983_v60, %v987_v62  ;;  %v8869_v59 = vcombine.low %v983_v60, %v987_v62  ;;  %v1011_v60 = vld [vmem:[#allocation2 + $0x1eb8] sm:$0xff] }
 0x3df   :  { %7328 = vmatpush1.bf16.msra.mxu0 %v8827_v8  ;;  %7492 = vmatpush1.bf16.msra.mxu1 %v8829_v37  ;;  %v9245_v8 = vsub.s32 %v7674_v6, %v9097_v44  ;;  %v991_v44 = vld [vmem:[#allocation2 + $0x1e18] sm:$0xff] }
 0x3e0   :  { %7329 = vmatprep.subr.bf16.mxu0 %v8836_v63  ;;  %7493 = vmatprep.subr.bf16.mxu1 %v8838_v9  ;;  %v8878_v3 = vcombine.high %v991_v44, %v995_v27 }
 0x3e3   :  { %7330 = vmatpush1.bf16.msra.mxu0 %v8835_v18  ;;  %7494 = vmatpush1.bf16.msra.mxu1 %v8837_v22  ;;  %v8867_v18 = vcombine.low %v982_v14, %v986_v55  ;;  %v990_v22 = vld [vmem:[#allocation2 + $0x1e10] sm:$0xff] }
 0x3e4   :  { %7331 = vmatprep.subr.bf16.mxu0 %v8844_v7  ;;  %7495 = vmatprep.subr.bf16.mxu1 %v8846_v26  ;;  %v994_v7 = vld [vmem:[#allocation2 + $0x1e30] sm:$0xff] }
 0x3e5   :  { %v1006_v55 = vld [vmem:[#allocation2 + $0x1e90] sm:$0xff] }
 0x3e7   :  { %7332 = vmatpush1.bf16.msra.mxu0 %v8843_v33  ;;  %7496 = vmatpush1.bf16.msra.mxu1 %v8845_v34 }
 0x3e8   :  { %7333 = vmatprep.subr.bf16.mxu0 %v8852_v38  ;;  %7497 = vmatprep.subr.bf16.mxu1 %v8854_v42  ;;  %v8876_v38 = vcombine.high %v990_v22, %v994_v7 }
 0x3e9   :  { %v7029_v52 = vpop.f32.mrb[8].mxu0  ;;  %v7193_v57 = vpop.f32.mrb[8].mxu1 }
 0x3ea   :  { %v7568_v56 = vrot.slane %v7029_v52, 2  ;;  %v7031_v58 = vpop.f32.mrb[9].mxu0  ;;  %v7570_v0 = vrot.slane %v7193_v57, 2  ;;  %v7195_v29 = vpop.f32.mrb[9].mxu1 }
 0x3eb   :  { %v7569_v1 = vrot.slane %v7031_v58, 2  ;;  %v7033_v2 = vpop.f32.mrb[10].mxu0  ;;  %7334 = vmatpush1.bf16.msra.mxu0 %v8851_v48  ;;  %v7571_v37 = vrot.slane %v7195_v29, 2  ;;  %v7197_v63 = vpop.f32.mrb[10].mxu1  ;;  %7498 = vmatpush1.bf16.msra.mxu1 %v8853_v49  ;;  %v1002_v48 = vld [vmem:[#allocation2 + $0x1e70] sm:$0xff] }
 0x3ec   :  { %v7584_v53 = vadd.f32 %v7568_v56, %v7029_v52  ;;  %v7034_v9 = vpop.f32.mrb[11].mxu0  ;;  %7335 = vmatprep.subr.bf16.mxu0 %v8860_v10  ;;  %v7586_v13 = vadd.f32 %v7570_v0, %v7193_v57  ;;  %v7198_v17 = vpop.f32.mrb[11].mxu1  ;;  %7499 = vmatprep.subr.bf16.mxu1 %v8862_v54  ;;  %v999_v10 = vld [vmem:[#allocation2 + $0x1e58] sm:$0xff]  ;;  %v8877_v52 = vcombine.low %v991_v44, %v995_v27 }
 0x3ed   :  { %v7585_v15 = vadd.f32 %v7569_v1, %v7031_v58  ;;  %v7587_v26 = vadd.f32 %v7571_v37, %v7195_v29  ;;  %v8884_v54 = vcombine.high %v998_v46, %v1002_v48  ;;  %v1007_v58 = vld [vmem:[#allocation2 + $0x1e98] sm:$0xff]  ;;  %v8883_v62 = vcombine.low %v998_v46, %v1002_v48  ;;  %v1026_v17 = vld [vmem:[#allocation2 + $0x1f30] sm:$0xff] }
 0x3ee   :  { %v7600_v24 = vrot.slane %v7584_v53, 1  ;;  %v7648_v31 = vadd.f32 %v7632_v50, %v7584_v53  ;;  %v7602_v28 = vrot.slane %v7586_v13, 1  ;;  %v7650_v30 = vadd.f32 %v7634_v11, %v7586_v13  ;;  %v1003_v50 = vld [vmem:[#allocation2 + $0x1e78] sm:$0xff]  ;;  %v1046_v46 = vld [vmem:[#allocation2 + $0x1fd0] sm:$0xff] }
 0x3ef   :  { %v7601_v32 = vrot.slane %v7585_v15, 1  ;;  %v7649_v33 = vadd.f32 %v7633_v51, %v7585_v15  ;;  %7336 = vmatpush1.bf16.msra.mxu0 %v8859_v4  ;;  %v7603_v35 = vrot.slane %v7587_v26, 1  ;;  %v7651_v36 = vadd.f32 %v7635_v47, %v7587_v26  ;;  %7500 = vmatpush1.bf16.msra.mxu1 %v8861_v5  ;;  %v1010_v47 = vld [vmem:[#allocation2 + $0x1eb0] sm:$0xff]  ;;  %v1015_v53 = vld [vmem:[#allocation2 + $0x1ed8] sm:$0xff] }
 0x3f0   :  { %v7616_v34 = vsub.f32 %v9229_v39, %v7600_v24  ;;  %7337 = vmatprep.subr.bf16.mxu0 %v8868_v12  ;;  %v7618_v42 = vsub.f32 %v9232_v40, %v7602_v28  ;;  %7501 = vmatprep.subr.bf16.mxu1 %v8870_v19  ;;  %v8875_v51 = vcombine.low %v990_v22, %v994_v7  ;;  %v1014_v4 = vld [vmem:[#allocation2 + $0x1ed0] sm:$0xff]  ;;  %v1019_v37 = vld [vmem:[#allocation2 + $0x1ef8] sm:$0xff] }
 0x3f1   :  { %v7617_v43 = vsub.f32 %v9235_v41, %v7601_v32  ;;  %v7727_v45 = vcombine.low %v7648_v31, %v7649_v33  ;;  %v7619_v6 = vsub.f32 %v9238_v23, %v7603_v35  ;;  %v7728_v49 = vcombine.low %v7650_v30, %v7651_v36  ;;  %v1018_v5 = vld [vmem:[#allocation2 + $0x1ef0] sm:$0xff]  ;;  %v1027_v19 = vld [vmem:[#allocation2 + $0x1f38] sm:$0xff] }
 0x3f2   :  { %v8886_v23 = vcombine.high %v999_v10, %v1003_v50  ;;  %v8885_v1 = vcombine.low %v999_v10, %v1003_v50  ;;  %v8892_v29 = vcombine.high %v1006_v55, %v1010_v47  ;;  %v8894_v2 = vcombine.high %v1007_v58, %v1011_v60  ;;  %v1022_v15 = vld [vmem:[#allocation2 + $0x1f10] sm:$0xff]  ;;  %v1031_v44 = vld [vmem:[#allocation2 + $0x1f58] sm:$0xff] }
 0x3f3   :  { %v7668_v39 = vcombine.low %v7616_v34, %v7617_v43  ;;  %v9252_v11 = vrot.slane %v7727_v45, %v9245_v8  ;;  %7338 = vmatpush1.bf16.msra.mxu0 %v8867_v18  ;;  %v7669_v40 = vcombine.low %v7618_v42, %v7619_v6  ;;  %v9255_v41 = vrot.slane %v7728_v49, %v9245_v8  ;;  %v1023_v18 = vld [vmem:[#allocation2 + $0x1f18] sm:$0xff]  ;;  %v1030_v26 = vld [vmem:[#allocation2 + $0x1f50] sm:$0xff] }
 0x3f4   :  { %7502 = vmatpush1.bf16.msra.mxu1 %v8869_v59  ;;  %7339 = vmatprep.subr.bf16.mxu0 %v8876_v38  ;;  %v8891_v63 = vcombine.low %v1006_v55, %v1010_v47  ;;  %v8893_v9 = vcombine.low %v1007_v58, %v1011_v60  ;;  %v8900_v12 = vcombine.high %v1014_v4, %v1018_v5  ;;  %v1034_v59 = vld [vmem:[#allocation2 + $0x1f70] sm:$0xff]  ;;  %v1035_v27 = vld [vmem:[#allocation2 + $0x1f78] sm:$0xff]  ;;  %v7541_v55 = vrot.slane %v9204_v21, 2 }
 0x3f5   :  { %v9258_v14 = vrot.slane %v7668_v39, %v9245_v8  ;;  %7503 = vmatprep.subr.bf16.mxu1 %v8878_v3  ;;  %v9261_v56 = vrot.slane %v7669_v40, %v9245_v8  ;;  %v7759_v57 = vcombine.low %v9252_v11, %v9255_v41  ;;  %v8902_v13 = vcombine.high %v1015_v53, %v1019_v37  ;;  %v1038_v34 = vld [vmem:[#allocation2 + $0x1f90] sm:$0xff]  ;;  %v1039_v36 = vld [vmem:[#allocation2 + $0x1f98] sm:$0xff] }
 0x3f6   :  { %v8899_v22 = vcombine.low %v1014_v4, %v1018_v5  ;;  %v8901_v7 = vcombine.low %v1015_v53, %v1019_v37  ;;  %v8908_v24 = vcombine.high %v1022_v15, %v1026_v17  ;;  %v8910_v31 = vcombine.high %v1023_v18, %v1027_v19  ;;  %v1042_v35 = vld [vmem:[#allocation2 + $0x1fb0] sm:$0xff]  ;;  %v1043_v38 = vld [vmem:[#allocation2 + $0x1fb8] sm:$0xff] }
 0x3f7   :  { %7340 = vmatpush1.bf16.msra.mxu0 %v8875_v51  ;;  %v7700_v0 = vcombine.low %v9258_v14, %v9261_v56  ;;  %v8907_v28 = vcombine.low %v1022_v15, %v1026_v17  ;;  %v8909_v30 = vcombine.low %v1023_v18, %v1027_v19  ;;  %v8916_v32 = vcombine.high %v1030_v26, %v1034_v59  ;;  %v1050_v48 = vld [vmem:[#allocation2 + $0x1ff0] sm:$0xff]  ;;  %v1047_v6 = vld [vmem:[#allocation2 + $0x1fd8] sm:$0xff] }
 0x3f8   :  { %7504 = vmatpush1.bf16.msra.mxu1 %v8877_v52  ;;  %7341 = vmatprep.subr.bf16.mxu0 %v8884_v54  ;;  %v8918_v33 = vcombine.high %v1031_v44, %v1035_v27  ;;  %v8915_v42 = vcombine.low %v1030_v26, %v1034_v59  ;;  %v8917_v43 = vcombine.low %v1031_v44, %v1035_v27  ;;  %v1051_v49 = vld [vmem:[#allocation2 + $0x1ff8] sm:$0xff]  ;;  %v7540_v54 = vrot.slane %v9200_v16, 2 }
 0x3f9   :  { %7505 = vmatprep.subr.bf16.mxu1 %v8886_v23  ;;  %v8924_v45 = vcombine.high %v1038_v34, %v1042_v35  ;;  %v8926_v3 = vcombine.high %v1039_v36, %v1043_v38  ;;  %v8923_v10 = vcombine.low %v1038_v34, %v1042_v35  ;;  %v8925_v50 = vcombine.low %v1039_v36, %v1043_v38 }
 0x3fa   :  { %v8932_v39 = vcombine.high %v1046_v46, %v1050_v48  ;;  %v8934_v51 = vcombine.high %v1047_v6, %v1051_v49  ;;  %v8931_v52 = vcombine.low %v1046_v46, %v1050_v48  ;;  %v8933_v40 = vcombine.low %v1047_v6, %v1051_v49 }
 0x3fb   :  { %7342 = vmatpush1.bf16.msra.mxu0 %v8883_v62  ;;  %v7542_v23 = vrot.slane %v9202_v20, 2  ;;  %v7543_v47 = vrot.slane %v9206_v25, 2  ;;  %v7556_v58 = vadd.f32 %v7540_v54, %v9200_v16  ;;  %v7557_v62 = vadd.f32 %v7541_v55, %v9204_v21 }
 0x3fc   :  { %7506 = vmatpush1.bf16.msra.mxu1 %v8885_v1  ;;  %7343 = vmatprep.subr.bf16.mxu0 %v8892_v29  ;;  %v7767_v6 = vrot.slane %v7759_v57, %v9245_v8 }
 0x3fd   :  { %7507 = vmatprep.subr.bf16.mxu1 %v8894_v2  ;;  %v7558_v60 = vadd.f32 %v7542_v23, %v9202_v20  ;;  %v7559_v29 = vadd.f32 %v7543_v47, %v9206_v25  ;;  %v7637_v18 = vrot.slane %v7557_v62, 1 }
 0x3ff   :  { %7344 = vmatpush1.bf16.msra.mxu0 %v8891_v63  ;;  %v7638_v16 = vrot.slane %v7558_v60, 1 }
 0x400   :  { %7508 = vmatpush1.bf16.msra.mxu1 %v8893_v9  ;;  %7345 = vmatprep.subr.bf16.mxu0 %v8900_v12  ;;  %v7636_v9 = vrot.slane %v7556_v58, 1 }
 0x401   :  { %7509 = vmatprep.subr.bf16.mxu1 %v8902_v13 }
 0x403   :  { %7346 = vmatpush1.bf16.msra.mxu0 %v8899_v22  ;;  %v7639_v22 = vrot.slane %v7559_v29, 1 }
 0x404   :  { %7510 = vmatpush1.bf16.msra.mxu1 %v8901_v7  ;;  %7347 = vmatprep.subr.bf16.mxu0 %v8908_v24 }
 0x405   :  { %7511 = vmatprep.subr.bf16.mxu1 %v8910_v31 }
 0x407   :  { %7348 = vmatpush1.bf16.msra.mxu0 %v8907_v28 }
 0x408   :  { %7512 = vmatpush1.bf16.msra.mxu1 %v8909_v30  ;;  %7349 = vmatprep.subr.bf16.mxu0 %v8916_v32 }
 0x409   :  { %7513 = vmatprep.subr.bf16.mxu1 %v8918_v33 }
 0x40b   :  { %7350 = vmatpush1.bf16.msra.mxu0 %v8915_v42 }
 0x40c   :  { %7514 = vmatpush1.bf16.msra.mxu1 %v8917_v43  ;;  %7351 = vmatprep.subr.bf16.mxu0 %v8924_v45 }
 0x40d   :  { %7515 = vmatprep.subr.bf16.mxu1 %v8926_v3 }
 0x40f   :  { %7352 = vmatpush1.bf16.msra.mxu0 %v8923_v10 }
 0x410   :  { %7516 = vmatpush1.bf16.msra.mxu1 %v8925_v50  ;;  %7353 = vmatprep.subr.bf16.mxu0 %v8932_v39  ;;  %v7708_v50 = vrot.slane %v7700_v0, %v9245_v8 }
 0x411   :  { %7517 = vmatprep.subr.bf16.mxu1 %v8934_v51 }
 0x413   :  { %7354 = vmatpush1.bf16.msra.mxu0 %v8931_v52 }
 0x414   :  { %7518 = vmatpush1.bf16.msra.mxu1 %v8933_v40 }
 0x416   :  { %7356 = vmatmul.mubr.bf16.vlgmr.msra.gmra.mrb[12].mxu0 %v9150_v61 }
 0x417   :  { %7520 = vmatmul.mubr.bf16.vlgmr.msra.gmra.mrb[12].mxu1 %v9150_v61 }
 0x4e9   :  { %v7357_v1 = vpop.f32.mrb[12].mxu0 }
 0x4ea   :  { %v7572_v2 = vrot.slane %v7357_v1, 2  ;;  %v7521_v4 = vpop.f32.mrb[12].mxu1  ;;  %v7359_v61 = vpop.f32.mrb[13].mxu0 }
 0x4eb   :  { %v7574_v5 = vrot.slane %v7521_v4, 2  ;;  %v7573_v53 = vrot.slane %v7359_v61, 2  ;;  %v7523_v37 = vpop.f32.mrb[13].mxu1  ;;  %v7361_v63 = vpop.f32.mrb[14].mxu0 }
 0x4ec   :  { %v7588_v12 = vadd.f32 %v7572_v2, %v7357_v1  ;;  %v7575_v13 = vrot.slane %v7523_v37, 2  ;;  %v7525_v15 = vpop.f32.mrb[14].mxu1  ;;  %v7362_v17 = vpop.f32.mrb[15].mxu0 }
 0x4ed   :  { %v7590_v20 = vadd.f32 %v7574_v5, %v7521_v4  ;;  %v7589_v19 = vadd.f32 %v7573_v53, %v7359_v61  ;;  %v7526_v21 = vpop.f32.mrb[15].mxu1 }
 0x4ee   :  { %v7604_v7 = vrot.slane %v7588_v12, 1  ;;  %v7652_v25 = vadd.f32 %v7636_v9, %v7588_v12  ;;  %v7591_v24 = vadd.f32 %v7575_v13, %v7523_v37 }
 0x4ef   :  { %v7606_v31 = vrot.slane %v7590_v20, 1  ;;  %v7654_v26 = vadd.f32 %v7638_v16, %v7590_v20  ;;  %v7605_v59 = vrot.slane %v7589_v19, 1  ;;  %v7653_v44 = vadd.f32 %v7637_v18, %v7589_v19 }
 0x4f0   :  { %v7620_v27 = vsub.f32 %v7556_v58, %v7604_v7  ;;  %v7607_v28 = vrot.slane %v7591_v24, 1  ;;  %v7655_v30 = vadd.f32 %v7639_v22, %v7591_v24 }
 0x4f1   :  { %v7622_v32 = vsub.f32 %v7558_v60, %v7606_v31  ;;  %v7621_v33 = vsub.f32 %v7557_v62, %v7605_v59  ;;  %v7729_v34 = vcombine.low %v7652_v25, %v7653_v44 }
 0x4f2   :  { %v7623_v35 = vsub.f32 %v7559_v29, %v7607_v28  ;;  %v7730_v36 = vcombine.low %v7654_v26, %v7655_v30 }
 0x4f3   :  { %v7670_v38 = vcombine.low %v7620_v27, %v7621_v33  ;;  %v7751_v42 = vrot.slane %v7729_v34, %v9245_v8 }
 0x4f4   :  { %v7671_v43 = vcombine.low %v7622_v32, %v7623_v35  ;;  %v7758_v45 = vrot.slane %v7730_v36, %v9245_v8 }
 0x4f5   :  { %v7692_v3 = vrot.slane %v7670_v38, %v9245_v8 }
 0x4f6   :  { %v7699_v46 = vrot.slane %v7671_v43, %v9245_v8  ;;  %v7760_v48 = vcombine.low %v7751_v42, %v7758_v45 }
 0x4f8   :  { %v7701_v49 = vcombine.low %v7692_v3, %v7699_v46  ;;  %v7774_v10 = vrot.slane %v7760_v48, %v9245_v8 }
 0x4fa   :  { %v7715_v39 = vrot.slane %v7701_v49, %v9245_v8  ;;  %v7775_v51 = vcombine.low %v7767_v6, %v7774_v10 }
 0x4fc   :  { %v7716_v52 = vcombine.low %v7708_v50, %v7715_v39  ;;  %8935 = vst [vmem:[%s9299_s2 + $0x1] ss:$2 sm:$0xff] %v7775_v51 }
 0x4fe   :  { %7718 = vst [vmem:[%s9299_s2] ss:$2 sm:$0xff] %v7716_v52 }
 0x4ff   :  { %7910 = vsyncpa [#allocation3], 1 }

</bundles_post_ra>
